<compile_context>
chip_gen: v5e
topology: v5e:2x2
jax: 0.10.0
libtpu: 0.0.40
codegen_flags: <defaults>
</compile_context>

<pallas_src>
import functools
import math

import numpy as np

import jax
import jax.numpy as jnp
from jax.experimental import pallas as pl
from jax.experimental.pallas import tpu as pltpu


# ----------------------------------------------------------------------------
# In-kernel building blocks.  All activations are (C, B*H*W) f32, channels on
# sublanes, flattened (batch, y, x) on lanes.
# ----------------------------------------------------------------------------
def _conv3x3_lanes(x, w, b, mask, W):
    """3x3 conv, padding=1, stride=1, as 9 lane-rolled+masked matmuls.

    x    : (Cin, P) activation, P = B*H*W.
    w    : (9*Cout, Cin) pre-packed weight; row block k = (dy+1)*3 + (dx+1).
    b    : (Cout, 1) bias.
    mask : (9, P) {0,1} border-validity masks (host precomputed).  Every tap
           whose source pixel lies outside its own image is masked, so the
           wrap-around / cross-image lanes a roll drags in contribute zero.
    """
    cin, P = x.shape
    cout = b.shape[0]
    acc = jnp.zeros((cout, P), jnp.float32)
    k = 0
    for dy in (-1, 0, 1):
        for dx in (-1, 0, 1):
            if dy == 0 and dx == 0:
                xs = x                                  # center tap: no shift/mask
            else:
                off = dy * W + dx
                # XLU lane rotation (separate bundle slot from VPU/MXU); avoids
                # materialising a padded copy + unaligned slices.
                xs = pltpu.roll(x, shift=(-off) % P, axis=1) * mask[k:k + 1, :]
            acc = acc + jnp.dot(w[k * cout:(k + 1) * cout, :], xs,
                                preferred_element_type=jnp.float32)
            k += 1
    return acc + b


def _deconv2x2_lanes(x, w, b, up):
    """ConvTranspose2d(kernel=2, stride=2) + ReLU.

    x  : (Cin, P_in)
    w  : (4*Cout, Cin), row block k = ky*2 + kx holds w_t[ci, co, ky, kx].
    b  : (Cout, 1)
    up : (4*P_in, P_out) stacked per-tap, parity-folded, batch-block-diagonal
         0/1 scatter matrices (host precomputed).
    """
    cout = b.shape[0]
    p_in = x.shape[1]
    p_out = up.shape[1]
    acc = jnp.zeros((cout, p_out), jnp.float32)
    for k in range(4):
        t = jnp.dot(w[k * cout:(k + 1) * cout, :], x,
                    preferred_element_type=jnp.float32)          # (Cout, P_in)
        acc = acc + jnp.dot(t, up[k * p_in:(k + 1) * p_in, :],
                            preferred_element_type=jnp.float32)  # (Cout, P_out)
    return jnp.maximum(acc + b, 0.0)


def _mid_linear_lanes(x, wref, bias, C, BS):
    """torch Linear(C*S, C*S) on the NCHW-flattened bottleneck, in (C, B*S) layout.

    wref : VMEM ref (C*C*B*S, B*S); for output channel co the row block
           [co*C*BS : (co+1)*C*BS] is the batch-block-diagonal weight for all
           input channels stacked (rows ordered (ci, b, si), cols (b, so)).
    bias : (C, B*S) = mid bias reshaped to (C, S) and tiled over batch.
    """
    CBS = C * BS
    if C > 1:
        # Lane-concat of the C rows (each BS lanes, 128-aligned): cheap relayout.
        xflat = jnp.concatenate([x[ci:ci + 1, :] for ci in range(C)], axis=1)
    else:
        xflat = x
    rows = []
    for co in range(C):
        rows.append(bias[co:co + 1, :] +
                    jnp.dot(xflat, wref[co * CBS:(co + 1) * CBS, :],
                            preferred_element_type=jnp.float32))
    return jnp.concatenate(rows, axis=0) if C > 1 else rows[0]


# ----------------------------------------------------------------------------
# Fused whole-forward kernel (flag='G1', mode=2, residual=True).
# ----------------------------------------------------------------------------
def make_generator_kernel(plan):
    def kernel(*refs):
        *in_refs, o_ref = refs
        it = iter(in_refs)
        load = lambda: next(it)[...]
        relu = lambda t: jnp.maximum(t, 0.0)

        x = load()                                          # (C0, B*H0*W0)

        # ---------------- encoder ----------------
        skips = []
        for blk in plan["encoder"]:
            W = blk["W"]
            mask = load()
            w1, b1 = load(), load()
            w2, b2 = load(), load()
            res = x
            x = relu(_conv3x3_lanes(x, w1, b1, mask, W)) + res
            res = x
            x = relu(_conv3x3_lanes(x, w2, b2, mask, W)) + res
            if not blk["last"]:
                w3, b3, sub = load(), load(), load()
                y = _conv3x3_lanes(x, w3, b3, mask, W)
                # stride-2 grid pick via one block-diagonal 0/1 matmul
                x = relu(jnp.dot(y, sub, preferred_element_type=jnp.float32))
            skips.append(x)

        # ---------------- mid Linear (flag='G1') ----------------
        wm_ref = next(it)                 # kept as a ref; sliced block-by-block
        bm = load()
        x = _mid_linear_lanes(x, wm_ref, bm, plan["mid_C"], plan["mid_BS"])

        # ---------------- decoder (already reversed) ----------------
        for blk, sx in zip(plan["decoder"], skips[::-1]):
            W = blk["W"]
            x = x + sx
            mask = load()
            w1, b1 = load(), load()
            w2, b2 = load(), load()
            res = x
            x = relu(_conv3x3_lanes(x, w1, b1, mask, W)) + res
            res = x
            x = relu(_conv3x3_lanes(x, w2, b2, mask, W)) + res
            if not blk["last"]:
                wd, bd, up = load(), load(), load()
                x = _deconv2x2_lanes(x, wd, bd, up)

        # ---------------- final 1x1 conv ----------------
        wf, bf = load(), load()
        o_ref[...] = jnp.dot(wf, x, preferred_element_type=jnp.float32) + bf

        remaining = sum(1 for _ in it)
        if remaining:
            raise ValueError(f"{remaining} unconsumed kernel inputs")

    return kernel


# ----------------------------------------------------------------------------
# Deterministic parameter construction (mirrors Generator.__init__ shapes).
# ----------------------------------------------------------------------------
def _uniform(key, shape, bound):
    return jax.random.uniform(key, shape, jnp.float32, -bound, bound)


def _init_conv(key, cout, cin, k):
    k1, k2 = jax.random.split(key)
    bound = 1.0 / math.sqrt(cin * k * k)
    return _uniform(k1, (cout, cin, k, k), bound), _uniform(k2, (cout,), bound)


def _init_deconv(key, cin, cout, k):
    k1, k2 = jax.random.split(key)
    bound = 1.0 / math.sqrt(cout * k * k)
    return _uniform(k1, (cin, cout, k, k), bound), _uniform(k2, (cout,), bound)


def build_generator_params(key, N=2, image_size=(3, 16, 16), linear_scaling=1):
    C0, H0, W0 = image_size
    keys = iter(jax.random.split(key, 8 * N + 8))
    params = {"encoder": [], "decoder": []}
    params["final"] = _init_conv(next(keys), 3, C0, 1)       # Conv2d(C0, 3, 1x1)

    c, h, w = C0, H0, W0
    dec = []
    for i in range(N):
        last = (i == N - 1)
        blk = {"last": last, "C": c, "H": h, "W": w}
        blk["w1"], blk["b1"] = _init_conv(next(keys), c, c, 3)
        blk["w2"], blk["b2"] = _init_conv(next(keys), c, c, 3)
        if not last:
            blk["w3"], blk["b3"] = _init_conv(next(keys), c + linear_scaling, c, 3)
        params["encoder"].append(blk)

        if not last:
            c_n = c + linear_scaling
            h_n = (h - 1) // 2 + 1
            w_n = (w - 1) // 2 + 1
        else:
            c_n, h_n, w_n = c, h, w

        dblk = {"last": last, "C": c_n, "H": h_n, "W": w_n}
        dblk["w1"], dblk["b1"] = _init_conv(next(keys), c_n, c_n, 3)
        dblk["w2"], dblk["b2"] = _init_conv(next(keys), c_n, c_n, 3)
        if not last:
            dblk["wd"], dblk["bd"] = _init_deconv(next(keys), c_n,
                                                  c_n - linear_scaling, 2)
        dec.append(dblk)
        c, h, w = c_n, h_n, w_n

    size = c * h * w
    kw_, kb_ = jax.random.split(next(keys))
    bound = 1.0 / math.sqrt(size)
    params["mid_w"] = _uniform(kw_, (size, size), bound)     # torch Linear (out, in)
    params["mid_b"] = _uniform(kb_, (size,), bound)
    params["mid_shape"] = (c, h, w)
    params["decoder"] = dec[::-1]                            # decoder.reverse()
    return params


# ----------------------------------------------------------------------------
# One-time packing of torch-layout params into the fused kernel's layouts.
# ----------------------------------------------------------------------------
def pack_generator_params(params, batch):
    flat = []
    flops = 0

    def conv_w(w):
        co, ci = w.shape[0], w.shape[1]
        return jnp.transpose(w, (2, 3, 0, 1)).reshape(9 * co, ci).astype(jnp.float32)

    def deconv_w(w):
        ci, co = w.shape[0], w.shape[1]
        return jnp.transpose(w, (2, 3, 1, 0)).reshape(4 * co, ci).astype(jnp.float32)

    def bias_col(b):
        return b.reshape(-1, 1).astype(jnp.float32)

    def conv_mask(H, W):
        P = batch * H * W
        p = np.arange(P)
        xx, yy = p % W, (p // W) % H
        m = np.zeros((9, P), np.float32)
        k = 0
        for dy in (-1, 0, 1):
            for dx in (-1, 0, 1):
                m[k] = ((xx + dx >= 0) & (xx + dx < W) &
                        (yy + dy >= 0) & (yy + dy < H)).astype(np.float32)
                k += 1
        return jnp.asarray(m)

    def sub_matrix_bd(H, W):
        """Batch-block-diagonal stride-2 subsample selector, (B*H*W, B*Ho*Wo)."""
        Ho, Wo = (H - 1) // 2 + 1, (W - 1) // 2 + 1
        M = np.zeros((batch * H * W, batch * Ho * Wo), np.float32)
        for bb in range(batch):
            for yo in range(Ho):
                for xo in range(Wo):
                    M[bb * H * W + (2 * yo) * W + 2 * xo,
                      bb * Ho * Wo + yo * Wo + xo] = 1.0
        return jnp.asarray(M)

    def up_matrix_bd(Hi, Wi):
        """Per-tap, parity-folded, batch-block-diagonal 2x upsample selectors."""
        Ho, Wo = 2 * Hi, 2 * Wi
        Pin, Pout = batch * Hi * Wi, batch * Ho * Wo
        M = np.zeros((4, Pin, Pout), np.float32)
        for ky in range(2):
            for kx in range(2):
                k = ky * 2 + kx
                for bb in range(batch):
                    for y in range(Hi):
                        for x_ in range(Wi):
                            M[k, bb * Hi * Wi + y * Wi + x_,
                              bb * Ho * Wo + (2 * y + ky) * Wo + (2 * x_ + kx)] = 1.0
        return jnp.asarray(M.reshape(4 * Pin, Pout))

    plan = {"batch": batch, "encoder": [], "decoder": []}

    for blk in params["encoder"]:
        H, W, C = blk["H"], blk["W"], blk["C"]
        P = batch * H * W
        plan["encoder"].append({"last": blk["last"], "H": H, "W": W, "C": C})
        flat.append(conv_mask(H, W))
        flat += [conv_w(blk["w1"]), bias_col(blk["b1"]),
                 conv_w(blk["w2"]), bias_col(blk["b2"])]
        flops += 2 * (2 * 9 * C * C * P)
        if not blk["last"]:
            if H % 2 or W % 2:
                # TODO(synk): odd sizes need the torch skip-crop (x[..., :-1]) path.
                raise NotImplementedError("odd spatial sizes not supported")
            Cd = blk["w3"].shape[0]
            Pout = batch * (H // 2) * (W // 2)
            flat += [conv_w(blk["w3"]), bias_col(blk["b3"]), sub_matrix_bd(H, W)]
            flops += 2 * 9 * Cd * C * P + 2 * Cd * P * Pout

    # --- mid Linear: batch-block-diagonal packing so the kernel does C wide matmuls
    Cm, hm, wm_ = params["mid_shape"]
    S = hm * wm_
    BS = batch * S
    W4 = np.asarray(params["mid_w"], np.float32).reshape(Cm, S, Cm, S)  # [co,so,ci,si]
    Wt = np.transpose(W4, (0, 2, 3, 1))                                 # [co,ci,si,so]
    Mbd = np.zeros((Cm, Cm, batch, S, batch, S), np.float32)
    for bb in range(batch):
        Mbd[:, :, bb, :, bb, :] = Wt
    flat.append(jnp.asarray(Mbd.reshape(Cm * Cm * BS, BS)))
    flat.append(jnp.asarray(np.tile(
        np.asarray(params["mid_b"], np.float32).reshape(Cm, S), (1, batch))))
    plan["mid_C"], plan["mid_BS"] = Cm, BS
    flops += 2 * Cm * Cm * BS * BS

    for blk in params["decoder"]:
        H, W, Cb = blk["H"], blk["W"], blk["C"]
        P = batch * H * W
        plan["decoder"].append({"last": blk["last"], "H": H, "W": W, "C": Cb})
        flat.append(conv_mask(H, W))
        flat += [conv_w(blk["w1"]), bias_col(blk["b1"]),
                 conv_w(blk["w2"]), bias_col(blk["b2"])]
        flops += 2 * (2 * 9 * Cb * Cb * P)
        if not blk["last"]:
            Cu = blk["wd"].shape[1]
            Pout = batch * (2 * H) * (2 * W)
            flat += [deconv_w(blk["wd"]), bias_col(blk["bd"]), up_matrix_bd(H, W)]
            flops += 4 * (2 * Cu * Cb * P + 2 * Cu * P * Pout)

    wf, bf = params["final"]
    flat += [jnp.asarray(wf[:, :, 0, 0], jnp.float32), bias_col(bf)]

    C0 = params["encoder"][0]["C"]
    P0 = batch * params["encoder"][0]["H"] * params["encoder"][0]["W"]
    flops += 2 * 3 * C0 * P0
    plan["flops"] = int(flops)
    plan["bytes"] = int(sum(int(a.size) * 4 for a in flat) + (C0 + 3) * P0 * 4)
    return plan, flat


# ----------------------------------------------------------------------------
# Public forward: NCHW in / NCHW out, single fused pallas_call.
# ----------------------------------------------------------------------------
def generator_forward(plan, flat, x_nchw):
    B, C0, H0, W0 = x_nchw.shape
    assert B == plan["batch"], "params were packed for a different batch size"
    P0 = B * H0 * W0
    x = jnp.transpose(x_nchw, (1, 0, 2, 3)).reshape(C0, P0).astype(jnp.float32)
    inputs = [x] + list(flat)
    vmem = pl.BlockSpec(memory_space=pltpu.MemorySpace.VMEM)
    out = pl.pallas_call(
        make_generator_kernel(plan),
        out_shape=jax.ShapeDtypeStruct((3, P0), jnp.float32),
        in_specs=[vmem] * len(inputs),
        out_specs=vmem,
        compiler_params=pltpu.CompilerParams(vmem_limit_bytes=32 * 1024 * 1024),
        cost_estimate=pl.CostEstimate(flops=plan["flops"], transcendentals=0,
                                      bytes_accessed=plan["bytes"]),
    )(*inputs)
    return jnp.transpose(out.reshape(3, B, H0, W0), (1, 0, 2, 3))


# ----------------------------------------------------------------------------
# Pure-XLA reference (same torch semantics) for a numerical cross-check.
# ----------------------------------------------------------------------------
def generator_reference(params, x):
    prec = jax.lax.Precision.HIGHEST
    relu = lambda t: jnp.maximum(t, 0.0)

    def conv(x, w, b, stride=1, pad=1):
        y = jax.lax.conv_general_dilated(
            x, w, (stride, stride), ((pad, pad), (pad, pad)),
            dimension_numbers=("NCHW", "OIHW", "NCHW"), precision=prec)
        return y + b.reshape(1, -1, 1, 1)

    def deconv(x, w, b):   # ConvTranspose2d(k=2, s=2, p=0)
        w_eq = jnp.flip(jnp.transpose(w, (1, 0, 2, 3)), axis=(2, 3))
        y = jax.lax.conv_general_dilated(
            x, w_eq, (1, 1), ((1, 1), (1, 1)), lhs_dilation=(2, 2),
            dimension_numbers=("NCHW", "OIHW", "NCHW"), precision=prec)
        return y + b.reshape(1, -1, 1, 1)

    skips = []
    for blk in params["encoder"]:
        res = x
        x = relu(conv(x, blk["w1"], blk["b1"])) + res
        res = x
        x = relu(conv(x, blk["w2"], blk["b2"])) + res
        if not blk["last"]:
            x = relu(conv(x, blk["w3"], blk["b3"], stride=2))
        skips.append(x)
    shape_tmp = x.shape
    xf = x.reshape(x.shape[0], -1)
    xf = jnp.dot(xf, params["mid_w"].T, precision=prec) + params["mid_b"]
    x = xf.reshape(shape_tmp)
    for blk, sx in zip(params["decoder"], skips[::-1]):
        if x.shape[-1] != sx.shape[-1]:
            x = x[:, :, :, :-1]
        if x.shape[-2] != sx.shape[-2]:
            x = x[:, :, :-1, :]
        x = x + sx
        res = x
        x = relu(conv(x, blk["w1"], blk["b1"])) + res
        res = x
        x = relu(conv(x, blk["w2"], blk["b2"])) + res
        if not blk["last"]:
            x = relu(deconv(x, blk["wd"], blk["bd"]))
    wf, bf = params["final"]
    return conv(x, wf, bf, stride=1, pad=0)


if __name__ == "__main__":
    key = jax.random.PRNGKey(0)
    kp, kx = jax.random.split(key)
    N, image_size, batch = 2, (3, 16, 16), 2

    params = build_generator_params(kp, N=N, image_size=image_size, linear_scaling=1)
    plan, flat = pack_generator_params(params, batch=batch)   # one-time pre-pack

    x = jax.random.normal(kx, (batch,) + image_size, jnp.float32)   # NCHW like PyTorch

    fwd = jax.jit(functools.partial(generator_forward, plan))
    y = fwd(flat, x)
    jax.block_until_ready(y)
    assert y.shape == (batch, 3, image_size[1], image_size[2]), y.shape

    # Cross-check the fused kernel against a plain-XLA reference of the module.
    y_ref = generator_reference(params, x)
    rel = float(jnp.max(jnp.abs(y - y_ref)) / (jnp.max(jnp.abs(y_ref)) + 1e-6))
    assert rel < 3e-2, f"kernel vs reference mismatch: rel={rel}"

    print("KERNEL_OK")
</pallas_src>

<mosaic_0001>
module attributes {stable_mosaic.version = 11 : i64} {
  func.func @kernel(%arg0: memref<3x512xf32, #tpu.memory_space<vmem>>, %arg1: memref<9x512xf32, #tpu.memory_space<vmem>>, %arg2: memref<27x3xf32, #tpu.memory_space<vmem>>, %arg3: memref<3x1xf32, #tpu.memory_space<vmem>>, %arg4: memref<27x3xf32, #tpu.memory_space<vmem>>, %arg5: memref<3x1xf32, #tpu.memory_space<vmem>>, %arg6: memref<36x3xf32, #tpu.memory_space<vmem>>, %arg7: memref<4x1xf32, #tpu.memory_space<vmem>>, %arg8: memref<512x128xf32, #tpu.memory_space<vmem>>, %arg9: memref<9x128xf32, #tpu.memory_space<vmem>>, %arg10: memref<36x4xf32, #tpu.memory_space<vmem>>, %arg11: memref<4x1xf32, #tpu.memory_space<vmem>>, %arg12: memref<36x4xf32, #tpu.memory_space<vmem>>, %arg13: memref<4x1xf32, #tpu.memory_space<vmem>>, %arg14: memref<2048x128xf32, #tpu.memory_space<vmem>>, %arg15: memref<4x128xf32, #tpu.memory_space<vmem>>, %arg16: memref<9x128xf32, #tpu.memory_space<vmem>>, %arg17: memref<36x4xf32, #tpu.memory_space<vmem>>, %arg18: memref<4x1xf32, #tpu.memory_space<vmem>>, %arg19: memref<36x4xf32, #tpu.memory_space<vmem>>, %arg20: memref<4x1xf32, #tpu.memory_space<vmem>>, %arg21: memref<9x128xf32, #tpu.memory_space<vmem>>, %arg22: memref<36x4xf32, #tpu.memory_space<vmem>>, %arg23: memref<4x1xf32, #tpu.memory_space<vmem>>, %arg24: memref<36x4xf32, #tpu.memory_space<vmem>>, %arg25: memref<4x1xf32, #tpu.memory_space<vmem>>, %arg26: memref<12x4xf32, #tpu.memory_space<vmem>>, %arg27: memref<3x1xf32, #tpu.memory_space<vmem>>, %arg28: memref<512x512xf32, #tpu.memory_space<vmem>>, %arg29: memref<3x3xf32, #tpu.memory_space<vmem>>, %arg30: memref<3x1xf32, #tpu.memory_space<vmem>>, %arg31: memref<3x512xf32, #tpu.memory_space<vmem>>) attributes {dimension_semantics = [], scalar_prefetch = 0 : i64, scratch_operands = 0 : i64, tpu.core_type = #tpu.core_type<tc>} {
    %c0 = arith.constant 0 : index
    %c0_0 = arith.constant 0 : index
    %0 = vector.load %arg0[%c0, %c0_0] : memref<3x512xf32, #tpu.memory_space<vmem>>, vector<3x512xf32>
    %c0_1 = arith.constant 0 : index
    %c0_2 = arith.constant 0 : index
    %1 = vector.load %arg1[%c0_1, %c0_2] : memref<9x512xf32, #tpu.memory_space<vmem>>, vector<9x512xf32>
    %c0_3 = arith.constant 0 : index
    %c0_4 = arith.constant 0 : index
    %2 = vector.load %arg2[%c0_3, %c0_4] : memref<27x3xf32, #tpu.memory_space<vmem>>, vector<27x3xf32>
    %c0_5 = arith.constant 0 : index
    %c0_6 = arith.constant 0 : index
    %3 = vector.load %arg3[%c0_5, %c0_6] : memref<3x1xf32, #tpu.memory_space<vmem>>, vector<3x1xf32>
    %c0_7 = arith.constant 0 : index
    %c0_8 = arith.constant 0 : index
    %4 = vector.load %arg4[%c0_7, %c0_8] : memref<27x3xf32, #tpu.memory_space<vmem>>, vector<27x3xf32>
    %c0_9 = arith.constant 0 : index
    %c0_10 = arith.constant 0 : index
    %5 = vector.load %arg5[%c0_9, %c0_10] : memref<3x1xf32, #tpu.memory_space<vmem>>, vector<3x1xf32>
    %cst = arith.constant 0.000000e+00 : f32
    %6 = vector.broadcast %cst : f32 to vector<3x512xf32>
    %c17_i32 = arith.constant 17 : i32
    %7 = tpu.dynamic_rotate %0 by %c17_i32 dim 1 : vector<3x512xf32>, i32 -> vector<3x512xf32>
    %8 = vector.extract_strided_slice %1 {offsets = [0, 0], sizes = [1, 512], strides = [1, 1]} : vector<9x512xf32> to vector<1x512xf32>
    %9 = vector.broadcast %8 : vector<1x512xf32> to vector<3x512xf32>
    %10 = arith.mulf %7, %9 : vector<3x512xf32>
    %11 = vector.extract_strided_slice %2 {offsets = [0, 0], sizes = [3, 3], strides = [1, 1]} : vector<27x3xf32> to vector<3x3xf32>
    %cst_11 = arith.constant dense<0.000000e+00> : vector<3x512xf32>
    %12 = tpu.matmul %11, %10, %cst_11 {dimension_numbers = #tpu.dot_dimension_numbers<[1], [0], [0], [1], [0, 0, 1, 1], [], []>} : vector<3x3xf32>, vector<3x512xf32>, vector<3x512xf32> -> vector<3x512xf32>
    %13 = arith.addf %6, %12 : vector<3x512xf32>
    %c16_i32 = arith.constant 16 : i32
    %14 = tpu.dynamic_rotate %0 by %c16_i32 dim 1 : vector<3x512xf32>, i32 -> vector<3x512xf32>
    %15 = vector.extract_strided_slice %1 {offsets = [1, 0], sizes = [1, 512], strides = [1, 1]} : vector<9x512xf32> to vector<1x512xf32>
    %16 = vector.broadcast %15 : vector<1x512xf32> to vector<3x512xf32>
    %17 = arith.mulf %14, %16 : vector<3x512xf32>
    %18 = vector.extract_strided_slice %2 {offsets = [3, 0], sizes = [3, 3], strides = [1, 1]} : vector<27x3xf32> to vector<3x3xf32>
    %cst_12 = arith.constant dense<0.000000e+00> : vector<3x512xf32>
    %19 = tpu.matmul %18, %17, %cst_12 {dimension_numbers = #tpu.dot_dimension_numbers<[1], [0], [0], [1], [0, 0, 1, 1], [], []>} : vector<3x3xf32>, vector<3x512xf32>, vector<3x512xf32> -> vector<3x512xf32>
    %20 = arith.addf %13, %19 : vector<3x512xf32>
    %c15_i32 = arith.constant 15 : i32
    %21 = tpu.dynamic_rotate %0 by %c15_i32 dim 1 : vector<3x512xf32>, i32 -> vector<3x512xf32>
    %22 = vector.extract_strided_slice %1 {offsets = [2, 0], sizes = [1, 512], strides = [1, 1]} : vector<9x512xf32> to vector<1x512xf32>
    %23 = vector.broadcast %22 : vector<1x512xf32> to vector<3x512xf32>
    %24 = arith.mulf %21, %23 : vector<3x512xf32>
    %25 = vector.extract_strided_slice %2 {offsets = [6, 0], sizes = [3, 3], strides = [1, 1]} : vector<27x3xf32> to vector<3x3xf32>
    %cst_13 = arith.constant dense<0.000000e+00> : vector<3x512xf32>
    %26 = tpu.matmul %25, %24, %cst_13 {dimension_numbers = #tpu.dot_dimension_numbers<[1], [0], [0], [1], [0, 0, 1, 1], [], []>} : vector<3x3xf32>, vector<3x512xf32>, vector<3x512xf32> -> vector<3x512xf32>
    %27 = arith.addf %20, %26 : vector<3x512xf32>
    %c1_i32 = arith.constant 1 : i32
    %28 = tpu.dynamic_rotate %0 by %c1_i32 dim 1 : vector<3x512xf32>, i32 -> vector<3x512xf32>
    %29 = vector.extract_strided_slice %1 {offsets = [3, 0], sizes = [1, 512], strides = [1, 1]} : vector<9x512xf32> to vector<1x512xf32>
    %30 = vector.broadcast %29 : vector<1x512xf32> to vector<3x512xf32>
    %31 = arith.mulf %28, %30 : vector<3x512xf32>
    %32 = vector.extract_strided_slice %2 {offsets = [9, 0], sizes = [3, 3], strides = [1, 1]} : vector<27x3xf32> to vector<3x3xf32>
    %cst_14 = arith.constant dense<0.000000e+00> : vector<3x512xf32>
    %33 = tpu.matmul %32, %31, %cst_14 {dimension_numbers = #tpu.dot_dimension_numbers<[1], [0], [0], [1], [0, 0, 1, 1], [], []>} : vector<3x3xf32>, vector<3x512xf32>, vector<3x512xf32> -> vector<3x512xf32>
    %34 = arith.addf %27, %33 : vector<3x512xf32>
    %35 = vector.extract_strided_slice %2 {offsets = [12, 0], sizes = [3, 3], strides = [1, 1]} : vector<27x3xf32> to vector<3x3xf32>
    %cst_15 = arith.constant dense<0.000000e+00> : vector<3x512xf32>
    %36 = tpu.matmul %35, %0, %cst_15 {dimension_numbers = #tpu.dot_dimension_numbers<[1], [0], [0], [1], [0, 0, 1, 1], [], []>} : vector<3x3xf32>, vector<3x512xf32>, vector<3x512xf32> -> vector<3x512xf32>
    %37 = arith.addf %34, %36 : vector<3x512xf32>
    %c511_i32 = arith.constant 511 : i32
    %38 = tpu.dynamic_rotate %0 by %c511_i32 dim 1 : vector<3x512xf32>, i32 -> vector<3x512xf32>
    %39 = vector.extract_strided_slice %1 {offsets = [5, 0], sizes = [1, 512], strides = [1, 1]} : vector<9x512xf32> to vector<1x512xf32>
    %40 = vector.broadcast %39 : vector<1x512xf32> to vector<3x512xf32>
    %41 = arith.mulf %38, %40 : vector<3x512xf32>
    %42 = vector.extract_strided_slice %2 {offsets = [15, 0], sizes = [3, 3], strides = [1, 1]} : vector<27x3xf32> to vector<3x3xf32>
    %cst_16 = arith.constant dense<0.000000e+00> : vector<3x512xf32>
    %43 = tpu.matmul %42, %41, %cst_16 {dimension_numbers = #tpu.dot_dimension_numbers<[1], [0], [0], [1], [0, 0, 1, 1], [], []>} : vector<3x3xf32>, vector<3x512xf32>, vector<3x512xf32> -> vector<3x512xf32>
    %44 = arith.addf %37, %43 : vector<3x512xf32>
    %c497_i32 = arith.constant 497 : i32
    %45 = tpu.dynamic_rotate %0 by %c497_i32 dim 1 : vector<3x512xf32>, i32 -> vector<3x512xf32>
    %46 = vector.extract_strided_slice %1 {offsets = [6, 0], sizes = [1, 512], strides = [1, 1]} : vector<9x512xf32> to vector<1x512xf32>
    %47 = vector.broadcast %46 : vector<1x512xf32> to vector<3x512xf32>
    %48 = arith.mulf %45, %47 : vector<3x512xf32>
    %49 = vector.extract_strided_slice %2 {offsets = [18, 0], sizes = [3, 3], strides = [1, 1]} : vector<27x3xf32> to vector<3x3xf32>
    %cst_17 = arith.constant dense<0.000000e+00> : vector<3x512xf32>
    %50 = tpu.matmul %49, %48, %cst_17 {dimension_numbers = #tpu.dot_dimension_numbers<[1], [0], [0], [1], [0, 0, 1, 1], [], []>} : vector<3x3xf32>, vector<3x512xf32>, vector<3x512xf32> -> vector<3x512xf32>
    %51 = arith.addf %44, %50 : vector<3x512xf32>
    %c496_i32 = arith.constant 496 : i32
    %52 = tpu.dynamic_rotate %0 by %c496_i32 dim 1 : vector<3x512xf32>, i32 -> vector<3x512xf32>
    %53 = vector.extract_strided_slice %1 {offsets = [7, 0], sizes = [1, 512], strides = [1, 1]} : vector<9x512xf32> to vector<1x512xf32>
    %54 = vector.broadcast %53 : vector<1x512xf32> to vector<3x512xf32>
    %55 = arith.mulf %52, %54 : vector<3x512xf32>
    %56 = vector.extract_strided_slice %2 {offsets = [21, 0], sizes = [3, 3], strides = [1, 1]} : vector<27x3xf32> to vector<3x3xf32>
    %cst_18 = arith.constant dense<0.000000e+00> : vector<3x512xf32>
    %57 = tpu.matmul %56, %55, %cst_18 {dimension_numbers = #tpu.dot_dimension_numbers<[1], [0], [0], [1], [0, 0, 1, 1], [], []>} : vector<3x3xf32>, vector<3x512xf32>, vector<3x512xf32> -> vector<3x512xf32>
    %58 = arith.addf %51, %57 : vector<3x512xf32>
    %c495_i32 = arith.constant 495 : i32
    %59 = tpu.dynamic_rotate %0 by %c495_i32 dim 1 : vector<3x512xf32>, i32 -> vector<3x512xf32>
    %60 = vector.extract_strided_slice %1 {offsets = [8, 0], sizes = [1, 512], strides = [1, 1]} : vector<9x512xf32> to vector<1x512xf32>
    %61 = vector.broadcast %60 : vector<1x512xf32> to vector<3x512xf32>
    %62 = arith.mulf %59, %61 : vector<3x512xf32>
    %63 = vector.extract_strided_slice %2 {offsets = [24, 0], sizes = [3, 3], strides = [1, 1]} : vector<27x3xf32> to vector<3x3xf32>
    %cst_19 = arith.constant dense<0.000000e+00> : vector<3x512xf32>
    %64 = tpu.matmul %63, %62, %cst_19 {dimension_numbers = #tpu.dot_dimension_numbers<[1], [0], [0], [1], [0, 0, 1, 1], [], []>} : vector<3x3xf32>, vector<3x512xf32>, vector<3x512xf32> -> vector<3x512xf32>
    %65 = arith.addf %58, %64 : vector<3x512xf32>
    %66 = vector.broadcast %3 : vector<3x1xf32> to vector<3x512xf32>
    %67 = arith.addf %65, %66 : vector<3x512xf32>
    %cst_20 = arith.constant 0.000000e+00 : f32
    %68 = vector.broadcast %cst_20 : f32 to vector<3x512xf32>
    %69 = arith.maximumf %67, %68 : vector<3x512xf32>
    %70 = arith.addf %69, %0 : vector<3x512xf32>
    %cst_21 = arith.constant 0.000000e+00 : f32
    %71 = vector.broadcast %cst_21 : f32 to vector<3x512xf32>
    %c17_i32_22 = arith.constant 17 : i32
    %72 = tpu.dynamic_rotate %70 by %c17_i32_22 dim 1 : vector<3x512xf32>, i32 -> vector<3x512xf32>
    %73 = vector.extract_strided_slice %1 {offsets = [0, 0], sizes = [1, 512], strides = [1, 1]} : vector<9x512xf32> to vector<1x512xf32>
    %74 = vector.broadcast %73 : vector<1x512xf32> to vector<3x512xf32>
    %75 = arith.mulf %72, %74 : vector<3x512xf32>
    %76 = vector.extract_strided_slice %4 {offsets = [0, 0], sizes = [3, 3], strides = [1, 1]} : vector<27x3xf32> to vector<3x3xf32>
    %cst_23 = arith.constant dense<0.000000e+00> : vector<3x512xf32>
    %77 = tpu.matmul %76, %75, %cst_23 {dimension_numbers = #tpu.dot_dimension_numbers<[1], [0], [0], [1], [0, 0, 1, 1], [], []>} : vector<3x3xf32>, vector<3x512xf32>, vector<3x512xf32> -> vector<3x512xf32>
    %78 = arith.addf %71, %77 : vector<3x512xf32>
    %c16_i32_24 = arith.constant 16 : i32
    %79 = tpu.dynamic_rotate %70 by %c16_i32_24 dim 1 : vector<3x512xf32>, i32 -> vector<3x512xf32>
    %80 = vector.extract_strided_slice %1 {offsets = [1, 0], sizes = [1, 512], strides = [1, 1]} : vector<9x512xf32> to vector<1x512xf32>
    %81 = vector.broadcast %80 : vector<1x512xf32> to vector<3x512xf32>
    %82 = arith.mulf %79, %81 : vector<3x512xf32>
    %83 = vector.extract_strided_slice %4 {offsets = [3, 0], sizes = [3, 3], strides = [1, 1]} : vector<27x3xf32> to vector<3x3xf32>
    %cst_25 = arith.constant dense<0.000000e+00> : vector<3x512xf32>
    %84 = tpu.matmul %83, %82, %cst_25 {dimension_numbers = #tpu.dot_dimension_numbers<[1], [0], [0], [1], [0, 0, 1, 1], [], []>} : vector<3x3xf32>, vector<3x512xf32>, vector<3x512xf32> -> vector<3x512xf32>
    %85 = arith.addf %78, %84 : vector<3x512xf32>
    %c15_i32_26 = arith.constant 15 : i32
    %86 = tpu.dynamic_rotate %70 by %c15_i32_26 dim 1 : vector<3x512xf32>, i32 -> vector<3x512xf32>
    %87 = vector.extract_strided_slice %1 {offsets = [2, 0], sizes = [1, 512], strides = [1, 1]} : vector<9x512xf32> to vector<1x512xf32>
    %88 = vector.broadcast %87 : vector<1x512xf32> to vector<3x512xf32>
    %89 = arith.mulf %86, %88 : vector<3x512xf32>
    %90 = vector.extract_strided_slice %4 {offsets = [6, 0], sizes = [3, 3], strides = [1, 1]} : vector<27x3xf32> to vector<3x3xf32>
    %cst_27 = arith.constant dense<0.000000e+00> : vector<3x512xf32>
    %91 = tpu.matmul %90, %89, %cst_27 {dimension_numbers = #tpu.dot_dimension_numbers<[1], [0], [0], [1], [0, 0, 1, 1], [], []>} : vector<3x3xf32>, vector<3x512xf32>, vector<3x512xf32> -> vector<3x512xf32>
    %92 = arith.addf %85, %91 : vector<3x512xf32>
    %c1_i32_28 = arith.constant 1 : i32
    %93 = tpu.dynamic_rotate %70 by %c1_i32_28 dim 1 : vector<3x512xf32>, i32 -> vector<3x512xf32>
    %94 = vector.extract_strided_slice %1 {offsets = [3, 0], sizes = [1, 512], strides = [1, 1]} : vector<9x512xf32> to vector<1x512xf32>
    %95 = vector.broadcast %94 : vector<1x512xf32> to vector<3x512xf32>
    %96 = arith.mulf %93, %95 : vector<3x512xf32>
    %97 = vector.extract_strided_slice %4 {offsets = [9, 0], sizes = [3, 3], strides = [1, 1]} : vector<27x3xf32> to vector<3x3xf32>
    %cst_29 = arith.constant dense<0.000000e+00> : vector<3x512xf32>
    %98 = tpu.matmul %97, %96, %cst_29 {dimension_numbers = #tpu.dot_dimension_numbers<[1], [0], [0], [1], [0, 0, 1, 1], [], []>} : vector<3x3xf32>, vector<3x512xf32>, vector<3x512xf32> -> vector<3x512xf32>
    %99 = arith.addf %92, %98 : vector<3x512xf32>
    %100 = vector.extract_strided_slice %4 {offsets = [12, 0], sizes = [3, 3], strides = [1, 1]} : vector<27x3xf32> to vector<3x3xf32>
    %cst_30 = arith.constant dense<0.000000e+00> : vector<3x512xf32>
    %101 = tpu.matmul %100, %70, %cst_30 {dimension_numbers = #tpu.dot_dimension_numbers<[1], [0], [0], [1], [0, 0, 1, 1], [], []>} : vector<3x3xf32>, vector<3x512xf32>, vector<3x512xf32> -> vector<3x512xf32>
    %102 = arith.addf %99, %101 : vector<3x512xf32>
    %c511_i32_31 = arith.constant 511 : i32
    %103 = tpu.dynamic_rotate %70 by %c511_i32_31 dim 1 : vector<3x512xf32>, i32 -> vector<3x512xf32>
    %104 = vector.extract_strided_slice %1 {offsets = [5, 0], sizes = [1, 512], strides = [1, 1]} : vector<9x512xf32> to vector<1x512xf32>
    %105 = vector.broadcast %104 : vector<1x512xf32> to vector<3x512xf32>
    %106 = arith.mulf %103, %105 : vector<3x512xf32>
    %107 = vector.extract_strided_slice %4 {offsets = [15, 0], sizes = [3, 3], strides = [1, 1]} : vector<27x3xf32> to vector<3x3xf32>
    %cst_32 = arith.constant dense<0.000000e+00> : vector<3x512xf32>
    %108 = tpu.matmul %107, %106, %cst_32 {dimension_numbers = #tpu.dot_dimension_numbers<[1], [0], [0], [1], [0, 0, 1, 1], [], []>} : vector<3x3xf32>, vector<3x512xf32>, vector<3x512xf32> -> vector<3x512xf32>
    %109 = arith.addf %102, %108 : vector<3x512xf32>
    %c497_i32_33 = arith.constant 497 : i32
    %110 = tpu.dynamic_rotate %70 by %c497_i32_33 dim 1 : vector<3x512xf32>, i32 -> vector<3x512xf32>
    %111 = vector.extract_strided_slice %1 {offsets = [6, 0], sizes = [1, 512], strides = [1, 1]} : vector<9x512xf32> to vector<1x512xf32>
    %112 = vector.broadcast %111 : vector<1x512xf32> to vector<3x512xf32>
    %113 = arith.mulf %110, %112 : vector<3x512xf32>
    %114 = vector.extract_strided_slice %4 {offsets = [18, 0], sizes = [3, 3], strides = [1, 1]} : vector<27x3xf32> to vector<3x3xf32>
    %cst_34 = arith.constant dense<0.000000e+00> : vector<3x512xf32>
    %115 = tpu.matmul %114, %113, %cst_34 {dimension_numbers = #tpu.dot_dimension_numbers<[1], [0], [0], [1], [0, 0, 1, 1], [], []>} : vector<3x3xf32>, vector<3x512xf32>, vector<3x512xf32> -> vector<3x512xf32>
    %116 = arith.addf %109, %115 : vector<3x512xf32>
    %c496_i32_35 = arith.constant 496 : i32
    %117 = tpu.dynamic_rotate %70 by %c496_i32_35 dim 1 : vector<3x512xf32>, i32 -> vector<3x512xf32>
    %118 = vector.extract_strided_slice %1 {offsets = [7, 0], sizes = [1, 512], strides = [1, 1]} : vector<9x512xf32> to vector<1x512xf32>
    %119 = vector.broadcast %118 : vector<1x512xf32> to vector<3x512xf32>
    %120 = arith.mulf %117, %119 : vector<3x512xf32>
    %121 = vector.extract_strided_slice %4 {offsets = [21, 0], sizes = [3, 3], strides = [1, 1]} : vector<27x3xf32> to vector<3x3xf32>
    %cst_36 = arith.constant dense<0.000000e+00> : vector<3x512xf32>
    %122 = tpu.matmul %121, %120, %cst_36 {dimension_numbers = #tpu.dot_dimension_numbers<[1], [0], [0], [1], [0, 0, 1, 1], [], []>} : vector<3x3xf32>, vector<3x512xf32>, vector<3x512xf32> -> vector<3x512xf32>
    %123 = arith.addf %116, %122 : vector<3x512xf32>
    %c495_i32_37 = arith.constant 495 : i32
    %124 = tpu.dynamic_rotate %70 by %c495_i32_37 dim 1 : vector<3x512xf32>, i32 -> vector<3x512xf32>
    %125 = vector.extract_strided_slice %1 {offsets = [8, 0], sizes = [1, 512], strides = [1, 1]} : vector<9x512xf32> to vector<1x512xf32>
    %126 = vector.broadcast %125 : vector<1x512xf32> to vector<3x512xf32>
    %127 = arith.mulf %124, %126 : vector<3x512xf32>
    %128 = vector.extract_strided_slice %4 {offsets = [24, 0], sizes = [3, 3], strides = [1, 1]} : vector<27x3xf32> to vector<3x3xf32>
    %cst_38 = arith.constant dense<0.000000e+00> : vector<3x512xf32>
    %129 = tpu.matmul %128, %127, %cst_38 {dimension_numbers = #tpu.dot_dimension_numbers<[1], [0], [0], [1], [0, 0, 1, 1], [], []>} : vector<3x3xf32>, vector<3x512xf32>, vector<3x512xf32> -> vector<3x512xf32>
    %130 = arith.addf %123, %129 : vector<3x512xf32>
    %131 = vector.broadcast %5 : vector<3x1xf32> to vector<3x512xf32>
    %132 = arith.addf %130, %131 : vector<3x512xf32>
    %cst_39 = arith.constant 0.000000e+00 : f32
    %133 = vector.broadcast %cst_39 : f32 to vector<3x512xf32>
    %134 = arith.maximumf %132, %133 : vector<3x512xf32>
    %135 = arith.addf %134, %70 : vector<3x512xf32>
    %c0_40 = arith.constant 0 : index
    %c0_41 = arith.constant 0 : index
    %136 = vector.load %arg6[%c0_40, %c0_41] : memref<36x3xf32, #tpu.memory_space<vmem>>, vector<36x3xf32>
    %c0_42 = arith.constant 0 : index
    %c0_43 = arith.constant 0 : index
    %137 = vector.load %arg7[%c0_42, %c0_43] : memref<4x1xf32, #tpu.memory_space<vmem>>, vector<4x1xf32>
    %c0_44 = arith.constant 0 : index
    %c0_45 = arith.constant 0 : index
    %138 = vector.load %arg8[%c0_44, %c0_45] : memref<512x128xf32, #tpu.memory_space<vmem>>, vector<512x128xf32>
    %cst_46 = arith.constant 0.000000e+00 : f32
    %139 = vector.broadcast %cst_46 : f32 to vector<4x512xf32>
    %c17_i32_47 = arith.constant 17 : i32
    %140 = tpu.dynamic_rotate %135 by %c17_i32_47 dim 1 : vector<3x512xf32>, i32 -> vector<3x512xf32>
    %141 = vector.extract_strided_slice %1 {offsets = [0, 0], sizes = [1, 512], strides = [1, 1]} : vector<9x512xf32> to vector<1x512xf32>
    %142 = vector.broadcast %141 : vector<1x512xf32> to vector<3x512xf32>
    %143 = arith.mulf %140, %142 : vector<3x512xf32>
    %144 = vector.extract_strided_slice %136 {offsets = [0, 0], sizes = [4, 3], strides = [1, 1]} : vector<36x3xf32> to vector<4x3xf32>
    %cst_48 = arith.constant dense<0.000000e+00> : vector<4x512xf32>
    %145 = tpu.matmul %144, %143, %cst_48 {dimension_numbers = #tpu.dot_dimension_numbers<[1], [0], [0], [1], [0, 0, 1, 1], [], []>} : vector<4x3xf32>, vector<3x512xf32>, vector<4x512xf32> -> vector<4x512xf32>
    %146 = arith.addf %139, %145 : vector<4x512xf32>
    %c16_i32_49 = arith.constant 16 : i32
    %147 = tpu.dynamic_rotate %135 by %c16_i32_49 dim 1 : vector<3x512xf32>, i32 -> vector<3x512xf32>
    %148 = vector.extract_strided_slice %1 {offsets = [1, 0], sizes = [1, 512], strides = [1, 1]} : vector<9x512xf32> to vector<1x512xf32>
    %149 = vector.broadcast %148 : vector<1x512xf32> to vector<3x512xf32>
    %150 = arith.mulf %147, %149 : vector<3x512xf32>
    %151 = vector.extract_strided_slice %136 {offsets = [4, 0], sizes = [4, 3], strides = [1, 1]} : vector<36x3xf32> to vector<4x3xf32>
    %cst_50 = arith.constant dense<0.000000e+00> : vector<4x512xf32>
    %152 = tpu.matmul %151, %150, %cst_50 {dimension_numbers = #tpu.dot_dimension_numbers<[1], [0], [0], [1], [0, 0, 1, 1], [], []>} : vector<4x3xf32>, vector<3x512xf32>, vector<4x512xf32> -> vector<4x512xf32>
    %153 = arith.addf %146, %152 : vector<4x512xf32>
    %c15_i32_51 = arith.constant 15 : i32
    %154 = tpu.dynamic_rotate %135 by %c15_i32_51 dim 1 : vector<3x512xf32>, i32 -> vector<3x512xf32>
    %155 = vector.extract_strided_slice %1 {offsets = [2, 0], sizes = [1, 512], strides = [1, 1]} : vector<9x512xf32> to vector<1x512xf32>
    %156 = vector.broadcast %155 : vector<1x512xf32> to vector<3x512xf32>
    %157 = arith.mulf %154, %156 : vector<3x512xf32>
    %158 = vector.extract_strided_slice %136 {offsets = [8, 0], sizes = [4, 3], strides = [1, 1]} : vector<36x3xf32> to vector<4x3xf32>
    %cst_52 = arith.constant dense<0.000000e+00> : vector<4x512xf32>
    %159 = tpu.matmul %158, %157, %cst_52 {dimension_numbers = #tpu.dot_dimension_numbers<[1], [0], [0], [1], [0, 0, 1, 1], [], []>} : vector<4x3xf32>, vector<3x512xf32>, vector<4x512xf32> -> vector<4x512xf32>
    %160 = arith.addf %153, %159 : vector<4x512xf32>
    %c1_i32_53 = arith.constant 1 : i32
    %161 = tpu.dynamic_rotate %135 by %c1_i32_53 dim 1 : vector<3x512xf32>, i32 -> vector<3x512xf32>
    %162 = vector.extract_strided_slice %1 {offsets = [3, 0], sizes = [1, 512], strides = [1, 1]} : vector<9x512xf32> to vector<1x512xf32>
    %163 = vector.broadcast %162 : vector<1x512xf32> to vector<3x512xf32>
    %164 = arith.mulf %161, %163 : vector<3x512xf32>
    %165 = vector.extract_strided_slice %136 {offsets = [12, 0], sizes = [4, 3], strides = [1, 1]} : vector<36x3xf32> to vector<4x3xf32>
    %cst_54 = arith.constant dense<0.000000e+00> : vector<4x512xf32>
    %166 = tpu.matmul %165, %164, %cst_54 {dimension_numbers = #tpu.dot_dimension_numbers<[1], [0], [0], [1], [0, 0, 1, 1], [], []>} : vector<4x3xf32>, vector<3x512xf32>, vector<4x512xf32> -> vector<4x512xf32>
    %167 = arith.addf %160, %166 : vector<4x512xf32>
    %168 = vector.extract_strided_slice %136 {offsets = [16, 0], sizes = [4, 3], strides = [1, 1]} : vector<36x3xf32> to vector<4x3xf32>
    %cst_55 = arith.constant dense<0.000000e+00> : vector<4x512xf32>
    %169 = tpu.matmul %168, %135, %cst_55 {dimension_numbers = #tpu.dot_dimension_numbers<[1], [0], [0], [1], [0, 0, 1, 1], [], []>} : vector<4x3xf32>, vector<3x512xf32>, vector<4x512xf32> -> vector<4x512xf32>
    %170 = arith.addf %167, %169 : vector<4x512xf32>
    %c511_i32_56 = arith.constant 511 : i32
    %171 = tpu.dynamic_rotate %135 by %c511_i32_56 dim 1 : vector<3x512xf32>, i32 -> vector<3x512xf32>
    %172 = vector.extract_strided_slice %1 {offsets = [5, 0], sizes = [1, 512], strides = [1, 1]} : vector<9x512xf32> to vector<1x512xf32>
    %173 = vector.broadcast %172 : vector<1x512xf32> to vector<3x512xf32>
    %174 = arith.mulf %171, %173 : vector<3x512xf32>
    %175 = vector.extract_strided_slice %136 {offsets = [20, 0], sizes = [4, 3], strides = [1, 1]} : vector<36x3xf32> to vector<4x3xf32>
    %cst_57 = arith.constant dense<0.000000e+00> : vector<4x512xf32>
    %176 = tpu.matmul %175, %174, %cst_57 {dimension_numbers = #tpu.dot_dimension_numbers<[1], [0], [0], [1], [0, 0, 1, 1], [], []>} : vector<4x3xf32>, vector<3x512xf32>, vector<4x512xf32> -> vector<4x512xf32>
    %177 = arith.addf %170, %176 : vector<4x512xf32>
    %c497_i32_58 = arith.constant 497 : i32
    %178 = tpu.dynamic_rotate %135 by %c497_i32_58 dim 1 : vector<3x512xf32>, i32 -> vector<3x512xf32>
    %179 = vector.extract_strided_slice %1 {offsets = [6, 0], sizes = [1, 512], strides = [1, 1]} : vector<9x512xf32> to vector<1x512xf32>
    %180 = vector.broadcast %179 : vector<1x512xf32> to vector<3x512xf32>
    %181 = arith.mulf %178, %180 : vector<3x512xf32>
    %182 = vector.extract_strided_slice %136 {offsets = [24, 0], sizes = [4, 3], strides = [1, 1]} : vector<36x3xf32> to vector<4x3xf32>
    %cst_59 = arith.constant dense<0.000000e+00> : vector<4x512xf32>
    %183 = tpu.matmul %182, %181, %cst_59 {dimension_numbers = #tpu.dot_dimension_numbers<[1], [0], [0], [1], [0, 0, 1, 1], [], []>} : vector<4x3xf32>, vector<3x512xf32>, vector<4x512xf32> -> vector<4x512xf32>
    %184 = arith.addf %177, %183 : vector<4x512xf32>
    %c496_i32_60 = arith.constant 496 : i32
    %185 = tpu.dynamic_rotate %135 by %c496_i32_60 dim 1 : vector<3x512xf32>, i32 -> vector<3x512xf32>
    %186 = vector.extract_strided_slice %1 {offsets = [7, 0], sizes = [1, 512], strides = [1, 1]} : vector<9x512xf32> to vector<1x512xf32>
    %187 = vector.broadcast %186 : vector<1x512xf32> to vector<3x512xf32>
    %188 = arith.mulf %185, %187 : vector<3x512xf32>
    %189 = vector.extract_strided_slice %136 {offsets = [28, 0], sizes = [4, 3], strides = [1, 1]} : vector<36x3xf32> to vector<4x3xf32>
    %cst_61 = arith.constant dense<0.000000e+00> : vector<4x512xf32>
    %190 = tpu.matmul %189, %188, %cst_61 {dimension_numbers = #tpu.dot_dimension_numbers<[1], [0], [0], [1], [0, 0, 1, 1], [], []>} : vector<4x3xf32>, vector<3x512xf32>, vector<4x512xf32> -> vector<4x512xf32>
    %191 = arith.addf %184, %190 : vector<4x512xf32>
    %c495_i32_62 = arith.constant 495 : i32
    %192 = tpu.dynamic_rotate %135 by %c495_i32_62 dim 1 : vector<3x512xf32>, i32 -> vector<3x512xf32>
    %193 = vector.extract_strided_slice %1 {offsets = [8, 0], sizes = [1, 512], strides = [1, 1]} : vector<9x512xf32> to vector<1x512xf32>
    %194 = vector.broadcast %193 : vector<1x512xf32> to vector<3x512xf32>
    %195 = arith.mulf %192, %194 : vector<3x512xf32>
    %196 = vector.extract_strided_slice %136 {offsets = [32, 0], sizes = [4, 3], strides = [1, 1]} : vector<36x3xf32> to vector<4x3xf32>
    %cst_63 = arith.constant dense<0.000000e+00> : vector<4x512xf32>
    %197 = tpu.matmul %196, %195, %cst_63 {dimension_numbers = #tpu.dot_dimension_numbers<[1], [0], [0], [1], [0, 0, 1, 1], [], []>} : vector<4x3xf32>, vector<3x512xf32>, vector<4x512xf32> -> vector<4x512xf32>
    %198 = arith.addf %191, %197 : vector<4x512xf32>
    %199 = vector.broadcast %137 : vector<4x1xf32> to vector<4x512xf32>
    %200 = arith.addf %198, %199 : vector<4x512xf32>
    %cst_64 = arith.constant dense<0.000000e+00> : vector<4x128xf32>
    %201 = tpu.matmul %200, %138, %cst_64 {dimension_numbers = #tpu.dot_dimension_numbers<[1], [0], [0], [1], [0, 0, 1, 1], [], []>} : vector<4x512xf32>, vector<512x128xf32>, vector<4x128xf32> -> vector<4x128xf32>
    %cst_65 = arith.constant 0.000000e+00 : f32
    %202 = vector.broadcast %cst_65 : f32 to vector<4x128xf32>
    %203 = arith.maximumf %201, %202 : vector<4x128xf32>
    %c0_66 = arith.constant 0 : index
    %c0_67 = arith.constant 0 : index
    %204 = vector.load %arg9[%c0_66, %c0_67] : memref<9x128xf32, #tpu.memory_space<vmem>>, vector<9x128xf32>
    %c0_68 = arith.constant 0 : index
    %c0_69 = arith.constant 0 : index
    %205 = vector.load %arg10[%c0_68, %c0_69] : memref<36x4xf32, #tpu.memory_space<vmem>>, vector<36x4xf32>
    %c0_70 = arith.constant 0 : index
    %c0_71 = arith.constant 0 : index
    %206 = vector.load %arg11[%c0_70, %c0_71] : memref<4x1xf32, #tpu.memory_space<vmem>>, vector<4x1xf32>
    %c0_72 = arith.constant 0 : index
    %c0_73 = arith.constant 0 : index
    %207 = vector.load %arg12[%c0_72, %c0_73] : memref<36x4xf32, #tpu.memory_space<vmem>>, vector<36x4xf32>
    %c0_74 = arith.constant 0 : index
    %c0_75 = arith.constant 0 : index
    %208 = vector.load %arg13[%c0_74, %c0_75] : memref<4x1xf32, #tpu.memory_space<vmem>>, vector<4x1xf32>
    %cst_76 = arith.constant 0.000000e+00 : f32
    %209 = vector.broadcast %cst_76 : f32 to vector<4x128xf32>
    %c9_i32 = arith.constant 9 : i32
    %210 = tpu.dynamic_rotate %203 by %c9_i32 dim 1 : vector<4x128xf32>, i32 -> vector<4x128xf32>
    %211 = vector.extract_strided_slice %204 {offsets = [0, 0], sizes = [1, 128], strides = [1, 1]} : vector<9x128xf32> to vector<1x128xf32>
    %212 = vector.broadcast %211 : vector<1x128xf32> to vector<4x128xf32>
    %213 = arith.mulf %210, %212 : vector<4x128xf32>
    %214 = vector.extract_strided_slice %205 {offsets = [0, 0], sizes = [4, 4], strides = [1, 1]} : vector<36x4xf32> to vector<4x4xf32>
    %cst_77 = arith.constant dense<0.000000e+00> : vector<4x128xf32>
    %215 = tpu.matmul %214, %213, %cst_77 {dimension_numbers = #tpu.dot_dimension_numbers<[1], [0], [0], [1], [0, 0, 1, 1], [], []>} : vector<4x4xf32>, vector<4x128xf32>, vector<4x128xf32> -> vector<4x128xf32>
    %216 = arith.addf %209, %215 : vector<4x128xf32>
    %c8_i32 = arith.constant 8 : i32
    %217 = tpu.dynamic_rotate %203 by %c8_i32 dim 1 : vector<4x128xf32>, i32 -> vector<4x128xf32>
    %218 = vector.extract_strided_slice %204 {offsets = [1, 0], sizes = [1, 128], strides = [1, 1]} : vector<9x128xf32> to vector<1x128xf32>
    %219 = vector.broadcast %218 : vector<1x128xf32> to vector<4x128xf32>
    %220 = arith.mulf %217, %219 : vector<4x128xf32>
    %221 = vector.extract_strided_slice %205 {offsets = [4, 0], sizes = [4, 4], strides = [1, 1]} : vector<36x4xf32> to vector<4x4xf32>
    %cst_78 = arith.constant dense<0.000000e+00> : vector<4x128xf32>
    %222 = tpu.matmul %221, %220, %cst_78 {dimension_numbers = #tpu.dot_dimension_numbers<[1], [0], [0], [1], [0, 0, 1, 1], [], []>} : vector<4x4xf32>, vector<4x128xf32>, vector<4x128xf32> -> vector<4x128xf32>
    %223 = arith.addf %216, %222 : vector<4x128xf32>
    %c7_i32 = arith.constant 7 : i32
    %224 = tpu.dynamic_rotate %203 by %c7_i32 dim 1 : vector<4x128xf32>, i32 -> vector<4x128xf32>
    %225 = vector.extract_strided_slice %204 {offsets = [2, 0], sizes = [1, 128], strides = [1, 1]} : vector<9x128xf32> to vector<1x128xf32>
    %226 = vector.broadcast %225 : vector<1x128xf32> to vector<4x128xf32>
    %227 = arith.mulf %224, %226 : vector<4x128xf32>
    %228 = vector.extract_strided_slice %205 {offsets = [8, 0], sizes = [4, 4], strides = [1, 1]} : vector<36x4xf32> to vector<4x4xf32>
    %cst_79 = arith.constant dense<0.000000e+00> : vector<4x128xf32>
    %229 = tpu.matmul %228, %227, %cst_79 {dimension_numbers = #tpu.dot_dimension_numbers<[1], [0], [0], [1], [0, 0, 1, 1], [], []>} : vector<4x4xf32>, vector<4x128xf32>, vector<4x128xf32> -> vector<4x128xf32>
    %230 = arith.addf %223, %229 : vector<4x128xf32>
    %c1_i32_80 = arith.constant 1 : i32
    %231 = tpu.dynamic_rotate %203 by %c1_i32_80 dim 1 : vector<4x128xf32>, i32 -> vector<4x128xf32>
    %232 = vector.extract_strided_slice %204 {offsets = [3, 0], sizes = [1, 128], strides = [1, 1]} : vector<9x128xf32> to vector<1x128xf32>
    %233 = vector.broadcast %232 : vector<1x128xf32> to vector<4x128xf32>
    %234 = arith.mulf %231, %233 : vector<4x128xf32>
    %235 = vector.extract_strided_slice %205 {offsets = [12, 0], sizes = [4, 4], strides = [1, 1]} : vector<36x4xf32> to vector<4x4xf32>
    %cst_81 = arith.constant dense<0.000000e+00> : vector<4x128xf32>
    %236 = tpu.matmul %235, %234, %cst_81 {dimension_numbers = #tpu.dot_dimension_numbers<[1], [0], [0], [1], [0, 0, 1, 1], [], []>} : vector<4x4xf32>, vector<4x128xf32>, vector<4x128xf32> -> vector<4x128xf32>
    %237 = arith.addf %230, %236 : vector<4x128xf32>
    %238 = vector.extract_strided_slice %205 {offsets = [16, 0], sizes = [4, 4], strides = [1, 1]} : vector<36x4xf32> to vector<4x4xf32>
    %cst_82 = arith.constant dense<0.000000e+00> : vector<4x128xf32>
    %239 = tpu.matmul %238, %203, %cst_82 {dimension_numbers = #tpu.dot_dimension_numbers<[1], [0], [0], [1], [0, 0, 1, 1], [], []>} : vector<4x4xf32>, vector<4x128xf32>, vector<4x128xf32> -> vector<4x128xf32>
    %240 = arith.addf %237, %239 : vector<4x128xf32>
    %c127_i32 = arith.constant 127 : i32
    %241 = tpu.dynamic_rotate %203 by %c127_i32 dim 1 : vector<4x128xf32>, i32 -> vector<4x128xf32>
    %242 = vector.extract_strided_slice %204 {offsets = [5, 0], sizes = [1, 128], strides = [1, 1]} : vector<9x128xf32> to vector<1x128xf32>
    %243 = vector.broadcast %242 : vector<1x128xf32> to vector<4x128xf32>
    %244 = arith.mulf %241, %243 : vector<4x128xf32>
    %245 = vector.extract_strided_slice %205 {offsets = [20, 0], sizes = [4, 4], strides = [1, 1]} : vector<36x4xf32> to vector<4x4xf32>
    %cst_83 = arith.constant dense<0.000000e+00> : vector<4x128xf32>
    %246 = tpu.matmul %245, %244, %cst_83 {dimension_numbers = #tpu.dot_dimension_numbers<[1], [0], [0], [1], [0, 0, 1, 1], [], []>} : vector<4x4xf32>, vector<4x128xf32>, vector<4x128xf32> -> vector<4x128xf32>
    %247 = arith.addf %240, %246 : vector<4x128xf32>
    %c121_i32 = arith.constant 121 : i32
    %248 = tpu.dynamic_rotate %203 by %c121_i32 dim 1 : vector<4x128xf32>, i32 -> vector<4x128xf32>
    %249 = vector.extract_strided_slice %204 {offsets = [6, 0], sizes = [1, 128], strides = [1, 1]} : vector<9x128xf32> to vector<1x128xf32>
    %250 = vector.broadcast %249 : vector<1x128xf32> to vector<4x128xf32>
    %251 = arith.mulf %248, %250 : vector<4x128xf32>
    %252 = vector.extract_strided_slice %205 {offsets = [24, 0], sizes = [4, 4], strides = [1, 1]} : vector<36x4xf32> to vector<4x4xf32>
    %cst_84 = arith.constant dense<0.000000e+00> : vector<4x128xf32>
    %253 = tpu.matmul %252, %251, %cst_84 {dimension_numbers = #tpu.dot_dimension_numbers<[1], [0], [0], [1], [0, 0, 1, 1], [], []>} : vector<4x4xf32>, vector<4x128xf32>, vector<4x128xf32> -> vector<4x128xf32>
    %254 = arith.addf %247, %253 : vector<4x128xf32>
    %c120_i32 = arith.constant 120 : i32
    %255 = tpu.dynamic_rotate %203 by %c120_i32 dim 1 : vector<4x128xf32>, i32 -> vector<4x128xf32>
    %256 = vector.extract_strided_slice %204 {offsets = [7, 0], sizes = [1, 128], strides = [1, 1]} : vector<9x128xf32> to vector<1x128xf32>
    %257 = vector.broadcast %256 : vector<1x128xf32> to vector<4x128xf32>
    %258 = arith.mulf %255, %257 : vector<4x128xf32>
    %259 = vector.extract_strided_slice %205 {offsets = [28, 0], sizes = [4, 4], strides = [1, 1]} : vector<36x4xf32> to vector<4x4xf32>
    %cst_85 = arith.constant dense<0.000000e+00> : vector<4x128xf32>
    %260 = tpu.matmul %259, %258, %cst_85 {dimension_numbers = #tpu.dot_dimension_numbers<[1], [0], [0], [1], [0, 0, 1, 1], [], []>} : vector<4x4xf32>, vector<4x128xf32>, vector<4x128xf32> -> vector<4x128xf32>
    %261 = arith.addf %254, %260 : vector<4x128xf32>
    %c119_i32 = arith.constant 119 : i32
    %262 = tpu.dynamic_rotate %203 by %c119_i32 dim 1 : vector<4x128xf32>, i32 -> vector<4x128xf32>
    %263 = vector.extract_strided_slice %204 {offsets = [8, 0], sizes = [1, 128], strides = [1, 1]} : vector<9x128xf32> to vector<1x128xf32>
    %264 = vector.broadcast %263 : vector<1x128xf32> to vector<4x128xf32>
    %265 = arith.mulf %262, %264 : vector<4x128xf32>
    %266 = vector.extract_strided_slice %205 {offsets = [32, 0], sizes = [4, 4], strides = [1, 1]} : vector<36x4xf32> to vector<4x4xf32>
    %cst_86 = arith.constant dense<0.000000e+00> : vector<4x128xf32>
    %267 = tpu.matmul %266, %265, %cst_86 {dimension_numbers = #tpu.dot_dimension_numbers<[1], [0], [0], [1], [0, 0, 1, 1], [], []>} : vector<4x4xf32>, vector<4x128xf32>, vector<4x128xf32> -> vector<4x128xf32>
    %268 = arith.addf %261, %267 : vector<4x128xf32>
    %269 = vector.broadcast %206 : vector<4x1xf32> to vector<4x128xf32>
    %270 = arith.addf %268, %269 : vector<4x128xf32>
    %cst_87 = arith.constant 0.000000e+00 : f32
    %271 = vector.broadcast %cst_87 : f32 to vector<4x128xf32>
    %272 = arith.maximumf %270, %271 : vector<4x128xf32>
    %273 = arith.addf %272, %203 : vector<4x128xf32>
    %cst_88 = arith.constant 0.000000e+00 : f32
    %274 = vector.broadcast %cst_88 : f32 to vector<4x128xf32>
    %c9_i32_89 = arith.constant 9 : i32
    %275 = tpu.dynamic_rotate %273 by %c9_i32_89 dim 1 : vector<4x128xf32>, i32 -> vector<4x128xf32>
    %276 = vector.extract_strided_slice %204 {offsets = [0, 0], sizes = [1, 128], strides = [1, 1]} : vector<9x128xf32> to vector<1x128xf32>
    %277 = vector.broadcast %276 : vector<1x128xf32> to vector<4x128xf32>
    %278 = arith.mulf %275, %277 : vector<4x128xf32>
    %279 = vector.extract_strided_slice %207 {offsets = [0, 0], sizes = [4, 4], strides = [1, 1]} : vector<36x4xf32> to vector<4x4xf32>
    %cst_90 = arith.constant dense<0.000000e+00> : vector<4x128xf32>
    %280 = tpu.matmul %279, %278, %cst_90 {dimension_numbers = #tpu.dot_dimension_numbers<[1], [0], [0], [1], [0, 0, 1, 1], [], []>} : vector<4x4xf32>, vector<4x128xf32>, vector<4x128xf32> -> vector<4x128xf32>
    %281 = arith.addf %274, %280 : vector<4x128xf32>
    %c8_i32_91 = arith.constant 8 : i32
    %282 = tpu.dynamic_rotate %273 by %c8_i32_91 dim 1 : vector<4x128xf32>, i32 -> vector<4x128xf32>
    %283 = vector.extract_strided_slice %204 {offsets = [1, 0], sizes = [1, 128], strides = [1, 1]} : vector<9x128xf32> to vector<1x128xf32>
    %284 = vector.broadcast %283 : vector<1x128xf32> to vector<4x128xf32>
    %285 = arith.mulf %282, %284 : vector<4x128xf32>
    %286 = vector.extract_strided_slice %207 {offsets = [4, 0], sizes = [4, 4], strides = [1, 1]} : vector<36x4xf32> to vector<4x4xf32>
    %cst_92 = arith.constant dense<0.000000e+00> : vector<4x128xf32>
    %287 = tpu.matmul %286, %285, %cst_92 {dimension_numbers = #tpu.dot_dimension_numbers<[1], [0], [0], [1], [0, 0, 1, 1], [], []>} : vector<4x4xf32>, vector<4x128xf32>, vector<4x128xf32> -> vector<4x128xf32>
    %288 = arith.addf %281, %287 : vector<4x128xf32>
    %c7_i32_93 = arith.constant 7 : i32
    %289 = tpu.dynamic_rotate %273 by %c7_i32_93 dim 1 : vector<4x128xf32>, i32 -> vector<4x128xf32>
    %290 = vector.extract_strided_slice %204 {offsets = [2, 0], sizes = [1, 128], strides = [1, 1]} : vector<9x128xf32> to vector<1x128xf32>
    %291 = vector.broadcast %290 : vector<1x128xf32> to vector<4x128xf32>
    %292 = arith.mulf %289, %291 : vector<4x128xf32>
    %293 = vector.extract_strided_slice %207 {offsets = [8, 0], sizes = [4, 4], strides = [1, 1]} : vector<36x4xf32> to vector<4x4xf32>
    %cst_94 = arith.constant dense<0.000000e+00> : vector<4x128xf32>
    %294 = tpu.matmul %293, %292, %cst_94 {dimension_numbers = #tpu.dot_dimension_numbers<[1], [0], [0], [1], [0, 0, 1, 1], [], []>} : vector<4x4xf32>, vector<4x128xf32>, vector<4x128xf32> -> vector<4x128xf32>
    %295 = arith.addf %288, %294 : vector<4x128xf32>
    %c1_i32_95 = arith.constant 1 : i32
    %296 = tpu.dynamic_rotate %273 by %c1_i32_95 dim 1 : vector<4x128xf32>, i32 -> vector<4x128xf32>
    %297 = vector.extract_strided_slice %204 {offsets = [3, 0], sizes = [1, 128], strides = [1, 1]} : vector<9x128xf32> to vector<1x128xf32>
    %298 = vector.broadcast %297 : vector<1x128xf32> to vector<4x128xf32>
    %299 = arith.mulf %296, %298 : vector<4x128xf32>
    %300 = vector.extract_strided_slice %207 {offsets = [12, 0], sizes = [4, 4], strides = [1, 1]} : vector<36x4xf32> to vector<4x4xf32>
    %cst_96 = arith.constant dense<0.000000e+00> : vector<4x128xf32>
    %301 = tpu.matmul %300, %299, %cst_96 {dimension_numbers = #tpu.dot_dimension_numbers<[1], [0], [0], [1], [0, 0, 1, 1], [], []>} : vector<4x4xf32>, vector<4x128xf32>, vector<4x128xf32> -> vector<4x128xf32>
    %302 = arith.addf %295, %301 : vector<4x128xf32>
    %303 = vector.extract_strided_slice %207 {offsets = [16, 0], sizes = [4, 4], strides = [1, 1]} : vector<36x4xf32> to vector<4x4xf32>
    %cst_97 = arith.constant dense<0.000000e+00> : vector<4x128xf32>
    %304 = tpu.matmul %303, %273, %cst_97 {dimension_numbers = #tpu.dot_dimension_numbers<[1], [0], [0], [1], [0, 0, 1, 1], [], []>} : vector<4x4xf32>, vector<4x128xf32>, vector<4x128xf32> -> vector<4x128xf32>
    %305 = arith.addf %302, %304 : vector<4x128xf32>
    %c127_i32_98 = arith.constant 127 : i32
    %306 = tpu.dynamic_rotate %273 by %c127_i32_98 dim 1 : vector<4x128xf32>, i32 -> vector<4x128xf32>
    %307 = vector.extract_strided_slice %204 {offsets = [5, 0], sizes = [1, 128], strides = [1, 1]} : vector<9x128xf32> to vector<1x128xf32>
    %308 = vector.broadcast %307 : vector<1x128xf32> to vector<4x128xf32>
    %309 = arith.mulf %306, %308 : vector<4x128xf32>
    %310 = vector.extract_strided_slice %207 {offsets = [20, 0], sizes = [4, 4], strides = [1, 1]} : vector<36x4xf32> to vector<4x4xf32>
    %cst_99 = arith.constant dense<0.000000e+00> : vector<4x128xf32>
    %311 = tpu.matmul %310, %309, %cst_99 {dimension_numbers = #tpu.dot_dimension_numbers<[1], [0], [0], [1], [0, 0, 1, 1], [], []>} : vector<4x4xf32>, vector<4x128xf32>, vector<4x128xf32> -> vector<4x128xf32>
    %312 = arith.addf %305, %311 : vector<4x128xf32>
    %c121_i32_100 = arith.constant 121 : i32
    %313 = tpu.dynamic_rotate %273 by %c121_i32_100 dim 1 : vector<4x128xf32>, i32 -> vector<4x128xf32>
    %314 = vector.extract_strided_slice %204 {offsets = [6, 0], sizes = [1, 128], strides = [1, 1]} : vector<9x128xf32> to vector<1x128xf32>
    %315 = vector.broadcast %314 : vector<1x128xf32> to vector<4x128xf32>
    %316 = arith.mulf %313, %315 : vector<4x128xf32>
    %317 = vector.extract_strided_slice %207 {offsets = [24, 0], sizes = [4, 4], strides = [1, 1]} : vector<36x4xf32> to vector<4x4xf32>
    %cst_101 = arith.constant dense<0.000000e+00> : vector<4x128xf32>
    %318 = tpu.matmul %317, %316, %cst_101 {dimension_numbers = #tpu.dot_dimension_numbers<[1], [0], [0], [1], [0, 0, 1, 1], [], []>} : vector<4x4xf32>, vector<4x128xf32>, vector<4x128xf32> -> vector<4x128xf32>
    %319 = arith.addf %312, %318 : vector<4x128xf32>
    %c120_i32_102 = arith.constant 120 : i32
    %320 = tpu.dynamic_rotate %273 by %c120_i32_102 dim 1 : vector<4x128xf32>, i32 -> vector<4x128xf32>
    %321 = vector.extract_strided_slice %204 {offsets = [7, 0], sizes = [1, 128], strides = [1, 1]} : vector<9x128xf32> to vector<1x128xf32>
    %322 = vector.broadcast %321 : vector<1x128xf32> to vector<4x128xf32>
    %323 = arith.mulf %320, %322 : vector<4x128xf32>
    %324 = vector.extract_strided_slice %207 {offsets = [28, 0], sizes = [4, 4], strides = [1, 1]} : vector<36x4xf32> to vector<4x4xf32>
    %cst_103 = arith.constant dense<0.000000e+00> : vector<4x128xf32>
    %325 = tpu.matmul %324, %323, %cst_103 {dimension_numbers = #tpu.dot_dimension_numbers<[1], [0], [0], [1], [0, 0, 1, 1], [], []>} : vector<4x4xf32>, vector<4x128xf32>, vector<4x128xf32> -> vector<4x128xf32>
    %326 = arith.addf %319, %325 : vector<4x128xf32>
    %c119_i32_104 = arith.constant 119 : i32
    %327 = tpu.dynamic_rotate %273 by %c119_i32_104 dim 1 : vector<4x128xf32>, i32 -> vector<4x128xf32>
    %328 = vector.extract_strided_slice %204 {offsets = [8, 0], sizes = [1, 128], strides = [1, 1]} : vector<9x128xf32> to vector<1x128xf32>
    %329 = vector.broadcast %328 : vector<1x128xf32> to vector<4x128xf32>
    %330 = arith.mulf %327, %329 : vector<4x128xf32>
    %331 = vector.extract_strided_slice %207 {offsets = [32, 0], sizes = [4, 4], strides = [1, 1]} : vector<36x4xf32> to vector<4x4xf32>
    %cst_105 = arith.constant dense<0.000000e+00> : vector<4x128xf32>
    %332 = tpu.matmul %331, %330, %cst_105 {dimension_numbers = #tpu.dot_dimension_numbers<[1], [0], [0], [1], [0, 0, 1, 1], [], []>} : vector<4x4xf32>, vector<4x128xf32>, vector<4x128xf32> -> vector<4x128xf32>
    %333 = arith.addf %326, %332 : vector<4x128xf32>
    %334 = vector.broadcast %208 : vector<4x1xf32> to vector<4x128xf32>
    %335 = arith.addf %333, %334 : vector<4x128xf32>
    %cst_106 = arith.constant 0.000000e+00 : f32
    %336 = vector.broadcast %cst_106 : f32 to vector<4x128xf32>
    %337 = arith.maximumf %335, %336 : vector<4x128xf32>
    %338 = arith.addf %337, %273 : vector<4x128xf32>
    %c0_107 = arith.constant 0 : index
    %c0_108 = arith.constant 0 : index
    %339 = vector.load %arg15[%c0_107, %c0_108] : memref<4x128xf32, #tpu.memory_space<vmem>>, vector<4x128xf32>
    %340 = vector.extract_strided_slice %338 {offsets = [0, 0], sizes = [1, 128], strides = [1, 1]} : vector<4x128xf32> to vector<1x128xf32>
    %341 = vector.extract_strided_slice %338 {offsets = [1, 0], sizes = [1, 128], strides = [1, 1]} : vector<4x128xf32> to vector<1x128xf32>
    %342 = vector.extract_strided_slice %338 {offsets = [2, 0], sizes = [1, 128], strides = [1, 1]} : vector<4x128xf32> to vector<1x128xf32>
    %343 = vector.extract_strided_slice %338 {offsets = [3, 0], sizes = [1, 128], strides = [1, 1]} : vector<4x128xf32> to vector<1x128xf32>
    %344 = tpu.concatenate %340, %341, %342, %343 in 1 : vector<1x128xf32>, vector<1x128xf32>, vector<1x128xf32>, vector<1x128xf32> -> vector<1x512xf32>
    %345 = vector.extract_strided_slice %339 {offsets = [0, 0], sizes = [1, 128], strides = [1, 1]} : vector<4x128xf32> to vector<1x128xf32>
    %c0_109 = arith.constant 0 : index
    %c0_110 = arith.constant 0 : index
    %346 = vector.load %arg14[%c0_109, %c0_110] : memref<2048x128xf32, #tpu.memory_space<vmem>>, vector<512x128xf32>
    %cst_111 = arith.constant dense<0.000000e+00> : vector<1x128xf32>
    %347 = tpu.matmul %344, %346, %cst_111 {dimension_numbers = #tpu.dot_dimension_numbers<[1], [0], [0], [1], [0, 0, 1, 1], [], []>} : vector<1x512xf32>, vector<512x128xf32>, vector<1x128xf32> -> vector<1x128xf32>
    %348 = arith.addf %345, %347 : vector<1x128xf32>
    %349 = vector.extract_strided_slice %339 {offsets = [1, 0], sizes = [1, 128], strides = [1, 1]} : vector<4x128xf32> to vector<1x128xf32>
    %c512 = arith.constant 512 : index
    %c0_112 = arith.constant 0 : index
    %350 = vector.load %arg14[%c512, %c0_112] : memref<2048x128xf32, #tpu.memory_space<vmem>>, vector<512x128xf32>
    %cst_113 = arith.constant dense<0.000000e+00> : vector<1x128xf32>
    %351 = tpu.matmul %344, %350, %cst_113 {dimension_numbers = #tpu.dot_dimension_numbers<[1], [0], [0], [1], [0, 0, 1, 1], [], []>} : vector<1x512xf32>, vector<512x128xf32>, vector<1x128xf32> -> vector<1x128xf32>
    %352 = arith.addf %349, %351 : vector<1x128xf32>
    %353 = vector.extract_strided_slice %339 {offsets = [2, 0], sizes = [1, 128], strides = [1, 1]} : vector<4x128xf32> to vector<1x128xf32>
    %c1024 = arith.constant 1024 : index
    %c0_114 = arith.constant 0 : index
    %354 = vector.load %arg14[%c1024, %c0_114] : memref<2048x128xf32, #tpu.memory_space<vmem>>, vector<512x128xf32>
    %cst_115 = arith.constant dense<0.000000e+00> : vector<1x128xf32>
    %355 = tpu.matmul %344, %354, %cst_115 {dimension_numbers = #tpu.dot_dimension_numbers<[1], [0], [0], [1], [0, 0, 1, 1], [], []>} : vector<1x512xf32>, vector<512x128xf32>, vector<1x128xf32> -> vector<1x128xf32>
    %356 = arith.addf %353, %355 : vector<1x128xf32>
    %357 = vector.extract_strided_slice %339 {offsets = [3, 0], sizes = [1, 128], strides = [1, 1]} : vector<4x128xf32> to vector<1x128xf32>
    %c1536 = arith.constant 1536 : index
    %c0_116 = arith.constant 0 : index
    %358 = vector.load %arg14[%c1536, %c0_116] : memref<2048x128xf32, #tpu.memory_space<vmem>>, vector<512x128xf32>
    %cst_117 = arith.constant dense<0.000000e+00> : vector<1x128xf32>
    %359 = tpu.matmul %344, %358, %cst_117 {dimension_numbers = #tpu.dot_dimension_numbers<[1], [0], [0], [1], [0, 0, 1, 1], [], []>} : vector<1x512xf32>, vector<512x128xf32>, vector<1x128xf32> -> vector<1x128xf32>
    %360 = arith.addf %357, %359 : vector<1x128xf32>
    %361 = tpu.concatenate %348, %352, %356, %360 in 0 : vector<1x128xf32>, vector<1x128xf32>, vector<1x128xf32>, vector<1x128xf32> -> vector<4x128xf32>
    %362 = arith.addf %361, %338 : vector<4x128xf32>
    %c0_118 = arith.constant 0 : index
    %c0_119 = arith.constant 0 : index
    %363 = vector.load %arg16[%c0_118, %c0_119] : memref<9x128xf32, #tpu.memory_space<vmem>>, vector<9x128xf32>
    %c0_120 = arith.constant 0 : index
    %c0_121 = arith.constant 0 : index
    %364 = vector.load %arg17[%c0_120, %c0_121] : memref<36x4xf32, #tpu.memory_space<vmem>>, vector<36x4xf32>
    %c0_122 = arith.constant 0 : index
    %c0_123 = arith.constant 0 : index
    %365 = vector.load %arg18[%c0_122, %c0_123] : memref<4x1xf32, #tpu.memory_space<vmem>>, vector<4x1xf32>
    %c0_124 = arith.constant 0 : index
    %c0_125 = arith.constant 0 : index
    %366 = vector.load %arg19[%c0_124, %c0_125] : memref<36x4xf32, #tpu.memory_space<vmem>>, vector<36x4xf32>
    %c0_126 = arith.constant 0 : index
    %c0_127 = arith.constant 0 : index
    %367 = vector.load %arg20[%c0_126, %c0_127] : memref<4x1xf32, #tpu.memory_space<vmem>>, vector<4x1xf32>
    %cst_128 = arith.constant 0.000000e+00 : f32
    %368 = vector.broadcast %cst_128 : f32 to vector<4x128xf32>
    %c9_i32_129 = arith.constant 9 : i32
    %369 = tpu.dynamic_rotate %362 by %c9_i32_129 dim 1 : vector<4x128xf32>, i32 -> vector<4x128xf32>
    %370 = vector.extract_strided_slice %363 {offsets = [0, 0], sizes = [1, 128], strides = [1, 1]} : vector<9x128xf32> to vector<1x128xf32>
    %371 = vector.broadcast %370 : vector<1x128xf32> to vector<4x128xf32>
    %372 = arith.mulf %369, %371 : vector<4x128xf32>
    %373 = vector.extract_strided_slice %364 {offsets = [0, 0], sizes = [4, 4], strides = [1, 1]} : vector<36x4xf32> to vector<4x4xf32>
    %cst_130 = arith.constant dense<0.000000e+00> : vector<4x128xf32>
    %374 = tpu.matmul %373, %372, %cst_130 {dimension_numbers = #tpu.dot_dimension_numbers<[1], [0], [0], [1], [0, 0, 1, 1], [], []>} : vector<4x4xf32>, vector<4x128xf32>, vector<4x128xf32> -> vector<4x128xf32>
    %375 = arith.addf %368, %374 : vector<4x128xf32>
    %c8_i32_131 = arith.constant 8 : i32
    %376 = tpu.dynamic_rotate %362 by %c8_i32_131 dim 1 : vector<4x128xf32>, i32 -> vector<4x128xf32>
    %377 = vector.extract_strided_slice %363 {offsets = [1, 0], sizes = [1, 128], strides = [1, 1]} : vector<9x128xf32> to vector<1x128xf32>
    %378 = vector.broadcast %377 : vector<1x128xf32> to vector<4x128xf32>
    %379 = arith.mulf %376, %378 : vector<4x128xf32>
    %380 = vector.extract_strided_slice %364 {offsets = [4, 0], sizes = [4, 4], strides = [1, 1]} : vector<36x4xf32> to vector<4x4xf32>
    %cst_132 = arith.constant dense<0.000000e+00> : vector<4x128xf32>
    %381 = tpu.matmul %380, %379, %cst_132 {dimension_numbers = #tpu.dot_dimension_numbers<[1], [0], [0], [1], [0, 0, 1, 1], [], []>} : vector<4x4xf32>, vector<4x128xf32>, vector<4x128xf32> -> vector<4x128xf32>
    %382 = arith.addf %375, %381 : vector<4x128xf32>
    %c7_i32_133 = arith.constant 7 : i32
    %383 = tpu.dynamic_rotate %362 by %c7_i32_133 dim 1 : vector<4x128xf32>, i32 -> vector<4x128xf32>
    %384 = vector.extract_strided_slice %363 {offsets = [2, 0], sizes = [1, 128], strides = [1, 1]} : vector<9x128xf32> to vector<1x128xf32>
    %385 = vector.broadcast %384 : vector<1x128xf32> to vector<4x128xf32>
    %386 = arith.mulf %383, %385 : vector<4x128xf32>
    %387 = vector.extract_strided_slice %364 {offsets = [8, 0], sizes = [4, 4], strides = [1, 1]} : vector<36x4xf32> to vector<4x4xf32>
    %cst_134 = arith.constant dense<0.000000e+00> : vector<4x128xf32>
    %388 = tpu.matmul %387, %386, %cst_134 {dimension_numbers = #tpu.dot_dimension_numbers<[1], [0], [0], [1], [0, 0, 1, 1], [], []>} : vector<4x4xf32>, vector<4x128xf32>, vector<4x128xf32> -> vector<4x128xf32>
    %389 = arith.addf %382, %388 : vector<4x128xf32>
    %c1_i32_135 = arith.constant 1 : i32
    %390 = tpu.dynamic_rotate %362 by %c1_i32_135 dim 1 : vector<4x128xf32>, i32 -> vector<4x128xf32>
    %391 = vector.extract_strided_slice %363 {offsets = [3, 0], sizes = [1, 128], strides = [1, 1]} : vector<9x128xf32> to vector<1x128xf32>
    %392 = vector.broadcast %391 : vector<1x128xf32> to vector<4x128xf32>
    %393 = arith.mulf %390, %392 : vector<4x128xf32>
    %394 = vector.extract_strided_slice %364 {offsets = [12, 0], sizes = [4, 4], strides = [1, 1]} : vector<36x4xf32> to vector<4x4xf32>
    %cst_136 = arith.constant dense<0.000000e+00> : vector<4x128xf32>
    %395 = tpu.matmul %394, %393, %cst_136 {dimension_numbers = #tpu.dot_dimension_numbers<[1], [0], [0], [1], [0, 0, 1, 1], [], []>} : vector<4x4xf32>, vector<4x128xf32>, vector<4x128xf32> -> vector<4x128xf32>
    %396 = arith.addf %389, %395 : vector<4x128xf32>
    %397 = vector.extract_strided_slice %364 {offsets = [16, 0], sizes = [4, 4], strides = [1, 1]} : vector<36x4xf32> to vector<4x4xf32>
    %cst_137 = arith.constant dense<0.000000e+00> : vector<4x128xf32>
    %398 = tpu.matmul %397, %362, %cst_137 {dimension_numbers = #tpu.dot_dimension_numbers<[1], [0], [0], [1], [0, 0, 1, 1], [], []>} : vector<4x4xf32>, vector<4x128xf32>, vector<4x128xf32> -> vector<4x128xf32>
    %399 = arith.addf %396, %398 : vector<4x128xf32>
    %c127_i32_138 = arith.constant 127 : i32
    %400 = tpu.dynamic_rotate %362 by %c127_i32_138 dim 1 : vector<4x128xf32>, i32 -> vector<4x128xf32>
    %401 = vector.extract_strided_slice %363 {offsets = [5, 0], sizes = [1, 128], strides = [1, 1]} : vector<9x128xf32> to vector<1x128xf32>
    %402 = vector.broadcast %401 : vector<1x128xf32> to vector<4x128xf32>
    %403 = arith.mulf %400, %402 : vector<4x128xf32>
    %404 = vector.extract_strided_slice %364 {offsets = [20, 0], sizes = [4, 4], strides = [1, 1]} : vector<36x4xf32> to vector<4x4xf32>
    %cst_139 = arith.constant dense<0.000000e+00> : vector<4x128xf32>
    %405 = tpu.matmul %404, %403, %cst_139 {dimension_numbers = #tpu.dot_dimension_numbers<[1], [0], [0], [1], [0, 0, 1, 1], [], []>} : vector<4x4xf32>, vector<4x128xf32>, vector<4x128xf32> -> vector<4x128xf32>
    %406 = arith.addf %399, %405 : vector<4x128xf32>
    %c121_i32_140 = arith.constant 121 : i32
    %407 = tpu.dynamic_rotate %362 by %c121_i32_140 dim 1 : vector<4x128xf32>, i32 -> vector<4x128xf32>
    %408 = vector.extract_strided_slice %363 {offsets = [6, 0], sizes = [1, 128], strides = [1, 1]} : vector<9x128xf32> to vector<1x128xf32>
    %409 = vector.broadcast %408 : vector<1x128xf32> to vector<4x128xf32>
    %410 = arith.mulf %407, %409 : vector<4x128xf32>
    %411 = vector.extract_strided_slice %364 {offsets = [24, 0], sizes = [4, 4], strides = [1, 1]} : vector<36x4xf32> to vector<4x4xf32>
    %cst_141 = arith.constant dense<0.000000e+00> : vector<4x128xf32>
    %412 = tpu.matmul %411, %410, %cst_141 {dimension_numbers = #tpu.dot_dimension_numbers<[1], [0], [0], [1], [0, 0, 1, 1], [], []>} : vector<4x4xf32>, vector<4x128xf32>, vector<4x128xf32> -> vector<4x128xf32>
    %413 = arith.addf %406, %412 : vector<4x128xf32>
    %c120_i32_142 = arith.constant 120 : i32
    %414 = tpu.dynamic_rotate %362 by %c120_i32_142 dim 1 : vector<4x128xf32>, i32 -> vector<4x128xf32>
    %415 = vector.extract_strided_slice %363 {offsets = [7, 0], sizes = [1, 128], strides = [1, 1]} : vector<9x128xf32> to vector<1x128xf32>
    %416 = vector.broadcast %415 : vector<1x128xf32> to vector<4x128xf32>
    %417 = arith.mulf %414, %416 : vector<4x128xf32>
    %418 = vector.extract_strided_slice %364 {offsets = [28, 0], sizes = [4, 4], strides = [1, 1]} : vector<36x4xf32> to vector<4x4xf32>
    %cst_143 = arith.constant dense<0.000000e+00> : vector<4x128xf32>
    %419 = tpu.matmul %418, %417, %cst_143 {dimension_numbers = #tpu.dot_dimension_numbers<[1], [0], [0], [1], [0, 0, 1, 1], [], []>} : vector<4x4xf32>, vector<4x128xf32>, vector<4x128xf32> -> vector<4x128xf32>
    %420 = arith.addf %413, %419 : vector<4x128xf32>
    %c119_i32_144 = arith.constant 119 : i32
    %421 = tpu.dynamic_rotate %362 by %c119_i32_144 dim 1 : vector<4x128xf32>, i32 -> vector<4x128xf32>
    %422 = vector.extract_strided_slice %363 {offsets = [8, 0], sizes = [1, 128], strides = [1, 1]} : vector<9x128xf32> to vector<1x128xf32>
    %423 = vector.broadcast %422 : vector<1x128xf32> to vector<4x128xf32>
    %424 = arith.mulf %421, %423 : vector<4x128xf32>
    %425 = vector.extract_strided_slice %364 {offsets = [32, 0], sizes = [4, 4], strides = [1, 1]} : vector<36x4xf32> to vector<4x4xf32>
    %cst_145 = arith.constant dense<0.000000e+00> : vector<4x128xf32>
    %426 = tpu.matmul %425, %424, %cst_145 {dimension_numbers = #tpu.dot_dimension_numbers<[1], [0], [0], [1], [0, 0, 1, 1], [], []>} : vector<4x4xf32>, vector<4x128xf32>, vector<4x128xf32> -> vector<4x128xf32>
    %427 = arith.addf %420, %426 : vector<4x128xf32>
    %428 = vector.broadcast %365 : vector<4x1xf32> to vector<4x128xf32>
    %429 = arith.addf %427, %428 : vector<4x128xf32>
    %cst_146 = arith.constant 0.000000e+00 : f32
    %430 = vector.broadcast %cst_146 : f32 to vector<4x128xf32>
    %431 = arith.maximumf %429, %430 : vector<4x128xf32>
    %432 = arith.addf %431, %362 : vector<4x128xf32>
    %cst_147 = arith.constant 0.000000e+00 : f32
    %433 = vector.broadcast %cst_147 : f32 to vector<4x128xf32>
    %c9_i32_148 = arith.constant 9 : i32
    %434 = tpu.dynamic_rotate %432 by %c9_i32_148 dim 1 : vector<4x128xf32>, i32 -> vector<4x128xf32>
    %435 = vector.extract_strided_slice %363 {offsets = [0, 0], sizes = [1, 128], strides = [1, 1]} : vector<9x128xf32> to vector<1x128xf32>
    %436 = vector.broadcast %435 : vector<1x128xf32> to vector<4x128xf32>
    %437 = arith.mulf %434, %436 : vector<4x128xf32>
    %438 = vector.extract_strided_slice %366 {offsets = [0, 0], sizes = [4, 4], strides = [1, 1]} : vector<36x4xf32> to vector<4x4xf32>
    %cst_149 = arith.constant dense<0.000000e+00> : vector<4x128xf32>
    %439 = tpu.matmul %438, %437, %cst_149 {dimension_numbers = #tpu.dot_dimension_numbers<[1], [0], [0], [1], [0, 0, 1, 1], [], []>} : vector<4x4xf32>, vector<4x128xf32>, vector<4x128xf32> -> vector<4x128xf32>
    %440 = arith.addf %433, %439 : vector<4x128xf32>
    %c8_i32_150 = arith.constant 8 : i32
    %441 = tpu.dynamic_rotate %432 by %c8_i32_150 dim 1 : vector<4x128xf32>, i32 -> vector<4x128xf32>
    %442 = vector.extract_strided_slice %363 {offsets = [1, 0], sizes = [1, 128], strides = [1, 1]} : vector<9x128xf32> to vector<1x128xf32>
    %443 = vector.broadcast %442 : vector<1x128xf32> to vector<4x128xf32>
    %444 = arith.mulf %441, %443 : vector<4x128xf32>
    %445 = vector.extract_strided_slice %366 {offsets = [4, 0], sizes = [4, 4], strides = [1, 1]} : vector<36x4xf32> to vector<4x4xf32>
    %cst_151 = arith.constant dense<0.000000e+00> : vector<4x128xf32>
    %446 = tpu.matmul %445, %444, %cst_151 {dimension_numbers = #tpu.dot_dimension_numbers<[1], [0], [0], [1], [0, 0, 1, 1], [], []>} : vector<4x4xf32>, vector<4x128xf32>, vector<4x128xf32> -> vector<4x128xf32>
    %447 = arith.addf %440, %446 : vector<4x128xf32>
    %c7_i32_152 = arith.constant 7 : i32
    %448 = tpu.dynamic_rotate %432 by %c7_i32_152 dim 1 : vector<4x128xf32>, i32 -> vector<4x128xf32>
    %449 = vector.extract_strided_slice %363 {offsets = [2, 0], sizes = [1, 128], strides = [1, 1]} : vector<9x128xf32> to vector<1x128xf32>
    %450 = vector.broadcast %449 : vector<1x128xf32> to vector<4x128xf32>
    %451 = arith.mulf %448, %450 : vector<4x128xf32>
    %452 = vector.extract_strided_slice %366 {offsets = [8, 0], sizes = [4, 4], strides = [1, 1]} : vector<36x4xf32> to vector<4x4xf32>
    %cst_153 = arith.constant dense<0.000000e+00> : vector<4x128xf32>
    %453 = tpu.matmul %452, %451, %cst_153 {dimension_numbers = #tpu.dot_dimension_numbers<[1], [0], [0], [1], [0, 0, 1, 1], [], []>} : vector<4x4xf32>, vector<4x128xf32>, vector<4x128xf32> -> vector<4x128xf32>
    %454 = arith.addf %447, %453 : vector<4x128xf32>
    %c1_i32_154 = arith.constant 1 : i32
    %455 = tpu.dynamic_rotate %432 by %c1_i32_154 dim 1 : vector<4x128xf32>, i32 -> vector<4x128xf32>
    %456 = vector.extract_strided_slice %363 {offsets = [3, 0], sizes = [1, 128], strides = [1, 1]} : vector<9x128xf32> to vector<1x128xf32>
    %457 = vector.broadcast %456 : vector<1x128xf32> to vector<4x128xf32>
    %458 = arith.mulf %455, %457 : vector<4x128xf32>
    %459 = vector.extract_strided_slice %366 {offsets = [12, 0], sizes = [4, 4], strides = [1, 1]} : vector<36x4xf32> to vector<4x4xf32>
    %cst_155 = arith.constant dense<0.000000e+00> : vector<4x128xf32>
    %460 = tpu.matmul %459, %458, %cst_155 {dimension_numbers = #tpu.dot_dimension_numbers<[1], [0], [0], [1], [0, 0, 1, 1], [], []>} : vector<4x4xf32>, vector<4x128xf32>, vector<4x128xf32> -> vector<4x128xf32>
    %461 = arith.addf %454, %460 : vector<4x128xf32>
    %462 = vector.extract_strided_slice %366 {offsets = [16, 0], sizes = [4, 4], strides = [1, 1]} : vector<36x4xf32> to vector<4x4xf32>
    %cst_156 = arith.constant dense<0.000000e+00> : vector<4x128xf32>
    %463 = tpu.matmul %462, %432, %cst_156 {dimension_numbers = #tpu.dot_dimension_numbers<[1], [0], [0], [1], [0, 0, 1, 1], [], []>} : vector<4x4xf32>, vector<4x128xf32>, vector<4x128xf32> -> vector<4x128xf32>
    %464 = arith.addf %461, %463 : vector<4x128xf32>
    %c127_i32_157 = arith.constant 127 : i32
    %465 = tpu.dynamic_rotate %432 by %c127_i32_157 dim 1 : vector<4x128xf32>, i32 -> vector<4x128xf32>
    %466 = vector.extract_strided_slice %363 {offsets = [5, 0], sizes = [1, 128], strides = [1, 1]} : vector<9x128xf32> to vector<1x128xf32>
    %467 = vector.broadcast %466 : vector<1x128xf32> to vector<4x128xf32>
    %468 = arith.mulf %465, %467 : vector<4x128xf32>
    %469 = vector.extract_strided_slice %366 {offsets = [20, 0], sizes = [4, 4], strides = [1, 1]} : vector<36x4xf32> to vector<4x4xf32>
    %cst_158 = arith.constant dense<0.000000e+00> : vector<4x128xf32>
    %470 = tpu.matmul %469, %468, %cst_158 {dimension_numbers = #tpu.dot_dimension_numbers<[1], [0], [0], [1], [0, 0, 1, 1], [], []>} : vector<4x4xf32>, vector<4x128xf32>, vector<4x128xf32> -> vector<4x128xf32>
    %471 = arith.addf %464, %470 : vector<4x128xf32>
    %c121_i32_159 = arith.constant 121 : i32
    %472 = tpu.dynamic_rotate %432 by %c121_i32_159 dim 1 : vector<4x128xf32>, i32 -> vector<4x128xf32>
    %473 = vector.extract_strided_slice %363 {offsets = [6, 0], sizes = [1, 128], strides = [1, 1]} : vector<9x128xf32> to vector<1x128xf32>
    %474 = vector.broadcast %473 : vector<1x128xf32> to vector<4x128xf32>
    %475 = arith.mulf %472, %474 : vector<4x128xf32>
    %476 = vector.extract_strided_slice %366 {offsets = [24, 0], sizes = [4, 4], strides = [1, 1]} : vector<36x4xf32> to vector<4x4xf32>
    %cst_160 = arith.constant dense<0.000000e+00> : vector<4x128xf32>
    %477 = tpu.matmul %476, %475, %cst_160 {dimension_numbers = #tpu.dot_dimension_numbers<[1], [0], [0], [1], [0, 0, 1, 1], [], []>} : vector<4x4xf32>, vector<4x128xf32>, vector<4x128xf32> -> vector<4x128xf32>
    %478 = arith.addf %471, %477 : vector<4x128xf32>
    %c120_i32_161 = arith.constant 120 : i32
    %479 = tpu.dynamic_rotate %432 by %c120_i32_161 dim 1 : vector<4x128xf32>, i32 -> vector<4x128xf32>
    %480 = vector.extract_strided_slice %363 {offsets = [7, 0], sizes = [1, 128], strides = [1, 1]} : vector<9x128xf32> to vector<1x128xf32>
    %481 = vector.broadcast %480 : vector<1x128xf32> to vector<4x128xf32>
    %482 = arith.mulf %479, %481 : vector<4x128xf32>
    %483 = vector.extract_strided_slice %366 {offsets = [28, 0], sizes = [4, 4], strides = [1, 1]} : vector<36x4xf32> to vector<4x4xf32>
    %cst_162 = arith.constant dense<0.000000e+00> : vector<4x128xf32>
    %484 = tpu.matmul %483, %482, %cst_162 {dimension_numbers = #tpu.dot_dimension_numbers<[1], [0], [0], [1], [0, 0, 1, 1], [], []>} : vector<4x4xf32>, vector<4x128xf32>, vector<4x128xf32> -> vector<4x128xf32>
    %485 = arith.addf %478, %484 : vector<4x128xf32>
    %c119_i32_163 = arith.constant 119 : i32
    %486 = tpu.dynamic_rotate %432 by %c119_i32_163 dim 1 : vector<4x128xf32>, i32 -> vector<4x128xf32>
    %487 = vector.extract_strided_slice %363 {offsets = [8, 0], sizes = [1, 128], strides = [1, 1]} : vector<9x128xf32> to vector<1x128xf32>
    %488 = vector.broadcast %487 : vector<1x128xf32> to vector<4x128xf32>
    %489 = arith.mulf %486, %488 : vector<4x128xf32>
    %490 = vector.extract_strided_slice %366 {offsets = [32, 0], sizes = [4, 4], strides = [1, 1]} : vector<36x4xf32> to vector<4x4xf32>
    %cst_164 = arith.constant dense<0.000000e+00> : vector<4x128xf32>
    %491 = tpu.matmul %490, %489, %cst_164 {dimension_numbers = #tpu.dot_dimension_numbers<[1], [0], [0], [1], [0, 0, 1, 1], [], []>} : vector<4x4xf32>, vector<4x128xf32>, vector<4x128xf32> -> vector<4x128xf32>
    %492 = arith.addf %485, %491 : vector<4x128xf32>
    %493 = vector.broadcast %367 : vector<4x1xf32> to vector<4x128xf32>
    %494 = arith.addf %492, %493 : vector<4x128xf32>
    %cst_165 = arith.constant 0.000000e+00 : f32
    %495 = vector.broadcast %cst_165 : f32 to vector<4x128xf32>
    %496 = arith.maximumf %494, %495 : vector<4x128xf32>
    %497 = arith.addf %496, %432 : vector<4x128xf32>
    %498 = arith.addf %497, %203 : vector<4x128xf32>
    %c0_166 = arith.constant 0 : index
    %c0_167 = arith.constant 0 : index
    %499 = vector.load %arg21[%c0_166, %c0_167] : memref<9x128xf32, #tpu.memory_space<vmem>>, vector<9x128xf32>
    %c0_168 = arith.constant 0 : index
    %c0_169 = arith.constant 0 : index
    %500 = vector.load %arg22[%c0_168, %c0_169] : memref<36x4xf32, #tpu.memory_space<vmem>>, vector<36x4xf32>
    %c0_170 = arith.constant 0 : index
    %c0_171 = arith.constant 0 : index
    %501 = vector.load %arg23[%c0_170, %c0_171] : memref<4x1xf32, #tpu.memory_space<vmem>>, vector<4x1xf32>
    %c0_172 = arith.constant 0 : index
    %c0_173 = arith.constant 0 : index
    %502 = vector.load %arg24[%c0_172, %c0_173] : memref<36x4xf32, #tpu.memory_space<vmem>>, vector<36x4xf32>
    %c0_174 = arith.constant 0 : index
    %c0_175 = arith.constant 0 : index
    %503 = vector.load %arg25[%c0_174, %c0_175] : memref<4x1xf32, #tpu.memory_space<vmem>>, vector<4x1xf32>
    %cst_176 = arith.constant 0.000000e+00 : f32
    %504 = vector.broadcast %cst_176 : f32 to vector<4x128xf32>
    %c9_i32_177 = arith.constant 9 : i32
    %505 = tpu.dynamic_rotate %498 by %c9_i32_177 dim 1 : vector<4x128xf32>, i32 -> vector<4x128xf32>
    %506 = vector.extract_strided_slice %499 {offsets = [0, 0], sizes = [1, 128], strides = [1, 1]} : vector<9x128xf32> to vector<1x128xf32>
    %507 = vector.broadcast %506 : vector<1x128xf32> to vector<4x128xf32>
    %508 = arith.mulf %505, %507 : vector<4x128xf32>
    %509 = vector.extract_strided_slice %500 {offsets = [0, 0], sizes = [4, 4], strides = [1, 1]} : vector<36x4xf32> to vector<4x4xf32>
    %cst_178 = arith.constant dense<0.000000e+00> : vector<4x128xf32>
    %510 = tpu.matmul %509, %508, %cst_178 {dimension_numbers = #tpu.dot_dimension_numbers<[1], [0], [0], [1], [0, 0, 1, 1], [], []>} : vector<4x4xf32>, vector<4x128xf32>, vector<4x128xf32> -> vector<4x128xf32>
    %511 = arith.addf %504, %510 : vector<4x128xf32>
    %c8_i32_179 = arith.constant 8 : i32
    %512 = tpu.dynamic_rotate %498 by %c8_i32_179 dim 1 : vector<4x128xf32>, i32 -> vector<4x128xf32>
    %513 = vector.extract_strided_slice %499 {offsets = [1, 0], sizes = [1, 128], strides = [1, 1]} : vector<9x128xf32> to vector<1x128xf32>
    %514 = vector.broadcast %513 : vector<1x128xf32> to vector<4x128xf32>
    %515 = arith.mulf %512, %514 : vector<4x128xf32>
    %516 = vector.extract_strided_slice %500 {offsets = [4, 0], sizes = [4, 4], strides = [1, 1]} : vector<36x4xf32> to vector<4x4xf32>
    %cst_180 = arith.constant dense<0.000000e+00> : vector<4x128xf32>
    %517 = tpu.matmul %516, %515, %cst_180 {dimension_numbers = #tpu.dot_dimension_numbers<[1], [0], [0], [1], [0, 0, 1, 1], [], []>} : vector<4x4xf32>, vector<4x128xf32>, vector<4x128xf32> -> vector<4x128xf32>
    %518 = arith.addf %511, %517 : vector<4x128xf32>
    %c7_i32_181 = arith.constant 7 : i32
    %519 = tpu.dynamic_rotate %498 by %c7_i32_181 dim 1 : vector<4x128xf32>, i32 -> vector<4x128xf32>
    %520 = vector.extract_strided_slice %499 {offsets = [2, 0], sizes = [1, 128], strides = [1, 1]} : vector<9x128xf32> to vector<1x128xf32>
    %521 = vector.broadcast %520 : vector<1x128xf32> to vector<4x128xf32>
    %522 = arith.mulf %519, %521 : vector<4x128xf32>
    %523 = vector.extract_strided_slice %500 {offsets = [8, 0], sizes = [4, 4], strides = [1, 1]} : vector<36x4xf32> to vector<4x4xf32>
    %cst_182 = arith.constant dense<0.000000e+00> : vector<4x128xf32>
    %524 = tpu.matmul %523, %522, %cst_182 {dimension_numbers = #tpu.dot_dimension_numbers<[1], [0], [0], [1], [0, 0, 1, 1], [], []>} : vector<4x4xf32>, vector<4x128xf32>, vector<4x128xf32> -> vector<4x128xf32>
    %525 = arith.addf %518, %524 : vector<4x128xf32>
    %c1_i32_183 = arith.constant 1 : i32
    %526 = tpu.dynamic_rotate %498 by %c1_i32_183 dim 1 : vector<4x128xf32>, i32 -> vector<4x128xf32>
    %527 = vector.extract_strided_slice %499 {offsets = [3, 0], sizes = [1, 128], strides = [1, 1]} : vector<9x128xf32> to vector<1x128xf32>
    %528 = vector.broadcast %527 : vector<1x128xf32> to vector<4x128xf32>
    %529 = arith.mulf %526, %528 : vector<4x128xf32>
    %530 = vector.extract_strided_slice %500 {offsets = [12, 0], sizes = [4, 4], strides = [1, 1]} : vector<36x4xf32> to vector<4x4xf32>
    %cst_184 = arith.constant dense<0.000000e+00> : vector<4x128xf32>
    %531 = tpu.matmul %530, %529, %cst_184 {dimension_numbers = #tpu.dot_dimension_numbers<[1], [0], [0], [1], [0, 0, 1, 1], [], []>} : vector<4x4xf32>, vector<4x128xf32>, vector<4x128xf32> -> vector<4x128xf32>
    %532 = arith.addf %525, %531 : vector<4x128xf32>
    %533 = vector.extract_strided_slice %500 {offsets = [16, 0], sizes = [4, 4], strides = [1, 1]} : vector<36x4xf32> to vector<4x4xf32>
    %cst_185 = arith.constant dense<0.000000e+00> : vector<4x128xf32>
    %534 = tpu.matmul %533, %498, %cst_185 {dimension_numbers = #tpu.dot_dimension_numbers<[1], [0], [0], [1], [0, 0, 1, 1], [], []>} : vector<4x4xf32>, vector<4x128xf32>, vector<4x128xf32> -> vector<4x128xf32>
    %535 = arith.addf %532, %534 : vector<4x128xf32>
    %c127_i32_186 = arith.constant 127 : i32
    %536 = tpu.dynamic_rotate %498 by %c127_i32_186 dim 1 : vector<4x128xf32>, i32 -> vector<4x128xf32>
    %537 = vector.extract_strided_slice %499 {offsets = [5, 0], sizes = [1, 128], strides = [1, 1]} : vector<9x128xf32> to vector<1x128xf32>
    %538 = vector.broadcast %537 : vector<1x128xf32> to vector<4x128xf32>
    %539 = arith.mulf %536, %538 : vector<4x128xf32>
    %540 = vector.extract_strided_slice %500 {offsets = [20, 0], sizes = [4, 4], strides = [1, 1]} : vector<36x4xf32> to vector<4x4xf32>
    %cst_187 = arith.constant dense<0.000000e+00> : vector<4x128xf32>
    %541 = tpu.matmul %540, %539, %cst_187 {dimension_numbers = #tpu.dot_dimension_numbers<[1], [0], [0], [1], [0, 0, 1, 1], [], []>} : vector<4x4xf32>, vector<4x128xf32>, vector<4x128xf32> -> vector<4x128xf32>
    %542 = arith.addf %535, %541 : vector<4x128xf32>
    %c121_i32_188 = arith.constant 121 : i32
    %543 = tpu.dynamic_rotate %498 by %c121_i32_188 dim 1 : vector<4x128xf32>, i32 -> vector<4x128xf32>
    %544 = vector.extract_strided_slice %499 {offsets = [6, 0], sizes = [1, 128], strides = [1, 1]} : vector<9x128xf32> to vector<1x128xf32>
    %545 = vector.broadcast %544 : vector<1x128xf32> to vector<4x128xf32>
    %546 = arith.mulf %543, %545 : vector<4x128xf32>
    %547 = vector.extract_strided_slice %500 {offsets = [24, 0], sizes = [4, 4], strides = [1, 1]} : vector<36x4xf32> to vector<4x4xf32>
    %cst_189 = arith.constant dense<0.000000e+00> : vector<4x128xf32>
    %548 = tpu.matmul %547, %546, %cst_189 {dimension_numbers = #tpu.dot_dimension_numbers<[1], [0], [0], [1], [0, 0, 1, 1], [], []>} : vector<4x4xf32>, vector<4x128xf32>, vector<4x128xf32> -> vector<4x128xf32>
    %549 = arith.addf %542, %548 : vector<4x128xf32>
    %c120_i32_190 = arith.constant 120 : i32
    %550 = tpu.dynamic_rotate %498 by %c120_i32_190 dim 1 : vector<4x128xf32>, i32 -> vector<4x128xf32>
    %551 = vector.extract_strided_slice %499 {offsets = [7, 0], sizes = [1, 128], strides = [1, 1]} : vector<9x128xf32> to vector<1x128xf32>
    %552 = vector.broadcast %551 : vector<1x128xf32> to vector<4x128xf32>
    %553 = arith.mulf %550, %552 : vector<4x128xf32>
    %554 = vector.extract_strided_slice %500 {offsets = [28, 0], sizes = [4, 4], strides = [1, 1]} : vector<36x4xf32> to vector<4x4xf32>
    %cst_191 = arith.constant dense<0.000000e+00> : vector<4x128xf32>
    %555 = tpu.matmul %554, %553, %cst_191 {dimension_numbers = #tpu.dot_dimension_numbers<[1], [0], [0], [1], [0, 0, 1, 1], [], []>} : vector<4x4xf32>, vector<4x128xf32>, vector<4x128xf32> -> vector<4x128xf32>
    %556 = arith.addf %549, %555 : vector<4x128xf32>
    %c119_i32_192 = arith.constant 119 : i32
    %557 = tpu.dynamic_rotate %498 by %c119_i32_192 dim 1 : vector<4x128xf32>, i32 -> vector<4x128xf32>
    %558 = vector.extract_strided_slice %499 {offsets = [8, 0], sizes = [1, 128], strides = [1, 1]} : vector<9x128xf32> to vector<1x128xf32>
    %559 = vector.broadcast %558 : vector<1x128xf32> to vector<4x128xf32>
    %560 = arith.mulf %557, %559 : vector<4x128xf32>
    %561 = vector.extract_strided_slice %500 {offsets = [32, 0], sizes = [4, 4], strides = [1, 1]} : vector<36x4xf32> to vector<4x4xf32>
    %cst_193 = arith.constant dense<0.000000e+00> : vector<4x128xf32>
    %562 = tpu.matmul %561, %560, %cst_193 {dimension_numbers = #tpu.dot_dimension_numbers<[1], [0], [0], [1], [0, 0, 1, 1], [], []>} : vector<4x4xf32>, vector<4x128xf32>, vector<4x128xf32> -> vector<4x128xf32>
    %563 = arith.addf %556, %562 : vector<4x128xf32>
    %564 = vector.broadcast %501 : vector<4x1xf32> to vector<4x128xf32>
    %565 = arith.addf %563, %564 : vector<4x128xf32>
    %cst_194 = arith.constant 0.000000e+00 : f32
    %566 = vector.broadcast %cst_194 : f32 to vector<4x128xf32>
    %567 = arith.maximumf %565, %566 : vector<4x128xf32>
    %568 = arith.addf %567, %498 : vector<4x128xf32>
    %cst_195 = arith.constant 0.000000e+00 : f32
    %569 = vector.broadcast %cst_195 : f32 to vector<4x128xf32>
    %c9_i32_196 = arith.constant 9 : i32
    %570 = tpu.dynamic_rotate %568 by %c9_i32_196 dim 1 : vector<4x128xf32>, i32 -> vector<4x128xf32>
    %571 = vector.extract_strided_slice %499 {offsets = [0, 0], sizes = [1, 128], strides = [1, 1]} : vector<9x128xf32> to vector<1x128xf32>
    %572 = vector.broadcast %571 : vector<1x128xf32> to vector<4x128xf32>
    %573 = arith.mulf %570, %572 : vector<4x128xf32>
    %574 = vector.extract_strided_slice %502 {offsets = [0, 0], sizes = [4, 4], strides = [1, 1]} : vector<36x4xf32> to vector<4x4xf32>
    %cst_197 = arith.constant dense<0.000000e+00> : vector<4x128xf32>
    %575 = tpu.matmul %574, %573, %cst_197 {dimension_numbers = #tpu.dot_dimension_numbers<[1], [0], [0], [1], [0, 0, 1, 1], [], []>} : vector<4x4xf32>, vector<4x128xf32>, vector<4x128xf32> -> vector<4x128xf32>
    %576 = arith.addf %569, %575 : vector<4x128xf32>
    %c8_i32_198 = arith.constant 8 : i32
    %577 = tpu.dynamic_rotate %568 by %c8_i32_198 dim 1 : vector<4x128xf32>, i32 -> vector<4x128xf32>
    %578 = vector.extract_strided_slice %499 {offsets = [1, 0], sizes = [1, 128], strides = [1, 1]} : vector<9x128xf32> to vector<1x128xf32>
    %579 = vector.broadcast %578 : vector<1x128xf32> to vector<4x128xf32>
    %580 = arith.mulf %577, %579 : vector<4x128xf32>
    %581 = vector.extract_strided_slice %502 {offsets = [4, 0], sizes = [4, 4], strides = [1, 1]} : vector<36x4xf32> to vector<4x4xf32>
    %cst_199 = arith.constant dense<0.000000e+00> : vector<4x128xf32>
    %582 = tpu.matmul %581, %580, %cst_199 {dimension_numbers = #tpu.dot_dimension_numbers<[1], [0], [0], [1], [0, 0, 1, 1], [], []>} : vector<4x4xf32>, vector<4x128xf32>, vector<4x128xf32> -> vector<4x128xf32>
    %583 = arith.addf %576, %582 : vector<4x128xf32>
    %c7_i32_200 = arith.constant 7 : i32
    %584 = tpu.dynamic_rotate %568 by %c7_i32_200 dim 1 : vector<4x128xf32>, i32 -> vector<4x128xf32>
    %585 = vector.extract_strided_slice %499 {offsets = [2, 0], sizes = [1, 128], strides = [1, 1]} : vector<9x128xf32> to vector<1x128xf32>
    %586 = vector.broadcast %585 : vector<1x128xf32> to vector<4x128xf32>
    %587 = arith.mulf %584, %586 : vector<4x128xf32>
    %588 = vector.extract_strided_slice %502 {offsets = [8, 0], sizes = [4, 4], strides = [1, 1]} : vector<36x4xf32> to vector<4x4xf32>
    %cst_201 = arith.constant dense<0.000000e+00> : vector<4x128xf32>
    %589 = tpu.matmul %588, %587, %cst_201 {dimension_numbers = #tpu.dot_dimension_numbers<[1], [0], [0], [1], [0, 0, 1, 1], [], []>} : vector<4x4xf32>, vector<4x128xf32>, vector<4x128xf32> -> vector<4x128xf32>
    %590 = arith.addf %583, %589 : vector<4x128xf32>
    %c1_i32_202 = arith.constant 1 : i32
    %591 = tpu.dynamic_rotate %568 by %c1_i32_202 dim 1 : vector<4x128xf32>, i32 -> vector<4x128xf32>
    %592 = vector.extract_strided_slice %499 {offsets = [3, 0], sizes = [1, 128], strides = [1, 1]} : vector<9x128xf32> to vector<1x128xf32>
    %593 = vector.broadcast %592 : vector<1x128xf32> to vector<4x128xf32>
    %594 = arith.mulf %591, %593 : vector<4x128xf32>
    %595 = vector.extract_strided_slice %502 {offsets = [12, 0], sizes = [4, 4], strides = [1, 1]} : vector<36x4xf32> to vector<4x4xf32>
    %cst_203 = arith.constant dense<0.000000e+00> : vector<4x128xf32>
    %596 = tpu.matmul %595, %594, %cst_203 {dimension_numbers = #tpu.dot_dimension_numbers<[1], [0], [0], [1], [0, 0, 1, 1], [], []>} : vector<4x4xf32>, vector<4x128xf32>, vector<4x128xf32> -> vector<4x128xf32>
    %597 = arith.addf %590, %596 : vector<4x128xf32>
    %598 = vector.extract_strided_slice %502 {offsets = [16, 0], sizes = [4, 4], strides = [1, 1]} : vector<36x4xf32> to vector<4x4xf32>
    %cst_204 = arith.constant dense<0.000000e+00> : vector<4x128xf32>
    %599 = tpu.matmul %598, %568, %cst_204 {dimension_numbers = #tpu.dot_dimension_numbers<[1], [0], [0], [1], [0, 0, 1, 1], [], []>} : vector<4x4xf32>, vector<4x128xf32>, vector<4x128xf32> -> vector<4x128xf32>
    %600 = arith.addf %597, %599 : vector<4x128xf32>
    %c127_i32_205 = arith.constant 127 : i32
    %601 = tpu.dynamic_rotate %568 by %c127_i32_205 dim 1 : vector<4x128xf32>, i32 -> vector<4x128xf32>
    %602 = vector.extract_strided_slice %499 {offsets = [5, 0], sizes = [1, 128], strides = [1, 1]} : vector<9x128xf32> to vector<1x128xf32>
    %603 = vector.broadcast %602 : vector<1x128xf32> to vector<4x128xf32>
    %604 = arith.mulf %601, %603 : vector<4x128xf32>
    %605 = vector.extract_strided_slice %502 {offsets = [20, 0], sizes = [4, 4], strides = [1, 1]} : vector<36x4xf32> to vector<4x4xf32>
    %cst_206 = arith.constant dense<0.000000e+00> : vector<4x128xf32>
    %606 = tpu.matmul %605, %604, %cst_206 {dimension_numbers = #tpu.dot_dimension_numbers<[1], [0], [0], [1], [0, 0, 1, 1], [], []>} : vector<4x4xf32>, vector<4x128xf32>, vector<4x128xf32> -> vector<4x128xf32>
    %607 = arith.addf %600, %606 : vector<4x128xf32>
    %c121_i32_207 = arith.constant 121 : i32
    %608 = tpu.dynamic_rotate %568 by %c121_i32_207 dim 1 : vector<4x128xf32>, i32 -> vector<4x128xf32>
    %609 = vector.extract_strided_slice %499 {offsets = [6, 0], sizes = [1, 128], strides = [1, 1]} : vector<9x128xf32> to vector<1x128xf32>
    %610 = vector.broadcast %609 : vector<1x128xf32> to vector<4x128xf32>
    %611 = arith.mulf %608, %610 : vector<4x128xf32>
    %612 = vector.extract_strided_slice %502 {offsets = [24, 0], sizes = [4, 4], strides = [1, 1]} : vector<36x4xf32> to vector<4x4xf32>
    %cst_208 = arith.constant dense<0.000000e+00> : vector<4x128xf32>
    %613 = tpu.matmul %612, %611, %cst_208 {dimension_numbers = #tpu.dot_dimension_numbers<[1], [0], [0], [1], [0, 0, 1, 1], [], []>} : vector<4x4xf32>, vector<4x128xf32>, vector<4x128xf32> -> vector<4x128xf32>
    %614 = arith.addf %607, %613 : vector<4x128xf32>
    %c120_i32_209 = arith.constant 120 : i32
    %615 = tpu.dynamic_rotate %568 by %c120_i32_209 dim 1 : vector<4x128xf32>, i32 -> vector<4x128xf32>
    %616 = vector.extract_strided_slice %499 {offsets = [7, 0], sizes = [1, 128], strides = [1, 1]} : vector<9x128xf32> to vector<1x128xf32>
    %617 = vector.broadcast %616 : vector<1x128xf32> to vector<4x128xf32>
    %618 = arith.mulf %615, %617 : vector<4x128xf32>
    %619 = vector.extract_strided_slice %502 {offsets = [28, 0], sizes = [4, 4], strides = [1, 1]} : vector<36x4xf32> to vector<4x4xf32>
    %cst_210 = arith.constant dense<0.000000e+00> : vector<4x128xf32>
    %620 = tpu.matmul %619, %618, %cst_210 {dimension_numbers = #tpu.dot_dimension_numbers<[1], [0], [0], [1], [0, 0, 1, 1], [], []>} : vector<4x4xf32>, vector<4x128xf32>, vector<4x128xf32> -> vector<4x128xf32>
    %621 = arith.addf %614, %620 : vector<4x128xf32>
    %c119_i32_211 = arith.constant 119 : i32
    %622 = tpu.dynamic_rotate %568 by %c119_i32_211 dim 1 : vector<4x128xf32>, i32 -> vector<4x128xf32>
    %623 = vector.extract_strided_slice %499 {offsets = [8, 0], sizes = [1, 128], strides = [1, 1]} : vector<9x128xf32> to vector<1x128xf32>
    %624 = vector.broadcast %623 : vector<1x128xf32> to vector<4x128xf32>
    %625 = arith.mulf %622, %624 : vector<4x128xf32>
    %626 = vector.extract_strided_slice %502 {offsets = [32, 0], sizes = [4, 4], strides = [1, 1]} : vector<36x4xf32> to vector<4x4xf32>
    %cst_212 = arith.constant dense<0.000000e+00> : vector<4x128xf32>
    %627 = tpu.matmul %626, %625, %cst_212 {dimension_numbers = #tpu.dot_dimension_numbers<[1], [0], [0], [1], [0, 0, 1, 1], [], []>} : vector<4x4xf32>, vector<4x128xf32>, vector<4x128xf32> -> vector<4x128xf32>
    %628 = arith.addf %621, %627 : vector<4x128xf32>
    %629 = vector.broadcast %503 : vector<4x1xf32> to vector<4x128xf32>
    %630 = arith.addf %628, %629 : vector<4x128xf32>
    %cst_213 = arith.constant 0.000000e+00 : f32
    %631 = vector.broadcast %cst_213 : f32 to vector<4x128xf32>
    %632 = arith.maximumf %630, %631 : vector<4x128xf32>
    %633 = arith.addf %632, %568 : vector<4x128xf32>
    %c0_214 = arith.constant 0 : index
    %c0_215 = arith.constant 0 : index
    %634 = vector.load %arg26[%c0_214, %c0_215] : memref<12x4xf32, #tpu.memory_space<vmem>>, vector<12x4xf32>
    %c0_216 = arith.constant 0 : index
    %c0_217 = arith.constant 0 : index
    %635 = vector.load %arg27[%c0_216, %c0_217] : memref<3x1xf32, #tpu.memory_space<vmem>>, vector<3x1xf32>
    %c0_218 = arith.constant 0 : index
    %c0_219 = arith.constant 0 : index
    %636 = vector.load %arg28[%c0_218, %c0_219] : memref<512x512xf32, #tpu.memory_space<vmem>>, vector<512x512xf32>
    %cst_220 = arith.constant 0.000000e+00 : f32
    %637 = vector.broadcast %cst_220 : f32 to vector<3x512xf32>
    %638 = vector.extract_strided_slice %634 {offsets = [0, 0], sizes = [3, 4], strides = [1, 1]} : vector<12x4xf32> to vector<3x4xf32>
    %cst_221 = arith.constant dense<0.000000e+00> : vector<3x128xf32>
    %639 = tpu.matmul %638, %633, %cst_221 {dimension_numbers = #tpu.dot_dimension_numbers<[1], [0], [0], [1], [0, 0, 1, 1], [], []>} : vector<3x4xf32>, vector<4x128xf32>, vector<3x128xf32> -> vector<3x128xf32>
    %640 = vector.extract_strided_slice %636 {offsets = [0, 0], sizes = [128, 512], strides = [1, 1]} : vector<512x512xf32> to vector<128x512xf32>
    %cst_222 = arith.constant dense<0.000000e+00> : vector<3x512xf32>
    %641 = tpu.matmul %639, %640, %cst_222 {dimension_numbers = #tpu.dot_dimension_numbers<[1], [0], [0], [1], [0, 0, 1, 1], [], []>} : vector<3x128xf32>, vector<128x512xf32>, vector<3x512xf32> -> vector<3x512xf32>
    %642 = arith.addf %637, %641 : vector<3x512xf32>
    %643 = vector.extract_strided_slice %634 {offsets = [3, 0], sizes = [3, 4], strides = [1, 1]} : vector<12x4xf32> to vector<3x4xf32>
    %cst_223 = arith.constant dense<0.000000e+00> : vector<3x128xf32>
    %644 = tpu.matmul %643, %633, %cst_223 {dimension_numbers = #tpu.dot_dimension_numbers<[1], [0], [0], [1], [0, 0, 1, 1], [], []>} : vector<3x4xf32>, vector<4x128xf32>, vector<3x128xf32> -> vector<3x128xf32>
    %645 = vector.extract_strided_slice %636 {offsets = [128, 0], sizes = [128, 512], strides = [1, 1]} : vector<512x512xf32> to vector<128x512xf32>
    %cst_224 = arith.constant dense<0.000000e+00> : vector<3x512xf32>
    %646 = tpu.matmul %644, %645, %cst_224 {dimension_numbers = #tpu.dot_dimension_numbers<[1], [0], [0], [1], [0, 0, 1, 1], [], []>} : vector<3x128xf32>, vector<128x512xf32>, vector<3x512xf32> -> vector<3x512xf32>
    %647 = arith.addf %642, %646 : vector<3x512xf32>
    %648 = vector.extract_strided_slice %634 {offsets = [6, 0], sizes = [3, 4], strides = [1, 1]} : vector<12x4xf32> to vector<3x4xf32>
    %cst_225 = arith.constant dense<0.000000e+00> : vector<3x128xf32>
    %649 = tpu.matmul %648, %633, %cst_225 {dimension_numbers = #tpu.dot_dimension_numbers<[1], [0], [0], [1], [0, 0, 1, 1], [], []>} : vector<3x4xf32>, vector<4x128xf32>, vector<3x128xf32> -> vector<3x128xf32>
    %650 = vector.extract_strided_slice %636 {offsets = [256, 0], sizes = [128, 512], strides = [1, 1]} : vector<512x512xf32> to vector<128x512xf32>
    %cst_226 = arith.constant dense<0.000000e+00> : vector<3x512xf32>
    %651 = tpu.matmul %649, %650, %cst_226 {dimension_numbers = #tpu.dot_dimension_numbers<[1], [0], [0], [1], [0, 0, 1, 1], [], []>} : vector<3x128xf32>, vector<128x512xf32>, vector<3x512xf32> -> vector<3x512xf32>
    %652 = arith.addf %647, %651 : vector<3x512xf32>
    %653 = vector.extract_strided_slice %634 {offsets = [9, 0], sizes = [3, 4], strides = [1, 1]} : vector<12x4xf32> to vector<3x4xf32>
    %cst_227 = arith.constant dense<0.000000e+00> : vector<3x128xf32>
    %654 = tpu.matmul %653, %633, %cst_227 {dimension_numbers = #tpu.dot_dimension_numbers<[1], [0], [0], [1], [0, 0, 1, 1], [], []>} : vector<3x4xf32>, vector<4x128xf32>, vector<3x128xf32> -> vector<3x128xf32>
    %655 = vector.extract_strided_slice %636 {offsets = [384, 0], sizes = [128, 512], strides = [1, 1]} : vector<512x512xf32> to vector<128x512xf32>
    %cst_228 = arith.constant dense<0.000000e+00> : vector<3x512xf32>
    %656 = tpu.matmul %654, %655, %cst_228 {dimension_numbers = #tpu.dot_dimension_numbers<[1], [0], [0], [1], [0, 0, 1, 1], [], []>} : vector<3x128xf32>, vector<128x512xf32>, vector<3x512xf32> -> vector<3x512xf32>
    %657 = arith.addf %652, %656 : vector<3x512xf32>
    %658 = vector.broadcast %635 : vector<3x1xf32> to vector<3x512xf32>
    %659 = arith.addf %657, %658 : vector<3x512xf32>
    %cst_229 = arith.constant 0.000000e+00 : f32
    %660 = vector.broadcast %cst_229 : f32 to vector<3x512xf32>
    %661 = arith.maximumf %659, %660 : vector<3x512xf32>
    %c0_230 = arith.constant 0 : index
    %c0_231 = arith.constant 0 : index
    %662 = vector.load %arg29[%c0_230, %c0_231] : memref<3x3xf32, #tpu.memory_space<vmem>>, vector<3x3xf32>
    %c0_232 = arith.constant 0 : index
    %c0_233 = arith.constant 0 : index
    %663 = vector.load %arg30[%c0_232, %c0_233] : memref<3x1xf32, #tpu.memory_space<vmem>>, vector<3x1xf32>
    %cst_234 = arith.constant dense<0.000000e+00> : vector<3x512xf32>
    %664 = tpu.matmul %662, %661, %cst_234 {dimension_numbers = #tpu.dot_dimension_numbers<[1], [0], [0], [1], [0, 0, 1, 1], [], []>} : vector<3x3xf32>, vector<3x512xf32>, vector<3x512xf32> -> vector<3x512xf32>
    %665 = vector.broadcast %663 : vector<3x1xf32> to vector<3x512xf32>
    %666 = arith.addf %664, %665 : vector<3x512xf32>
    %c0_235 = arith.constant 0 : index
    %c0_236 = arith.constant 0 : index
    %667 = vector.load %arg31[%c0_235, %c0_236] : memref<3x512xf32, #tpu.memory_space<vmem>>, vector<3x512xf32>
    tpu.vector_store %arg31[%c0_235, %c0_236], %666 {strides = array<i32>} : memref<3x512xf32, #tpu.memory_space<vmem>>, vector<3x512xf32>,
    return
  }
}

</mosaic_0001>

<bundles_post_ra>
// kernel: generator_forward.1
= control target key start
LH: loop header
LB: loop body
LE: loop exit
PB: predicated region body
PF: predicated region fallthrough
CT: control target
= control target key end

     0   :  { %s7185_s6 = smov 1   ;;  %s7186_s10 = smov 2   ;;  %s8918_s0 = inlined_call_operand.smem [shape: u32[32], index: -1, kind: input, shape index: {}] }
   0x1   :  { %s7244_s5 = sld [smem:[%s8918_s0]]   ;;  %s7187_s14 = smov 3  }
   0x2   :  { %s7249_s9 = sld [smem:[%s8918_s0 + %s7185_s6]]   ;;  %s7188_s18 = smov 4  }
   0x3   :  { %s7254_s13 = sld [smem:[%s8918_s0 + %s7186_s10]]   ;;  %s7189_s22 = smov 5  }
   0x4   :  { %s7259_s17 = sld [smem:[%s8918_s0 + %s7187_s14]]   ;;  %s7190_s26 = smov 6  }
   0x5   :  { %s7264_s21 = sld [smem:[%s8918_s0 + %s7188_s18]]   ;;  %s7191_s30 = smov 7  }
   0x6   :  { %s7269_s25 = sld [smem:[%s8918_s0 + %s7189_s22]]   ;;  %s7192_s4 = smov 8  }
   0x7   :  { %s7274_s29 = sld [smem:[%s8918_s0 + %s7190_s26]]   ;;  %s7193_s10 = smov 9  }
   0x8   :  { %s7279_s3 = sld [smem:[%s8918_s0 + %s7191_s30]]   ;;  %s7194_s15 = smov 10  }
   0x9   :  { %s7284_s8 = sld [smem:[%s8918_s0 + %s7192_s4]]   ;;  %s7195_s20 = smov 11  }
   0xa   :  { %s7289_s14 = sld [smem:[%s8918_s0 + %s7193_s10]]   ;;  %s7196_s26 = smov 12  }
   0xb   :  { %s7294_s19 = sld [smem:[%s8918_s0 + %s7194_s15]]   ;;  %s7197_s1 = smov 13  }
   0xc   :  { %s7299_s24 = sld [smem:[%s8918_s0 + %s7195_s20]]   ;;  %s7198_s7 = smov 14  }
   0xd   :  { %s7304_s30 = sld [smem:[%s8918_s0 + %s7196_s26]]   ;;  %s7199_s15 = smov 15  }
   0xe   :  { %s7309_s6 = sld [smem:[%s8918_s0 + %s7197_s1]]   ;;  %s7200_s22 = smov 16  }
   0xf   :  { %s7314_s12 = sld [smem:[%s8918_s0 + %s7198_s7]]   ;;  %s7201_s28 = smov 17  }
  0x10   :  { %s7319_s20 = sld [smem:[%s8918_s0 + %s7199_s15]]   ;;  %s7202_s7 = smov 18  }
  0x11   :  { %s7324_s27 = sld [smem:[%s8918_s0 + %s7200_s22]]   ;;  %s7203_s15 = smov 19  }
  0x12   :  { %s7329_s4 = sld [smem:[%s8918_s0 + %s7201_s28]]   ;;  %s7204_s22 = smov 20  }
  0x13   :  { %8958 = sst [smem:[#allocation8_spill]] %s7304_s30  ;;  %s7205_s28 = smov 21  }
  0x14   :  { %s7334_s30 = sld [smem:[%s8918_s0 + %s7202_s7]]   ;;  %s7206_s7 = smov 22  }
  0x16   :  { %8959 = sst [smem:[#allocation9_spill]] %s7319_s20 }
  0x17   :  { %8960 = sst [smem:[#allocation10_spill]] %s7324_s27 }
  0x18   :  { %8961 = sst [smem:[#allocation11_spill]] %s7329_s4 }
  0x19   :  { %s7339_s20 = sld [smem:[%s8918_s0 + %s7203_s15]]   ;;  %s7207_s15 = smov 23  }
  0x1a   :  { %8962 = sst [smem:[#allocation12_spill]] %s7334_s30 }
  0x1b   :  { %s7344_s27 = sld [smem:[%s8918_s0 + %s7204_s22]]   ;;  %s7208_s22 = smov 24  }
  0x1c   :  { %s7349_s4 = sld [smem:[%s8918_s0 + %s7205_s28]]   ;;  %s7209_s28 = smov 25  }
  0x1d   :  { %s7354_s30 = sld [smem:[%s8918_s0 + %s7206_s7]]   ;;  %s7210_s7 = smov 26  }
  0x1f   :  { %8963 = sst [smem:[#allocation13_spill]] %s7339_s20 }
  0x20   :  { %s7359_s20 = sld [smem:[%s8918_s0 + %s7207_s15]]   ;;  %s7211_s15 = smov 27  }
  0x21   :  { %8964 = sst [smem:[#allocation14_spill]] %s7344_s27 }
  0x22   :  { %8965 = sst [smem:[#allocation15_spill]] %s7349_s4 }
  0x23   :  { %8966 = sst [smem:[#allocation16_spill]] %s7354_s30 }
  0x24   :  { %s7364_s27 = sld [smem:[%s8918_s0 + %s7208_s22]]   ;;  %s7212_s22 = smov 28  }
  0x25   :  { %s7369_s4 = sld [smem:[%s8918_s0 + %s7209_s28]]   ;;  %s7213_s28 = smov 29  }
  0x26   :  { %8967 = sst [smem:[#allocation17_spill]] %s7359_s20 }
  0x27   :  { %s7374_s30 = sld [smem:[%s8918_s0 + %s7210_s7]]   ;;  %s7214_s7 = smov 30  }
  0x28   :  { %s7379_s20 = sld [smem:[%s8918_s0 + %s7211_s15]]   ;;  %s7215_s15 = smov 31  }
  0x2a   :  { %8968 = sst [smem:[#allocation18_spill]] %s7364_s27 }
  0x2b   :  { %8969 = sst [smem:[#allocation19_spill]] %s7369_s4 }
  0x2c   :  { %s7384_s27 = sld [smem:[%s8918_s0 + %s7212_s22]]  }
  0x2d   :  { %8970 = sst [smem:[#allocation20_spill]] %s7374_s30 }
  0x2e   :  { %8971 = sst [smem:[#allocation21_spill]] %s7379_s20 }
  0x2f   :  { %s7389_s4 = sld [smem:[%s8918_s0 + %s7213_s28]]  }
  0x30   :  { %s7394_s30 = sld [smem:[%s8918_s0 + %s7214_s7]]  }
  0x31   :  { %s7399_s20 = sld [smem:[%s8918_s0 + %s7215_s15]]  }
  0x32   :  { %68 = vsyncpa [#allocation3], 0  ;;  %s102_s22 = sshll.u32 %s7314_s12, 4  ;;  %s103_s22 = int_to_ptr.hbm [resolvable:$true] %s102_s22 }
  0x33   :  { %69 = vsyncpa [#allocation5], 0  ;;  %s7216_s23 = smov [#allocation2]   ;;  %s141_s28 = sshll.u32 %s7384_s27, 4  ;;  %s142_s28 = int_to_ptr.hbm [resolvable:$true] %s141_s28 }
  0x34   :  { %s104_s26 = sshll.u32 %s7216_s23, 4  ;;  %s7133_s1 = sshra.s32 %s103_s22, 4  ;;  %s105_s26 = int_to_ptr.vmem [resolvable:$true] %s104_s26  ;;  %s7134_s1 = int_to_ptr.hbm [resolvable:$true] %s7133_s1 }
  0x35   :  { %s7135_s2 = scalar_lea.hbm %s7134_s1, 2048  ;;  %s7137_s7 = scalar_lea.hbm %s7314_s12, 2048 }
  0x36   :  { %p7136_p0 = scmp.ne.s32.totalorder %s7134_s1, %s7135_s2  ;;  %p7138_p1 = scmp.lt.s32.totalorder %s7134_s1, %s7314_s12 }
  0x37   :  { %p7139_p2 = scmp.lt.s32.totalorder %s7137_s7, %s7135_s2 }
  0x39   :  { %p7140_p3 = por %p7139_p2, %p7138_p1 }
  0x3b   :  { %p7141_p4 = pnand %p7140_p3, %p7136_p0 }
  0x3d   :  { %7144 = shalt.err (!%p7141_p4)
}
  0x3e   :  { %s7217_s0 = smov 128   ;;  %s7218_s10 = smov 8  }
  0x3f   :  { %110 = dma.hbm_to_vmem [thread:$0]  %s103_s22, 32768, %s105_s26, [#allocation3], %s7217_s0, %s7217_s0, %s7218_s10  }
  0x40   :  { %s7219_s11 = smov [#allocation4]   ;;  %s7157_s16 = sshra.s32 %s142_s28, 4  ;;  %s7158_s16 = int_to_ptr.hbm [resolvable:$true] %s7157_s16 }
  0x41   :  { %s143_s15 = sshll.u32 %s7219_s11, 4  ;;  %s7159_s18 = scalar_lea.hbm %s7158_s16, 2048  ;;  %s144_s15 = int_to_ptr.vmem [resolvable:$true] %s143_s15 }
  0x42   :  { %p7160_p5 = scmp.ne.s32.totalorder %s7158_s16, %s7159_s18  ;;  %s7161_s23 = scalar_lea.hbm %s7384_s27, 2048 }
  0x43   :  { %p7162_p6 = scmp.lt.s32.totalorder %s7158_s16, %s7384_s27  ;;  %p7163_p7 = scmp.lt.s32.totalorder %s7161_s23, %s7159_s18 }
  0x45   :  { %p7164_p8 = por %p7163_p7, %p7162_p6 }
  0x47   :  { %p7165_p9 = pnand %p7164_p8, %p7160_p5 }
  0x49   :  { %7168 = shalt.err (!%p7165_p9)
}
  0x4a   :  { %s7220_s12 = smov 512   ;;  %s7221_s1 = smov 32  }
  0x4b   :  { %149 = dma.hbm_to_vmem [thread:$0]  %s142_s28, 32768, %s144_s15, [#allocation5], %s7220_s12, %s7220_s12, %s7221_s1  }
  0x4c   :  { %7181 = dma.done.wait [#allocation3], 32768  }
  0x4d   :  { %7182 = vsyncadd [#allocation3], 4294934528 }
  0x4e   :  { %7183 = dma.done.wait [#allocation5], 32768  }
  0x4f   :  { %7184 = vsyncadd [#allocation5], 4294934528  ;;  %v7409_v0 = vld [vmem:[%s7244_s5] sm:$0x77]  ;;  %v7412_v1 = vld [vmem:[%s7244_s5 + $0x8] sm:$0x77]  ;;  %v203_v42 = vlaneseq }
  0x50   :  { %184 = vst [vmem:[#allocation1] ss:$2 sm:$0xff] %v7409_v0  ;;  %s7222_s27 = smov 17   ;;  %s7223_s5 = smov 16   ;;  %v7479_v46 = vld [vmem:[%s7249_s9 + $0x10] sm:$0xff]  ;;  %v7482_v47 = vld [vmem:[%s7249_s9 + $0x18] sm:$0xff] }
  0x51   :  { %186 = vst [vmem:[#allocation1 + $0x10] ss:$2 sm:$0xff] %v7412_v1  ;;  %s7224_s22 = smov 15   ;;  %s7225_s26 = smov 1   ;;  %v7476_v45 = vand.u32 127, %v203_v42  ;;  %v7485_v48 = vld [vmem:[%s7249_s9 + $0x8] sm:$0xff] }
  0x52   :  { %s7226_s28 = smov 127   ;;  %s7227_s2 = smov 113   ;;  %v7488_v50 = vld [vmem:[%s7249_s9] sm:$0xff]  ;;  %v7492_v51 = vperm.slane %v7479_v46, 1  ;;  %v7495_v52 = vperm.slane %v7482_v47, 1  ;;  %v7502_v54 = vperm.slane %v7485_v48, 0 }
  0x53   :  { %s7228_s7 = smov 112   ;;  %s7229_s0 = smov 111   ;;  %vm237_vm0 = vcmp.lt.s32.totalorder %v7476_v45, 16  ;;  %v7498_v53 = vld [vmem:[%s7254_s13] sm:$0xff]  ;;  %vm205_vm1 = vcmp.lt.s32.totalorder %v7476_v45, 17  ;;  %v7505_v55 = vperm.slane %v7479_v46, 0 }
  0x54   :  { %vm461_vm2 = vcmp.lt.s32.totalorder %v7476_v45, 15  ;;  %v7511_v58 = vperm.slane %v7488_v50, 1  ;;  %vm255_vm3 = vcmask 1042432   ;;  %v7514_v59 = vperm.slane %v7485_v48, 1  ;;  %s9029_s11 = sld [smem:[#allocation17_spill]] }
  0x55   :  { %v251_v62 = vrot.slane %v7498_v53, 3  ;;  %v7522_v63 = vperm.slane %v7485_v48, 2  ;;  %vm252_vm4 = vcmask 23552   ;;  %vm475_vm5 = vcmask 1041408   ;;  %s9030_s15 = sld [smem:[#allocation15_spill]] }
  0x56   :  { %vm596_vm6 = vcmp.lt.s32.totalorder %v7476_v45, 1  ;;  %vm829_vm7 = vcmp.lt.s32.totalorder %v7476_v45, 127  ;;  %vm964_vm8 = vcmp.lt.s32.totalorder %v7476_v45, 113  ;;  %vm843_vm9 = vcmask 1040384   ;;  %s9031_s16 = sld [smem:[#allocation16_spill]] }
  0x57   :  { %v187_v2 = vld.sshfl [vmem:[#allocation1] sm:$0xff pattern:$0x75316420]  ;;  %v188_v3 = vld.sshfl [vmem:[#allocation1 + $0x8] sm:$0xff pattern:$0x75316420] }
  0x58   :  { %195 = vrot.lane.b32.xlu1 %v187_v2, %s7222_s27  ;;  %218 = vst [vmem:[#allocation1] ss:$2 sm:$0xff] %v7409_v0  ;;  %v189_v4 = vld.sshfl [vmem:[#allocation1 + $0x10] sm:$0xff pattern:$0x75316420]  ;;  %197 = vrot.lane.b32.xlu2 %v188_v3, %s7222_s27  ;;  %vm1095_vm10 = vcmp.lt.s32.totalorder %v7476_v45, 112 }
  0x59   :  { %v190_v5 = vld.sshfl [vmem:[#allocation1 + $0x18] sm:$0xff pattern:$0x75316420]  ;;  %vm1226_vm11 = vcmp.lt.s32.totalorder %v7476_v45, 111  ;;  %vm3598_vm12 = vcmask 1043456   ;;  %vm3595_vm13 = vcmask 31744  }
  0x5a   :  { %220 = vst [vmem:[#allocation1 + $0x10] ss:$2 sm:$0xff] %v7412_v1  ;;  %s9032_s18 = sld [smem:[#allocation19_spill]] }
  0x5b   :  { %s9033_s23 = sld [smem:[#allocation18_spill]] }
  0x5c   :  { %s9035_s12 = sld [smem:[#allocation21_spill]] }
  0x5f   :  { %v222_v6 = vld.sshfl [vmem:[#allocation1 + $0x8] sm:$0xff pattern:$0x75316420]  ;;  %v221_v7 = vld.sshfl [vmem:[#allocation1] sm:$0xff pattern:$0x75316420] }
  0x60   :  { %231 = vrot.lane.b32.xlu0 %v222_v6, %s7223_s5  ;;  %442 = vst [vmem:[#allocation1] ss:$2 sm:$0xff] %v7409_v0  ;;  %199 = vrot.lane.b32.xlu2 %v189_v4, %s7222_s27 }
  0x61   :  { %v224_v8 = vld.sshfl [vmem:[#allocation1 + $0x18] sm:$0xff pattern:$0x75316420]  ;;  %v223_v9 = vld.sshfl [vmem:[#allocation1 + $0x10] sm:$0xff pattern:$0x75316420] }
  0x62   :  { %235 = vrot.lane.b32.xlu1 %v224_v8, %s7223_s5  ;;  %444 = vst [vmem:[#allocation1 + $0x10] ss:$2 sm:$0xff] %v7412_v1 }
  0x67   :  { %v445_v10 = vld.sshfl [vmem:[#allocation1] sm:$0xff pattern:$0x75316420]  ;;  %v446_v11 = vld.sshfl [vmem:[#allocation1 + $0x8] sm:$0xff pattern:$0x75316420] }
  0x68   :  { %233 = vrot.lane.b32.xlu0 %v223_v9, %s7223_s5  ;;  %577 = vst [vmem:[#allocation1] ss:$2 sm:$0xff] %v7409_v0  ;;  %455 = vrot.lane.b32.xlu2 %v446_v11, %s7224_s22 }
  0x69   :  { %v448_v12 = vld.sshfl [vmem:[#allocation1 + $0x18] sm:$0xff pattern:$0x75316420]  ;;  %v447_v13 = vld.sshfl [vmem:[#allocation1 + $0x10] sm:$0xff pattern:$0x75316420] }
  0x6a   :  { %229 = vrot.lane.b32.xlu1 %v221_v7, %s7223_s5  ;;  %579 = vst [vmem:[#allocation1 + $0x10] ss:$2 sm:$0xff] %v7412_v1 }
  0x6f   :  { %v581_v14 = vld.sshfl [vmem:[#allocation1 + $0x8] sm:$0xff pattern:$0x75316420]  ;;  %v580_v15 = vld.sshfl [vmem:[#allocation1] sm:$0xff pattern:$0x75316420] }
  0x70   :  { %201 = vrot.lane.b32.xlu0 %v190_v5, %s7222_s27  ;;  %709 = vst [vmem:[#allocation1] ss:$2 sm:$0xff] %v7409_v0  ;;  %453 = vrot.lane.b32.xlu2 %v445_v10, %s7224_s22 }
  0x71   :  { %v583_v16 = vld.sshfl [vmem:[#allocation1 + $0x18] sm:$0xff pattern:$0x75316420]  ;;  %v582_v17 = vld.sshfl [vmem:[#allocation1 + $0x10] sm:$0xff pattern:$0x75316420] }
  0x72   :  { %459 = vrot.lane.b32.xlu1 %v448_v12, %s7224_s22  ;;  %711 = vst [vmem:[#allocation1 + $0x10] ss:$2 sm:$0xff] %v7412_v1  ;;  %v7547_v12 = vperm.slane %v7488_v50, 0 }
  0x77   :  { %v7435_v18 = vld.sshfl [vmem:[#allocation1] sm:$0xff pattern:$0x75316420]  ;;  %v7437_v19 = vld.sshfl [vmem:[#allocation1 + $0x8] sm:$0xff pattern:$0x75316420] }
  0x78   :  { %457 = vrot.lane.b32.xlu0 %v447_v13, %s7224_s22  ;;  %810 = vst [vmem:[#allocation1] ss:$2 sm:$0xff] %v7409_v0  ;;  %594 = vrot.lane.b32.xlu2 %v583_v16, %s7225_s26  ;;  %v7550_v13 = vperm.slane %v7482_v47, 0  ;;  %v7559_v16 = vperm.slane %v7488_v50, 2 }
  0x79   :  { %v7442_v20 = vld.sshfl [vmem:[#allocation1 + $0x10] sm:$0xff pattern:$0x75316420]  ;;  %v7444_v21 = vld.sshfl [vmem:[#allocation1 + $0x18] sm:$0xff pattern:$0x75316420] }
  0x7a   :  { %592 = vrot.lane.b32.xlu1 %v582_v17, %s7225_s26  ;;  %812 = vst [vmem:[#allocation1 + $0x10] ss:$2 sm:$0xff] %v7412_v1 }
  0x7f   :  { %v814_v22 = vld.sshfl [vmem:[#allocation1 + $0x8] sm:$0xff pattern:$0x75316420]  ;;  %v813_v23 = vld.sshfl [vmem:[#allocation1] sm:$0xff pattern:$0x75316420] }
  0x80   :  { %590 = vrot.lane.b32.xlu0 %v581_v14, %s7225_s26  ;;  %945 = vst [vmem:[#allocation1] ss:$2 sm:$0xff] %v7409_v0 }
  0x81   :  { %v815_v24 = vld.sshfl [vmem:[#allocation1 + $0x10] sm:$0xff pattern:$0x75316420]  ;;  %v816_v25 = vld.sshfl [vmem:[#allocation1 + $0x18] sm:$0xff pattern:$0x75316420] }
  0x82   :  { %825 = vrot.lane.b32.xlu1 %v815_v24, %s7226_s28  ;;  %947 = vst [vmem:[#allocation1 + $0x10] ss:$2 sm:$0xff] %v7412_v1  ;;  %827 = vrot.lane.b32.xlu2 %v816_v25, %s7226_s28 }
  0x87   :  { %v949_v26 = vld.sshfl [vmem:[#allocation1 + $0x8] sm:$0xff pattern:$0x75316420]  ;;  %v948_v27 = vld.sshfl [vmem:[#allocation1] sm:$0xff pattern:$0x75316420] }
  0x88   :  { %588 = vrot.lane.b32.xlu0 %v580_v15, %s7225_s26  ;;  %1076 = vst [vmem:[#allocation1] ss:$2 sm:$0xff] %v7409_v0 }
  0x89   :  { %v950_v28 = vld.sshfl [vmem:[#allocation1 + $0x10] sm:$0xff pattern:$0x75316420]  ;;  %v951_v29 = vld.sshfl [vmem:[#allocation1 + $0x18] sm:$0xff pattern:$0x75316420] }
  0x8a   :  { %823 = vrot.lane.b32.xlu1 %v814_v22, %s7226_s28  ;;  %1078 = vst [vmem:[#allocation1 + $0x10] ss:$2 sm:$0xff] %v7412_v1  ;;  %960 = vrot.lane.b32.xlu2 %v950_v28, %s7227_s2 }
  0x8f   :  { %v1079_v30 = vld.sshfl [vmem:[#allocation1] sm:$0xff pattern:$0x75316420]  ;;  %v1080_v31 = vld.sshfl [vmem:[#allocation1 + $0x8] sm:$0xff pattern:$0x75316420] }
  0x90   :  { %821 = vrot.lane.b32.xlu0 %v813_v23, %s7226_s28  ;;  %1207 = vst [vmem:[#allocation1] ss:$2 sm:$0xff] %v7409_v0 }
  0x91   :  { %v1082_v32 = vld.sshfl [vmem:[#allocation1 + $0x18] sm:$0xff pattern:$0x75316420]  ;;  %v1081_v33 = vld.sshfl [vmem:[#allocation1 + $0x10] sm:$0xff pattern:$0x75316420] }
  0x92   :  { %956 = vrot.lane.b32.xlu1 %v948_v27, %s7227_s2  ;;  %1209 = vst [vmem:[#allocation1 + $0x10] ss:$2 sm:$0xff] %v7412_v1  ;;  %958 = vrot.lane.b32.xlu2 %v949_v26, %s7227_s2  ;;  %v7571_v27 = vld [vmem:[%s7254_s13 + $0x8] sm:$0xff] }
  0x97   :  { %v1211_v34 = vld.sshfl [vmem:[#allocation1 + $0x8] sm:$0xff pattern:$0x75316420]  ;;  %v1210_v35 = vld.sshfl [vmem:[#allocation1] sm:$0xff pattern:$0x75316420] }
  0x98   :  { %962 = vrot.lane.b32.xlu0 %v951_v29, %s7227_s2  ;;  %1351 = vst [vmem:[#allocation1] ss:$2 sm:$0xff] %v7409_v0  ;;  %v7581_v29 = vperm.slane %v7479_v46, 2 }
  0x99   :  { %v1212_v36 = vld.sshfl [vmem:[#allocation1 + $0x10] sm:$0xff pattern:$0x75316420]  ;;  %v1213_v37 = vld.sshfl [vmem:[#allocation1 + $0x18] sm:$0xff pattern:$0x75316420] }
  0x9a   :  { %1093 = vrot.lane.b32.xlu1 %v1082_v32, %s7228_s7  ;;  %1087 = vrot.lane.b32.xlu2 %v1079_v30, %s7228_s7  ;;  %1353 = vst [vmem:[#allocation1 + $0x10] ss:$2 sm:$0xff] %v7412_v1  ;;  %v7584_v30 = vperm.slane %v7482_v47, 2  ;;  %v477_v32 = vrot.slane %v7571_v27, 6 }
  0xa0   :  { %1091 = vrot.lane.b32.xlu0 %v1081_v33, %s7228_s7 }
  0xa2   :  { %1222 = vrot.lane.b32.xlu1 %v1212_v36, %s7229_s0  ;;  %1224 = vrot.lane.b32.xlu2 %v1213_v37, %s7229_s0 }
  0xa8   :  { %1089 = vrot.lane.b32.xlu0 %v1080_v31, %s7228_s7  ;;  %v476_v31 = vrot.slane %v7498_v53, 6 }
  0xaa   :  { %1220 = vrot.lane.b32.xlu1 %v1211_v34, %s7229_s0  ;;  %v7595_v34 = vperm.slane %v7482_v47, 3  ;;  %v478_v42 = vsel %vm475_vm5, %v476_v31, %v477_v32 }
  0xac   :  { %8972 = vst [vmem:[#allocation22_spill] sm:$0xff] %v7595_v34 }
  0xb0   :  { %1218 = vrot.lane.b32.xlu0 %v1210_v35, %s7229_s0 }
  0xb2   :  { %v198_v38 = vpop.permute.xlu2 %197 }
  0xba   :  { %v200_v39 = vpop.permute.xlu2 %199 }
  0xbb   :  { %v207_v56 = vsel %vm205_vm1, %v198_v38, %v200_v39 }
  0xbc   :  { %v216_v7 = vmul.f32 %v7505_v55, %v207_v56 }
  0xc2   :  { %v7474_v41 = vpop.permute.xlu2 %455 }
  0xca   :  { %v196_v40 = vpop.permute.xlu1 %195  ;;  %v454_v49 = vpop.permute.xlu2 %453 }
  0xcb   :  { %v464_v3 = vsel %vm461_vm2, %v454_v49, %v7474_v41  ;;  %v208_v4 = vsel %vm205_vm1, %v196_v40, %v198_v38 }
  0xcc   :  { %v471_v10 = vmul.f32 %v7522_v63, %v464_v3  ;;  %v215_v11 = vmul.f32 %v7502_v54, %v208_v4 }
  0xd2   :  { %v232_v43 = vpop.permute.xlu0 %231  ;;  %v7552_v14 = vpop.permute.xlu2 %594 }
  0xd4   :  { %v236_v44 = vpop.permute.xlu1 %235 }
  0xda   :  { %v234_v57 = vpop.permute.xlu0 %233 }
  0xdb   :  { %v239_v60 = vsel %vm237_vm0, %v232_v43, %v234_v57  ;;  %v238_v61 = vsel %vm237_vm0, %v234_v57, %v236_v44  ;;  %v609_v57 = vrot.slane %v7571_v27, 1 }
  0xdc   :  { %v230_v0 = vpop.permute.xlu1 %229  ;;  %v248_v1 = vmul.f32 %v7492_v51, %v239_v60  ;;  %v249_v2 = vmul.f32 %v7495_v52, %v238_v61  ;;  %v7597_v35 = vpop.permute.xlu2 %827 }
  0xdd   :  { %v241_v5 = vsel %vm237_vm0, %v236_v44, %v230_v0  ;;  %v240_v6 = vsel %vm237_vm0, %v230_v0, %v232_v43 }
  0xde   :  { %v246_v8 = vmul.f32 %v7511_v58, %v241_v5  ;;  %v247_v9 = vmul.f32 %v7514_v59, %v240_v6  ;;  %6732 = vmatpush.msk.msra.mxu2 %vm255_vm3, %v248_v1  ;;  %6734 = vmatpush.msk.msra.mxu3 %vm255_vm3, %v249_v2  ;;  %v7641_v1 = vperm.slane %v7488_v50, 3  ;;  %v7644_v2 = vperm.slane %v7485_v48, 3 }
  0xdf   :  { %6733 = vmatmul.msk.f32.vlgmr.msra.gmra.mxu2 %vm252_vm4, %v251_v62  ;;  %6735 = vmatmul.msk.f32.vlgmr.msra.gmra.mxu3 %vm252_vm4, %v251_v62  ;;  %v7655_v6 = vperm.slane %v7485_v48, 5 }
  0xe0   :  { %6728 = vmatpush.msk.msra.mxu0 %vm255_vm3, %v246_v8  ;;  %6730 = vmatpush.msk.msra.mxu1 %vm255_vm3, %v247_v9  ;;  %8974 = vst [vmem:[#allocation24_spill] sm:$0xff] %v7641_v1 }
  0xe1   :  { %6731 = vmatmul.msk.f32.vlgmr.msra.gmra.mxu1 %vm252_vm4, %v251_v62  ;;  %6740 = vmatpush.msk.msrb.mxu2 %vm255_vm3, %v216_v7  ;;  %8975 = vst [vmem:[#allocation25_spill] sm:$0xff] %v7644_v2 }
  0xe2   :  { %6738 = vmatpush.msk.msrb.mxu1 %vm255_vm3, %v215_v11  ;;  %6729 = vmatmul.msk.f32.vlgmr.msra.gmra.mxu0 %vm252_vm4, %v251_v62  ;;  %v202_v15 = vpop.permute.xlu0 %201  ;;  %8976 = vst [vmem:[#allocation26_spill] sm:$0xff] %v7655_v6  ;;  %v7665_v11 = vld [vmem:[%s7254_s13 + $0x10] sm:$0xff] }
  0xe3   :  { %v206_v17 = vsel %vm205_vm1, %v200_v39, %v202_v15  ;;  %v209_v22 = vsel %vm205_vm1, %v202_v15, %v196_v40 }
  0xe4   :  { %6746 = vmatpush.msk.msra.mxu1 %vm255_vm3, %v471_v10  ;;  %v460_v23 = vpop.permute.xlu1 %459  ;;  %v214_v24 = vmul.f32 %v7547_v12, %v209_v22  ;;  %v217_v25 = vmul.f32 %v7550_v13, %v206_v17  ;;  %v7631_v62 = vpop.permute.xlu2 %960  ;;  %v7675_v17 = vperm.slane %v7488_v50, 5  ;;  %v7678_v22 = vperm.slane %v7482_v47, 5 }
  0xe5   :  { %v465_v26 = vsel %vm461_vm2, %v460_v23, %v454_v49 }
  0xe6   :  { %6736 = vmatpush.msk.msrb.mxu0 %vm255_vm3, %v214_v24  ;;  %6742 = vmatpush.msk.msrb.mxu3 %vm255_vm3, %v217_v25  ;;  %v470_v28 = vmul.f32 %v7559_v16, %v465_v26  ;;  %8977 = vst [vmem:[#allocation27_spill] sm:$0xff] %v7675_v17  ;;  %v845_v24 = vrot.slane %v7665_v11, 7  ;;  %v7685_v25 = vperm.slane %v7485_v48, 6  ;;  %v7690_v26 = vperm.slane %v7488_v50, 6 }
  0xe7   :  { %6741 = vmatmul.msk.f32.vlgmr.msrb.gmra.mxu2 %vm252_vm4, %v7498_v53  ;;  %6743 = vmatmul.msk.f32.vlgmr.msrb.gmra.mxu3 %vm252_vm4, %v7498_v53  ;;  %8978 = vst [vmem:[#allocation28_spill] sm:$0xff] %v7678_v22 }
  0xe8   :  { %6744 = vmatpush.msk.msra.mxu0 %vm255_vm3, %v470_v28  ;;  %8979 = vst [vmem:[#allocation29_spill] sm:$0xff] %v7685_v25 }
  0xe9   :  { %6739 = vmatmul.msk.f32.vlgmr.msrb.gmra.mxu1 %vm252_vm4, %v7498_v53  ;;  %8980 = vst [vmem:[#allocation30_spill] sm:$0xff] %v7690_v26 }
  0xea   :  { %6737 = vmatmul.msk.f32.vlgmr.msrb.gmra.mxu0 %vm252_vm4, %v7498_v53  ;;  %v458_v33 = vpop.permute.xlu0 %457  ;;  %v7625_v53 = vperm.slane %v7479_v46, 5 }
  0xeb   :  { %v462_v36 = vsel %vm461_vm2, %v458_v33, %v460_v23  ;;  %v463_v37 = vsel %vm461_vm2, %v7474_v41, %v458_v33  ;;  %v7616_v41 = vperm.slane %v7479_v46, 3  ;;  %v844_v23 = vrot.slane %v7571_v27, 7 }
  0xec   :  { %v472_v38 = vmul.f32 %v7581_v29, %v463_v37  ;;  %v473_v39 = vmul.f32 %v7584_v30, %v462_v36  ;;  %v593_v40 = vpop.permute.xlu1 %592  ;;  %8973 = vst [vmem:[#allocation23_spill] sm:$0xff] %v7625_v53 }
  0xed   :  { %v597_v43 = vsel %vm596_vm6, %v593_v40, %v7552_v14  ;;  %v846_v36 = vsel %vm843_vm9, %v844_v23, %v845_v24  ;;  %v7763_v23 = vperm.slane %v7488_v50, 7  ;;  %v7766_v24 = vperm.slane %v7485_v48, 7 }
  0xee   :  { %6748 = vmatpush.msk.msra.mxu2 %vm255_vm3, %v472_v38  ;;  %6750 = vmatpush.msk.msra.mxu3 %vm255_vm3, %v473_v39  ;;  %v608_v44 = vmul.f32 %v7595_v34, %v597_v43  ;;  %v176_v43 = vld [vmem:[%s7259_s17] sm:$0x7]  ;;  %s7233_s17 = smov 121  }
  0xef   :  { %6749 = vmatmul.msk.f32.vlgmr.msra.gmra.mxu2 %vm252_vm4, %v478_v42  ;;  %6751 = vmatmul.msk.f32.vlgmr.msra.gmra.mxu3 %vm252_vm4, %v478_v42  ;;  %8986 = vst [vmem:[#allocation36_spill] sm:$0xff] %v7763_v23 }
  0xf0   :  { %6758 = vmatpush.msk.msrb.mxu3 %vm255_vm3, %v608_v44  ;;  %8987 = vst [vmem:[#allocation37_spill] sm:$0xff] %v7766_v24 }
  0xf1   :  { %6747 = vmatmul.msk.f32.vlgmr.msra.gmra.mxu1 %vm252_vm4, %v478_v42 }
  0xf2   :  { %6766 = vmatpush.msk.msra.mxu3 %vm255_vm3, %v7444_v21  ;;  %6745 = vmatmul.msk.f32.vlgmr.msra.gmra.mxu0 %vm252_vm4, %v478_v42  ;;  %v591_v49 = vpop.permute.xlu0 %590 }
  0xf3   :  { %v598_v56 = vsel %vm596_vm6, %v591_v49, %v593_v40  ;;  %v7716_v40 = vperm.slane %v7482_v47, 6 }
  0xf4   :  { %v826_v60 = vpop.permute.xlu1 %825  ;;  %v607_v61 = vmul.f32 %v7616_v41, %v598_v56  ;;  %v7230_v56 = vmov 0  }
  0xf5   :  { %v830_v21 = vsel %vm829_vm7, %v826_v60, %v7597_v35  ;;  %8982 = vst [vmem:[#allocation32_spill] sm:$0xff] %v7716_v40  ;;  %7119 = vset.pattern.permute.xlu2 %v7230_v56  ;;  %7120 = vset.pattern.permute.xlu0 %v7230_v56 }
  0xf6   :  { %6756 = vmatpush.msk.msrb.mxu2 %vm255_vm3, %v607_v61  ;;  %v840_v0 = vmul.f32 %v7625_v53, %v830_v21  ;;  %1340 = vperm.xlu2 %7119, %v176_v43  }
  0xf7   :  { %6757 = vmatmul.msk.f32.vlgmr.msrb.gmra.mxu2 %vm252_vm4, %v609_v57  ;;  %6759 = vmatmul.msk.f32.vlgmr.msrb.gmra.mxu3 %vm252_vm4, %v609_v57 }
  0xf8   :  { %6764 = vmatpush.msk.msra.mxu2 %vm255_vm3, %v7442_v20  ;;  %v708_v20 = vrot.slane %v7571_v27, 4  ;;  %7121 = vset.pattern.permute.xlu1 %v7230_v56 }
  0xfa   :  { %6772 = vmatpush.msk.msrb.mxu2 %vm255_vm3, %v840_v0  ;;  %v589_v3 = vpop.permute.xlu0 %588 }
  0xfb   :  { %v599_v4 = vsel %vm596_vm6, %v589_v3, %v591_v49  ;;  %v600_v5 = vsel %vm596_vm6, %v7552_v14, %v589_v3  ;;  %v959_v14 = vpop.permute.xlu2 %958  ;;  %v7724_v49 = vperm.slane %v7482_v47, 7  ;;  %v977_v47 = vrot.slane %v7665_v11, 2 }
  0xfc   :  { %v605_v7 = vmul.f32 %v7641_v1, %v600_v5  ;;  %v606_v8 = vmul.f32 %v7644_v2, %v599_v4  ;;  %v824_v9 = vpop.permute.xlu1 %823  ;;  %v966_v28 = vsel %vm964_vm8, %v959_v14, %v7631_v62  ;;  %v7743_v4 = vperm.slane %v7479_v46, 7 }
  0xfd   :  { %v831_v10 = vsel %vm829_vm7, %v824_v9, %v826_v60  ;;  %v974_v38 = vmul.f32 %v7685_v25, %v966_v28  ;;  %8983 = vst [vmem:[#allocation33_spill] sm:$0xff] %v7724_v49 }
  0xfe   :  { %6752 = vmatpush.msk.msrb.mxu0 %vm255_vm3, %v605_v7  ;;  %6754 = vmatpush.msk.msrb.mxu1 %vm255_vm3, %v606_v8  ;;  %v839_v15 = vmul.f32 %v7655_v6, %v831_v10  ;;  %8984 = vst [vmem:[#allocation34_spill] sm:$0xff] %v7743_v4  ;;  %v7749_v7 = vld [vmem:[%s7249_s9 + $0x30] ss:$0 sm:$0xff] }
  0xff   :  { %6753 = vmatmul.msk.f32.vlgmr.msrb.gmra.mxu0 %vm252_vm4, %v609_v57  ;;  %6755 = vmatmul.msk.f32.vlgmr.msrb.gmra.mxu1 %vm252_vm4, %v609_v57  ;;  %8985 = vst [vmem:[#allocation35_spill] sm:$0xff] %v7749_v7 }
 0x100   :  { %6762 = vmatpush.msk.msra.mxu1 %vm255_vm3, %v7437_v19  ;;  %6765 = vmatmul.msk.f32.vlgmr.msra.gmra.mxu2 %vm252_vm4, %v708_v20 }
 0x101   :  { %6767 = vmatmul.msk.f32.vlgmr.msra.gmra.mxu3 %vm252_vm4, %v708_v20  ;;  %6760 = vmatpush.msk.msra.mxu0 %vm255_vm3, %v7435_v18 }
 0x102   :  { %6770 = vmatpush.msk.msrb.mxu1 %vm255_vm3, %v839_v15  ;;  %v822_v19 = vpop.permute.xlu0 %821 }
 0x103   :  { %v832_v27 = vsel %vm829_vm7, %v822_v19, %v824_v9  ;;  %v833_v31 = vsel %vm829_vm7, %v7597_v35, %v822_v19  ;;  %v7713_v35 = vperm.slane %v7479_v46, 6  ;;  %v1088_v42 = vpop.permute.xlu2 %1087  ;;  %v1108_v46 = vrot.slane %v7665_v11, 5  ;;  %v7771_v19 = vld [vmem:[%s7249_s9 + $0x28] ss:$0 sm:$0xff] }
 0x104   :  { %v838_v32 = vmul.f32 %v7675_v17, %v832_v27  ;;  %v841_v18 = vmul.f32 %v7678_v22, %v833_v31  ;;  %v957_v33 = vpop.permute.xlu1 %956  ;;  %8988 = vst [vmem:[#allocation38_spill] sm:$0xff] %v7771_v19 }
 0x105   :  { %v967_v37 = vsel %vm964_vm8, %v957_v33, %v959_v14  ;;  %8981 = vst [vmem:[#allocation31_spill] sm:$0xff] %v7713_v35 }
 0x106   :  { %6768 = vmatpush.msk.msrb.mxu0 %vm255_vm3, %v838_v32  ;;  %6774 = vmatpush.msk.msrb.mxu3 %vm255_vm3, %v841_v18  ;;  %v973_v39 = vmul.f32 %v7690_v26, %v967_v37  ;;  %v175_v18 = vld [vmem:[%s7254_s13 + $0x18] sm:$0x7]  ;;  %s7232_s13 = smov 120  }
 0x107   :  { %6761 = vmatmul.msk.f32.vlgmr.msra.gmra.mxu0 %vm252_vm4, %v708_v20  ;;  %6763 = vmatmul.msk.f32.vlgmr.msra.gmra.mxu1 %vm252_vm4, %v708_v20  ;;  %v7793_v37 = vld [vmem:[%s7249_s9 + $0x38] ss:$0 sm:$0xff] }
 0x108   :  { %6773 = vmatmul.msk.f32.vlgmr.msrb.gmra.mxu2 %vm252_vm4, %v846_v36  ;;  %6776 = vmatpush.msk.msra.mxu0 %vm255_vm3, %v973_v39  ;;  %8990 = vst [vmem:[#allocation40_spill] sm:$0xff] %v7793_v37 }
 0x109   :  { %6775 = vmatmul.msk.f32.vlgmr.msrb.gmra.mxu3 %vm252_vm4, %v846_v36  ;;  %6778 = vmatpush.msk.msra.mxu1 %vm255_vm3, %v974_v38 }
 0x10a   :  { %v963_v44 = vpop.permute.xlu0 %962 }
 0x10b   :  { %v965_v57 = vsel %vm964_vm8, %v7631_v62, %v963_v44  ;;  %v968_v60 = vsel %vm964_vm8, %v963_v44, %v957_v33  ;;  %v1225_v8 = vpop.permute.xlu2 %1224 }
 0x10c   :  { %v975_v61 = vmul.f32 %v7713_v35, %v965_v57  ;;  %v976_v21 = vmul.f32 %v7716_v40, %v968_v60  ;;  %v1094_v0 = vpop.permute.xlu1 %1093 }
 0x10d   :  { %v1099_v3 = vsel %vm1095_vm10, %v1094_v0, %v1088_v42 }
 0x10e   :  { %6780 = vmatpush.msk.msra.mxu2 %vm255_vm3, %v975_v61  ;;  %6782 = vmatpush.msk.msra.mxu3 %vm255_vm3, %v976_v21  ;;  %v1107_v62 = vmul.f32 %v7724_v49, %v1099_v3 }
 0x10f   :  { %6769 = vmatmul.msk.f32.vlgmr.msrb.gmra.mxu0 %vm252_vm4, %v846_v36  ;;  %6771 = vmatmul.msk.f32.vlgmr.msrb.gmra.mxu1 %vm252_vm4, %v846_v36  ;;  %v7790_v36 = vld [vmem:[%s7249_s9 + $0x20] ss:$0 sm:$0xff] }
 0x110   :  { %6781 = vmatmul.msk.f32.vlgmr.msra.gmra.mxu2 %vm252_vm4, %v977_v47  ;;  %6790 = vmatpush.msk.msrb.mxu3 %vm255_vm3, %v1107_v62  ;;  %8989 = vst [vmem:[#allocation39_spill] sm:$0xff] %v7790_v36 }
 0x111   :  { %6783 = vmatmul.msk.f32.vlgmr.msra.gmra.mxu3 %vm252_vm4, %v977_v47 }
 0x112   :  { %v1092_v5 = vpop.permute.xlu0 %1091 }
 0x113   :  { %v1096_v9 = vsel %vm1095_vm10, %v1092_v5, %v1094_v0 }
 0x114   :  { %v1106_v20 = vmul.f32 %v7743_v4, %v1096_v9  ;;  %v1223_v10 = vpop.permute.xlu1 %1222 }
 0x115   :  { %v1227_v14 = vsel %vm1226_vm11, %v1223_v10, %v1225_v8 }
 0x116   :  { %6788 = vmatpush.msk.msrb.mxu2 %vm255_vm3, %v1106_v20  ;;  %v1237_v15 = vmul.f32 %v7749_v7, %v1227_v14 }
 0x117   :  { %6777 = vmatmul.msk.f32.vlgmr.msra.gmra.mxu0 %vm252_vm4, %v977_v47  ;;  %6779 = vmatmul.msk.f32.vlgmr.msra.gmra.mxu1 %vm252_vm4, %v977_v47 }
 0x118   :  { %6789 = vmatmul.msk.f32.vlgmr.msrb.gmra.mxu2 %vm252_vm4, %v1108_v46 }
 0x119   :  { %6791 = vmatmul.msk.f32.vlgmr.msrb.gmra.mxu3 %vm252_vm4, %v1108_v46  ;;  %6796 = vmatpush.msk.msra.mxu2 %vm255_vm3, %v1237_v15 }
 0x11a   :  { %v1090_v11 = vpop.permute.xlu0 %1089 }
 0x11b   :  { %v1097_v28 = vsel %vm1095_vm10, %v1090_v11, %v1092_v5  ;;  %v1098_v27 = vsel %vm1095_vm10, %v1088_v42, %v1090_v11 }
 0x11c   :  { %v1104_v50 = vmul.f32 %v7763_v23, %v1098_v27  ;;  %v1105_v48 = vmul.f32 %v7766_v24, %v1097_v28  ;;  %v1221_v31 = vpop.permute.xlu1 %1220 }
 0x11d   :  { %v1228_v32 = vsel %vm1226_vm11, %v1221_v31, %v1223_v10 }
 0x11e   :  { %v1236_v33 = vmul.f32 %v7771_v19, %v1228_v32  ;;  %6784 = vmatpush.msk.msrb.mxu0 %vm255_vm3, %v1104_v50  ;;  %6786 = vmatpush.msk.msrb.mxu1 %vm255_vm3, %v1105_v48 }
 0x11f   :  { %6785 = vmatmul.msk.f32.vlgmr.msrb.gmra.mxu0 %vm252_vm4, %v1108_v46  ;;  %6787 = vmatmul.msk.f32.vlgmr.msrb.gmra.mxu1 %vm252_vm4, %v1108_v46 }
 0x120   :  { %6794 = vmatpush.msk.msra.mxu1 %vm255_vm3, %v1236_v33  ;;  %6797 = vmatmul.msk.f32.vlgmr.msra.gmra.mxu2 %vm252_vm4, %v175_v18 }
 0x122   :  { %v1219_v38 = vpop.permute.xlu0 %1218 }
 0x123   :  { %v1229_v39 = vsel %vm1226_vm11, %v1219_v38, %v1221_v31  ;;  %v1230_v42 = vsel %vm1226_vm11, %v1225_v8, %v1219_v38 }
 0x124   :  { %v1235_v43 = vmul.f32 %v7790_v36, %v1229_v39  ;;  %v1238_v44 = vmul.f32 %v7793_v37, %v1230_v42 }
 0x126   :  { %6792 = vmatpush.msk.msra.mxu0 %vm255_vm3, %v1235_v43  ;;  %6798 = vmatpush.msk.msra.mxu3 %vm255_vm3, %v1238_v44 }
 0x127   :  { %6793 = vmatmul.msk.f32.vlgmr.msra.gmra.mxu0 %vm252_vm4, %v175_v18  ;;  %6795 = vmatmul.msk.f32.vlgmr.msra.gmra.mxu1 %vm252_vm4, %v175_v18 }
 0x128   :  { %6799 = vmatmul.msk.f32.vlgmr.msra.gmra.mxu3 %vm252_vm4, %v175_v18 }
 0x15e   :  { %v305_v56 = vpop.f32.mrf.mxu1 }
 0x15f   :  { %v285_v57 = vpop.f32.mrf.mxu0 }
 0x162   :  { %v325_v60 = vpop.f32.mrf.mxu2  ;;  %v345_v61 = vpop.f32.mrf.mxu3 }
 0x166   :  { %v399_v21 = vpop.f32.mrf.mxu1 }
 0x167   :  { %v379_v0 = vpop.f32.mrf.mxu0  ;;  %v400_v39 = vadd.f32 %v399_v21, %v305_v56 }
 0x168   :  { %v380_v42 = vadd.f32 %v379_v0, %v285_v57 }
 0x16a   :  { %v419_v47 = vpop.f32.mrf.mxu2  ;;  %v439_v3 = vpop.f32.mrf.mxu3 }
 0x16b   :  { %v420_v44 = vadd.f32 %v419_v47, %v325_v60  ;;  %v440_v19 = vadd.f32 %v439_v3, %v345_v61 }
 0x16e   :  { %v530_v8 = vpop.f32.mrf.mxu1 }
 0x16f   :  { %v510_v9 = vpop.f32.mrf.mxu0  ;;  %v574_v37 = vadd.f32 %v530_v8, %v400_v39 }
 0x170   :  { %v573_v4 = vadd.f32 %v510_v9, %v380_v42 }
 0x172   :  { %v550_v62 = vpop.f32.mrf.mxu2  ;;  %v570_v5 = vpop.f32.mrf.mxu3 }
 0x173   :  { %v575_v24 = vadd.f32 %v550_v62, %v420_v44  ;;  %v576_v25 = vadd.f32 %v570_v5, %v440_v19  ;;  %v1341_v19 = vpop.permute.xlu2 %1340 }
 0x17a   :  { %v681_v20 = vpop.f32.mrf.mxu2  ;;  %v701_v10 = vpop.f32.mrf.mxu3 }
 0x17b   :  { %v706_v40 = vadd.f32 %v681_v20, %v575_v24  ;;  %v707_v6 = vadd.f32 %v701_v10, %v576_v25 }
 0x17c   :  { %v641_v46 = vpop.f32.mrf.mxu0  ;;  %v661_v14 = vpop.f32.mrf.mxu1 }
 0x17d   :  { %v705_v23 = vadd.f32 %v661_v14, %v574_v37  ;;  %v704_v26 = vadd.f32 %v641_v46, %v573_v4 }
 0x183   :  { %v783_v15 = vpop.f32.mrf.mxu2 }
 0x184   :  { %v743_v11 = vpop.f32.mrf.mxu0  ;;  %v803_v28 = vpop.f32.mrf.mxu3  ;;  %v808_v22 = vadd.f32 %v783_v15, %v706_v40 }
 0x185   :  { %v763_v27 = vpop.f32.mrf.mxu1  ;;  %v806_v53 = vadd.f32 %v743_v11, %v704_v26  ;;  %v809_v0 = vadd.f32 %v803_v28, %v707_v6  ;;  %v1357_v11 = vld.sshfl [vmem:[#allocation1 + $0x18] sm:$0xff pattern:$0x75316420]  ;;  %v1354_v28 = vld.sshfl [vmem:[#allocation1] sm:$0xff pattern:$0x75316420] }
 0x186   :  { %v807_v35 = vadd.f32 %v763_v27, %v705_v23 }
 0x18b   :  { %v918_v50 = vpop.f32.mrf.mxu2 }
 0x18c   :  { %v878_v48 = vpop.f32.mrf.mxu0  ;;  %v938_v32 = vpop.f32.mrf.mxu3  ;;  %v943_v56 = vadd.f32 %v918_v50, %v808_v22  ;;  %v1355_v22 = vld.sshfl [vmem:[#allocation1 + $0x8] sm:$0xff pattern:$0x75316420] }
 0x18d   :  { %v898_v31 = vpop.f32.mrf.mxu1  ;;  %v941_v21 = vadd.f32 %v878_v48, %v806_v53  ;;  %v944_v8 = vadd.f32 %v938_v32, %v809_v0 }
 0x18e   :  { %v942_v17 = vadd.f32 %v898_v31, %v807_v35  ;;  %v181_v31 = vld [vmem:[%s7269_s25] sm:$0x7]  ;;  %s7235_s25 = smov 119  }
 0x193   :  { %v1049_v18 = vpop.f32.mrf.mxu2 }
 0x194   :  { %v1009_v33 = vpop.f32.mrf.mxu0  ;;  %v1069_v43 = vpop.f32.mrf.mxu3  ;;  %v1074_v47 = vadd.f32 %v1049_v18, %v943_v56 }
 0x195   :  { %v1029_v38 = vpop.f32.mrf.mxu1  ;;  %v1072_v3 = vadd.f32 %v1009_v33, %v941_v21  ;;  %v1075_v40 = vadd.f32 %v1069_v43, %v944_v8  ;;  %v177_v43 = vld [vmem:[%s7264_s21] sm:$0xff] }
 0x196   :  { %v1073_v57 = vadd.f32 %v1029_v38, %v942_v17  ;;  %v1399_v0 = vrot.slane %v177_v43, 3 }
 0x19b   :  { %v1180_v36 = vpop.f32.mrf.mxu2 }
 0x19c   :  { %v1140_v7 = vpop.f32.mrf.mxu0  ;;  %v1200_v60 = vpop.f32.mrf.mxu3  ;;  %v1205_v9 = vadd.f32 %v1180_v36, %v1074_v47 }
 0x19d   :  { %v1160_v49 = vpop.f32.mrf.mxu1  ;;  %v1203_v4 = vadd.f32 %v1140_v7, %v1072_v3  ;;  %v1206_v17 = vadd.f32 %v1200_v60, %v1075_v40  ;;  %v1356_v7 = vld.sshfl [vmem:[#allocation1 + $0x10] sm:$0xff pattern:$0x75316420] }
 0x19e   :  { %v1204_v61 = vadd.f32 %v1160_v49, %v1073_v57 }
 0x1a3   :  { %v1311_v37 = vpop.f32.mrf.mxu2 }
 0x1a4   :  { %v1271_v24 = vpop.f32.mrf.mxu0  ;;  %v1336_v35 = vadd.f32 %v1311_v37, %v1205_v9 }
 0x1a5   :  { %v1291_v62 = vpop.f32.mrf.mxu1  ;;  %v1334_v25 = vadd.f32 %v1271_v24, %v1203_v4 }
 0x1a6   :  { %v1335_v23 = vadd.f32 %v1291_v62, %v1204_v61  ;;  %v1345_v6 = vadd.f32 %v1341_v19, %v1336_v35 }
 0x1a7   :  { %v1343_v10 = vadd.f32 %v1341_v19, %v1334_v25 }
 0x1a8   :  { %v1344_v26 = vadd.f32 %v1341_v19, %v1335_v23  ;;  %v1349_v36 = vmax.f32 %v1345_v6, 0.0  ;;  %v1605_v6 = vrot.slane %v177_v43, 6 }
 0x1a9   :  { %v1347_v15 = vmax.f32 %v1343_v10, 0.0 }
 0x1aa   :  { %v1348_v53 = vmax.f32 %v1344_v26, 0.0  ;;  %v7814_v27 = vadd.f32 %v1356_v7, %v1349_v36 }
 0x1ab   :  { %v1331_v5 = vpop.f32.mrf.mxu3  ;;  %v7818_v48 = vadd.f32 %v1354_v28, %v1347_v15 }
 0x1ac   :  { %v7806_v20 = vadd.f32 %v1355_v22, %v1348_v53  ;;  %v1337_v49 = vadd.f32 %v1331_v5, %v1206_v17  ;;  %v7917_v53 = vld [vmem:[%s7264_s21 + $0x8] sm:$0xff] }
 0x1ae   :  { %v1346_v46 = vadd.f32 %v1341_v19, %v1337_v49  ;;  %1590 = vrot.lane.b32.xlu2 %v7806_v20, %s7224_s22  ;;  %1368 = vrot.lane.b32.xlu1 %v7806_v20, %s7222_s27  ;;  %v1606_v49 = vrot.slane %v7917_v53, 6 }
 0x1af   :  { %1384 = vrot.lane.b32.xlu0 %v7806_v20, %s7223_s5 }
 0x1b0   :  { %v1350_v14 = vmax.f32 %v1346_v46, 0.0 }
 0x1b2   :  { %v7816_v50 = vadd.f32 %v1357_v11, %v1350_v14 }
 0x1b6   :  { %1388 = vrot.lane.b32.xlu2 %v7816_v50, %s7223_s5  ;;  %1386 = vrot.lane.b32.xlu1 %v7814_v27, %s7223_s5 }
 0x1b7   :  { %1382 = vrot.lane.b32.xlu0 %v7818_v48, %s7223_s5 }
 0x1be   :  { %1370 = vrot.lane.b32.xlu2 %v7814_v27, %s7222_s27  ;;  %1366 = vrot.lane.b32.xlu1 %v7818_v48, %s7222_s27 }
 0x1bf   :  { %1372 = vrot.lane.b32.xlu0 %v7816_v50, %s7222_s27 }
 0x1c6   :  { %1588 = vrot.lane.b32.xlu2 %v7818_v48, %s7224_s22  ;;  %1594 = vrot.lane.b32.xlu1 %v7816_v50, %s7224_s22 }
 0x1c7   :  { %1592 = vrot.lane.b32.xlu0 %v7814_v27, %s7224_s22 }
 0x1ce   :  { %1712 = vrot.lane.b32.xlu2 %v7816_v50, %s7225_s26  ;;  %1710 = vrot.lane.b32.xlu1 %v7814_v27, %s7225_s26 }
 0x1cf   :  { %1708 = vrot.lane.b32.xlu0 %v7806_v20, %s7225_s26 }
 0x1d6   :  { %2040 = vrot.lane.b32.xlu2 %v7806_v20, %s7227_s2  ;;  %1922 = vrot.lane.b32.xlu1 %v7806_v20, %s7226_s28 }
 0x1d7   :  { %1706 = vrot.lane.b32.xlu0 %v7818_v48, %s7225_s26 }
 0x1de   :  { %1926 = vrot.lane.b32.xlu2 %v7816_v50, %s7226_s28  ;;  %1924 = vrot.lane.b32.xlu1 %v7814_v27, %s7226_s28 }
 0x1df   :  { %1920 = vrot.lane.b32.xlu0 %v7818_v48, %s7226_s28 }
 0x1e6   :  { %2042 = vrot.lane.b32.xlu2 %v7814_v27, %s7227_s2  ;;  %2038 = vrot.lane.b32.xlu1 %v7818_v48, %s7227_s2 }
 0x1e7   :  { %2044 = vrot.lane.b32.xlu0 %v7816_v50, %s7227_s2 }
 0x1ee   :  { %2153 = vrot.lane.b32.xlu2 %v7818_v48, %s7228_s7  ;;  %2159 = vrot.lane.b32.xlu1 %v7816_v50, %s7228_s7 }
 0x1ef   :  { %2157 = vrot.lane.b32.xlu0 %v7814_v27, %s7228_s7 }
 0x1f6   :  { %2274 = vrot.lane.b32.xlu2 %v7816_v50, %s7229_s0  ;;  %2272 = vrot.lane.b32.xlu1 %v7814_v27, %s7229_s0 }
 0x1f7   :  { %2155 = vrot.lane.b32.xlu0 %v7806_v20, %s7228_s7 }
 0x1fe   :  { %2385 = vperm.xlu2 %7119, %v181_v31   ;;  %2270 = vrot.lane.b32.xlu1 %v7806_v20, %s7229_s0 }
 0x1ff   :  { %2268 = vrot.lane.b32.xlu0 %v7818_v48, %s7229_s0 }
 0x208   :  { %v1591_v32 = vpop.permute.xlu2 %1590 }
 0x210   :  { %v1389_v18 = vpop.permute.xlu2 %1388 }
 0x218   :  { %v1371_v33 = vpop.permute.xlu2 %1370 }
 0x220   :  { %v1369_v38 = vpop.permute.xlu1 %1368  ;;  %v1589_v42 = vpop.permute.xlu2 %1588 }
 0x221   :  { %v1385_v39 = vpop.permute.xlu0 %1384  ;;  %v1375_v56 = vsel %vm205_vm1, %v1369_v38, %v1371_v33  ;;  %v1598_v40 = vsel %vm461_vm2, %v1589_v42, %v1591_v32 }
 0x222   :  { %v1380_v9 = vmul.f32 %v1375_v56, %v7505_v55  ;;  %v1601_v5 = vmul.f32 %v1598_v40, %v7522_v63 }
 0x228   :  { %v1387_v44 = vpop.permute.xlu1 %1386  ;;  %v1713_v24 = vpop.permute.xlu2 %1712 }
 0x229   :  { %v1390_v57 = vsel %vm237_vm0, %v1387_v44, %v1389_v18  ;;  %v1391_v21 = vsel %vm237_vm0, %v1385_v39, %v1387_v44  ;;  %v1383_v60 = vpop.permute.xlu0 %1382 }
 0x22a   :  { %v1396_v47 = vmul.f32 %v1391_v21, %v7492_v51  ;;  %v1397_v61 = vmul.f32 %v1390_v57, %v7495_v52  ;;  %v1392_v3 = vsel %vm237_vm0, %v1383_v60, %v1385_v39  ;;  %v1393_v37 = vsel %vm237_vm0, %v1389_v18, %v1383_v60 }
 0x22b   :  { %v1394_v62 = vmul.f32 %v1393_v37, %v7511_v58  ;;  %v1395_v8 = vmul.f32 %v1392_v3, %v7514_v59  ;;  %v1607_v18 = vsel %vm475_vm5, %v1605_v6, %v1606_v49  ;;  %v1821_v3 = vrot.slane %v7917_v53, 4  ;;  %v8994_v49 = vld [vmem:[#allocation28_spill] sm:$0xff] }
 0x22c   :  { %6804 = vmatpush.msk.msrb.mxu2 %vm255_vm3, %v1396_v47  ;;  %6806 = vmatpush.msk.msrb.mxu3 %vm255_vm3, %v1397_v61 }
 0x22d   :  { %6800 = vmatpush.msk.msrb.mxu0 %vm255_vm3, %v1394_v62  ;;  %6802 = vmatpush.msk.msrb.mxu1 %vm255_vm3, %v1395_v8  ;;  %v179_v62 = vld [vmem:[%s7264_s21 + $0x10] sm:$0xff] }
 0x22e   :  { %6803 = vmatmul.msk.f32.vlgmr.msrb.gmra.mxu1 %vm252_vm4, %v1399_v0  ;;  %6805 = vmatmul.msk.f32.vlgmr.msrb.gmra.mxu2 %vm252_vm4, %v1399_v0  ;;  %v1938_v40 = vrot.slane %v179_v62, 7 }
 0x22f   :  { %6807 = vmatmul.msk.f32.vlgmr.msrb.gmra.mxu3 %vm252_vm4, %v1399_v0  ;;  %6812 = vmatpush.msk.msra.mxu2 %vm255_vm3, %v1380_v9  ;;  %v1937_v9 = vrot.slane %v7917_v53, 7 }
 0x230   :  { %v1367_v23 = vpop.permute.xlu1 %1366  ;;  %6801 = vmatmul.msk.f32.vlgmr.msrb.gmra.mxu0 %vm252_vm4, %v1399_v0  ;;  %v7930_v36 = vpop.permute.xlu2 %2040 }
 0x231   :  { %v1376_v4 = vsel %vm205_vm1, %v1367_v23, %v1369_v38  ;;  %v1373_v19 = vpop.permute.xlu0 %1372 }
 0x232   :  { %v1379_v35 = vmul.f32 %v1376_v4, %v7502_v54  ;;  %v1374_v26 = vsel %vm205_vm1, %v1371_v33, %v1373_v19  ;;  %v1377_v25 = vsel %vm205_vm1, %v1373_v19, %v1367_v23 }
 0x233   :  { %v1378_v22 = vmul.f32 %v1377_v25, %v7547_v12  ;;  %v1381_v17 = vmul.f32 %v1374_v26, %v7550_v13  ;;  %v8992_v25 = vld [vmem:[#allocation23_spill] sm:$0xff] }
 0x234   :  { %6810 = vmatpush.msk.msra.mxu1 %vm255_vm3, %v1379_v35  ;;  %v8991_v35 = vld [vmem:[#allocation26_spill] sm:$0xff] }
 0x235   :  { %6808 = vmatpush.msk.msra.mxu0 %vm255_vm3, %v1378_v22  ;;  %6814 = vmatpush.msk.msra.mxu3 %vm255_vm3, %v1381_v17 }
 0x236   :  { %6811 = vmatmul.msk.f32.vlgmr.msra.gmra.mxu1 %vm252_vm4, %v177_v43  ;;  %6813 = vmatmul.msk.f32.vlgmr.msra.gmra.mxu2 %vm252_vm4, %v177_v43 }
 0x237   :  { %6815 = vmatmul.msk.f32.vlgmr.msra.gmra.mxu3 %vm252_vm4, %v177_v43  ;;  %6818 = vmatpush.msk.msrb.mxu1 %vm255_vm3, %v1601_v5  ;;  %v8993_v5 = vld [vmem:[#allocation27_spill] sm:$0xff] }
 0x238   :  { %v1595_v10 = vpop.permute.xlu1 %1594  ;;  %6809 = vmatmul.msk.f32.vlgmr.msra.gmra.mxu0 %vm252_vm4, %v177_v43  ;;  %v1722_v43 = vrot.slane %v7917_v53, 1  ;;  %v1927_v56 = vpop.permute.xlu2 %1926 }
 0x239   :  { %v1599_v46 = vsel %vm461_vm2, %v1595_v10, %v1589_v42  ;;  %v1593_v7 = vpop.permute.xlu0 %1592 }
 0x23a   :  { %v1600_v14 = vmul.f32 %v1599_v46, %v7559_v16  ;;  %v1596_v15 = vsel %vm461_vm2, %v1593_v7, %v1595_v10  ;;  %v1597_v11 = vsel %vm461_vm2, %v1591_v32, %v1593_v7  ;;  %v8995_v46 = vld [vmem:[#allocation29_spill] sm:$0xff] }
 0x23b   :  { %v1602_v28 = vmul.f32 %v1597_v11, %v7581_v29  ;;  %v1603_v31 = vmul.f32 %v1596_v15, %v7584_v30 }
 0x23c   :  { %6816 = vmatpush.msk.msrb.mxu0 %vm255_vm3, %v1600_v14  ;;  %v1939_v14 = vsel %vm843_vm9, %v1937_v9, %v1938_v40 }
 0x23d   :  { %6820 = vmatpush.msk.msrb.mxu2 %vm255_vm3, %v1602_v28  ;;  %6822 = vmatpush.msk.msrb.mxu3 %vm255_vm3, %v1603_v31  ;;  %v8996_v31 = vld [vmem:[#allocation30_spill] sm:$0xff] }
 0x23e   :  { %6819 = vmatmul.msk.f32.vlgmr.msrb.gmra.mxu1 %vm252_vm4, %v1607_v18  ;;  %6821 = vmatmul.msk.f32.vlgmr.msrb.gmra.mxu2 %vm252_vm4, %v1607_v18 }
 0x23f   :  { %6823 = vmatmul.msk.f32.vlgmr.msrb.gmra.mxu3 %vm252_vm4, %v1607_v18 }
 0x240   :  { %v1711_v33 = vpop.permute.xlu1 %1710  ;;  %6817 = vmatmul.msk.f32.vlgmr.msrb.gmra.mxu0 %vm252_vm4, %v1607_v18  ;;  %v2043_v37 = vpop.permute.xlu2 %2042 }
 0x241   :  { %v1714_v32 = vsel %vm596_vm6, %v1711_v33, %v1713_v24  ;;  %v1709_v38 = vpop.permute.xlu0 %1708 }
 0x242   :  { %v1721_v39 = vmul.f32 %v1714_v32, %v7595_v34  ;;  %v1715_v42 = vsel %vm596_vm6, %v1709_v38, %v1711_v33 }
 0x243   :  { %v1720_v44 = vmul.f32 %v1715_v42, %v7616_v41  ;;  %v8998_v42 = vld [vmem:[#allocation32_spill] sm:$0xff] }
 0x244   :  { %6830 = vmatpush.msk.msra.mxu3 %vm255_vm3, %v1721_v39 }
 0x245   :  { %6828 = vmatpush.msk.msra.mxu2 %vm255_vm3, %v1720_v44  ;;  %v2054_v44 = vrot.slane %v179_v62, 2 }
 0x246   :  { %6838 = vmatpush.msk.msrb.mxu3 %vm255_vm3, %v7816_v50  ;;  %6829 = vmatmul.msk.f32.vlgmr.msra.gmra.mxu2 %vm252_vm4, %v1722_v43 }
 0x247   :  { %6831 = vmatmul.msk.f32.vlgmr.msra.gmra.mxu3 %vm252_vm4, %v1722_v43  ;;  %6836 = vmatpush.msk.msrb.mxu2 %vm255_vm3, %v7814_v27 }
 0x248   :  { %v1923_v57 = vpop.permute.xlu1 %1922 }
 0x249   :  { %v1707_v21 = vpop.permute.xlu0 %1706 }
 0x24a   :  { %v1716_v60 = vsel %vm596_vm6, %v1707_v21, %v1709_v38  ;;  %v1717_v0 = vsel %vm596_vm6, %v1713_v24, %v1707_v21  ;;  %v2047_v24 = vsel %vm964_vm8, %v7930_v36, %v2043_v37  ;;  %v8997_v38 = vld [vmem:[#allocation31_spill] sm:$0xff] }
 0x24b   :  { %v1718_v47 = vmul.f32 %v1717_v0, %v7641_v1  ;;  %v1719_v61 = vmul.f32 %v1716_v60, %v7644_v2  ;;  %v2051_v7 = vmul.f32 %v2047_v24, %v8995_v46  ;;  %v8999_v60 = vld [vmem:[#allocation33_spill] sm:$0xff] }
 0x24d   :  { %6824 = vmatpush.msk.msra.mxu0 %vm255_vm3, %v1718_v47  ;;  %6826 = vmatpush.msk.msra.mxu1 %vm255_vm3, %v1719_v61  ;;  %v9000_v61 = vld [vmem:[#allocation34_spill] sm:$0xff] }
 0x24e   :  { %6825 = vmatmul.msk.f32.vlgmr.msra.gmra.mxu0 %vm252_vm4, %v1722_v43  ;;  %6827 = vmatmul.msk.f32.vlgmr.msra.gmra.mxu1 %vm252_vm4, %v1722_v43 }
 0x24f   :  { %6832 = vmatpush.msk.msrb.mxu0 %vm255_vm3, %v7818_v48  ;;  %6834 = vmatpush.msk.msrb.mxu1 %vm255_vm3, %v7806_v20 }
 0x250   :  { %6837 = vmatmul.msk.f32.vlgmr.msrb.gmra.mxu2 %vm252_vm4, %v1821_v3  ;;  %6839 = vmatmul.msk.f32.vlgmr.msrb.gmra.mxu3 %vm252_vm4, %v1821_v3  ;;  %v1925_v8 = vpop.permute.xlu1 %1924 }
 0x251   :  { %v1928_v23 = vsel %vm829_vm7, %v1925_v8, %v1927_v56  ;;  %v1929_v4 = vsel %vm829_vm7, %v1923_v57, %v1925_v8  ;;  %v1921_v19 = vpop.permute.xlu0 %1920 }
 0x252   :  { %v1933_v26 = vmul.f32 %v1929_v4, %v8991_v35  ;;  %v1934_v22 = vmul.f32 %v1928_v23, %v8992_v25  ;;  %v1930_v17 = vsel %vm829_vm7, %v1921_v19, %v1923_v57  ;;  %v1931_v53 = vsel %vm829_vm7, %v1927_v56, %v1921_v19  ;;  %v9001_v4 = vld [vmem:[#allocation35_spill] sm:$0xff] }
 0x253   :  { %v1932_v6 = vmul.f32 %v1930_v17, %v8993_v5  ;;  %v1935_v10 = vmul.f32 %v1931_v53, %v8994_v49  ;;  %v9003_v17 = vld [vmem:[#allocation37_spill] sm:$0xff] }
 0x254   :  { %6842 = vmatpush.msk.msra.mxu1 %vm255_vm3, %v1933_v26  ;;  %6844 = vmatpush.msk.msra.mxu2 %vm255_vm3, %v1934_v22  ;;  %v9002_v26 = vld [vmem:[#allocation36_spill] sm:$0xff] }
 0x255   :  { %6840 = vmatpush.msk.msra.mxu0 %vm255_vm3, %v1932_v6  ;;  %6846 = vmatpush.msk.msra.mxu3 %vm255_vm3, %v1935_v10  ;;  %v180_v6 = vld [vmem:[%s7264_s21 + $0x18] sm:$0x7]  ;;  %s7234_s21 = smov 9  }
 0x256   :  { %6833 = vmatmul.msk.f32.vlgmr.msrb.gmra.mxu0 %vm252_vm4, %v1821_v3  ;;  %6835 = vmatmul.msk.f32.vlgmr.msrb.gmra.mxu1 %vm252_vm4, %v1821_v3 }
 0x257   :  { %6850 = vmatpush.msk.msrb.mxu1 %vm255_vm3, %v2051_v7 }
 0x258   :  { %6845 = vmatmul.msk.f32.vlgmr.msra.gmra.mxu2 %vm252_vm4, %v1939_v14  ;;  %6847 = vmatmul.msk.f32.vlgmr.msra.gmra.mxu3 %vm252_vm4, %v1939_v14  ;;  %v2039_v15 = vpop.permute.xlu1 %2038 }
 0x259   :  { %v2048_v11 = vsel %vm964_vm8, %v2039_v15, %v7930_v36  ;;  %v2045_v28 = vpop.permute.xlu0 %2044  ;;  %v2154_v36 = vpop.permute.xlu2 %2153 }
 0x25a   :  { %v2050_v18 = vmul.f32 %v2048_v11, %v8996_v31  ;;  %v2046_v33 = vsel %vm964_vm8, %v2043_v37, %v2045_v28  ;;  %v2049_v32 = vsel %vm964_vm8, %v2045_v28, %v2039_v15  ;;  %v2169_v37 = vrot.slane %v179_v62, 5  ;;  %v9004_v15 = vld [vmem:[#allocation38_spill] sm:$0xff] }
 0x25b   :  { %v2052_v39 = vmul.f32 %v2046_v33, %v8997_v38  ;;  %v2053_v43 = vmul.f32 %v2049_v32, %v8998_v42  ;;  %v9005_v33 = vld [vmem:[#allocation39_spill] sm:$0xff] }
 0x25c   :  { %6848 = vmatpush.msk.msrb.mxu0 %vm255_vm3, %v2050_v18 }
 0x25d   :  { %6852 = vmatpush.msk.msrb.mxu2 %vm255_vm3, %v2052_v39  ;;  %6854 = vmatpush.msk.msrb.mxu3 %vm255_vm3, %v2053_v43  ;;  %v9006_v39 = vld [vmem:[#allocation40_spill] sm:$0xff] }
 0x25e   :  { %6841 = vmatmul.msk.f32.vlgmr.msra.gmra.mxu0 %vm252_vm4, %v1939_v14  ;;  %6843 = vmatmul.msk.f32.vlgmr.msra.gmra.mxu1 %vm252_vm4, %v1939_v14 }
 0x260   :  { %6853 = vmatmul.msk.f32.vlgmr.msrb.gmra.mxu2 %vm252_vm4, %v2054_v44  ;;  %6855 = vmatmul.msk.f32.vlgmr.msrb.gmra.mxu3 %vm252_vm4, %v2054_v44  ;;  %v2160_v56 = vpop.permute.xlu1 %2159 }
 0x261   :  { %v2164_v57 = vsel %vm1095_vm10, %v2160_v56, %v2154_v36  ;;  %v2158_v21 = vpop.permute.xlu0 %2157  ;;  %v2275_v8 = vpop.permute.xlu2 %2274 }
 0x262   :  { %v2168_v0 = vmul.f32 %v2164_v57, %v8999_v60  ;;  %v2161_v47 = vsel %vm1095_vm10, %v2158_v21, %v2160_v56 }
 0x263   :  { %v2167_v3 = vmul.f32 %v2161_v47, %v9000_v61 }
 0x264   :  { %6862 = vmatpush.msk.msra.mxu3 %vm255_vm3, %v2168_v0 }
 0x265   :  { %6860 = vmatpush.msk.msra.mxu2 %vm255_vm3, %v2167_v3 }
 0x266   :  { %6849 = vmatmul.msk.f32.vlgmr.msrb.gmra.mxu0 %vm252_vm4, %v2054_v44  ;;  %6851 = vmatmul.msk.f32.vlgmr.msrb.gmra.mxu1 %vm252_vm4, %v2054_v44 }
 0x268   :  { %6861 = vmatmul.msk.f32.vlgmr.msra.gmra.mxu2 %vm252_vm4, %v2169_v37  ;;  %6863 = vmatmul.msk.f32.vlgmr.msra.gmra.mxu3 %vm252_vm4, %v2169_v37  ;;  %v2273_v9 = vpop.permute.xlu1 %2272 }
 0x269   :  { %v2276_v24 = vsel %vm1226_vm11, %v2273_v9, %v2275_v8  ;;  %v2156_v23 = vpop.permute.xlu0 %2155 }
 0x26a   :  { %v2282_v19 = vmul.f32 %v9001_v4, %v2276_v24  ;;  %v2162_v62 = vsel %vm1095_vm10, %v2156_v23, %v2158_v21  ;;  %v2163_v40 = vsel %vm1095_vm10, %v2154_v36, %v2156_v23 }
 0x26b   :  { %v2165_v22 = vmul.f32 %v2163_v40, %v9002_v26  ;;  %v2166_v53 = vmul.f32 %v2162_v62, %v9003_v17 }
 0x26c   :  { %6868 = vmatpush.msk.msrb.mxu2 %vm255_vm3, %v2282_v19 }
 0x26d   :  { %6856 = vmatpush.msk.msra.mxu0 %vm255_vm3, %v2165_v22  ;;  %6858 = vmatpush.msk.msra.mxu1 %vm255_vm3, %v2166_v53 }
 0x26e   :  { %6857 = vmatmul.msk.f32.vlgmr.msra.gmra.mxu0 %vm252_vm4, %v2169_v37  ;;  %6859 = vmatmul.msk.f32.vlgmr.msra.gmra.mxu1 %vm252_vm4, %v2169_v37 }
 0x270   :  { %6869 = vmatmul.msk.f32.vlgmr.msrb.gmra.mxu2 %vm252_vm4, %v180_v6  ;;  %v2271_v10 = vpop.permute.xlu1 %2270 }
 0x271   :  { %v2277_v7 = vsel %vm1226_vm11, %v2271_v10, %v2273_v9  ;;  %v2269_v14 = vpop.permute.xlu0 %2268 }
 0x272   :  { %v2281_v11 = vmul.f32 %v9004_v15, %v2277_v7  ;;  %v2278_v28 = vsel %vm1226_vm11, %v2269_v14, %v2271_v10  ;;  %v2279_v18 = vsel %vm1226_vm11, %v2275_v8, %v2269_v14 }
 0x273   :  { %v2280_v32 = vmul.f32 %v9005_v33, %v2278_v28  ;;  %v2283_v43 = vmul.f32 %v9006_v39, %v2279_v18 }
 0x274   :  { %6866 = vmatpush.msk.msrb.mxu1 %vm255_vm3, %v2281_v11 }
 0x275   :  { %6864 = vmatpush.msk.msrb.mxu0 %vm255_vm3, %v2280_v32  ;;  %6870 = vmatpush.msk.msrb.mxu3 %vm255_vm3, %v2283_v43 }
 0x276   :  { %6865 = vmatmul.msk.f32.vlgmr.msrb.gmra.mxu0 %vm252_vm4, %v180_v6  ;;  %6867 = vmatmul.msk.f32.vlgmr.msrb.gmra.mxu1 %vm252_vm4, %v180_v6 }
 0x277   :  { %6871 = vmatmul.msk.f32.vlgmr.msrb.gmra.mxu3 %vm252_vm4, %v180_v6 }
 0x2ab   :  { %v1451_v36 = vpop.f32.mrf.mxu1 }
 0x2ad   :  { %v1431_v44 = vpop.f32.mrf.mxu0 }
 0x2b1   :  { %v1471_v56 = vpop.f32.mrf.mxu2 }
 0x2b2   :  { %v1491_v57 = vpop.f32.mrf.mxu3 }
 0x2b3   :  { %v1545_v0 = vpop.f32.mrf.mxu1 }
 0x2b4   :  { %v1546_v33 = vadd.f32 %v1545_v0, %v1451_v36 }
 0x2b5   :  { %v1525_v21 = vpop.f32.mrf.mxu0 }
 0x2b6   :  { %v1526_v42 = vadd.f32 %v1525_v21, %v1431_v44 }
 0x2b9   :  { %v1565_v47 = vpop.f32.mrf.mxu2 }
 0x2ba   :  { %v1585_v3 = vpop.f32.mrf.mxu3  ;;  %v1566_v32 = vadd.f32 %v1565_v47, %v1471_v56 }
 0x2bb   :  { %v1659_v24 = vpop.f32.mrf.mxu1  ;;  %v1586_v18 = vadd.f32 %v1585_v3, %v1491_v57 }
 0x2bc   :  { %v1703_v17 = vadd.f32 %v1659_v24, %v1546_v33 }
 0x2bd   :  { %v1639_v8 = vpop.f32.mrf.mxu0 }
 0x2be   :  { %v1702_v56 = vadd.f32 %v1639_v8, %v1526_v42 }
 0x2c1   :  { %v1679_v37 = vpop.f32.mrf.mxu2 }
 0x2c2   :  { %v1699_v9 = vpop.f32.mrf.mxu3  ;;  %v1704_v60 = vadd.f32 %v1679_v37, %v1566_v32 }
 0x2c3   :  { %v1705_v26 = vadd.f32 %v1699_v9, %v1586_v18 }
 0x2c9   :  { %v1794_v23 = vpop.f32.mrf.mxu2 }
 0x2ca   :  { %v1814_v4 = vpop.f32.mrf.mxu3  ;;  %v1819_v35 = vadd.f32 %v1794_v23, %v1704_v60  ;;  %v2386_v60 = vpop.permute.xlu2 %2385 }
 0x2cb   :  { %v1754_v19 = vpop.f32.mrf.mxu0  ;;  %v1774_v62 = vpop.f32.mrf.mxu1  ;;  %v1820_v5 = vadd.f32 %v1814_v4, %v1705_v26 }
 0x2cc   :  { %v1818_v61 = vadd.f32 %v1774_v62, %v1703_v17  ;;  %v1817_v37 = vadd.f32 %v1754_v19, %v1702_v56 }
 0x2d3   :  { %v1893_v40 = vpop.f32.mrf.mxu2  ;;  %v1913_v22 = vpop.f32.mrf.mxu3 }
 0x2d4   :  { %v1853_v53 = vpop.f32.mrf.mxu0  ;;  %v1873_v6 = vpop.f32.mrf.mxu1  ;;  %v1918_v49 = vadd.f32 %v1893_v40, %v1819_v35  ;;  %v1919_v2 = vadd.f32 %v1913_v22, %v1820_v5 }
 0x2d5   :  { %v1917_v38 = vadd.f32 %v1873_v6, %v1818_v61  ;;  %v1916_v26 = vadd.f32 %v1853_v53, %v1817_v37 }
 0x2db   :  { %v2011_v10 = vpop.f32.mrf.mxu2  ;;  %v2031_v14 = vpop.f32.mrf.mxu3 }
 0x2dc   :  { %v1991_v7 = vpop.f32.mrf.mxu1  ;;  %v1971_v15 = vpop.f32.mrf.mxu0  ;;  %v2036_v1 = vadd.f32 %v2011_v10, %v1918_v49  ;;  %v2037_v17 = vadd.f32 %v2031_v14, %v1919_v2 }
 0x2dd   :  { %v2035_v25 = vadd.f32 %v1991_v7, %v1917_v38  ;;  %v2034_v38 = vadd.f32 %v1971_v15, %v1916_v26  ;;  %v2400_v15 = vld [vmem:[%s7274_s29] sm:$0xff] }
 0x2de   :  { %v2503_v32 = vrot.slane %v2400_v15, 4 }
 0x2e3   :  { %v2126_v11 = vpop.f32.mrf.mxu2  ;;  %v2146_v39 = vpop.f32.mrf.mxu3 }
 0x2e4   :  { %v2106_v28 = vpop.f32.mrf.mxu1  ;;  %v2086_v43 = vpop.f32.mrf.mxu0  ;;  %v2151_v0 = vadd.f32 %v2126_v11, %v2036_v1  ;;  %v2152_v61 = vadd.f32 %v2146_v39, %v2037_v17 }
 0x2e5   :  { %v2150_v34 = vadd.f32 %v2106_v28, %v2035_v25  ;;  %v2149_v21 = vadd.f32 %v2086_v43, %v2034_v38 }
 0x2eb   :  { %v2241_v46 = vpop.f32.mrf.mxu2  ;;  %v2261_v57 = vpop.f32.mrf.mxu3 }
 0x2ec   :  { %v2221_v31 = vpop.f32.mrf.mxu1  ;;  %v2201_v36 = vpop.f32.mrf.mxu0  ;;  %v2266_v24 = vadd.f32 %v2241_v46, %v2151_v0  ;;  %v2267_v5 = vadd.f32 %v2261_v57, %v2152_v61 }
 0x2ed   :  { %v2265_v47 = vadd.f32 %v2221_v31, %v2150_v34  ;;  %v2264_v42 = vadd.f32 %v2201_v36, %v2149_v21 }
 0x2f3   :  { %v2356_v3 = vpop.f32.mrf.mxu2 }
 0x2f4   :  { %v2336_v9 = vpop.f32.mrf.mxu1  ;;  %v2381_v44 = vadd.f32 %v2356_v3, %v2266_v24  ;;  %v2316_v31 = vpop.f32.mrf.mxu0 }
 0x2f5   :  { %v2380_v62 = vadd.f32 %v2336_v9, %v2265_v47  ;;  %v2379_v8 = vadd.f32 %v2316_v31, %v2264_v42  ;;  %v9007_v31 = vld [vmem:[#allocation22_spill] sm:$0xff] }
 0x2f6   :  { %v2390_v23 = vadd.f32 %v2386_v60, %v2381_v44 }
 0x2f7   :  { %v2389_v35 = vadd.f32 %v2386_v60, %v2380_v62 }
 0x2f8   :  { %v2394_v46 = vmax.f32 %v2390_v23, 0.0 }
 0x2f9   :  { %v2393_v49 = vmax.f32 %v2389_v35, 0.0  ;;  %v2401_v35 = vld [vmem:[%s7274_s29 + $0x8] sm:$0xff] }
 0x2fa   :  { %v2376_v25 = vpop.f32.mrf.mxu3  ;;  %v8078_v40 = vadd.f32 %v2394_v46, %v7814_v27  ;;  %v2405_v27 = vld [vmem:[%s7279_s3] sm:$0xf]  ;;  %s9023_s3 = sld [smem:[#allocation9_spill]] }
 0x2fb   :  { %v8068_v1 = vadd.f32 %v2393_v49, %v7806_v20  ;;  %v2382_v34 = vadd.f32 %v2376_v25, %v2267_v5  ;;  %v2388_v20 = vadd.f32 %v2386_v60, %v2379_v8 }
 0x2fd   :  { %v2391_v2 = vadd.f32 %v2386_v60, %v2382_v34  ;;  %2694 = vrot.lane.b32.xlu1 %v8068_v1, %s7224_s22  ;;  %2488 = vrot.lane.b32.xlu0 %v8068_v1, %s7223_s5  ;;  %v2392_v22 = vmax.f32 %v2388_v20, 0.0 }
 0x2ff   :  { %v2395_v4 = vmax.f32 %v2391_v2, 0.0  ;;  %v8087_v53 = vadd.f32 %v2392_v22, %v7818_v48  ;;  %v2823_v2 = vrot.slane %v2401_v35, 4  ;;  %v9009_v22 = vld [vmem:[#allocation25_spill] sm:$0xff] }
 0x301   :  { %v8075_v19 = vadd.f32 %v2395_v4, %v7816_v50  ;;  %v9008_v4 = vld [vmem:[#allocation24_spill] sm:$0xff] }
 0x303   :  { %2492 = vrot.lane.b32.xlu2 %v8075_v19, %s7223_s5 }
 0x305   :  { %2490 = vrot.lane.b32.xlu1 %v8078_v40, %s7223_s5  ;;  %2472 = vrot.lane.b32.xlu0 %v8068_v1, %s7222_s27 }
 0x30b   :  { %2476 = vrot.lane.b32.xlu2 %v8075_v19, %s7222_s27 }
 0x30d   :  { %2474 = vrot.lane.b32.xlu1 %v8078_v40, %s7222_s27  ;;  %2486 = vrot.lane.b32.xlu0 %v8087_v53, %s7223_s5 }
 0x313   :  { %2696 = vrot.lane.b32.xlu2 %v8078_v40, %s7224_s22 }
 0x315   :  { %2698 = vrot.lane.b32.xlu1 %v8075_v19, %s7224_s22  ;;  %2470 = vrot.lane.b32.xlu0 %v8087_v53, %s7222_s27 }
 0x31b   :  { %2809 = vrot.lane.b32.xlu2 %v8068_v1, %s7225_s26 }
 0x31d   :  { %2692 = vrot.lane.b32.xlu1 %v8087_v53, %s7224_s22  ;;  %2811 = vrot.lane.b32.xlu0 %v8078_v40, %s7225_s26 }
 0x323   :  { %2813 = vrot.lane.b32.xlu2 %v8075_v19, %s7225_s26 }
 0x325   :  { %3136 = vrot.lane.b32.xlu1 %v8087_v53, %s7227_s2  ;;  %2807 = vrot.lane.b32.xlu0 %v8087_v53, %s7225_s26 }
 0x32b   :  { %3027 = vrot.lane.b32.xlu2 %v8075_v19, %s7226_s28 }
 0x32d   :  { %3025 = vrot.lane.b32.xlu1 %v8078_v40, %s7226_s28  ;;  %3021 = vrot.lane.b32.xlu0 %v8087_v53, %s7226_s28 }
 0x333   :  { %3142 = vrot.lane.b32.xlu2 %v8075_v19, %s7227_s2 }
 0x335   :  { %3140 = vrot.lane.b32.xlu1 %v8078_v40, %s7227_s2  ;;  %3023 = vrot.lane.b32.xlu0 %v8068_v1, %s7226_s28 }
 0x33b   :  { %3255 = vrot.lane.b32.xlu2 %v8078_v40, %s7228_s7 }
 0x33d   :  { %3138 = vrot.lane.b32.xlu1 %v8068_v1, %s7227_s2  ;;  %3257 = vrot.lane.b32.xlu0 %v8075_v19, %s7228_s7 }
 0x343   :  { %3251 = vrot.lane.b32.xlu2 %v8087_v53, %s7228_s7 }
 0x345   :  { %3372 = vrot.lane.b32.xlu1 %v8075_v19, %s7229_s0  ;;  %3370 = vrot.lane.b32.xlu0 %v8078_v40, %s7229_s0 }
 0x34b   :  { %3253 = vrot.lane.b32.xlu2 %v8068_v1, %s7228_s7 }
 0x34d   :  { %3368 = vrot.lane.b32.xlu1 %v8068_v1, %s7229_s0  ;;  %3366 = vrot.lane.b32.xlu0 %v8087_v53, %s7229_s0 }
 0x353   :  { %3483 = vperm.xlu2 %7119, %v2405_v27  }
 0x35d   :  { %v2493_v50 = vpop.permute.xlu2 %2492 }
 0x365   :  { %v2477_v48 = vpop.permute.xlu2 %2476 }
 0x36d   :  { %v2697_v6 = vpop.permute.xlu2 %2696 }
 0x36f   :  { %v2695_v10 = vpop.permute.xlu1 %2694  ;;  %v2489_v7 = vpop.permute.xlu0 %2488 }
 0x370   :  { %v2701_v24 = vsel %vm461_vm2, %v2695_v10, %v2697_v6 }
 0x371   :  { %v2706_v62 = vmul.f32 %v2701_v24, %v7581_v29 }
 0x375   :  { %v8144_v14 = vpop.permute.xlu2 %2809 }
 0x377   :  { %v2491_v11 = vpop.permute.xlu1 %2490  ;;  %v2473_v28 = vpop.permute.xlu0 %2472 }
 0x378   :  { %v2494_v18 = vsel %vm237_vm0, %v2491_v11, %v2493_v50  ;;  %v2495_v33 = vsel %vm237_vm0, %v2489_v7, %v2491_v11 }
 0x379   :  { %v2500_v39 = vmul.f32 %v2495_v33, %v7492_v51  ;;  %v2501_v43 = vmul.f32 %v2494_v18, %v7495_v52 }
 0x37b   :  { %6876 = vmatpush.msk.msra.mxu2 %vm255_vm3, %v2500_v39  ;;  %6878 = vmatpush.msk.msra.mxu3 %vm255_vm3, %v2501_v43 }
 0x37c   :  { %6877 = vmatmul.msk.f32.vlgmr.msra.gmra.mxu2 %vm252_vm4, %v2503_v32  ;;  %6879 = vmatmul.msk.f32.vlgmr.msra.gmra.mxu3 %vm252_vm4, %v2503_v32 }
 0x37d   :  { %v8157_v57 = vpop.permute.xlu2 %2813 }
 0x37f   :  { %v2475_v36 = vpop.permute.xlu1 %2474  ;;  %v2487_v56 = vpop.permute.xlu0 %2486 }
 0x380   :  { %v2478_v0 = vsel %vm205_vm1, %v2475_v36, %v2477_v48  ;;  %v2479_v51 = vsel %vm205_vm1, %v2473_v28, %v2475_v36  ;;  %v2496_v52 = vsel %vm237_vm0, %v2487_v56, %v2489_v7  ;;  %v2497_v47 = vsel %vm237_vm0, %v2493_v50, %v2487_v56  ;;  %v9011_v7 = vld [vmem:[#allocation28_spill] sm:$0xff]  ;;  %v9013_v36 = vld [vmem:[#allocation31_spill] sm:$0xff] }
 0x381   :  { %v2484_v3 = vmul.f32 %v2479_v51, %v7505_v55  ;;  %v2485_v9 = vmul.f32 %v2478_v0, %v7550_v13  ;;  %v2498_v37 = vmul.f32 %v2497_v47, %v7511_v58  ;;  %v2499_v17 = vmul.f32 %v2496_v52, %v7514_v59  ;;  %v9014_v0 = vld [vmem:[#allocation27_spill] sm:$0xff]  ;;  %v9015_v52 = vld [vmem:[#allocation26_spill] sm:$0xff] }
 0x383   :  { %6872 = vmatpush.msk.msra.mxu0 %vm255_vm3, %v2498_v37  ;;  %6874 = vmatpush.msk.msra.mxu1 %vm255_vm3, %v2499_v17 }
 0x384   :  { %6884 = vmatpush.msk.msrb.mxu2 %vm255_vm3, %v2484_v3  ;;  %6886 = vmatpush.msk.msrb.mxu3 %vm255_vm3, %v2485_v9  ;;  %v2403_v3 = vld [vmem:[%s7274_s29 + $0x18] sm:$0xff] }
 0x385   :  { %6873 = vmatmul.msk.f32.vlgmr.msra.gmra.mxu0 %vm252_vm4, %v2503_v32  ;;  %6875 = vmatmul.msk.f32.vlgmr.msra.gmra.mxu1 %vm252_vm4, %v2503_v32  ;;  %v8180_v55 = vpop.permute.xlu2 %3027 }
 0x386   :  { %6885 = vmatmul.msk.f32.vlgmr.msrb.gmra.mxu2 %vm252_vm4, %v2400_v15  ;;  %6887 = vmatmul.msk.f32.vlgmr.msrb.gmra.mxu3 %vm252_vm4, %v2400_v15 }
 0x387   :  { %6892 = vmatpush.msk.msra.mxu2 %vm255_vm3, %v2706_v62  ;;  %v2699_v58 = vpop.permute.xlu1 %2698  ;;  %v2471_v59 = vpop.permute.xlu0 %2470 }
 0x388   :  { %v2700_v13 = vsel %vm461_vm2, %v2697_v6, %v2699_v58  ;;  %v2480_v29 = vsel %vm205_vm1, %v2471_v59, %v2473_v28  ;;  %v2481_v60 = vsel %vm205_vm1, %v2477_v48, %v2471_v59  ;;  %v9010_v6 = vld [vmem:[#allocation23_spill] sm:$0xff] }
 0x389   :  { %v2707_v26 = vmul.f32 %v2700_v13, %v7584_v30  ;;  %v2482_v61 = vmul.f32 %v2481_v60, %v7547_v12  ;;  %v2483_v44 = vmul.f32 %v2480_v29, %v7502_v54  ;;  %v9016_v29 = vld [vmem:[#allocation30_spill] sm:$0xff] }
 0x38b   :  { %6880 = vmatpush.msk.msrb.mxu0 %vm255_vm3, %v2482_v61  ;;  %6882 = vmatpush.msk.msrb.mxu1 %vm255_vm3, %v2483_v44  ;;  %v9018_v44 = vld [vmem:[#allocation34_spill] sm:$0xff] }
 0x38c   :  { %6894 = vmatpush.msk.msra.mxu3 %vm255_vm3, %v2707_v26  ;;  %v9017_v26 = vld [vmem:[#allocation29_spill] sm:$0xff] }
 0x38d   :  { %6881 = vmatmul.msk.f32.vlgmr.msrb.gmra.mxu0 %vm252_vm4, %v2400_v15  ;;  %6883 = vmatmul.msk.f32.vlgmr.msrb.gmra.mxu1 %vm252_vm4, %v2400_v15  ;;  %v3143_v30 = vpop.permute.xlu2 %3142  ;;  %v9012_v15 = vld [vmem:[#allocation32_spill] sm:$0xff] }
 0x38e   :  { %6893 = vmatmul.msk.f32.vlgmr.msra.gmra.mxu2 %vm252_vm4, %v2401_v35  ;;  %6895 = vmatmul.msk.f32.vlgmr.msra.gmra.mxu3 %vm252_vm4, %v2401_v35 }
 0x38f   :  { %v2693_v38 = vpop.permute.xlu1 %2692  ;;  %v2812_v12 = vpop.permute.xlu0 %2811 }
 0x390   :  { %v2702_v54 = vsel %vm461_vm2, %v2693_v38, %v2695_v10  ;;  %v2703_v5 = vsel %vm461_vm2, %v2699_v58, %v2693_v38  ;;  %v2815_v49 = vsel %vm596_vm6, %v2812_v12, %v8157_v57  ;;  %v2816_v25 = vsel %vm596_vm6, %v8144_v14, %v2812_v12 }
 0x391   :  { %v2704_v21 = vmul.f32 %v2703_v5, %v7559_v16  ;;  %v2705_v23 = vmul.f32 %v2702_v54, %v7522_v63  ;;  %v2821_v34 = vmul.f32 %v2816_v25, %v7616_v41  ;;  %v2822_v42 = vmul.f32 %v2815_v49, %v9007_v31  ;;  %v9020_v54 = vld [vmem:[#allocation36_spill] sm:$0xff]  ;;  %v9021_v49 = vld [vmem:[#allocation37_spill] sm:$0xff]  ;;  %v7129_v31 = vld [vmem:[%s7249_s9 + $0x30] ss:$0 sm:$0xff] }
 0x392   :  { %v3267_v12 = vrot.slane %v2403_v3, 4 }
 0x393   :  { %6888 = vmatpush.msk.msra.mxu0 %vm255_vm3, %v2704_v21  ;;  %6890 = vmatpush.msk.msra.mxu1 %vm255_vm3, %v2705_v23 }
 0x394   :  { %6900 = vmatpush.msk.msrb.mxu2 %vm255_vm3, %v2821_v34  ;;  %6902 = vmatpush.msk.msrb.mxu3 %vm255_vm3, %v2822_v42 }
 0x395   :  { %6889 = vmatmul.msk.f32.vlgmr.msra.gmra.mxu0 %vm252_vm4, %v2401_v35  ;;  %6891 = vmatmul.msk.f32.vlgmr.msra.gmra.mxu1 %vm252_vm4, %v2401_v35  ;;  %v3256_v41 = vpop.permute.xlu2 %3255 }
 0x396   :  { %6901 = vmatmul.msk.f32.vlgmr.msrb.gmra.mxu2 %vm252_vm4, %v2823_v2  ;;  %6903 = vmatmul.msk.f32.vlgmr.msrb.gmra.mxu3 %vm252_vm4, %v2823_v2 }
 0x397   :  { %6908 = vmatpush.msk.msra.mxu2 %vm255_vm3, %v8078_v40  ;;  %6910 = vmatpush.msk.msra.mxu3 %vm255_vm3, %v8075_v19  ;;  %v3137_v63 = vpop.permute.xlu1 %3136  ;;  %v2808_v16 = vpop.permute.xlu0 %2807  ;;  %v2402_v19 = vld [vmem:[%s7274_s29 + $0x10] sm:$0xff] }
 0x398   :  { %v2817_v46 = vsel %vm596_vm6, %v2808_v16, %v8144_v14  ;;  %v2818_v8 = vsel %vm596_vm6, %v8157_v57, %v2808_v16  ;;  %v3147_v40 = vsel %vm964_vm8, %v3143_v30, %v3137_v63  ;;  %v3037_v18 = vrot.slane %v2402_v19, 4 }
 0x399   :  { %v2819_v20 = vmul.f32 %v2818_v8, %v9008_v4  ;;  %v2820_v27 = vmul.f32 %v2817_v46, %v9009_v22  ;;  %v3151_v11 = vmul.f32 %v3147_v40, %v9012_v15  ;;  %v7130_v4 = vld [vmem:[%s7249_s9 + $0x28] ss:$0 sm:$0xff]  ;;  %v7131_v22 = vld [vmem:[%s7249_s9 + $0x20] ss:$0 sm:$0xff]  ;;  %v2452_v15 = vld [vmem:[%s7284_s8 + $0x170] sm:$0xff] }
 0x39b   :  { %6896 = vmatpush.msk.msrb.mxu0 %vm255_vm3, %v2819_v20  ;;  %6898 = vmatpush.msk.msrb.mxu1 %vm255_vm3, %v2820_v27 }
 0x39d   :  { %6904 = vmatpush.msk.msra.mxu0 %vm255_vm3, %v8087_v53  ;;  %6906 = vmatpush.msk.msra.mxu1 %vm255_vm3, %v8068_v1  ;;  %v3252_v28 = vpop.permute.xlu2 %3251 }
 0x39e   :  { %6897 = vmatmul.msk.f32.vlgmr.msrb.gmra.mxu0 %vm252_vm4, %v2823_v2  ;;  %6899 = vmatmul.msk.f32.vlgmr.msrb.gmra.mxu1 %vm252_vm4, %v2823_v2  ;;  %v2404_v2 = vld [vmem:[%s7274_s29 + $0x20] sm:$0xf]  ;;  %s9022_s29 = sld [smem:[#allocation8_spill]] }
 0x39f   :  { %6909 = vmatmul.msk.f32.vlgmr.msra.gmra.mxu2 %vm252_vm4, %v2402_v19  ;;  %6911 = vmatmul.msk.f32.vlgmr.msra.gmra.mxu3 %vm252_vm4, %v2402_v19  ;;  %v3026_v50 = vpop.permute.xlu1 %3025  ;;  %v3022_v48 = vpop.permute.xlu0 %3021 }
 0x3a0   :  { %v3029_v53 = vsel %vm829_vm7, %v3026_v50, %v8180_v55  ;;  %v3032_v1 = vsel %vm829_vm7, %v8180_v55, %v3022_v48 }
 0x3a1   :  { %v3035_v10 = vmul.f32 %v3029_v53, %v9010_v6  ;;  %v3036_v14 = vmul.f32 %v3032_v1, %v9011_v7  ;;  %v2453_v1 = vld [vmem:[%s7284_s8 + $0x178] sm:$0xff] }
 0x3a2   :  { %v2421_v7 = vld [vmem:[%s7284_s8 + $0x78] sm:$0xff] }
 0x3a3   :  { %6916 = vmatpush.msk.msrb.mxu2 %vm255_vm3, %v3035_v10  ;;  %6918 = vmatpush.msk.msrb.mxu3 %vm255_vm3, %v3036_v14  ;;  %v2437_v14 = vld [vmem:[%s7284_s8 + $0xf8] sm:$0xff] }
 0x3a5   :  { %6926 = vmatpush.msk.msra.mxu3 %vm255_vm3, %v3151_v11  ;;  %v3254_v9 = vpop.permute.xlu2 %3253 }
 0x3a6   :  { %6905 = vmatmul.msk.f32.vlgmr.msra.gmra.mxu0 %vm252_vm4, %v2402_v19  ;;  %6907 = vmatmul.msk.f32.vlgmr.msra.gmra.mxu1 %vm252_vm4, %v2402_v19  ;;  %v3260_v37 = vsel %vm1095_vm10, %v3254_v9, %v3256_v41  ;;  %v3261_v17 = vsel %vm1095_vm10, %v3252_v28, %v3254_v9  ;;  %v7132_v19 = vld [vmem:[%s7249_s9 + $0x38] ss:$0 sm:$0xff]  ;;  %s7231_s9 = smov 7  }
 0x3a7   :  { %6917 = vmatmul.msk.f32.vlgmr.msrb.gmra.mxu2 %vm252_vm4, %v3037_v18  ;;  %6919 = vmatmul.msk.f32.vlgmr.msrb.gmra.mxu3 %vm252_vm4, %v3037_v18  ;;  %v3141_v33 = vpop.permute.xlu1 %3140  ;;  %v3024_v32 = vpop.permute.xlu0 %3023  ;;  %v3263_v5 = vmul.f32 %v3261_v17, %v9020_v54  ;;  %v3264_v25 = vmul.f32 %v3260_v37, %v9021_v49  ;;  %v2433_v9 = vld [vmem:[%s7284_s8 + $0xd8] sm:$0xff]  ;;  %v2448_v37 = vld [vmem:[%s7284_s8 + $0x150] sm:$0xff] }
 0x3a8   :  { %v3144_v39 = vsel %vm964_vm8, %v3141_v33, %v3143_v30  ;;  %v3030_v43 = vsel %vm829_vm7, %v3024_v32, %v3026_v50  ;;  %v3031_v57 = vsel %vm829_vm7, %v3022_v48, %v3024_v32  ;;  %v9019_v30 = vld [vmem:[#allocation33_spill] sm:$0xff]  ;;  %v2451_v32 = vld [vmem:[%s7284_s8 + $0x168] sm:$0xff]  ;;  %v2429_v49 = vld [vmem:[%s7284_s8 + $0xb8] sm:$0xff] }
 0x3a9   :  { %v3150_v56 = vmul.f32 %v3144_v39, %v9013_v36  ;;  %v3033_v51 = vmul.f32 %v3031_v57, %v9014_v0  ;;  %v3034_v47 = vmul.f32 %v3030_v43, %v9015_v52  ;;  %v2419_v39 = vld [vmem:[%s7284_s8 + $0x68] sm:$0xff]  ;;  %v2450_v57 = vld [vmem:[%s7284_s8 + $0x160] sm:$0xff]  ;;  %v2449_v0 = vld [vmem:[%s7284_s8 + $0x158] sm:$0xff] }
 0x3aa   :  { %v2435_v43 = vld [vmem:[%s7284_s8 + $0xe8] sm:$0xff]  ;;  %v2418_v36 = vld [vmem:[%s7284_s8 + $0x60] sm:$0xff] }
 0x3ab   :  { %6912 = vmatpush.msk.msrb.mxu0 %vm255_vm3, %v3033_v51  ;;  %6914 = vmatpush.msk.msrb.mxu1 %vm255_vm3, %v3034_v47  ;;  %v2469_v51 = vld [vmem:[%s7284_s8 + $0x1f8] sm:$0xff] }
 0x3ac   :  { %6924 = vmatpush.msk.msra.mxu2 %vm255_vm3, %v3150_v56  ;;  %v2434_v56 = vld [vmem:[%s7284_s8 + $0xe0] sm:$0xff] }
 0x3ae   :  { %6913 = vmatmul.msk.f32.vlgmr.msrb.gmra.mxu0 %vm252_vm4, %v3037_v18  ;;  %6915 = vmatmul.msk.f32.vlgmr.msrb.gmra.mxu1 %vm252_vm4, %v3037_v18  ;;  %v2420_v18 = vld [vmem:[%s7284_s8 + $0x70] sm:$0xff] }
 0x3af   :  { %6925 = vmatmul.msk.f32.vlgmr.msra.gmra.mxu2 %vm252_vm4, %v2403_v3  ;;  %6927 = vmatmul.msk.f32.vlgmr.msra.gmra.mxu3 %vm252_vm4, %v2403_v3  ;;  %v3139_v24 = vpop.permute.xlu1 %3138  ;;  %v3258_v62 = vpop.permute.xlu0 %3257 }
 0x3b0   :  { %v3145_v55 = vsel %vm964_vm8, %v3139_v24, %v3141_v33  ;;  %v3146_v58 = vsel %vm964_vm8, %v3137_v63, %v3139_v24  ;;  %v3259_v59 = vsel %vm1095_vm10, %v3256_v41, %v3258_v62  ;;  %v3262_v13 = vsel %vm1095_vm10, %v3258_v62, %v3252_v28  ;;  %v2436_v33 = vld [vmem:[%s7284_s8 + $0xf0] sm:$0xff] }
 0x3b1   :  { %v3148_v60 = vmul.f32 %v3146_v58, %v9016_v29  ;;  %v3149_v61 = vmul.f32 %v3145_v55, %v9017_v26  ;;  %v3265_v35 = vmul.f32 %v3259_v59, %v9018_v44  ;;  %v3266_v38 = vmul.f32 %v3262_v13, %v9019_v30  ;;  %v2468_v62 = vld [vmem:[%s7284_s8 + $0x1f0] sm:$0xff]  ;;  %v2447_v59 = vld [vmem:[%s7284_s8 + $0x148] sm:$0xff]  ;;  %v2446_v26 = vld [vmem:[%s7284_s8 + $0x140] sm:$0xff] }
 0x3b2   :  { %v2416_v55 = vld [vmem:[%s7284_s8 + $0x50] sm:$0xff]  ;;  %v2467_v13 = vld [vmem:[%s7284_s8 + $0x1e8] sm:$0xff]  ;;  %v2414_v44 = vld [vmem:[%s7284_s8 + $0x40] sm:$0xff] }
 0x3b3   :  { %6920 = vmatpush.msk.msra.mxu0 %vm255_vm3, %v3148_v60  ;;  %6922 = vmatpush.msk.msra.mxu1 %vm255_vm3, %v3149_v61  ;;  %v2432_v58 = vld [vmem:[%s7284_s8 + $0xd0] sm:$0xff]  ;;  %v2415_v29 = vld [vmem:[%s7284_s8 + $0x48] sm:$0xff]  ;;  %v2466_v61 = vld [vmem:[%s7284_s8 + $0x1e0] sm:$0xff] }
 0x3b4   :  { %6932 = vmatpush.msk.msrb.mxu2 %vm255_vm3, %v3265_v35  ;;  %6934 = vmatpush.msk.msrb.mxu3 %vm255_vm3, %v3266_v38  ;;  %v2431_v60 = vld [vmem:[%s7284_s8 + $0xc8] sm:$0xff]  ;;  %v2430_v35 = vld [vmem:[%s7284_s8 + $0xc0] sm:$0xff]  ;;  %v2445_v30 = vld [vmem:[%s7284_s8 + $0x138] sm:$0xff] }
 0x3b5   :  { %6928 = vmatpush.msk.msrb.mxu0 %vm255_vm3, %v3263_v5  ;;  %6930 = vmatpush.msk.msrb.mxu1 %vm255_vm3, %v3264_v25  ;;  %v2465_v38 = vld [vmem:[%s7284_s8 + $0x1d8] sm:$0xff]  ;;  %v2444_v25 = vld [vmem:[%s7284_s8 + $0x130] sm:$0xff] }
 0x3b6   :  { %6921 = vmatmul.msk.f32.vlgmr.msra.gmra.mxu0 %vm252_vm4, %v2403_v3  ;;  %6923 = vmatmul.msk.f32.vlgmr.msra.gmra.mxu1 %vm252_vm4, %v2403_v3  ;;  %v2417_v3 = vld [vmem:[%s7284_s8 + $0x58] sm:$0xff] }
 0x3b7   :  { %6933 = vmatmul.msk.f32.vlgmr.msrb.gmra.mxu2 %vm252_vm4, %v3267_v12  ;;  %6935 = vmatmul.msk.f32.vlgmr.msrb.gmra.mxu3 %vm252_vm4, %v3267_v12  ;;  %v3373_v21 = vpop.permute.xlu1 %3372  ;;  %v3371_v23 = vpop.permute.xlu0 %3370  ;;  %v2413_v5 = vld [vmem:[%s7284_s8 + $0x38] sm:$0xff] }
 0x3b8   :  { %v3374_v34 = vsel %vm1226_vm11, %v3371_v23, %v3373_v21 }
 0x3b9   :  { %v3380_v42 = vmul.f32 %v7129_v31, %v3374_v34  ;;  %v2464_v34 = vld [vmem:[%s7284_s8 + $0x1d0] sm:$0xff] }
 0x3ba   :  { %v2412_v31 = vld [vmem:[%s7284_s8 + $0x30] sm:$0xff] }
 0x3bb   :  { %6940 = vmatpush.msk.msra.mxu2 %vm255_vm3, %v3380_v42  ;;  %v2428_v42 = vld [vmem:[%s7284_s8 + $0xb0] sm:$0xff] }
 0x3bd   :  { %3530 = vmatpush.msrb.mxu2 %v2453_v1  ;;  %v2425_v1 = vld [vmem:[%s7284_s8 + $0x98] sm:$0xff] }
 0x3be   :  { %6929 = vmatmul.msk.f32.vlgmr.msrb.gmra.mxu0 %vm252_vm4, %v3267_v12  ;;  %6931 = vmatmul.msk.f32.vlgmr.msrb.gmra.mxu1 %vm252_vm4, %v3267_v12 }
 0x3bf   :  { %6941 = vmatmul.msk.f32.vlgmr.msra.gmra.mxu2 %vm252_vm4, %v2404_v2  ;;  %v3369_v63 = vpop.permute.xlu1 %3368  ;;  %v3367_v16 = vpop.permute.xlu0 %3366 }
 0x3c0   :  { %v3375_v41 = vsel %vm1226_vm11, %v3369_v63, %v3371_v23  ;;  %v3376_v46 = vsel %vm1226_vm11, %v3367_v16, %v3369_v63  ;;  %v3377_v8 = vsel %vm1226_vm11, %v3373_v21, %v3367_v16  ;;  %3531 = vmatpush.msrb.mxu2 %v2452_v15  ;;  %v2463_v63 = vld [vmem:[%s7284_s8 + $0x1c8] sm:$0xff] }
 0x3c1   :  { %v3379_v20 = vmul.f32 %v7130_v4, %v3375_v41  ;;  %v3378_v27 = vmul.f32 %v7131_v22, %v3376_v46  ;;  %v3381_v40 = vmul.f32 %v7132_v19, %v3377_v8  ;;  %v2411_v16 = vld [vmem:[%s7284_s8 + $0x28] sm:$0xff]  ;;  %v2442_v46 = vld [vmem:[%s7284_s8 + $0x120] sm:$0xff]  ;;  %v2441_v22 = vld [vmem:[%s7284_s8 + $0x118] sm:$0xff] }
 0x3c2   :  { %3532 = vmatpush.msrb.mxu2 %v2451_v32  ;;  %v2427_v41 = vld [vmem:[%s7284_s8 + $0xa8] sm:$0xff]  ;;  %v2462_v8 = vld [vmem:[%s7284_s8 + $0x1c0] sm:$0xff]  ;;  %v2408_v32 = vld [vmem:[%s7284_s8 + $0x10] sm:$0xff] }
 0x3c3   :  { %6936 = vmatpush.msk.msra.mxu0 %vm255_vm3, %v3378_v27  ;;  %6938 = vmatpush.msk.msra.mxu1 %vm255_vm3, %v3379_v20  ;;  %v2410_v4 = vld [vmem:[%s7284_s8 + $0x20] sm:$0xff]  ;;  %v2461_v27 = vld [vmem:[%s7284_s8 + $0x1b8] sm:$0xff] }
 0x3c4   :  { %6942 = vmatpush.msk.msra.mxu3 %vm255_vm3, %v3381_v40  ;;  %3533 = vmatpush.msrb.mxu2 %v2450_v57  ;;  %v2426_v20 = vld [vmem:[%s7284_s8 + $0xa0] sm:$0xff]  ;;  %v2409_v40 = vld [vmem:[%s7284_s8 + $0x18] sm:$0xff]  ;;  %v2459_v57 = vld [vmem:[%s7284_s8 + $0x1a8] sm:$0xff] }
 0x3c5   :  { %6943 = vmatmul.msk.f32.vlgmr.msra.gmra.mxu3 %vm252_vm4, %v2404_v2  ;;  %3490 = vmatpush.msrb.mxu0 %v2421_v7  ;;  %v2440_v7 = vld [vmem:[%s7284_s8 + $0x110] sm:$0xff] }
 0x3c6   :  { %6937 = vmatmul.msk.f32.vlgmr.msra.gmra.mxu0 %vm252_vm4, %v2404_v2  ;;  %6939 = vmatmul.msk.f32.vlgmr.msra.gmra.mxu1 %vm252_vm4, %v2404_v2  ;;  %v2443_v2 = vld [vmem:[%s7284_s8 + $0x128] sm:$0xff] }
 0x3c7   :  { %3510 = vmatpush.msrb.mxu1 %v2437_v14  ;;  %3491 = vmatpush.msrb.mxu0 %v2420_v18  ;;  %v2460_v18 = vld [vmem:[%s7284_s8 + $0x1b0] sm:$0xff] }
 0x3c8   :  { %3550 = vmatpush.msrb.mxu3 %v2469_v51  ;;  %3534 = vmatpush.msrb.mxu2 %v2449_v0  ;;  %v2438_v0 = vld [vmem:[%s7284_s8 + $0x100] sm:$0xff] }
 0x3c9   :  { %3511 = vmatpush.msrb.mxu1 %v2436_v33  ;;  %3492 = vmatpush.msrb.mxu0 %v2419_v39  ;;  %v2424_v39 = vld [vmem:[%s7284_s8 + $0x90] sm:$0xff]  ;;  %v2458_v51 = vld [vmem:[%s7284_s8 + $0x1a0] sm:$0xff] }
 0x3ca   :  { %3535 = vmatpush.msrb.mxu2 %v2448_v37  ;;  %3551 = vmatpush.msrb.mxu3 %v2468_v62  ;;  %v2457_v37 = vld [vmem:[%s7284_s8 + $0x198] sm:$0xff] }
 0x3cb   :  { %3512 = vmatpush.msrb.mxu1 %v2435_v43  ;;  %3493 = vmatpush.msrb.mxu0 %v2418_v36  ;;  %v2439_v43 = vld [vmem:[%s7284_s8 + $0x108] sm:$0xff] }
 0x3cc   :  { %3536 = vmatpush.msrb.mxu2 %v2447_v59  ;;  %3552 = vmatpush.msrb.mxu3 %v2467_v13  ;;  %v2407_v36 = vld [vmem:[%s7284_s8 + $0x8] sm:$0xff] }
 0x3cd   :  { %3513 = vmatpush.msrb.mxu1 %v2434_v56  ;;  %3494 = vmatpush.msrb.mxu0 %v2417_v3  ;;  %v2423_v56 = vld [vmem:[%s7284_s8 + $0x88] sm:$0xff]  ;;  %v2406_v3 = vld [vmem:[%s7284_s8] sm:$0xff] }
 0x3ce   :  { %3537 = vmatpush.msrb.mxu2 %v2446_v26  ;;  %3553 = vmatpush.msrb.mxu3 %v2466_v61  ;;  %v2455_v13 = vld [vmem:[%s7284_s8 + $0x188] sm:$0xff] }
 0x3cf   :  { %3514 = vmatpush.msrb.mxu1 %v2433_v9  ;;  %3495 = vmatpush.msrb.mxu0 %v2416_v55  ;;  %v2422_v9 = vld [vmem:[%s7284_s8 + $0x80] sm:$0xff]  ;;  %v2456_v55 = vld [vmem:[%s7284_s8 + $0x190] sm:$0xff] }
 0x3d0   :  { %3538 = vmatpush.msrb.mxu2 %v2445_v30  ;;  %3554 = vmatpush.msrb.mxu3 %v2465_v38 }
 0x3d1   :  { %3515 = vmatpush.msrb.mxu1 %v2432_v58  ;;  %3496 = vmatpush.msrb.mxu0 %v2415_v29  ;;  %v2454_v29 = vld [vmem:[%s7284_s8 + $0x180] sm:$0xff]  ;;  %s9024_s8 = sld [smem:[#allocation12_spill]] }
 0x3d2   :  { %3539 = vmatpush.msrb.mxu2 %v2444_v25  ;;  %3555 = vmatpush.msrb.mxu3 %v2464_v34 }
 0x3d3   :  { %3516 = vmatpush.msrb.mxu1 %v2431_v60  ;;  %3497 = vmatpush.msrb.mxu0 %v2414_v44 }
 0x3d4   :  { %3540 = vmatpush.msrb.mxu2 %v2443_v2  ;;  %3556 = vmatpush.msrb.mxu3 %v2463_v63 }
 0x3d5   :  { %3517 = vmatpush.msrb.mxu1 %v2430_v35  ;;  %3498 = vmatpush.msrb.mxu0 %v2413_v5 }
 0x3d6   :  { %3541 = vmatpush.msrb.mxu2 %v2442_v46  ;;  %3557 = vmatpush.msrb.mxu3 %v2462_v8 }
 0x3d7   :  { %3518 = vmatpush.msrb.mxu1 %v2429_v49  ;;  %3499 = vmatpush.msrb.mxu0 %v2412_v31 }
 0x3d8   :  { %3542 = vmatpush.msrb.mxu2 %v2441_v22  ;;  %3558 = vmatpush.msrb.mxu3 %v2461_v27 }
 0x3d9   :  { %3519 = vmatpush.msrb.mxu1 %v2428_v42  ;;  %3500 = vmatpush.msrb.mxu0 %v2411_v16 }
 0x3da   :  { %3543 = vmatpush.msrb.mxu2 %v2440_v7  ;;  %3559 = vmatpush.msrb.mxu3 %v2460_v18 }
 0x3db   :  { %3520 = vmatpush.msrb.mxu1 %v2427_v41  ;;  %3501 = vmatpush.msrb.mxu0 %v2410_v4 }
 0x3dc   :  { %3544 = vmatpush.msrb.mxu2 %v2439_v43  ;;  %3560 = vmatpush.msrb.mxu3 %v2459_v57 }
 0x3dd   :  { %3521 = vmatpush.msrb.mxu1 %v2426_v20  ;;  %3502 = vmatpush.msrb.mxu0 %v2409_v40  ;;  %v3484_v40 = vpop.permute.xlu2 %3483 }
 0x3de   :  { %3545 = vmatpush.msrb.mxu2 %v2438_v0  ;;  %3561 = vmatpush.msrb.mxu3 %v2458_v51 }
 0x3df   :  { %3522 = vmatpush.msrb.mxu1 %v2425_v1  ;;  %3503 = vmatpush.msrb.mxu0 %v2408_v32 }
 0x3e0   :  { %3562 = vmatpush.msrb.mxu3 %v2457_v37 }
 0x3e1   :  { %3523 = vmatpush.msrb.mxu1 %v2424_v39  ;;  %3504 = vmatpush.msrb.mxu0 %v2407_v36 }
 0x3e2   :  { %3563 = vmatpush.msrb.mxu3 %v2456_v55  ;;  %v8468_v55 = vld [vmem:[%s7289_s14] sm:$0xff] }
 0x3e3   :  { %3524 = vmatpush.msrb.mxu1 %v2423_v56  ;;  %3505 = vmatpush.msrb.mxu0 %v2406_v3 }
 0x3e4   :  { %3564 = vmatpush.msrb.mxu3 %v2455_v13  ;;  %v3574_v13 = vld [vmem:[%s7294_s19 + $0x8] sm:$0xff] }
 0x3e5   :  { %3525 = vmatpush.msrb.mxu1 %v2422_v9 }
 0x3e6   :  { %3565 = vmatpush.msrb.mxu3 %v2454_v29 }
 0x3ff   :  { %v8333_v45 = vpop.f32.mrf.mxu2  ;;  %v8335_v50 = vpop.f32.mrf.mxu3 }
 0x402   :  { %v8337_v48 = vpop.f32.mrf.mxu0  ;;  %v8339_v53 = vpop.f32.mrf.mxu1 }
 0x409   :  { %v8342_v6 = vpop.f32.mrf.mxu2  ;;  %v8344_v10 = vpop.f32.mrf.mxu3 }
 0x40a   :  { %v8349_v11 = vpop.f32.mrf.mxu0  ;;  %v8351_v28 = vpop.f32.mrf.mxu1  ;;  %v2670_v35 = vadd.f32 %v8342_v6, %v8333_v45 }
 0x40b   :  { %v2630_v30 = vadd.f32 %v8349_v11, %v8337_v48  ;;  %v2650_v38 = vadd.f32 %v8351_v28, %v8339_v53  ;;  %v2690_v53 = vadd.f32 %v8344_v10, %v8335_v50 }
 0x411   :  { %v8363_v52 = vpop.f32.mrf.mxu2  ;;  %v8365_v47 = vpop.f32.mrf.mxu3 }
 0x412   :  { %v8370_v17 = vpop.f32.mrf.mxu0  ;;  %v8372_v24 = vpop.f32.mrf.mxu1  ;;  %v2805_v5 = vadd.f32 %v8363_v52, %v2670_v35 }
 0x413   :  { %v2803_v25 = vadd.f32 %v8370_v17, %v2630_v30  ;;  %v2804_v34 = vadd.f32 %v8372_v24, %v2650_v38  ;;  %v2806_v17 = vadd.f32 %v8365_v47, %v2690_v53  ;;  %v3591_v38 = vperm.slane %v8468_v55, 1 }
 0x419   :  { %v8387_v12 = vpop.f32.mrf.mxu2  ;;  %v8389_v54 = vpop.f32.mrf.mxu3 }
 0x41a   :  { %v2920_v31 = vadd.f32 %v8387_v12, %v2805_v5  ;;  %v2921_v12 = vadd.f32 %v8389_v54, %v2806_v17  ;;  %v3649_v5 = vperm.slane %v8468_v55, 2  ;;  %v3738_v17 = vperm.slane %v8468_v55, 5 }
 0x41b   :  { %v8394_v21 = vpop.f32.mrf.mxu0  ;;  %v8396_v23 = vpop.f32.mrf.mxu1 }
 0x41c   :  { %v2918_v42 = vadd.f32 %v8394_v21, %v2803_v25  ;;  %v2919_v2 = vadd.f32 %v8396_v23, %v2804_v34 }
 0x422   :  { %v2994_v19 = vpop.f32.mrf.mxu2  ;;  %v8415_v33 = vpop.f32.mrf.mxu3 }
 0x423   :  { %v2954_v14 = vpop.f32.mrf.mxu0  ;;  %v2974_v15 = vpop.f32.mrf.mxu1  ;;  %v3019_v6 = vadd.f32 %v2994_v19, %v2920_v31  ;;  %v3020_v4 = vadd.f32 %v8415_v33, %v2921_v12 }
 0x424   :  { %v3017_v11 = vadd.f32 %v2954_v14, %v2918_v42  ;;  %v3018_v28 = vadd.f32 %v2974_v15, %v2919_v2 }
 0x42a   :  { %v3109_v62 = vpop.f32.mrf.mxu2  ;;  %v3129_v60 = vpop.f32.mrf.mxu3 }
 0x42b   :  { %v3069_v58 = vpop.f32.mrf.mxu0  ;;  %v3089_v59 = vpop.f32.mrf.mxu1  ;;  %v3134_v52 = vadd.f32 %v3109_v62, %v3019_v6  ;;  %v3135_v1 = vadd.f32 %v3129_v60, %v3020_v4  ;;  %v3578_v62 = vld [vmem:[%s7299_s24] sm:$0xf]  ;;  %v3682_v60 = vrot.slane %v3574_v13, 4  ;;  %v3587_v6 = vperm.slane %v8468_v55, 0  ;;  %s9027_s24 = sld [smem:[#allocation14_spill]] }
 0x42c   :  { %v3132_v16 = vadd.f32 %v3069_v58, %v3017_v11  ;;  %v3133_v24 = vadd.f32 %v3089_v59, %v3018_v28  ;;  %v3680_v58 = vperm.slane %v8468_v55, 3  ;;  %v3575_v28 = vld [vmem:[%s7294_s19 + $0x10] sm:$0xff] }
 0x42d   :  { %v3740_v12 = vrot.slane %v3575_v28, 4 }
 0x432   :  { %v3224_v26 = vpop.f32.mrf.mxu2  ;;  %v3244_v49 = vpop.f32.mrf.mxu3 }
 0x433   :  { %v3184_v61 = vpop.f32.mrf.mxu0  ;;  %v3204_v44 = vpop.f32.mrf.mxu1  ;;  %v3249_v41 = vadd.f32 %v3224_v26, %v3134_v52  ;;  %v3250_v15 = vadd.f32 %v3244_v49, %v3135_v1  ;;  %v3800_v26 = vperm.slane %v8468_v55, 7  ;;  %v3573_v49 = vld [vmem:[%s7294_s19] sm:$0xff]  ;;  %v8506_v52 = vld [vmem:[%s7289_s14 + $0x8] ss:$0 sm:$0xff]  ;;  %s9025_s14 = sld [smem:[#allocation10_spill]] }
 0x434   :  { %v3247_v21 = vadd.f32 %v3184_v61, %v3132_v16  ;;  %v3248_v46 = vadd.f32 %v3204_v44, %v3133_v24  ;;  %v3576_v44 = vld [vmem:[%s7294_s19 + $0x18] sm:$0xff]  ;;  %v3594_v42 = vrot.slane %v3573_v49, 4 }
 0x435   :  { %v3802_v30 = vrot.slane %v3576_v44, 4 }
 0x43a   :  { %v3339_v45 = vpop.f32.mrf.mxu2  ;;  %v3359_v8 = vpop.f32.mrf.mxu3 }
 0x43b   :  { %v3299_v63 = vpop.f32.mrf.mxu0  ;;  %v3319_v48 = vpop.f32.mrf.mxu1  ;;  %v3364_v23 = vadd.f32 %v3339_v45, %v3249_v41  ;;  %v3365_v32 = vadd.f32 %v3359_v8, %v3250_v15  ;;  %v3769_v45 = vperm.slane %v8468_v55, 6  ;;  %v4210_v55 = vld [vmem:[#allocation2 + $0x1e8] sm:$0xff] }
 0x43c   :  { %v3362_v20 = vadd.f32 %v3299_v63, %v3247_v21  ;;  %v3363_v22 = vadd.f32 %v3319_v48, %v3248_v46  ;;  %v3577_v46 = vld [vmem:[%s7294_s19 + $0x20] sm:$0xf]  ;;  %s9026_s19 = sld [smem:[#allocation11_spill]] }
 0x442   :  { %v3454_v27 = vpop.f32.mrf.mxu2 }
 0x443   :  { %v3479_v50 = vadd.f32 %v3454_v27, %v3364_v23  ;;  %v3414_v10 = vpop.f32.mrf.mxu0  ;;  %v3434_v19 = vpop.f32.mrf.mxu1 }
 0x444   :  { %v3477_v47 = vadd.f32 %v3414_v10, %v3362_v20  ;;  %v3478_v7 = vadd.f32 %v3434_v19, %v3363_v22 }
 0x445   :  { %v3488_v14 = vadd.f32 %v3484_v40, %v3479_v50 }
 0x446   :  { %v3486_v18 = vadd.f32 %v3484_v40, %v3477_v47  ;;  %v3487_v54 = vadd.f32 %v3484_v40, %v3478_v7 }
 0x447   :  { %3546 = vmatmul.f32.vlgmr.msrb.gmra.mxu2 %v3488_v14 }
 0x448   :  { %3506 = vmatmul.f32.vlgmr.msrb.gmra.mxu0 %v3486_v18  ;;  %3526 = vmatmul.f32.vlgmr.msrb.gmra.mxu1 %v3487_v54  ;;  %v3474_v39 = vpop.f32.mrf.mxu3 }
 0x449   :  { %v3480_v33 = vadd.f32 %v3474_v39, %v3365_v32 }
 0x44b   :  { %v3489_v43 = vadd.f32 %v3484_v40, %v3480_v33 }
 0x44d   :  { %3566 = vmatmul.f32.vlgmr.msrb.gmra.mxu3 %v3489_v43 }
 0x4c5   :  { %v3507_v57 = vpop.f32.mrf.mxu0  ;;  %v3527_v36 = vpop.f32.mrf.mxu1 }
 0x4c6   :  { %v3528_v0 = vadd.f32 %v3527_v36, %v3507_v57  ;;  %v3584_v57 = vld [vmem:[%s7309_s6] sm:$0xf]  ;;  %s9028_s6 = sld [smem:[#allocation13_spill]] }
 0x4ca   :  { %v3547_v56 = vpop.f32.mrf.mxu2 }
 0x4cb   :  { %v3548_v51 = vadd.f32 %v3547_v56, %v3528_v0  ;;  %v3579_v56 = vld [vmem:[%s9022_s29] sm:$0xff] }
 0x4d0   :  { %v3567_v3 = vpop.f32.mrf.mxu3 }
 0x4d1   :  { %v3568_v9 = vadd.f32 %v3567_v3, %v3548_v51  ;;  %v3875_v51 = vrot.slane %v3579_v56, 4  ;;  %v3581_v3 = vld [vmem:[%s9022_s29 + $0x10] sm:$0xff] }
 0x4d3   :  { %v8448_v37 = vmax.f32 %v3568_v9, 0.0 }
 0x4d5   :  { %3678 = vrot.lane.b32.xlu2 %v8448_v37, %s7225_s26  ;;  %3589 = vrot.lane.b32.xlu1 %v8448_v37, %s7218_s10 }
 0x4d6   :  { %3647 = vrot.lane.b32.xlu0 %v8448_v37, %s7231_s9 }
 0x4dd   :  { %3798 = vrot.lane.b32.xlu2 %v8448_v37, %s7232_s13  ;;  %3767 = vrot.lane.b32.xlu1 %v8448_v37, %s7233_s17 }
 0x4de   :  { %3585 = vrot.lane.b32.xlu0 %v8448_v37, %s7234_s21 }
 0x4e5   :  { %3862 = vperm.xlu2 %7119, %v3578_v62   ;;  %3829 = vrot.lane.b32.xlu1 %v8448_v37, %s7235_s25 }
 0x4e6   :  { %3736 = vrot.lane.b32.xlu0 %v8448_v37, %s7226_s28 }
 0x52f   :  { %v3679_v59 = vpop.permute.xlu2 %3678 }
 0x530   :  { %v3681_v29 = vmul.f32 %v3680_v58, %v3679_v59 }
 0x532   :  { %6950 = vmatpush.msk.msra.mxu3 %vm3598_vm12, %v3681_v29 }
 0x533   :  { %6951 = vmatmul.msk.f32.vlgmr.msra.gmra.mxu3 %vm3595_vm13, %v3682_v60 }
 0x537   :  { %v3799_v61 = vpop.permute.xlu2 %3798 }
 0x538   :  { %v3801_v35 = vmul.f32 %v3800_v26, %v3799_v61  ;;  %v3580_v61 = vld [vmem:[%s9022_s29 + $0x8] sm:$0xff] }
 0x53a   :  { %6958 = vmatpush.msk.msrb.mxu3 %vm3598_vm12, %v3801_v35  ;;  %v4179_v35 = vld [vmem:[#allocation2 + $0xf0] sm:$0xff] }
 0x53b   :  { %6959 = vmatmul.msk.f32.vlgmr.msrb.gmra.mxu3 %vm3595_vm13, %v3802_v30  ;;  %v4178_v30 = vld [vmem:[#allocation2 + $0xe8] sm:$0xff] }
 0x53f   :  { %v3863_v32 = vpop.permute.xlu2 %3862 }
 0x547   :  { %v3590_v25 = vpop.permute.xlu1 %3589 }
 0x548   :  { %v3592_v34 = vmul.f32 %v3591_v38, %v3590_v25  ;;  %v3648_v31 = vpop.permute.xlu0 %3647 }
 0x549   :  { %v3650_v2 = vmul.f32 %v3649_v5, %v3648_v31 }
 0x54a   :  { %6944 = vmatpush.msk.msra.mxu0 %vm3598_vm12, %v3592_v34  ;;  %v4016_v34 = vrot.slane %v3581_v3, 4 }
 0x54b   :  { %6948 = vmatpush.msk.msra.mxu2 %vm3598_vm12, %v3650_v2  ;;  %6945 = vmatmul.msk.f32.vlgmr.msra.gmra.mxu0 %vm3595_vm13, %v3594_v42  ;;  %v3582_v42 = vld [vmem:[%s9022_s29 + $0x18] sm:$0xff]  ;;  %v4164_v2 = vld [vmem:[#allocation2 + $0x78] sm:$0xff] }
 0x54c   :  { %6952 = vmatpush.msk.msrb.mxu0 %vm3598_vm12, %v8448_v37  ;;  %6949 = vmatmul.msk.f32.vlgmr.msra.gmra.mxu2 %vm3595_vm13, %v3574_v13 }
 0x54f   :  { %v3768_v63 = vpop.permute.xlu1 %3767 }
 0x550   :  { %v3770_v48 = vmul.f32 %v3769_v45, %v3768_v63  ;;  %v3586_v53 = vpop.permute.xlu0 %3585  ;;  %v4162_v63 = vld [vmem:[#allocation2 + $0x68] sm:$0xff] }
 0x551   :  { %v3588_v11 = vmul.f32 %v3587_v6, %v3586_v53 }
 0x552   :  { %6956 = vmatpush.msk.msrb.mxu2 %vm3598_vm12, %v3770_v48  ;;  %v4175_v48 = vld [vmem:[#allocation2 + $0xd0] sm:$0xff] }
 0x553   :  { %6946 = vmatpush.msk.msra.mxu1 %vm3598_vm12, %v3588_v11  ;;  %6953 = vmatmul.msk.f32.vlgmr.msrb.gmra.mxu0 %vm3595_vm13, %v3575_v28  ;;  %v4076_v11 = vrot.slane %v3582_v42, 4 }
 0x554   :  { %6947 = vmatmul.msk.f32.vlgmr.msra.gmra.mxu1 %vm3595_vm13, %v3573_v49  ;;  %6957 = vmatmul.msk.f32.vlgmr.msrb.gmra.mxu2 %vm3595_vm13, %v3576_v44  ;;  %v4180_v44 = vld [vmem:[#allocation2 + $0xf8] sm:$0xff] }
 0x557   :  { %v3830_v16 = vpop.permute.xlu1 %3829 }
 0x558   :  { %v3832_v24 = vmul.f32 %v8506_v52, %v3830_v16  ;;  %v3737_v41 = vpop.permute.xlu0 %3736  ;;  %v3583_v16 = vld [vmem:[%s9022_s29 + $0x20] sm:$0xf] }
 0x559   :  { %v3739_v21 = vmul.f32 %v3738_v17, %v3737_v41  ;;  %v4212_v41 = vld [vmem:[#allocation2 + $0x1f8] sm:$0xff] }
 0x55a   :  { %6960 = vmatpush.msk.msra.mxu0 %vm3598_vm12, %v3832_v24 }
 0x55b   :  { %6954 = vmatpush.msk.msrb.mxu1 %vm3598_vm12, %v3739_v21  ;;  %6961 = vmatmul.msk.f32.vlgmr.msra.gmra.mxu0 %vm3595_vm13, %v3577_v46  ;;  %v4161_v21 = vld [vmem:[#allocation2 + $0x60] sm:$0xff]  ;;  %v4211_v46 = vld [vmem:[#allocation2 + $0x1f0] sm:$0xff] }
 0x55c   :  { %6955 = vmatmul.msk.f32.vlgmr.msrb.gmra.mxu1 %vm3595_vm13, %v3740_v12  ;;  %v4196_v12 = vld [vmem:[#allocation2 + $0x178] sm:$0xff] }
 0x5b6   :  { %v3705_v20 = vpop.f32.mrf.mxu3 }
 0x5be   :  { %v3825_v7 = vpop.f32.mrf.mxu3 }
 0x5c8   :  { %v3619_v23 = vpop.f32.mrf.mxu0 }
 0x5cf   :  { %v3674_v8 = vpop.f32.mrf.mxu2 }
 0x5d0   :  { %v3732_v27 = vpop.f32.mrf.mxu0 }
 0x5d1   :  { %v3644_v4 = vpop.f32.mrf.mxu1 }
 0x5d2   :  { %v3645_v22 = vadd.f32 %v3644_v4, %v3619_v23  ;;  %v4174_v23 = vld [vmem:[#allocation2 + $0xc8] sm:$0xff] }
 0x5d3   :  { %v4194_v4 = vld [vmem:[#allocation2 + $0x168] sm:$0xff] }
 0x5d4   :  { %v3677_v50 = vadd.f32 %v3674_v8, %v3645_v22  ;;  %v4160_v8 = vld [vmem:[#allocation2 + $0x58] sm:$0xff]  ;;  %v4209_v22 = vld [vmem:[#allocation2 + $0x1e0] sm:$0xff] }
 0x5d6   :  { %v3708_v10 = vadd.f32 %v3705_v20, %v3677_v50  ;;  %v4159_v20 = vld [vmem:[#allocation2 + $0x50] sm:$0xff]  ;;  %v4193_v50 = vld [vmem:[#allocation2 + $0x160] sm:$0xff] }
 0x5d7   :  { %v3794_v1 = vpop.f32.mrf.mxu2 }
 0x5d8   :  { %v3735_v19 = vadd.f32 %v3732_v27, %v3708_v10  ;;  %v3856_v15 = vpop.f32.mrf.mxu0  ;;  %v4172_v27 = vld [vmem:[#allocation2 + $0xb8] sm:$0xff]  ;;  %v4158_v10 = vld [vmem:[#allocation2 + $0x48] sm:$0xff] }
 0x5d9   :  { %v3763_v40 = vpop.f32.mrf.mxu1 }
 0x5da   :  { %v3766_v47 = vadd.f32 %v3763_v40, %v3735_v19  ;;  %v4208_v19 = vld [vmem:[#allocation2 + $0x1d8] sm:$0xff]  ;;  %v4171_v40 = vld [vmem:[#allocation2 + $0xb0] sm:$0xff] }
 0x5dc   :  { %v3797_v14 = vadd.f32 %v3794_v1, %v3766_v47  ;;  %v4192_v1 = vld [vmem:[#allocation2 + $0x158] sm:$0xff]  ;;  %v4157_v47 = vld [vmem:[#allocation2 + $0x40] sm:$0xff] }
 0x5de   :  { %v3828_v18 = vadd.f32 %v3825_v7, %v3797_v14  ;;  %v4207_v7 = vld [vmem:[#allocation2 + $0x1d0] sm:$0xff]  ;;  %v4170_v14 = vld [vmem:[#allocation2 + $0xa8] sm:$0xff] }
 0x5e0   :  { %v3859_v54 = vadd.f32 %v3856_v15, %v3828_v18  ;;  %v4191_v15 = vld [vmem:[#allocation2 + $0x150] sm:$0xff]  ;;  %v4156_v18 = vld [vmem:[#allocation2 + $0x38] sm:$0xff] }
 0x5e2   :  { %v3865_v39 = vadd.f32 %v3863_v32, %v3859_v54  ;;  %v4206_v54 = vld [vmem:[#allocation2 + $0x1c8] sm:$0xff]  ;;  %v4169_v32 = vld [vmem:[#allocation2 + $0xa0] sm:$0xff] }
 0x5e4   :  { %v3866_v33 = vmax.f32 %v3865_v39, 0.0  ;;  %v4190_v39 = vld [vmem:[#allocation2 + $0x148] sm:$0xff] }
 0x5e6   :  { %v8520_v43 = vadd.f32 %v3866_v33, %v8448_v37  ;;  %v4155_v33 = vld [vmem:[#allocation2 + $0x30] sm:$0xff] }
 0x5e8   :  { %3871 = vrot.lane.b32.xlu2 %v8520_v43, %s7218_s10  ;;  %3926 = vrot.lane.b32.xlu1 %v8520_v43, %s7231_s9 }
 0x5e9   :  { %3868 = vrot.lane.b32.xlu0 %v8520_v43, %s7234_s21 }
 0x5f0   :  { %4043 = vrot.lane.b32.xlu2 %v8520_v43, %s7233_s17  ;;  %3956 = vrot.lane.b32.xlu1 %v8520_v43, %s7225_s26 }
 0x5f1   :  { %4013 = vrot.lane.b32.xlu0 %v8520_v43, %s7226_s28 }
 0x5f8   :  { %4135 = vperm.xlu2 %7119, %v3584_v57   ;;  %4103 = vrot.lane.b32.xlu1 %v8520_v43, %s7235_s25  ;;  %v4205_v57 = vld [vmem:[#allocation2 + $0x1c0] sm:$0xff] }
 0x5f9   :  { %4073 = vrot.lane.b32.xlu0 %v8520_v43, %s7232_s13 }
 0x642   :  { %v3872_v36 = vpop.permute.xlu2 %3871 }
 0x643   :  { %v3873_v0 = vmul.f32 %v3872_v36, %v3591_v38  ;;  %v3959_v38 = vrot.slane %v3580_v61, 4  ;;  %v4168_v36 = vld [vmem:[#allocation2 + $0x98] sm:$0xff] }
 0x645   :  { %6962 = vmatpush.msk.msra.mxu1 %vm3598_vm12, %v3873_v0  ;;  %v4154_v0 = vld [vmem:[#allocation2 + $0x28] sm:$0xff] }
 0x646   :  { %6963 = vmatmul.msk.f32.vlgmr.msra.gmra.mxu1 %vm3595_vm13, %v3875_v51  ;;  %v4204_v51 = vld [vmem:[#allocation2 + $0x1b8] sm:$0xff] }
 0x647   :  { %6970 = vmatpush.msk.msrb.mxu1 %vm3598_vm12, %v8520_v43 }
 0x64a   :  { %v4044_v9 = vpop.permute.xlu2 %4043 }
 0x64b   :  { %v4045_v29 = vmul.f32 %v4044_v9, %v3769_v45  ;;  %v4177_v45 = vld [vmem:[#allocation2 + $0xe0] sm:$0xff]  ;;  %v4188_v9 = vld [vmem:[#allocation2 + $0x138] sm:$0xff] }
 0x64e   :  { %6971 = vmatmul.msk.f32.vlgmr.msrb.gmra.mxu1 %vm3595_vm13, %v3581_v3  ;;  %v4167_v3 = vld [vmem:[#allocation2 + $0x90] sm:$0xff] }
 0x65a   :  { %v3927_v62 = vpop.permute.xlu1 %3926 }
 0x65b   :  { %v3928_v59 = vmul.f32 %v3927_v62, %v3649_v5  ;;  %v3869_v13 = vpop.permute.xlu0 %3868  ;;  %v4153_v62 = vld [vmem:[#allocation2 + $0x20] sm:$0xff] }
 0x65c   :  { %v3870_v60 = vmul.f32 %v3869_v13, %v3587_v6  ;;  %v4176_v6 = vld [vmem:[#allocation2 + $0xd8] sm:$0xff]  ;;  %v4166_v13 = vld [vmem:[#allocation2 + $0x88] sm:$0xff] }
 0x65d   :  { %6966 = vmatpush.msk.msra.mxu3 %vm3598_vm12, %v3928_v59  ;;  %v4203_v59 = vld [vmem:[#allocation2 + $0x1b0] sm:$0xff] }
 0x65e   :  { %6964 = vmatpush.msk.msra.mxu2 %vm3598_vm12, %v3870_v60  ;;  %6967 = vmatmul.msk.f32.vlgmr.msra.gmra.mxu3 %vm3595_vm13, %v3580_v61  ;;  %v4152_v60 = vld [vmem:[#allocation2 + $0x18] sm:$0xff]  ;;  %v4202_v61 = vld [vmem:[#allocation2 + $0x1a8] sm:$0xff] }
 0x65f   :  { %6974 = vmatpush.msk.msrb.mxu3 %vm3598_vm12, %v4045_v29  ;;  %6965 = vmatmul.msk.f32.vlgmr.msra.gmra.mxu2 %vm3595_vm13, %v3579_v56  ;;  %v4189_v56 = vld [vmem:[#allocation2 + $0x140] sm:$0xff]  ;;  %v4187_v29 = vld [vmem:[#allocation2 + $0x130] sm:$0xff] }
 0x661   :  { %4233 = vmatpush.msra.mxu3 %v4180_v44  ;;  %v4165_v44 = vld [vmem:[#allocation2 + $0x80] sm:$0xff] }
 0x662   :  { %v3957_v5 = vpop.permute.xlu1 %3956 }
 0x663   :  { %4234 = vmatpush.msra.mxu3 %v4179_v35  ;;  %v3958_v49 = vmul.f32 %v3957_v5, %v3680_v58  ;;  %v4014_v25 = vpop.permute.xlu0 %4013  ;;  %v4163_v58 = vld [vmem:[#allocation2 + $0x70] sm:$0xff]  ;;  %v4186_v35 = vld [vmem:[#allocation2 + $0x128] sm:$0xff]  ;;  %v4325_v5 = vld [vmem:[#allocation2 + $0x2f8] sm:$0xff] }
 0x664   :  { %v4015_v31 = vmul.f32 %v4014_v25, %v3738_v17  ;;  %v4150_v25 = vld [vmem:[#allocation2 + $0x8] sm:$0xff] }
 0x665   :  { %4235 = vmatpush.msra.mxu3 %v4178_v30  ;;  %6968 = vmatpush.msk.msrb.mxu0 %vm3598_vm12, %v3958_v49  ;;  %v4151_v30 = vld [vmem:[#allocation2 + $0x10] sm:$0xff]  ;;  %v4185_v49 = vld [vmem:[#allocation2 + $0x120] sm:$0xff] }
 0x666   :  { %6972 = vmatpush.msk.msrb.mxu2 %vm3598_vm12, %v4015_v31  ;;  %6969 = vmatmul.msk.f32.vlgmr.msrb.gmra.mxu0 %vm3595_vm13, %v3959_v38  ;;  %v4201_v38 = vld [vmem:[#allocation2 + $0x1a0] sm:$0xff]  ;;  %v4324_v31 = vld [vmem:[#allocation2 + $0x2f0] sm:$0xff] }
 0x667   :  { %6973 = vmatmul.msk.f32.vlgmr.msrb.gmra.mxu2 %vm3595_vm13, %v4016_v34  ;;  %6975 = vmatmul.msk.f32.vlgmr.msrb.gmra.mxu3 %vm3595_vm13, %v3582_v42  ;;  %v4200_v34 = vld [vmem:[#allocation2 + $0x198] sm:$0xff] }
 0x668   :  { %4213 = vmatpush.msra.mxu2 %v4164_v2  ;;  %4236 = vmatpush.msra.mxu3 %v4177_v45  ;;  %v4184_v42 = vld [vmem:[#allocation2 + $0x118] sm:$0xff]  ;;  %v4149_v2 = vld [vmem:[#allocation2] sm:$0xff]  ;;  %v4199_v45 = vld [vmem:[#allocation2 + $0x190] sm:$0xff] }
 0x66a   :  { %v4104_v53 = vpop.permute.xlu1 %4103  ;;  %4214 = vmatpush.msra.mxu2 %v4163_v58  ;;  %4237 = vmatpush.msra.mxu3 %v4176_v6  ;;  %v4309_v58 = vld [vmem:[#allocation2 + $0x278] sm:$0xff]  ;;  %v4183_v6 = vld [vmem:[#allocation2 + $0x110] sm:$0xff] }
 0x66b   :  { %v4105_v28 = vmul.f32 %v8506_v52, %v4104_v53  ;;  %v4074_v17 = vpop.permute.xlu0 %4073  ;;  %v4195_v52 = vld [vmem:[#allocation2 + $0x170] sm:$0xff]  ;;  %v4182_v53 = vld [vmem:[#allocation2 + $0x108] sm:$0xff] }
 0x66c   :  { %v4075_v24 = vmul.f32 %v4074_v17, %v3800_v26  ;;  %4215 = vmatpush.msra.mxu2 %v4162_v63  ;;  %4238 = vmatpush.msra.mxu3 %v4175_v48  ;;  %v4173_v26 = vld [vmem:[#allocation2 + $0xc0] sm:$0xff]  ;;  %v4198_v63 = vld [vmem:[#allocation2 + $0x188] sm:$0xff]  ;;  %v4308_v48 = vld [vmem:[#allocation2 + $0x270] sm:$0xff] }
 0x66d   :  { %6978 = vmatpush.msk.msra.mxu1 %vm3598_vm12, %v4105_v28  ;;  %v4307_v28 = vld [vmem:[#allocation2 + $0x268] sm:$0xff]  ;;  %v4181_v17 = vld [vmem:[#allocation2 + $0x100] sm:$0xff] }
 0x66e   :  { %6976 = vmatpush.msk.msra.mxu0 %vm3598_vm12, %v4075_v24  ;;  %6979 = vmatmul.msk.f32.vlgmr.msra.gmra.mxu1 %vm3595_vm13, %v3583_v16  ;;  %v4357_v16 = vld [vmem:[#allocation2 + $0x3f8] sm:$0xff] }
 0x66f   :  { %6977 = vmatmul.msk.f32.vlgmr.msra.gmra.mxu0 %vm3595_vm13, %v4076_v11  ;;  %4273 = vmatpush.msrb.mxu1 %v4212_v41  ;;  %v4197_v11 = vld [vmem:[#allocation2 + $0x180] sm:$0xff]  ;;  %v4341_v24 = vld [vmem:[#allocation2 + $0x378] sm:$0xff]  ;;  %v4356_v41 = vld [vmem:[#allocation2 + $0x3f0] sm:$0xff] }
 0x670   :  { %4253 = vmatpush.msrb.mxu0 %v4196_v12  ;;  %4216 = vmatpush.msra.mxu2 %v4161_v21  ;;  %v4340_v12 = vld [vmem:[#allocation2 + $0x370] sm:$0xff]  ;;  %v4306_v21 = vld [vmem:[#allocation2 + $0x260] sm:$0xff] }
 0x671   :  { %4274 = vmatpush.msrb.mxu1 %v4211_v46  ;;  %4239 = vmatpush.msra.mxu3 %v4174_v23  ;;  %v4323_v46 = vld [vmem:[#allocation2 + $0x2e8] sm:$0xff] }
 0x672   :  { %4254 = vmatpush.msrb.mxu0 %v4195_v52  ;;  %4217 = vmatpush.msra.mxu2 %v4160_v8  ;;  %v4339_v23 = vld [vmem:[#allocation2 + $0x368] sm:$0xff]  ;;  %v4305_v8 = vld [vmem:[#allocation2 + $0x258] sm:$0xff] }
 0x673   :  { %4275 = vmatpush.msrb.mxu1 %v4210_v55  ;;  %4240 = vmatpush.msra.mxu3 %v4173_v26  ;;  %v4355_v52 = vld [vmem:[#allocation2 + $0x3e8] sm:$0xff]  ;;  %v4322_v55 = vld [vmem:[#allocation2 + $0x2e0] sm:$0xff] }
 0x674   :  { %4255 = vmatpush.msrb.mxu0 %v4194_v4  ;;  %4218 = vmatpush.msra.mxu2 %v4159_v20  ;;  %v4338_v26 = vld [vmem:[#allocation2 + $0x360] sm:$0xff]  ;;  %v4304_v20 = vld [vmem:[#allocation2 + $0x250] sm:$0xff] }
 0x675   :  { %4276 = vmatpush.msrb.mxu1 %v4209_v22  ;;  %4241 = vmatpush.msra.mxu3 %v4172_v27  ;;  %v4354_v4 = vld [vmem:[#allocation2 + $0x3e0] sm:$0xff]  ;;  %v4321_v22 = vld [vmem:[#allocation2 + $0x2d8] sm:$0xff] }
 0x676   :  { %4256 = vmatpush.msrb.mxu0 %v4193_v50  ;;  %4219 = vmatpush.msra.mxu2 %v4158_v10  ;;  %v4337_v27 = vld [vmem:[#allocation2 + $0x358] sm:$0xff]  ;;  %v4303_v10 = vld [vmem:[#allocation2 + $0x248] sm:$0xff] }
 0x677   :  { %4277 = vmatpush.msrb.mxu1 %v4208_v19  ;;  %4242 = vmatpush.msra.mxu3 %v4171_v40  ;;  %v4353_v50 = vld [vmem:[#allocation2 + $0x3d8] sm:$0xff]  ;;  %v4320_v19 = vld [vmem:[#allocation2 + $0x2d0] sm:$0xff] }
 0x678   :  { %4257 = vmatpush.msrb.mxu0 %v4192_v1  ;;  %4220 = vmatpush.msra.mxu2 %v4157_v47  ;;  %v4336_v40 = vld [vmem:[#allocation2 + $0x350] sm:$0xff]  ;;  %v4302_v47 = vld [vmem:[#allocation2 + $0x240] sm:$0xff] }
 0x679   :  { %4278 = vmatpush.msrb.mxu1 %v4207_v7  ;;  %4243 = vmatpush.msra.mxu3 %v4170_v14  ;;  %v4352_v1 = vld [vmem:[#allocation2 + $0x3d0] sm:$0xff]  ;;  %v4319_v7 = vld [vmem:[#allocation2 + $0x2c8] sm:$0xff] }
 0x67a   :  { %4258 = vmatpush.msrb.mxu0 %v4191_v15  ;;  %4221 = vmatpush.msra.mxu2 %v4156_v18  ;;  %v4335_v14 = vld [vmem:[#allocation2 + $0x348] sm:$0xff]  ;;  %v4301_v18 = vld [vmem:[#allocation2 + $0x238] sm:$0xff] }
 0x67b   :  { %4279 = vmatpush.msrb.mxu1 %v4206_v54  ;;  %4244 = vmatpush.msra.mxu3 %v4169_v32  ;;  %v4351_v15 = vld [vmem:[#allocation2 + $0x3c8] sm:$0xff]  ;;  %v4318_v54 = vld [vmem:[#allocation2 + $0x2c0] sm:$0xff] }
 0x67c   :  { %4259 = vmatpush.msrb.mxu0 %v4190_v39  ;;  %4222 = vmatpush.msra.mxu2 %v4155_v33  ;;  %v4334_v32 = vld [vmem:[#allocation2 + $0x340] sm:$0xff]  ;;  %v4300_v33 = vld [vmem:[#allocation2 + $0x230] sm:$0xff] }
 0x67d   :  { %4280 = vmatpush.msrb.mxu1 %v4205_v57  ;;  %4245 = vmatpush.msra.mxu3 %v4168_v36  ;;  %v4350_v39 = vld [vmem:[#allocation2 + $0x3c0] sm:$0xff]  ;;  %v4317_v57 = vld [vmem:[#allocation2 + $0x2b8] sm:$0xff] }
 0x67e   :  { %4260 = vmatpush.msrb.mxu0 %v4189_v56  ;;  %4223 = vmatpush.msra.mxu2 %v4154_v0  ;;  %v4333_v36 = vld [vmem:[#allocation2 + $0x338] sm:$0xff]  ;;  %v4299_v0 = vld [vmem:[#allocation2 + $0x228] sm:$0xff] }
 0x67f   :  { %4281 = vmatpush.msrb.mxu1 %v4204_v51  ;;  %4246 = vmatpush.msra.mxu3 %v4167_v3  ;;  %v4349_v56 = vld [vmem:[#allocation2 + $0x3b8] sm:$0xff]  ;;  %v4316_v51 = vld [vmem:[#allocation2 + $0x2b0] sm:$0xff] }
 0x680   :  { %4261 = vmatpush.msrb.mxu0 %v4188_v9  ;;  %4224 = vmatpush.msra.mxu2 %v4153_v62  ;;  %v4332_v3 = vld [vmem:[#allocation2 + $0x330] sm:$0xff]  ;;  %v4298_v62 = vld [vmem:[#allocation2 + $0x220] sm:$0xff] }
 0x681   :  { %4282 = vmatpush.msrb.mxu1 %v4203_v59  ;;  %4247 = vmatpush.msra.mxu3 %v4166_v13  ;;  %v4348_v9 = vld [vmem:[#allocation2 + $0x3b0] sm:$0xff]  ;;  %v4315_v59 = vld [vmem:[#allocation2 + $0x2a8] sm:$0xff] }
 0x682   :  { %4262 = vmatpush.msrb.mxu0 %v4187_v29  ;;  %4225 = vmatpush.msra.mxu2 %v4152_v60  ;;  %v4331_v13 = vld [vmem:[#allocation2 + $0x328] sm:$0xff]  ;;  %v4297_v60 = vld [vmem:[#allocation2 + $0x218] sm:$0xff] }
 0x683   :  { %4283 = vmatpush.msrb.mxu1 %v4202_v61  ;;  %4248 = vmatpush.msra.mxu3 %v4165_v44  ;;  %v4347_v29 = vld [vmem:[#allocation2 + $0x3a8] sm:$0xff]  ;;  %v4314_v61 = vld [vmem:[#allocation2 + $0x2a0] sm:$0xff] }
 0x684   :  { %4263 = vmatpush.msrb.mxu0 %v4186_v35  ;;  %4226 = vmatpush.msra.mxu2 %v4151_v30  ;;  %v4330_v44 = vld [vmem:[#allocation2 + $0x320] sm:$0xff]  ;;  %v4296_v30 = vld [vmem:[#allocation2 + $0x210] sm:$0xff] }
 0x685   :  { %4284 = vmatpush.msrb.mxu1 %v4201_v38  ;;  %4378 = vmatpush.msrb.mxu3 %v4325_v5  ;;  %v4346_v35 = vld [vmem:[#allocation2 + $0x3a0] sm:$0xff]  ;;  %v4313_v38 = vld [vmem:[#allocation2 + $0x298] sm:$0xff] }
 0x686   :  { %4264 = vmatpush.msrb.mxu0 %v4185_v49  ;;  %4227 = vmatpush.msra.mxu2 %v4150_v25  ;;  %v4329_v5 = vld [vmem:[#allocation2 + $0x318] sm:$0xff]  ;;  %v4295_v25 = vld [vmem:[#allocation2 + $0x208] sm:$0xff] }
 0x687   :  { %4285 = vmatpush.msrb.mxu1 %v4200_v34  ;;  %4379 = vmatpush.msrb.mxu3 %v4324_v31  ;;  %v4345_v49 = vld [vmem:[#allocation2 + $0x398] sm:$0xff]  ;;  %v4312_v34 = vld [vmem:[#allocation2 + $0x290] sm:$0xff] }
 0x688   :  { %4265 = vmatpush.msrb.mxu0 %v4184_v42  ;;  %4228 = vmatpush.msra.mxu2 %v4149_v2  ;;  %v4328_v31 = vld [vmem:[#allocation2 + $0x310] sm:$0xff]  ;;  %v4294_v2 = vld [vmem:[#allocation2 + $0x200] sm:$0xff] }
 0x689   :  { %4286 = vmatpush.msrb.mxu1 %v4199_v45  ;;  %4380 = vmatpush.msrb.mxu3 %v4323_v46  ;;  %v4344_v42 = vld [vmem:[#allocation2 + $0x390] sm:$0xff]  ;;  %v4311_v45 = vld [vmem:[#allocation2 + $0x288] sm:$0xff] }
 0x68a   :  { %4358 = vmatpush.msrb.mxu2 %v4309_v58  ;;  %4266 = vmatpush.msrb.mxu0 %v4183_v6  ;;  %v4327_v58 = vld [vmem:[#allocation2 + $0x308] sm:$0xff] }
 0x68b   :  { %4287 = vmatpush.msrb.mxu1 %v4198_v63  ;;  %4381 = vmatpush.msrb.mxu3 %v4322_v55  ;;  %v4343_v6 = vld [vmem:[#allocation2 + $0x388] sm:$0xff] }
 0x68c   :  { %4359 = vmatpush.msrb.mxu2 %v4308_v48  ;;  %4267 = vmatpush.msrb.mxu0 %v4182_v53  ;;  %v4310_v48 = vld [vmem:[#allocation2 + $0x280] sm:$0xff] }
 0x68d   :  { %4288 = vmatpush.msrb.mxu1 %v4197_v11  ;;  %4382 = vmatpush.msrb.mxu3 %v4321_v22  ;;  %v4326_v53 = vld [vmem:[#allocation2 + $0x300] sm:$0xff] }
 0x68e   :  { %4360 = vmatpush.msrb.mxu2 %v4307_v28  ;;  %4268 = vmatpush.msrb.mxu0 %v4181_v17  ;;  %v4342_v11 = vld [vmem:[#allocation2 + $0x380] sm:$0xff] }
 0x68f   :  { %4418 = vmatpush.msra.mxu1 %v4357_v16  ;;  %4383 = vmatpush.msrb.mxu3 %v4320_v19 }
 0x690   :  { %4398 = vmatpush.msra.mxu0 %v4341_v24  ;;  %4361 = vmatpush.msrb.mxu2 %v4306_v21 }
 0x691   :  { %4419 = vmatpush.msra.mxu1 %v4356_v41  ;;  %4384 = vmatpush.msrb.mxu3 %v4319_v7 }
 0x692   :  { %4399 = vmatpush.msra.mxu0 %v4340_v12  ;;  %4362 = vmatpush.msrb.mxu2 %v4305_v8 }
 0x693   :  { %4420 = vmatpush.msra.mxu1 %v4355_v52  ;;  %4385 = vmatpush.msrb.mxu3 %v4318_v54  ;;  %v4455_v54 = vld [vmem:[#allocation2 + $0x468] sm:$0xff] }
 0x694   :  { %4400 = vmatpush.msra.mxu0 %v4339_v23  ;;  %4363 = vmatpush.msrb.mxu2 %v4304_v20 }
 0x695   :  { %4421 = vmatpush.msra.mxu1 %v4354_v4  ;;  %4386 = vmatpush.msrb.mxu3 %v4317_v57  ;;  %v4454_v57 = vld [vmem:[#allocation2 + $0x460] sm:$0xff] }
 0x696   :  { %4401 = vmatpush.msra.mxu0 %v4338_v26  ;;  %4364 = vmatpush.msrb.mxu2 %v4303_v10 }
 0x697   :  { %4422 = vmatpush.msra.mxu1 %v4353_v50  ;;  %4387 = vmatpush.msrb.mxu3 %v4316_v51  ;;  %v4453_v51 = vld [vmem:[#allocation2 + $0x458] sm:$0xff] }
 0x698   :  { %4402 = vmatpush.msra.mxu0 %v4337_v27  ;;  %4365 = vmatpush.msrb.mxu2 %v4302_v47  ;;  %v4136_v27 = vpop.permute.xlu2 %4135 }
 0x699   :  { %4423 = vmatpush.msra.mxu1 %v4352_v1  ;;  %4388 = vmatpush.msrb.mxu3 %v4315_v59  ;;  %v4452_v59 = vld [vmem:[#allocation2 + $0x450] sm:$0xff] }
 0x69a   :  { %4403 = vmatpush.msra.mxu0 %v4336_v40  ;;  %4366 = vmatpush.msrb.mxu2 %v4301_v18  ;;  %v4457_v40 = vld [vmem:[#allocation2 + $0x478] sm:$0xff] }
 0x69b   :  { %4424 = vmatpush.msra.mxu1 %v4351_v15  ;;  %4389 = vmatpush.msrb.mxu3 %v4314_v61  ;;  %v4473_v15 = vld [vmem:[#allocation2 + $0x4f8] sm:$0xff]  ;;  %v4451_v61 = vld [vmem:[#allocation2 + $0x448] sm:$0xff] }
 0x69c   :  { %4404 = vmatpush.msra.mxu0 %v4335_v14  ;;  %4367 = vmatpush.msrb.mxu2 %v4300_v33  ;;  %v4456_v14 = vld [vmem:[#allocation2 + $0x470] sm:$0xff]  ;;  %v4489_v18 = vld [vmem:[#allocation2 + $0x578] sm:$0xff] }
 0x69d   :  { %4425 = vmatpush.msra.mxu1 %v4350_v39  ;;  %4390 = vmatpush.msrb.mxu3 %v4313_v38  ;;  %v4488_v39 = vld [vmem:[#allocation2 + $0x570] sm:$0xff]  ;;  %v4450_v38 = vld [vmem:[#allocation2 + $0x440] sm:$0xff] }
 0x69e   :  { %4405 = vmatpush.msra.mxu0 %v4334_v32  ;;  %4368 = vmatpush.msrb.mxu2 %v4299_v0  ;;  %v4472_v32 = vld [vmem:[#allocation2 + $0x4f0] sm:$0xff]  ;;  %v4503_v0 = vld [vmem:[#allocation2 + $0x5e8] sm:$0xff] }
 0x69f   :  { %4426 = vmatpush.msra.mxu1 %v4349_v56  ;;  %4391 = vmatpush.msrb.mxu3 %v4312_v34  ;;  %v4504_v33 = vld [vmem:[#allocation2 + $0x5f0] sm:$0xff]  ;;  %v4487_v56 = vld [vmem:[#allocation2 + $0x568] sm:$0xff]  ;;  %v4449_v34 = vld [vmem:[#allocation2 + $0x438] sm:$0xff] }
 0x6a0   :  { %4406 = vmatpush.msra.mxu0 %v4333_v36  ;;  %4369 = vmatpush.msrb.mxu2 %v4298_v62  ;;  %v4471_v36 = vld [vmem:[#allocation2 + $0x4e8] sm:$0xff]  ;;  %v4502_v62 = vld [vmem:[#allocation2 + $0x5e0] sm:$0xff] }
 0x6a1   :  { %4427 = vmatpush.msra.mxu1 %v4348_v9  ;;  %4392 = vmatpush.msrb.mxu3 %v4311_v45  ;;  %v4486_v9 = vld [vmem:[#allocation2 + $0x560] sm:$0xff]  ;;  %v4448_v45 = vld [vmem:[#allocation2 + $0x430] sm:$0xff] }
 0x6a2   :  { %4407 = vmatpush.msra.mxu0 %v4332_v3  ;;  %4370 = vmatpush.msrb.mxu2 %v4297_v60  ;;  %v4470_v3 = vld [vmem:[#allocation2 + $0x4e0] sm:$0xff]  ;;  %v4501_v60 = vld [vmem:[#allocation2 + $0x5d8] sm:$0xff] }
 0x6a3   :  { %4428 = vmatpush.msra.mxu1 %v4347_v29  ;;  %4393 = vmatpush.msrb.mxu3 %v4310_v48  ;;  %v4485_v29 = vld [vmem:[#allocation2 + $0x558] sm:$0xff]  ;;  %v4447_v48 = vld [vmem:[#allocation2 + $0x428] sm:$0xff] }
 0x6a4   :  { %4408 = vmatpush.msra.mxu0 %v4331_v13  ;;  %4371 = vmatpush.msrb.mxu2 %v4296_v30  ;;  %v4469_v13 = vld [vmem:[#allocation2 + $0x4d8] sm:$0xff]  ;;  %v4500_v30 = vld [vmem:[#allocation2 + $0x5d0] sm:$0xff] }
 0x6a5   :  { %4429 = vmatpush.msra.mxu1 %v4346_v35  ;;  %v4484_v35 = vld [vmem:[#allocation2 + $0x550] sm:$0xff] }
 0x6a6   :  { %4409 = vmatpush.msra.mxu0 %v4330_v44  ;;  %4372 = vmatpush.msrb.mxu2 %v4295_v25  ;;  %v4468_v44 = vld [vmem:[#allocation2 + $0x4d0] sm:$0xff]  ;;  %v4499_v25 = vld [vmem:[#allocation2 + $0x5c8] sm:$0xff] }
 0x6a7   :  { %4430 = vmatpush.msra.mxu1 %v4345_v49  ;;  %v4483_v49 = vld [vmem:[#allocation2 + $0x548] sm:$0xff] }
 0x6a8   :  { %4410 = vmatpush.msra.mxu0 %v4329_v5  ;;  %4373 = vmatpush.msrb.mxu2 %v4294_v2  ;;  %v4467_v5 = vld [vmem:[#allocation2 + $0x4c8] sm:$0xff]  ;;  %v4498_v2 = vld [vmem:[#allocation2 + $0x5c0] sm:$0xff] }
 0x6a9   :  { %4431 = vmatpush.msra.mxu1 %v4344_v42  ;;  %v4482_v42 = vld [vmem:[#allocation2 + $0x540] sm:$0xff] }
 0x6aa   :  { %4411 = vmatpush.msra.mxu0 %v4328_v31  ;;  %v4466_v31 = vld [vmem:[#allocation2 + $0x4c0] sm:$0xff] }
 0x6ab   :  { %4432 = vmatpush.msra.mxu1 %v4343_v6  ;;  %v4481_v6 = vld [vmem:[#allocation2 + $0x538] sm:$0xff] }
 0x6ac   :  { %4412 = vmatpush.msra.mxu0 %v4327_v58  ;;  %v4465_v58 = vld [vmem:[#allocation2 + $0x4b8] sm:$0xff] }
 0x6ad   :  { %4433 = vmatpush.msra.mxu1 %v4342_v11  ;;  %v4480_v11 = vld [vmem:[#allocation2 + $0x530] sm:$0xff] }
 0x6ae   :  { %4413 = vmatpush.msra.mxu0 %v4326_v53  ;;  %v4464_v53 = vld [vmem:[#allocation2 + $0x4b0] sm:$0xff] }
 0x6c3   :  { %v3898_v63 = vpop.f32.mrf.mxu1 }
 0x6cb   :  { %v4009_v41 = vpop.f32.mrf.mxu1 }
 0x6e1   :  { %v3952_v17 = vpop.f32.mrf.mxu3 }
 0x6e2   :  { %v3923_v28 = vpop.f32.mrf.mxu2 }
 0x6e3   :  { %v3924_v16 = vadd.f32 %v3923_v28, %v3898_v63  ;;  %v3982_v24 = vpop.f32.mrf.mxu0  ;;  %v4497_v63 = vld [vmem:[#allocation2 + $0x5b8] sm:$0xff]  ;;  %v4496_v28 = vld [vmem:[#allocation2 + $0x5b0] sm:$0xff] }
 0x6e5   :  { %v3955_v12 = vadd.f32 %v3952_v17, %v3924_v16  ;;  %v4446_v17 = vld [vmem:[#allocation2 + $0x420] sm:$0xff]  ;;  %v4463_v16 = vld [vmem:[#allocation2 + $0x4a8] sm:$0xff] }
 0x6e7   :  { %v3985_v21 = vadd.f32 %v3982_v24, %v3955_v12  ;;  %v4479_v24 = vld [vmem:[#allocation2 + $0x528] sm:$0xff]  ;;  %v4445_v12 = vld [vmem:[#allocation2 + $0x418] sm:$0xff] }
 0x6e9   :  { %v4012_v46 = vadd.f32 %v4009_v41, %v3985_v21  ;;  %v4495_v41 = vld [vmem:[#allocation2 + $0x5a8] sm:$0xff]  ;;  %v4462_v21 = vld [vmem:[#allocation2 + $0x4a0] sm:$0xff] }
 0x6ea   :  { %v4039_v23 = vpop.f32.mrf.mxu2  ;;  %v4069_v52 = vpop.f32.mrf.mxu3 }
 0x6eb   :  { %v4042_v8 = vadd.f32 %v4039_v23, %v4012_v46  ;;  %v4129_v4 = vpop.f32.mrf.mxu1  ;;  %v4478_v46 = vld [vmem:[#allocation2 + $0x520] sm:$0xff] }
 0x6ec   :  { %v4099_v55 = vpop.f32.mrf.mxu0  ;;  %v4494_v23 = vld [vmem:[#allocation2 + $0x5a0] sm:$0xff] }
 0x6ed   :  { %v4072_v26 = vadd.f32 %v4069_v52, %v4042_v8  ;;  %v4444_v52 = vld [vmem:[#allocation2 + $0x410] sm:$0xff]  ;;  %v4461_v8 = vld [vmem:[#allocation2 + $0x498] sm:$0xff] }
 0x6ef   :  { %v4102_v20 = vadd.f32 %v4099_v55, %v4072_v26  ;;  %v4477_v55 = vld [vmem:[#allocation2 + $0x518] sm:$0xff] }
 0x6f0   :  { %v4493_v26 = vld [vmem:[#allocation2 + $0x598] sm:$0xff] }
 0x6f1   :  { %v4132_v22 = vadd.f32 %v4129_v4, %v4102_v20  ;;  %v4443_v4 = vld [vmem:[#allocation2 + $0x408] sm:$0xff]  ;;  %v4460_v20 = vld [vmem:[#allocation2 + $0x490] sm:$0xff] }
 0x6f3   :  { %v4138_v50 = vadd.f32 %v4136_v27, %v4132_v22  ;;  %v4476_v22 = vld [vmem:[#allocation2 + $0x510] sm:$0xff] }
 0x6f4   :  { %v4492_v27 = vld [vmem:[#allocation2 + $0x590] sm:$0xff] }
 0x6f5   :  { %v4139_v10 = vmax.f32 %v4138_v50, 0.0  ;;  %v4442_v50 = vld [vmem:[#allocation2 + $0x400] sm:$0xff] }
 0x6f7   :  { %v8579_v19 = vadd.f32 %v4139_v10, %v8520_v43  ;;  %v4505_v43 = vld [vmem:[#allocation2 + $0x5f8] sm:$0xff]  ;;  %v4459_v10 = vld [vmem:[#allocation2 + $0x488] sm:$0xff] }
 0x6f9   :  { %4229 = vmatmul.f32.vlgmr.msra.gmra.mxu2 %v8579_v19  ;;  %v8583_v1 = vrot.slane %v8579_v19, 1  ;;  %v8586_v47 = vrot.slane %v8579_v19, 2  ;;  %v8589_v7 = vrot.slane %v8579_v19, 3 }
 0x6fa   :  { %4506 = vmatpush.msra.mxu2 %v4457_v40  ;;  %v4475_v40 = vld [vmem:[#allocation2 + $0x508] sm:$0xff] }
 0x6fb   :  { %4249 = vmatmul.f32.vlgmr.msra.gmra.mxu3 %v8583_v1  ;;  %4269 = vmatmul.f32.vlgmr.msrb.gmra.mxu0 %v8586_v47 }
 0x6fc   :  { %4289 = vmatmul.f32.vlgmr.msrb.gmra.mxu1 %v8589_v7  ;;  %4507 = vmatpush.msra.mxu2 %v4456_v14  ;;  %v4491_v14 = vld [vmem:[#allocation2 + $0x588] sm:$0xff] }
 0x6fd   :  { %4526 = vmatpush.msra.mxu3 %v4473_v15  ;;  %4546 = vmatpush.msrb.mxu0 %v4489_v18  ;;  %v4605_v15 = vld [vmem:[#allocation2 + $0x678] sm:$0xff]  ;;  %v4458_v18 = vld [vmem:[#allocation2 + $0x480] sm:$0xff] }
 0x6fe   :  { %4566 = vmatpush.msrb.mxu1 %v4505_v43  ;;  %4508 = vmatpush.msra.mxu2 %v4455_v54  ;;  %v4474_v43 = vld [vmem:[#allocation2 + $0x500] sm:$0xff] }
 0x6ff   :  { %4527 = vmatpush.msra.mxu3 %v4472_v32  ;;  %4547 = vmatpush.msrb.mxu0 %v4488_v39  ;;  %v4490_v54 = vld [vmem:[#allocation2 + $0x580] sm:$0xff]  ;;  %v4604_v32 = vld [vmem:[#allocation2 + $0x670] sm:$0xff]  ;;  %v4621_v39 = vld [vmem:[#allocation2 + $0x6f8] sm:$0xff] }
 0x700   :  { %4567 = vmatpush.msrb.mxu1 %v4504_v33  ;;  %4509 = vmatpush.msra.mxu2 %v4454_v57  ;;  %v4637_v33 = vld [vmem:[#allocation2 + $0x778] sm:$0xff] }
 0x701   :  { %4528 = vmatpush.msra.mxu3 %v4471_v36  ;;  %4548 = vmatpush.msrb.mxu0 %v4487_v56  ;;  %v4653_v57 = vld [vmem:[#allocation2 + $0x7f8] sm:$0xff]  ;;  %v4603_v36 = vld [vmem:[#allocation2 + $0x668] sm:$0xff]  ;;  %v4620_v56 = vld [vmem:[#allocation2 + $0x6f0] sm:$0xff] }
 0x702   :  { %4568 = vmatpush.msrb.mxu1 %v4503_v0  ;;  %4374 = vmatmul.f32.vlgmr.msrb.gmra.mxu2 %v8579_v19  ;;  %v4636_v0 = vld [vmem:[#allocation2 + $0x770] sm:$0xff] }
 0x703   :  { %4510 = vmatpush.msra.mxu2 %v4453_v51  ;;  %4529 = vmatpush.msra.mxu3 %v4470_v3  ;;  %v4652_v51 = vld [vmem:[#allocation2 + $0x7f0] sm:$0xff]  ;;  %v4602_v3 = vld [vmem:[#allocation2 + $0x660] sm:$0xff] }
 0x704   :  { %4549 = vmatpush.msrb.mxu0 %v4486_v9  ;;  %4569 = vmatpush.msrb.mxu1 %v4502_v62  ;;  %v4619_v9 = vld [vmem:[#allocation2 + $0x6e8] sm:$0xff] }
 0x705   :  { %4394 = vmatmul.f32.vlgmr.msrb.gmra.mxu3 %v8583_v1  ;;  %4414 = vmatmul.f32.vlgmr.msra.gmra.mxu0 %v8586_v47  ;;  %v4635_v62 = vld [vmem:[#allocation2 + $0x768] sm:$0xff] }
 0x706   :  { %4434 = vmatmul.f32.vlgmr.msra.gmra.mxu1 %v8589_v7  ;;  %4511 = vmatpush.msra.mxu2 %v4452_v59  ;;  %v4651_v59 = vld [vmem:[#allocation2 + $0x7e8] sm:$0xff] }
 0x707   :  { %4530 = vmatpush.msra.mxu3 %v4469_v13  ;;  %4550 = vmatpush.msrb.mxu0 %v4485_v29  ;;  %v4601_v13 = vld [vmem:[#allocation2 + $0x658] sm:$0xff]  ;;  %v4618_v29 = vld [vmem:[#allocation2 + $0x6e0] sm:$0xff] }
 0x708   :  { %4570 = vmatpush.msrb.mxu1 %v4501_v60  ;;  %4512 = vmatpush.msra.mxu2 %v4451_v61  ;;  %v4634_v60 = vld [vmem:[#allocation2 + $0x760] sm:$0xff] }
 0x709   :  { %4531 = vmatpush.msra.mxu3 %v4468_v44  ;;  %4551 = vmatpush.msrb.mxu0 %v4484_v35  ;;  %v4650_v61 = vld [vmem:[#allocation2 + $0x7e0] sm:$0xff]  ;;  %v4600_v44 = vld [vmem:[#allocation2 + $0x650] sm:$0xff]  ;;  %v4617_v35 = vld [vmem:[#allocation2 + $0x6d8] sm:$0xff] }
 0x70a   :  { %4571 = vmatpush.msrb.mxu1 %v4500_v30  ;;  %4513 = vmatpush.msra.mxu2 %v4450_v38  ;;  %v4633_v30 = vld [vmem:[#allocation2 + $0x758] sm:$0xff] }
 0x70b   :  { %4532 = vmatpush.msra.mxu3 %v4467_v5  ;;  %4552 = vmatpush.msrb.mxu0 %v4483_v49  ;;  %v4649_v38 = vld [vmem:[#allocation2 + $0x7d8] sm:$0xff]  ;;  %v4599_v5 = vld [vmem:[#allocation2 + $0x648] sm:$0xff]  ;;  %v4616_v49 = vld [vmem:[#allocation2 + $0x6d0] sm:$0xff] }
 0x70c   :  { %4572 = vmatpush.msrb.mxu1 %v4499_v25  ;;  %4514 = vmatpush.msra.mxu2 %v4449_v34  ;;  %v4632_v25 = vld [vmem:[#allocation2 + $0x750] sm:$0xff] }
 0x70d   :  { %4533 = vmatpush.msra.mxu3 %v4466_v31  ;;  %4553 = vmatpush.msrb.mxu0 %v4482_v42  ;;  %v4648_v34 = vld [vmem:[#allocation2 + $0x7d0] sm:$0xff]  ;;  %v4598_v31 = vld [vmem:[#allocation2 + $0x640] sm:$0xff]  ;;  %v4615_v42 = vld [vmem:[#allocation2 + $0x6c8] sm:$0xff] }
 0x70e   :  { %4573 = vmatpush.msrb.mxu1 %v4498_v2  ;;  %4515 = vmatpush.msra.mxu2 %v4448_v45  ;;  %v4631_v2 = vld [vmem:[#allocation2 + $0x748] sm:$0xff] }
 0x70f   :  { %4534 = vmatpush.msra.mxu3 %v4465_v58  ;;  %4554 = vmatpush.msrb.mxu0 %v4481_v6  ;;  %v4647_v45 = vld [vmem:[#allocation2 + $0x7c8] sm:$0xff]  ;;  %v4597_v58 = vld [vmem:[#allocation2 + $0x638] sm:$0xff]  ;;  %v4614_v6 = vld [vmem:[#allocation2 + $0x6c0] sm:$0xff] }
 0x710   :  { %4574 = vmatpush.msrb.mxu1 %v4497_v63  ;;  %4516 = vmatpush.msra.mxu2 %v4447_v48  ;;  %v4630_v63 = vld [vmem:[#allocation2 + $0x740] sm:$0xff] }
 0x711   :  { %4535 = vmatpush.msra.mxu3 %v4464_v53  ;;  %4555 = vmatpush.msrb.mxu0 %v4480_v11  ;;  %v4646_v48 = vld [vmem:[#allocation2 + $0x7c0] sm:$0xff]  ;;  %v4596_v53 = vld [vmem:[#allocation2 + $0x630] sm:$0xff]  ;;  %v4613_v11 = vld [vmem:[#allocation2 + $0x6b8] sm:$0xff] }
 0x712   :  { %4575 = vmatpush.msrb.mxu1 %v4496_v28  ;;  %4517 = vmatpush.msra.mxu2 %v4446_v17  ;;  %v4629_v28 = vld [vmem:[#allocation2 + $0x738] sm:$0xff] }
 0x713   :  { %4536 = vmatpush.msra.mxu3 %v4463_v16  ;;  %4556 = vmatpush.msrb.mxu0 %v4479_v24  ;;  %v4645_v17 = vld [vmem:[#allocation2 + $0x7b8] sm:$0xff]  ;;  %v4595_v16 = vld [vmem:[#allocation2 + $0x628] sm:$0xff]  ;;  %v4612_v24 = vld [vmem:[#allocation2 + $0x6b0] sm:$0xff] }
 0x714   :  { %4576 = vmatpush.msrb.mxu1 %v4495_v41  ;;  %4518 = vmatpush.msra.mxu2 %v4445_v12  ;;  %v4628_v41 = vld [vmem:[#allocation2 + $0x730] sm:$0xff] }
 0x715   :  { %4537 = vmatpush.msra.mxu3 %v4462_v21  ;;  %4557 = vmatpush.msrb.mxu0 %v4478_v46  ;;  %v4644_v12 = vld [vmem:[#allocation2 + $0x7b0] sm:$0xff]  ;;  %v4594_v21 = vld [vmem:[#allocation2 + $0x620] sm:$0xff]  ;;  %v4611_v46 = vld [vmem:[#allocation2 + $0x6a8] sm:$0xff] }
 0x716   :  { %4577 = vmatpush.msrb.mxu1 %v4494_v23  ;;  %4519 = vmatpush.msra.mxu2 %v4444_v52  ;;  %v4627_v23 = vld [vmem:[#allocation2 + $0x728] sm:$0xff] }
 0x717   :  { %4538 = vmatpush.msra.mxu3 %v4461_v8  ;;  %4558 = vmatpush.msrb.mxu0 %v4477_v55  ;;  %v4643_v52 = vld [vmem:[#allocation2 + $0x7a8] sm:$0xff]  ;;  %v4593_v8 = vld [vmem:[#allocation2 + $0x618] sm:$0xff]  ;;  %v4610_v55 = vld [vmem:[#allocation2 + $0x6a0] sm:$0xff] }
 0x718   :  { %4578 = vmatpush.msrb.mxu1 %v4493_v26  ;;  %4520 = vmatpush.msra.mxu2 %v4443_v4  ;;  %v4626_v26 = vld [vmem:[#allocation2 + $0x720] sm:$0xff] }
 0x719   :  { %4539 = vmatpush.msra.mxu3 %v4460_v20  ;;  %4559 = vmatpush.msrb.mxu0 %v4476_v22  ;;  %v4642_v4 = vld [vmem:[#allocation2 + $0x7a0] sm:$0xff]  ;;  %v4592_v20 = vld [vmem:[#allocation2 + $0x610] sm:$0xff]  ;;  %v4609_v22 = vld [vmem:[#allocation2 + $0x698] sm:$0xff] }
 0x71a   :  { %4579 = vmatpush.msrb.mxu1 %v4492_v27  ;;  %4521 = vmatpush.msra.mxu2 %v4442_v50  ;;  %v4625_v27 = vld [vmem:[#allocation2 + $0x718] sm:$0xff] }
 0x71b   :  { %4540 = vmatpush.msra.mxu3 %v4459_v10  ;;  %4560 = vmatpush.msrb.mxu0 %v4475_v40  ;;  %v4641_v50 = vld [vmem:[#allocation2 + $0x798] sm:$0xff]  ;;  %v4591_v10 = vld [vmem:[#allocation2 + $0x608] sm:$0xff]  ;;  %v4608_v40 = vld [vmem:[#allocation2 + $0x690] sm:$0xff] }
 0x71c   :  { %4580 = vmatpush.msrb.mxu1 %v4491_v14  ;;  %4522 = vmatmul.f32.vlgmr.msra.gmra.mxu2 %v8579_v19  ;;  %v4624_v14 = vld [vmem:[#allocation2 + $0x710] sm:$0xff] }
 0x71d   :  { %4654 = vmatpush.msrb.mxu2 %v4605_v15  ;;  %4541 = vmatpush.msra.mxu3 %v4458_v18  ;;  %v4640_v15 = vld [vmem:[#allocation2 + $0x790] sm:$0xff]  ;;  %v4590_v18 = vld [vmem:[#allocation2 + $0x600] sm:$0xff] }
 0x71e   :  { %4561 = vmatpush.msrb.mxu0 %v4474_v43  ;;  %4581 = vmatpush.msrb.mxu1 %v4490_v54  ;;  %v4607_v43 = vld [vmem:[#allocation2 + $0x688] sm:$0xff] }
 0x71f   :  { %4542 = vmatmul.f32.vlgmr.msra.gmra.mxu3 %v8583_v1  ;;  %4562 = vmatmul.f32.vlgmr.msrb.gmra.mxu0 %v8586_v47  ;;  %v4623_v54 = vld [vmem:[#allocation2 + $0x708] sm:$0xff] }
 0x720   :  { %4582 = vmatmul.f32.vlgmr.msrb.gmra.mxu1 %v8589_v7  ;;  %4655 = vmatpush.msrb.mxu2 %v4604_v32  ;;  %v4639_v32 = vld [vmem:[#allocation2 + $0x788] sm:$0xff] }
 0x721   :  { %4674 = vmatpush.msrb.mxu3 %v4621_v39  ;;  %4694 = vmatpush.msra.mxu0 %v4637_v33  ;;  %v4606_v39 = vld [vmem:[#allocation2 + $0x680] sm:$0xff] }
 0x722   :  { %4714 = vmatpush.msra.mxu1 %v4653_v57  ;;  %4656 = vmatpush.msrb.mxu2 %v4603_v36  ;;  %v4622_v33 = vld [vmem:[#allocation2 + $0x700] sm:$0xff] }
 0x723   :  { %4675 = vmatpush.msrb.mxu3 %v4620_v56  ;;  %4695 = vmatpush.msra.mxu0 %v4636_v0  ;;  %v4638_v57 = vld [vmem:[#allocation2 + $0x780] sm:$0xff] }
 0x724   :  { %4715 = vmatpush.msra.mxu1 %v4652_v51  ;;  %4657 = vmatpush.msrb.mxu2 %v4602_v3 }
 0x725   :  { %4676 = vmatpush.msrb.mxu3 %v4619_v9  ;;  %4696 = vmatpush.msra.mxu0 %v4635_v62 }
 0x726   :  { %4716 = vmatpush.msra.mxu1 %v4651_v59  ;;  %4658 = vmatpush.msrb.mxu2 %v4601_v13 }
 0x727   :  { %4677 = vmatpush.msrb.mxu3 %v4618_v29  ;;  %4697 = vmatpush.msra.mxu0 %v4634_v60 }
 0x728   :  { %4717 = vmatpush.msra.mxu1 %v4650_v61  ;;  %4659 = vmatpush.msrb.mxu2 %v4600_v44 }
 0x729   :  { %4678 = vmatpush.msrb.mxu3 %v4617_v35  ;;  %4698 = vmatpush.msra.mxu0 %v4633_v30 }
 0x72a   :  { %4718 = vmatpush.msra.mxu1 %v4649_v38  ;;  %4660 = vmatpush.msrb.mxu2 %v4599_v5 }
 0x72b   :  { %4679 = vmatpush.msrb.mxu3 %v4616_v49  ;;  %4699 = vmatpush.msra.mxu0 %v4632_v25 }
 0x72c   :  { %4719 = vmatpush.msra.mxu1 %v4648_v34  ;;  %4661 = vmatpush.msrb.mxu2 %v4598_v31 }
 0x72d   :  { %4680 = vmatpush.msrb.mxu3 %v4615_v42  ;;  %4700 = vmatpush.msra.mxu0 %v4631_v2 }
 0x72e   :  { %4720 = vmatpush.msra.mxu1 %v4647_v45  ;;  %4662 = vmatpush.msrb.mxu2 %v4597_v58 }
 0x72f   :  { %4681 = vmatpush.msrb.mxu3 %v4614_v6  ;;  %4701 = vmatpush.msra.mxu0 %v4630_v63  ;;  %v4141_v6 = vld [vmem:[%s9023_s3] sm:$0xf] }
 0x730   :  { %4721 = vmatpush.msra.mxu1 %v4646_v48  ;;  %4663 = vmatpush.msrb.mxu2 %v4596_v53 }
 0x731   :  { %4682 = vmatpush.msrb.mxu3 %v4613_v11  ;;  %4702 = vmatpush.msra.mxu0 %v4629_v28 }
 0x732   :  { %4722 = vmatpush.msra.mxu1 %v4645_v17  ;;  %4664 = vmatpush.msrb.mxu2 %v4595_v16 }
 0x733   :  { %4683 = vmatpush.msrb.mxu3 %v4612_v24  ;;  %4703 = vmatpush.msra.mxu0 %v4628_v41 }
 0x734   :  { %4723 = vmatpush.msra.mxu1 %v4644_v12  ;;  %4665 = vmatpush.msrb.mxu2 %v4594_v21 }
 0x735   :  { %4684 = vmatpush.msrb.mxu3 %v4611_v46  ;;  %4704 = vmatpush.msra.mxu0 %v4627_v23  ;;  %v8631_v46 = vld [vmem:[%s9025_s14] sm:$0xff] }
 0x736   :  { %4724 = vmatpush.msra.mxu1 %v4643_v52  ;;  %4666 = vmatpush.msrb.mxu2 %v4593_v8  ;;  %v4818_v23 = vperm.slane %v8631_v46, 2 }
 0x737   :  { %4685 = vmatpush.msrb.mxu3 %v4610_v55  ;;  %4705 = vmatpush.msra.mxu0 %v4626_v26  ;;  %v4745_v55 = vld [vmem:[%s9026_s19 + $0x8] sm:$0xff]  ;;  %v4758_v26 = vperm.slane %v8631_v46, 0 }
 0x738   :  { %4725 = vmatpush.msra.mxu1 %v4642_v4  ;;  %4667 = vmatpush.msrb.mxu2 %v4592_v20  ;;  %v4762_v4 = vperm.slane %v8631_v46, 1  ;;  %v4744_v20 = vld [vmem:[%s9026_s19] sm:$0xff] }
 0x739   :  { %4686 = vmatpush.msrb.mxu3 %v4609_v22  ;;  %4706 = vmatpush.msra.mxu0 %v4625_v27  ;;  %v8643_v27 = vld [vmem:[%s9025_s14 + $0x8] ss:$0 sm:$0xff] }
 0x73a   :  { %4726 = vmatpush.msra.mxu1 %v4641_v50  ;;  %4668 = vmatpush.msrb.mxu2 %v4591_v10 }
 0x73b   :  { %4687 = vmatpush.msrb.mxu3 %v4608_v40  ;;  %4707 = vmatpush.msra.mxu0 %v4624_v14  ;;  %v4765_v40 = vrot.slane %v4744_v20, 4 }
 0x73c   :  { %4727 = vmatpush.msra.mxu1 %v4640_v15  ;;  %4669 = vmatpush.msrb.mxu2 %v4590_v18 }
 0x73d   :  { %4688 = vmatpush.msrb.mxu3 %v4607_v43  ;;  %4708 = vmatpush.msra.mxu0 %v4623_v54  ;;  %v4849_v43 = vperm.slane %v8631_v46, 3  ;;  %v4907_v54 = vperm.slane %v8631_v46, 5 }
 0x73e   :  { %4728 = vmatpush.msra.mxu1 %v4639_v32  ;;  %4670 = vmatmul.f32.vlgmr.msrb.gmra.mxu2 %v8579_v19  ;;  %v4746_v32 = vld [vmem:[%s9026_s19 + $0x10] sm:$0xff] }
 0x73f   :  { %4689 = vmatpush.msrb.mxu3 %v4606_v39  ;;  %4709 = vmatpush.msra.mxu0 %v4622_v33  ;;  %v4851_v33 = vrot.slane %v4745_v55, 4 }
 0x740   :  { %4729 = vmatpush.msra.mxu1 %v4638_v57  ;;  %4690 = vmatmul.f32.vlgmr.msrb.gmra.mxu3 %v8583_v1 }
 0x741   :  { %4710 = vmatmul.f32.vlgmr.msra.gmra.mxu0 %v8586_v47  ;;  %4730 = vmatmul.f32.vlgmr.msra.gmra.mxu1 %v8589_v7 }
 0x778   :  { %v4270_v0 = vpop.f32.mrf.mxu0 }
 0x779   :  { %v4290_v51 = vpop.f32.mrf.mxu1 }
 0x77c   :  { %v4230_v56 = vpop.f32.mrf.mxu2 }
 0x77e   :  { %v4250_v36 = vpop.f32.mrf.mxu3 }
 0x77f   :  { %v4251_v30 = vadd.f32 %v4250_v36, %v4230_v56  ;;  %v4909_v56 = vrot.slane %v4746_v32, 4 }
 0x781   :  { %v4271_v5 = vadd.f32 %v4270_v0, %v4251_v30 }
 0x782   :  { %v4415_v62 = vpop.f32.mrf.mxu0 }
 0x783   :  { %v4435_v13 = vpop.f32.mrf.mxu1  ;;  %v4291_v45 = vadd.f32 %v4290_v51, %v4271_v5  ;;  %v4969_v51 = vperm.slane %v8631_v46, 7 }
 0x785   :  { %v4375_v9 = vpop.f32.mrf.mxu2  ;;  %v4293_v28 = vadd.f32 %v4291_v45, %v4141_v6 }
 0x788   :  { %v4395_v3 = vpop.f32.mrf.mxu3 }
 0x789   :  { %v4396_v29 = vadd.f32 %v4395_v3, %v4375_v9  ;;  %v4747_v3 = vld [vmem:[%s9026_s19 + $0x18] sm:$0xff]  ;;  %v4938_v9 = vperm.slane %v8631_v46, 6 }
 0x78b   :  { %v4416_v44 = vadd.f32 %v4415_v62, %v4396_v29 }
 0x78d   :  { %v4436_v38 = vadd.f32 %v4435_v13, %v4416_v44 }
 0x78f   :  { %v4439_v34 = vrot.slane %v4436_v38, 7 }
 0x791   :  { %v4441_v48 = vadd.f32 %v4439_v34, %v4141_v6 }
 0x793   :  { %v4738_v16 = vsel %vm843_vm9, %v4293_v28, %v4441_v48  ;;  %v4755_v28 = vld [vmem:[%s9027_s24] sm:$0xf] }
 0x79c   :  { %v4563_v35 = vpop.f32.mrf.mxu0 }
 0x79d   :  { %v4583_v47 = vpop.f32.mrf.mxu1 }
 0x79f   :  { %v4523_v60 = vpop.f32.mrf.mxu2 }
 0x7a2   :  { %v4543_v59 = vpop.f32.mrf.mxu3 }
 0x7a3   :  { %v4544_v61 = vadd.f32 %v4543_v59, %v4523_v60  ;;  %v4971_v59 = vrot.slane %v4747_v3, 4 }
 0x7a5   :  { %v4564_v1 = vadd.f32 %v4563_v35, %v4544_v61  ;;  %v4748_v61 = vld [vmem:[%s9026_s19 + $0x20] sm:$0xf] }
 0x7a7   :  { %v4584_v7 = vadd.f32 %v4583_v47, %v4564_v1 }
 0x7a9   :  { %v4587_v42 = vrot.slane %v4584_v7, 6 }
 0x7ab   :  { %v4589_v11 = vadd.f32 %v4587_v42, %v4141_v6 }
 0x7ad   :  { %v4739_v41 = vsel %vm475_vm5, %v4738_v16, %v4589_v11 }
 0x7be   :  { %v4711_v2 = vpop.f32.mrf.mxu0  ;;  %v4731_v63 = vpop.f32.mrf.mxu1 }
 0x7c1   :  { %v4671_v49 = vpop.f32.mrf.mxu2 }
 0x7c3   :  { %v4691_v25 = vpop.f32.mrf.mxu3 }
 0x7c4   :  { %v4692_v31 = vadd.f32 %v4691_v25, %v4671_v49 }
 0x7c6   :  { %v4712_v58 = vadd.f32 %v4711_v2, %v4692_v31 }
 0x7c8   :  { %v4732_v53 = vadd.f32 %v4731_v63, %v4712_v58 }
 0x7ca   :  { %v4735_v17 = vrot.slane %v4732_v53, 5 }
 0x7cc   :  { %v4737_v24 = vadd.f32 %v4735_v17, %v4141_v6 }
 0x7ce   :  { %v4740_v12 = vsel %vm255_vm3, %v4739_v41, %v4737_v24  ;;  %v4750_v24 = vld [vmem:[%s9028_s6] sm:$0xff]  ;;  %v4752_v41 = vld [vmem:[%s9028_s6 + $0x10] sm:$0xff] }
 0x7cf   :  { %v8611_v21 = vadd.f32 %v4740_v12, %v8579_v19  ;;  %v4749_v19 = vld [vmem:[%s9024_s8] sm:$0xf] }
 0x7d1   :  { %4816 = vrot.lane.b32.xlu2 %v8611_v21, %s7231_s9  ;;  %4756 = vrot.lane.b32.xlu1 %v8611_v21, %s7234_s21 }
 0x7d2   :  { %4760 = vrot.lane.b32.xlu0 %v8611_v21, %s7218_s10 }
 0x7d9   :  { %4998 = vrot.lane.b32.xlu2 %v8611_v21, %s7235_s25  ;;  %4847 = vrot.lane.b32.xlu1 %v8611_v21, %s7225_s26 }
 0x7da   :  { %4905 = vrot.lane.b32.xlu0 %v8611_v21, %s7226_s28 }
 0x7e1   :  { %5031 = vperm.xlu2 %7119, %v4749_v19   ;;  %4967 = vrot.lane.b32.xlu1 %v8611_v21, %s7232_s13 }
 0x7e2   :  { %4936 = vrot.lane.b32.xlu0 %v8611_v21, %s7233_s17 }
 0x82b   :  { %v4817_v52 = vpop.permute.xlu2 %4816 }
 0x82c   :  { %v4819_v8 = vmul.f32 %v4818_v23, %v4817_v52  ;;  %v4751_v52 = vld [vmem:[%s9028_s6 + $0x8] sm:$0xff] }
 0x82e   :  { %6984 = vmatpush.msk.msrb.mxu0 %vm3598_vm12, %v4819_v8 }
 0x82f   :  { %6985 = vmatmul.msk.f32.vlgmr.msrb.gmra.mxu0 %vm3595_vm13, %v4745_v55  ;;  %v5128_v55 = vrot.slane %v4751_v52, 4 }
 0x833   :  { %v4999_v14 = vpop.permute.xlu2 %4998 }
 0x834   :  { %v5001_v18 = vmul.f32 %v8643_v27, %v4999_v14 }
 0x83b   :  { %v5032_v63 = vpop.permute.xlu2 %5031 }
 0x843   :  { %v4757_v22 = vpop.permute.xlu1 %4756 }
 0x844   :  { %v4759_v50 = vmul.f32 %v4758_v26, %v4757_v22  ;;  %v4761_v10 = vpop.permute.xlu0 %4760  ;;  %v5044_v22 = vrot.slane %v4750_v24, 4 }
 0x845   :  { %v4763_v15 = vmul.f32 %v4762_v4, %v4761_v10  ;;  %v4753_v10 = vld [vmem:[%s9028_s6 + $0x18] sm:$0xff] }
 0x846   :  { %6982 = vmatpush.msk.msra.mxu3 %vm3598_vm12, %v4759_v50  ;;  %v5245_v14 = vrot.slane %v4753_v10, 4 }
 0x847   :  { %6980 = vmatpush.msk.msra.mxu2 %vm3598_vm12, %v4763_v15  ;;  %6983 = vmatmul.msk.f32.vlgmr.msra.gmra.mxu3 %vm3595_vm13, %v4744_v20 }
 0x848   :  { %6981 = vmatmul.msk.f32.vlgmr.msra.gmra.mxu2 %vm3595_vm13, %v4765_v40 }
 0x849   :  { %6988 = vmatpush.msk.msrb.mxu2 %vm3598_vm12, %v8611_v21 }
 0x84b   :  { %6996 = vmatpush.msk.msra.mxu2 %vm3598_vm12, %v5001_v18  ;;  %v4848_v39 = vpop.permute.xlu1 %4847 }
 0x84c   :  { %v4850_v57 = vmul.f32 %v4849_v43, %v4848_v39  ;;  %v4906_v36 = vpop.permute.xlu0 %4905 }
 0x84d   :  { %v4908_v0 = vmul.f32 %v4907_v54, %v4906_v36 }
 0x84e   :  { %6986 = vmatpush.msk.msrb.mxu1 %vm3598_vm12, %v4850_v57 }
 0x84f   :  { %6990 = vmatpush.msk.msrb.mxu3 %vm3598_vm12, %v4908_v0  ;;  %6987 = vmatmul.msk.f32.vlgmr.msrb.gmra.mxu1 %vm3595_vm13, %v4851_v33  ;;  %v4754_v33 = vld [vmem:[%s9028_s6 + $0x20] sm:$0xf] }
 0x850   :  { %6989 = vmatmul.msk.f32.vlgmr.msrb.gmra.mxu2 %vm3595_vm13, %v4746_v32  ;;  %6991 = vmatmul.msk.f32.vlgmr.msrb.gmra.mxu3 %vm3595_vm13, %v4909_v56 }
 0x853   :  { %v4968_v62 = vpop.permute.xlu1 %4967 }
 0x854   :  { %v4970_v13 = vmul.f32 %v4969_v51, %v4968_v62  ;;  %v4937_v29 = vpop.permute.xlu0 %4936 }
 0x855   :  { %v4939_v60 = vmul.f32 %v4938_v9, %v4937_v29 }
 0x856   :  { %6994 = vmatpush.msk.msra.mxu1 %vm3598_vm12, %v4970_v13 }
 0x857   :  { %6992 = vmatpush.msk.msra.mxu0 %vm3598_vm12, %v4939_v60  ;;  %6995 = vmatmul.msk.f32.vlgmr.msra.gmra.mxu1 %vm3595_vm13, %v4971_v59 }
 0x858   :  { %6997 = vmatmul.msk.f32.vlgmr.msra.gmra.mxu2 %vm3595_vm13, %v4748_v61  ;;  %6993 = vmatmul.msk.f32.vlgmr.msra.gmra.mxu0 %vm3595_vm13, %v4747_v3 }
 0x8ac   :  { %v4843_v1 = vpop.f32.mrf.mxu0 }
 0x8ca   :  { %v4813_v44 = vpop.f32.mrf.mxu3 }
 0x8cb   :  { %v4788_v35 = vpop.f32.mrf.mxu2 }
 0x8cc   :  { %v4814_v30 = vadd.f32 %v4813_v44, %v4788_v35  ;;  %v4874_v38 = vpop.f32.mrf.mxu1 }
 0x8ce   :  { %v4846_v47 = vadd.f32 %v4843_v1, %v4814_v30 }
 0x8d0   :  { %v4877_v7 = vadd.f32 %v4874_v38, %v4846_v47 }
 0x8d3   :  { %v4901_v5 = vpop.f32.mrf.mxu2  ;;  %v4932_v49 = vpop.f32.mrf.mxu3 }
 0x8d4   :  { %v4904_v25 = vadd.f32 %v4901_v5, %v4877_v7  ;;  %v4994_v42 = vpop.f32.mrf.mxu1  ;;  %v8763_v7 = vld [vmem:[%s9030_s15] sm:$0xff] }
 0x8d5   :  { %v4963_v34 = vpop.f32.mrf.mxu0  ;;  %v5418_v5 = vperm.slane %v8763_v7, 3 }
 0x8d6   :  { %v4935_v31 = vadd.f32 %v4932_v49, %v4904_v25  ;;  %v5314_v25 = vld [vmem:[%s9031_s16 + $0x8] sm:$0xff] }
 0x8d8   :  { %v4966_v2 = vadd.f32 %v4963_v34, %v4935_v31  ;;  %v5420_v31 = vrot.slane %v5314_v25, 4 }
 0x8da   :  { %v4997_v45 = vadd.f32 %v4994_v42, %v4966_v2  ;;  %v5538_v42 = vperm.slane %v8763_v7, 7 }
 0x8db   :  { %v5025_v58 = vpop.f32.mrf.mxu2 }
 0x8dc   :  { %v5028_v6 = vadd.f32 %v5025_v58, %v4997_v45  ;;  %v5316_v45 = vld [vmem:[%s9031_s16 + $0x18] sm:$0xff] }
 0x8de   :  { %v5034_v48 = vadd.f32 %v5032_v63, %v5028_v6  ;;  %v5540_v6 = vrot.slane %v5316_v45, 4  ;;  %v5331_v63 = vperm.slane %v8763_v7, 1 }
 0x8e0   :  { %v5035_v53 = vmax.f32 %v5034_v48, 0.0  ;;  %v5387_v48 = vperm.slane %v8763_v7, 2 }
 0x8e2   :  { %v8683_v11 = vadd.f32 %v5035_v53, %v8611_v21  ;;  %v5185_v21 = vrot.slane %v4752_v41, 4  ;;  %v5313_v53 = vld [vmem:[%s9031_s16] sm:$0xff] }
 0x8e4   :  { %5037 = vrot.lane.b32.xlu2 %v8683_v11, %s7234_s21  ;;  %5125 = vrot.lane.b32.xlu1 %v8683_v11, %s7225_s26 }
 0x8e5   :  { %5040 = vrot.lane.b32.xlu0 %v8683_v11, %s7218_s10 }
 0x8ec   :  { %5182 = vrot.lane.b32.xlu2 %v8683_v11, %s7226_s28  ;;  %5242 = vrot.lane.b32.xlu1 %v8683_v11, %s7232_s13 }
 0x8ed   :  { %5095 = vrot.lane.b32.xlu0 %v8683_v11, %s7231_s9 }
 0x8f4   :  { %5304 = vperm.xlu2 %7119, %v4755_v28   ;;  %5212 = vrot.lane.b32.xlu1 %v8683_v11, %s7233_s17 }
 0x8f5   :  { %5272 = vrot.lane.b32.xlu0 %v8683_v11, %s7235_s25 }
 0x93e   :  { %v5038_v17 = vpop.permute.xlu2 %5037 }
 0x93f   :  { %v5039_v16 = vmul.f32 %v5038_v17, %v4758_v26 }
 0x941   :  { %7000 = vmatpush.msk.msrb.mxu0 %vm3598_vm12, %v5039_v16  ;;  %v5334_v16 = vrot.slane %v5313_v53, 4 }
 0x942   :  { %7001 = vmatmul.msk.f32.vlgmr.msrb.gmra.mxu0 %vm3595_vm13, %v4750_v24 }
 0x946   :  { %v5183_v12 = vpop.permute.xlu2 %5182 }
 0x947   :  { %v5184_v19 = vmul.f32 %v5183_v12, %v4907_v54  ;;  %v5327_v12 = vperm.slane %v8763_v7, 0 }
 0x949   :  { %7008 = vmatpush.msk.msra.mxu0 %vm3598_vm12, %v5184_v19 }
 0x94a   :  { %7009 = vmatmul.msk.f32.vlgmr.msra.gmra.mxu0 %vm3595_vm13, %v5185_v21 }
 0x94e   :  { %v5305_v35 = vpop.permute.xlu2 %5304 }
 0x956   :  { %v5126_v8 = vpop.permute.xlu1 %5125 }
 0x957   :  { %v5127_v26 = vmul.f32 %v5126_v8, %v4849_v43  ;;  %v5041_v20 = vpop.permute.xlu0 %5040 }
 0x958   :  { %v5042_v50 = vmul.f32 %v5041_v20, %v4762_v4  ;;  %v5476_v20 = vperm.slane %v8763_v7, 5 }
 0x959   :  { %7004 = vmatpush.msk.msrb.mxu2 %vm3598_vm12, %v5127_v26  ;;  %v8801_v26 = vld [vmem:[%s9030_s15 + $0x8] ss:$0 sm:$0xff] }
 0x95a   :  { %6998 = vmatpush.msk.msra.mxu3 %vm3598_vm12, %v5042_v50  ;;  %7005 = vmatmul.msk.f32.vlgmr.msrb.gmra.mxu2 %vm3595_vm13, %v5128_v55  ;;  %v5315_v55 = vld [vmem:[%s9031_s16 + $0x10] sm:$0xff] }
 0x95b   :  { %6999 = vmatmul.msk.f32.vlgmr.msra.gmra.mxu3 %vm3595_vm13, %v5044_v22 }
 0x95c   :  { %7006 = vmatpush.msk.msrb.mxu3 %vm3598_vm12, %v8683_v11 }
 0x95e   :  { %v5243_v40 = vpop.permute.xlu1 %5242 }
 0x95f   :  { %v5244_v15 = vmul.f32 %v5243_v40, %v4969_v51  ;;  %v5096_v18 = vpop.permute.xlu0 %5095  ;;  %v5478_v40 = vrot.slane %v5315_v55, 4 }
 0x960   :  { %v5097_v4 = vmul.f32 %v5096_v18, %v4818_v23 }
 0x961   :  { %7012 = vmatpush.msk.msra.mxu2 %vm3598_vm12, %v5244_v15  ;;  %v5317_v15 = vld [vmem:[%s9031_s16 + $0x20] sm:$0xf] }
 0x962   :  { %7002 = vmatpush.msk.msrb.mxu1 %vm3598_vm12, %v5097_v4  ;;  %7013 = vmatmul.msk.f32.vlgmr.msra.gmra.mxu2 %vm3595_vm13, %v5245_v14 }
 0x963   :  { %7003 = vmatmul.msk.f32.vlgmr.msrb.gmra.mxu1 %vm3595_vm13, %v4751_v52  ;;  %7007 = vmatmul.msk.f32.vlgmr.msrb.gmra.mxu3 %vm3595_vm13, %v4752_v41  ;;  %v5507_v41 = vperm.slane %v8763_v7, 6  ;;  %v5994_v7 = vld [vmem:[#allocation4 + $0x380] sm:$0xff] }
 0x966   :  { %v5213_v43 = vpop.permute.xlu1 %5212 }
 0x967   :  { %v5214_v54 = vmul.f32 %v5213_v43, %v4938_v9  ;;  %v5273_v32 = vpop.permute.xlu0 %5272 }
 0x968   :  { %v5274_v39 = vmul.f32 %v8643_v27, %v5273_v32 }
 0x969   :  { %7010 = vmatpush.msk.msra.mxu1 %vm3598_vm12, %v5214_v54 }
 0x96a   :  { %7014 = vmatpush.msk.msra.mxu3 %vm3598_vm12, %v5274_v39 }
 0x96b   :  { %7015 = vmatmul.msk.f32.vlgmr.msra.gmra.mxu3 %vm3595_vm13, %v4754_v33  ;;  %7011 = vmatmul.msk.f32.vlgmr.msra.gmra.mxu1 %vm3595_vm13, %v4753_v10 }
 0x9bf   :  { %v5092_v23 = vpop.f32.mrf.mxu0 }
 0x9c7   :  { %v5208_v9 = vpop.f32.mrf.mxu0 }
 0x9dd   :  { %v5151_v51 = vpop.f32.mrf.mxu2 }
 0x9de   :  { %v5067_v57 = vpop.f32.mrf.mxu3 }
 0x9df   :  { %v5093_v36 = vadd.f32 %v5092_v23, %v5067_v57 }
 0x9e0   :  { %v5121_v56 = vpop.f32.mrf.mxu1 }
 0x9e1   :  { %v5124_v0 = vadd.f32 %v5121_v56, %v5093_v36 }
 0x9e3   :  { %v5154_v46 = vadd.f32 %v5151_v51, %v5124_v0 }
 0x9e5   :  { %v5268_v13 = vpop.f32.mrf.mxu2 }
 0x9e6   :  { %v5178_v3 = vpop.f32.mrf.mxu3 }
 0x9e7   :  { %v5181_v62 = vadd.f32 %v5178_v3, %v5154_v46 }
 0x9e8   :  { %v5238_v27 = vpop.f32.mrf.mxu1 }
 0x9e9   :  { %v5211_v59 = vadd.f32 %v5208_v9, %v5181_v62 }
 0x9eb   :  { %v5241_v29 = vadd.f32 %v5238_v27, %v5211_v59 }
 0x9ed   :  { %v5271_v60 = vadd.f32 %v5268_v13, %v5241_v29 }
 0x9ee   :  { %v5298_v61 = vpop.f32.mrf.mxu3 }
 0x9ef   :  { %v5301_v44 = vadd.f32 %v5298_v61, %v5271_v60  ;;  %v5324_v60 = vld [vmem:[%s9032_s18] sm:$0xf] }
 0x9f1   :  { %v5307_v1 = vadd.f32 %v5305_v35, %v5301_v44  ;;  %v5319_v44 = vld [vmem:[%s9033_s23] sm:$0xff] }
 0x9f3   :  { %v5308_v30 = vmax.f32 %v5307_v1, 0.0  ;;  %v5613_v1 = vrot.slane %v5319_v44, 4 }
 0x9f5   :  { %v5309_v47 = vadd.f32 %v5308_v30, %v8683_v11  ;;  %v5321_v30 = vld [vmem:[%s9033_s23 + $0x10] sm:$0xff] }
 0x9f7   :  { %v8743_v38 = vadd.f32 %v5309_v47, %v8448_v37  ;;  %v5318_v37 = vld [vmem:[%s9029_s11] sm:$0xf] }
 0x9f9   :  { %5416 = vrot.lane.b32.xlu2 %v8743_v38, %s7225_s26  ;;  %5329 = vrot.lane.b32.xlu1 %v8743_v38, %s7218_s10 }
 0x9fa   :  { %5385 = vrot.lane.b32.xlu0 %v8743_v38, %s7231_s9 }
 0xa01   :  { %5536 = vrot.lane.b32.xlu2 %v8743_v38, %s7232_s13  ;;  %5505 = vrot.lane.b32.xlu1 %v8743_v38, %s7233_s17 }
 0xa02   :  { %5325 = vrot.lane.b32.xlu0 %v8743_v38, %s7234_s21 }
 0xa09   :  { %5600 = vperm.xlu2 %7119, %v5318_v37   ;;  %5567 = vrot.lane.b32.xlu1 %v8743_v38, %s7235_s25 }
 0xa0a   :  { %5474 = vrot.lane.b32.xlu0 %v8743_v38, %s7226_s28 }
 0xa53   :  { %v5417_v49 = vpop.permute.xlu2 %5416 }
 0xa54   :  { %v5419_v34 = vmul.f32 %v5418_v5, %v5417_v49 }
 0xa56   :  { %7022 = vmatpush.msk.msrb.mxu3 %vm3598_vm12, %v5419_v34 }
 0xa57   :  { %7023 = vmatmul.msk.f32.vlgmr.msrb.gmra.mxu3 %vm3595_vm13, %v5420_v31  ;;  %v5320_v31 = vld [vmem:[%s9033_s23 + $0x8] sm:$0xff] }
 0xa5b   :  { %v5537_v2 = vpop.permute.xlu2 %5536 }
 0xa5c   :  { %v5539_v58 = vmul.f32 %v5538_v42, %v5537_v2  ;;  %v5697_v2 = vrot.slane %v5320_v31, 4 }
 0xa5e   :  { %7030 = vmatpush.msk.msra.mxu3 %vm3598_vm12, %v5539_v58 }
 0xa5f   :  { %7031 = vmatmul.msk.f32.vlgmr.msra.gmra.mxu3 %vm3595_vm13, %v5540_v6 }
 0xa63   :  { %v5601_v27 = vpop.permute.xlu2 %5600 }
 0xa6b   :  { %v5330_v11 = vpop.permute.xlu1 %5329 }
 0xa6c   :  { %v5332_v28 = vmul.f32 %v5331_v63, %v5330_v11  ;;  %v5386_v17 = vpop.permute.xlu0 %5385 }
 0xa6d   :  { %v5388_v24 = vmul.f32 %v5387_v48, %v5386_v17 }
 0xa6e   :  { %7016 = vmatpush.msk.msrb.mxu0 %vm3598_vm12, %v5332_v28 }
 0xa6f   :  { %7020 = vmatpush.msk.msrb.mxu2 %vm3598_vm12, %v5388_v24  ;;  %7017 = vmatmul.msk.f32.vlgmr.msrb.gmra.mxu0 %vm3595_vm13, %v5334_v16  ;;  %v5323_v16 = vld [vmem:[%s9033_s23 + $0x20] sm:$0xf] }
 0xa70   :  { %7024 = vmatpush.msk.msra.mxu0 %vm3598_vm12, %v8743_v38  ;;  %7021 = vmatmul.msk.f32.vlgmr.msrb.gmra.mxu2 %vm3595_vm13, %v5314_v25 }
 0xa73   :  { %v5506_v21 = vpop.permute.xlu1 %5505 }
 0xa74   :  { %v5508_v19 = vmul.f32 %v5507_v41, %v5506_v21  ;;  %v5326_v52 = vpop.permute.xlu0 %5325  ;;  %v6007_v21 = vld [vmem:[#allocation4 + $0x3e8] sm:$0xff] }
 0xa75   :  { %v5328_v8 = vmul.f32 %v5327_v12, %v5326_v52  ;;  %v6003_v52 = vld [vmem:[#allocation4 + $0x3c8] sm:$0xff] }
 0xa76   :  { %7028 = vmatpush.msk.msra.mxu2 %vm3598_vm12, %v5508_v19  ;;  %v6002_v19 = vld [vmem:[#allocation4 + $0x3c0] sm:$0xff] }
 0xa77   :  { %7018 = vmatpush.msk.msrb.mxu1 %vm3598_vm12, %v5328_v8  ;;  %7025 = vmatmul.msk.f32.vlgmr.msra.gmra.mxu0 %vm3595_vm13, %v5315_v55  ;;  %v5998_v8 = vld [vmem:[#allocation4 + $0x3a0] sm:$0xff]  ;;  %v5999_v55 = vld [vmem:[#allocation4 + $0x3a8] sm:$0xff] }
 0xa78   :  { %7019 = vmatmul.msk.f32.vlgmr.msrb.gmra.mxu1 %vm3595_vm13, %v5313_v53  ;;  %7029 = vmatmul.msk.f32.vlgmr.msra.gmra.mxu2 %vm3595_vm13, %v5316_v45  ;;  %v5322_v53 = vld [vmem:[%s9033_s23 + $0x18] sm:$0xff] }
 0xa79   :  { %v5814_v28 = vrot.slane %v5322_v53, 4 }
 0xa7b   :  { %v5568_v22 = vpop.permute.xlu1 %5567 }
 0xa7c   :  { %v5570_v50 = vmul.f32 %v8801_v26, %v5568_v22  ;;  %v5475_v10 = vpop.permute.xlu0 %5474 }
 0xa7d   :  { %v5477_v14 = vmul.f32 %v5476_v20, %v5475_v10  ;;  %v5986_v10 = vld [vmem:[#allocation4 + $0x340] sm:$0xff] }
 0xa7e   :  { %7032 = vmatpush.msk.msrb.mxu0 %vm3598_vm12, %v5570_v50 }
 0xa7f   :  { %7026 = vmatpush.msk.msra.mxu1 %vm3598_vm12, %v5477_v14  ;;  %7033 = vmatmul.msk.f32.vlgmr.msrb.gmra.mxu0 %vm3595_vm13, %v5317_v15 }
 0xa80   :  { %7027 = vmatmul.msk.f32.vlgmr.msra.gmra.mxu1 %vm3595_vm13, %v5478_v40  ;;  %v5987_v40 = vld [vmem:[#allocation4 + $0x348] sm:$0xff] }
 0xada   :  { %v5443_v54 = vpop.f32.mrf.mxu3 }
 0xae2   :  { %v5563_v51 = vpop.f32.mrf.mxu3 }
 0xaec   :  { %v5357_v18 = vpop.f32.mrf.mxu0 }
 0xaf3   :  { %v5412_v4 = vpop.f32.mrf.mxu2 }
 0xaf4   :  { %v5470_v39 = vpop.f32.mrf.mxu0 }
 0xaf5   :  { %v5382_v43 = vpop.f32.mrf.mxu1 }
 0xaf6   :  { %v5383_v32 = vadd.f32 %v5382_v43, %v5357_v18  ;;  %v5983_v43 = vld [vmem:[#allocation4 + $0x328] sm:$0xff] }
 0xaf8   :  { %v5415_v33 = vadd.f32 %v5412_v4, %v5383_v32  ;;  %v5982_v4 = vld [vmem:[#allocation4 + $0x320] sm:$0xff] }
 0xaf9   :  { %v5978_v32 = vld [vmem:[#allocation4 + $0x300] sm:$0xff] }
 0xafa   :  { %v5446_v23 = vadd.f32 %v5443_v54, %v5415_v33 }
 0xafb   :  { %v5532_v56 = vpop.f32.mrf.mxu2 }
 0xafc   :  { %v5473_v57 = vadd.f32 %v5470_v39, %v5446_v23  ;;  %v5594_v3 = vpop.f32.mrf.mxu0  ;;  %v5979_v39 = vld [vmem:[#allocation4 + $0x308] sm:$0xff]  ;;  %v5974_v23 = vld [vmem:[#allocation4 + $0x2e0] sm:$0xff] }
 0xafd   :  { %v5501_v36 = vpop.f32.mrf.mxu1 }
 0xafe   :  { %v5504_v0 = vadd.f32 %v5501_v36, %v5473_v57  ;;  %v5975_v57 = vld [vmem:[#allocation4 + $0x2e8] sm:$0xff] }
 0xb00   :  { %v5535_v46 = vadd.f32 %v5532_v56, %v5504_v0 }
 0xb02   :  { %v5566_v9 = vadd.f32 %v5563_v51, %v5535_v46  ;;  %v5970_v51 = vld [vmem:[#allocation4 + $0x2c0] sm:$0xff]  ;;  %v5971_v46 = vld [vmem:[#allocation4 + $0x2c8] sm:$0xff] }
 0xb04   :  { %v5597_v62 = vadd.f32 %v5594_v3, %v5566_v9 }
 0xb06   :  { %v5603_v59 = vadd.f32 %v5601_v27, %v5597_v62  ;;  %v5966_v62 = vld [vmem:[#allocation4 + $0x2a0] sm:$0xff]  ;;  %v5967_v27 = vld [vmem:[#allocation4 + $0x2a8] sm:$0xff] }
 0xb08   :  { %v5604_v13 = vmax.f32 %v5603_v59, 0.0 }
 0xb0a   :  { %v8815_v29 = vadd.f32 %v5604_v13, %v8743_v38 }
 0xb0c   :  { %5609 = vrot.lane.b32.xlu2 %v8815_v29, %s7218_s10  ;;  %5664 = vrot.lane.b32.xlu1 %v8815_v29, %s7231_s9  ;;  %s9034_s10 = sld [smem:[#allocation20_spill]] }
 0xb0d   :  { %5606 = vrot.lane.b32.xlu0 %v8815_v29, %s7234_s21 }
 0xb14   :  { %5781 = vrot.lane.b32.xlu2 %v8815_v29, %s7233_s17  ;;  %5694 = vrot.lane.b32.xlu1 %v8815_v29, %s7225_s26 }
 0xb15   :  { %5751 = vrot.lane.b32.xlu0 %v8815_v29, %s7226_s28 }
 0xb1c   :  { %5873 = vperm.xlu2 %7119, %v5324_v60   ;;  %5841 = vrot.lane.b32.xlu1 %v8815_v29, %s7235_s25  ;;  %v5962_v60 = vld [vmem:[#allocation4 + $0x280] sm:$0xff] }
 0xb1d   :  { %5811 = vrot.lane.b32.xlu0 %v8815_v29, %s7232_s13 }
 0xb66   :  { %v5610_v61 = vpop.permute.xlu2 %5609 }
 0xb67   :  { %v5611_v35 = vmul.f32 %v5610_v61, %v5331_v63  ;;  %v5754_v63 = vrot.slane %v5321_v30, 4  ;;  %v5963_v61 = vld [vmem:[#allocation4 + $0x288] sm:$0xff] }
 0xb69   :  { %7034 = vmatpush.msk.msrb.mxu1 %vm3598_vm12, %v5611_v35  ;;  %v5958_v35 = vld [vmem:[#allocation4 + $0x260] sm:$0xff] }
 0xb6a   :  { %7035 = vmatmul.msk.f32.vlgmr.msrb.gmra.mxu1 %vm3595_vm13, %v5613_v1  ;;  %v5959_v1 = vld [vmem:[#allocation4 + $0x268] sm:$0xff] }
 0xb6b   :  { %7042 = vmatpush.msk.msra.mxu1 %vm3598_vm12, %v8815_v29 }
 0xb6e   :  { %v5782_v47 = vpop.permute.xlu2 %5781 }
 0xb6f   :  { %v5783_v25 = vmul.f32 %v5782_v47, %v5507_v41 }
 0xb72   :  { %7043 = vmatmul.msk.f32.vlgmr.msra.gmra.mxu1 %vm3595_vm13, %v5321_v30 }
 0xb76   :  { %v5874_v47 = vpop.permute.xlu2 %5873 }
 0xb7e   :  { %v5665_v38 = vpop.permute.xlu1 %5664 }
 0xb7f   :  { %v5666_v37 = vmul.f32 %v5665_v38, %v5387_v48  ;;  %v5607_v49 = vpop.permute.xlu0 %5606  ;;  %v5954_v38 = vld [vmem:[#allocation4 + $0x240] sm:$0xff] }
 0xb80   :  { %v5608_v34 = vmul.f32 %v5607_v49, %v5327_v12  ;;  %v6006_v12 = vld [vmem:[#allocation4 + $0x3e0] sm:$0xff] }
 0xb81   :  { %7038 = vmatpush.msk.msrb.mxu3 %vm3598_vm12, %v5666_v37  ;;  %v5955_v37 = vld [vmem:[#allocation4 + $0x248] sm:$0xff] }
 0xb82   :  { %7036 = vmatpush.msk.msrb.mxu2 %vm3598_vm12, %v5608_v34  ;;  %7039 = vmatmul.msk.f32.vlgmr.msrb.gmra.mxu3 %vm3595_vm13, %v5320_v31  ;;  %v5950_v34 = vld [vmem:[#allocation4 + $0x220] sm:$0xff]  ;;  %v5951_v31 = vld [vmem:[#allocation4 + $0x228] sm:$0xff] }
 0xb83   :  { %7046 = vmatpush.msk.msra.mxu3 %vm3598_vm12, %v5783_v25  ;;  %7037 = vmatmul.msk.f32.vlgmr.msrb.gmra.mxu2 %vm3595_vm13, %v5319_v44  ;;  %v8874_v25 = vld [vmem:[%s9034_s10] sm:$0xff] }
 0xb86   :  { %v5695_v45 = vpop.permute.xlu1 %5694 }
 0xb87   :  { %v5696_v58 = vmul.f32 %v5695_v45, %v5418_v5  ;;  %v5752_v6 = vpop.permute.xlu0 %5751  ;;  %v6164_v45 = vrot.slane %v8874_v25, 3 }
 0xb88   :  { %v5753_v48 = vmul.f32 %v5752_v6, %v5476_v20  ;;  %v5991_v20 = vld [vmem:[#allocation4 + $0x368] sm:$0xff]  ;;  %v6008_v6 = vld [vmem:[#allocation4 + $0x3f0] sm:$0xff] }
 0xb89   :  { %7040 = vmatpush.msk.msra.mxu0 %vm3598_vm12, %v5696_v58 }
 0xb8a   :  { %7044 = vmatpush.msk.msra.mxu2 %vm3598_vm12, %v5753_v48  ;;  %7041 = vmatmul.msk.f32.vlgmr.msra.gmra.mxu0 %vm3595_vm13, %v5697_v2  ;;  %v5946_v48 = vld [vmem:[#allocation4 + $0x200] sm:$0xff] }
 0xb8b   :  { %7045 = vmatmul.msk.f32.vlgmr.msra.gmra.mxu2 %vm3595_vm13, %v5754_v63  ;;  %7047 = vmatmul.msk.f32.vlgmr.msra.gmra.mxu3 %vm3595_vm13, %v5322_v53  ;;  %v6009_v63 = vld [vmem:[#allocation4 + $0x3f8] sm:$0xff]  ;;  %v5947_v53 = vld [vmem:[#allocation4 + $0x208] sm:$0xff] }
 0xb8e   :  { %v5842_v11 = vpop.permute.xlu1 %5841 }
 0xb8f   :  { %v5843_v5 = vmul.f32 %v8801_v26, %v5842_v11  ;;  %v5812_v17 = vpop.permute.xlu0 %5811  ;;  %v5990_v26 = vld [vmem:[#allocation4 + $0x360] sm:$0xff]  ;;  %v6004_v11 = vld [vmem:[#allocation4 + $0x3d0] sm:$0xff] }
 0xb90   :  { %v5813_v24 = vmul.f32 %v5812_v17, %v5538_v42  ;;  %v5995_v42 = vld [vmem:[#allocation4 + $0x388] sm:$0xff]  ;;  %v6000_v17 = vld [vmem:[#allocation4 + $0x3b0] sm:$0xff] }
 0xb91   :  { %7050 = vmatpush.msk.msrb.mxu1 %vm3598_vm12, %v5843_v5  ;;  %v5943_v5 = vld [vmem:[#allocation4 + $0x1e8] sm:$0xff] }
 0xb92   :  { %7048 = vmatpush.msk.msrb.mxu0 %vm3598_vm12, %v5813_v24  ;;  %7051 = vmatmul.msk.f32.vlgmr.msrb.gmra.mxu1 %vm3595_vm13, %v5323_v16  ;;  %v6001_v16 = vld [vmem:[#allocation4 + $0x3b8] sm:$0xff]  ;;  %v5938_v24 = vld [vmem:[#allocation4 + $0x1c0] sm:$0xff] }
 0xb93   :  { %7049 = vmatmul.msk.f32.vlgmr.msrb.gmra.mxu0 %vm3595_vm13, %v5814_v28  ;;  %6207 = vmatpush.msra.mxu1 %v6007_v21  ;;  %v5942_v28 = vld [vmem:[#allocation4 + $0x1e0] sm:$0xff]  ;;  %v5997_v21 = vld [vmem:[#allocation4 + $0x398] sm:$0xff] }
 0xb94   :  { %6187 = vmatpush.msra.mxu0 %v6006_v12  ;;  %v5996_v12 = vld [vmem:[#allocation4 + $0x390] sm:$0xff] }
 0xb95   :  { %6208 = vmatpush.msra.mxu1 %v6003_v52  ;;  %v5935_v52 = vld [vmem:[#allocation4 + $0x1a8] sm:$0xff] }
 0xb96   :  { %6188 = vmatpush.msra.mxu0 %v6002_v19  ;;  %v5934_v19 = vld [vmem:[#allocation4 + $0x1a0] sm:$0xff] }
 0xb97   :  { %6209 = vmatpush.msra.mxu1 %v5999_v55  ;;  %v5993_v55 = vld [vmem:[#allocation4 + $0x378] sm:$0xff] }
 0xb98   :  { %6189 = vmatpush.msra.mxu0 %v5998_v8  ;;  %v5992_v8 = vld [vmem:[#allocation4 + $0x370] sm:$0xff] }
 0xb99   :  { %6210 = vmatpush.msra.mxu1 %v5995_v42  ;;  %v5931_v42 = vld [vmem:[#allocation4 + $0x188] sm:$0xff] }
 0xb9a   :  { %6190 = vmatpush.msra.mxu0 %v5994_v7  ;;  %v5930_v7 = vld [vmem:[#allocation4 + $0x180] sm:$0xff] }
 0xb9b   :  { %6211 = vmatpush.msra.mxu1 %v5991_v20  ;;  %v5989_v20 = vld [vmem:[#allocation4 + $0x358] sm:$0xff] }
 0xb9c   :  { %6191 = vmatpush.msra.mxu0 %v5990_v26  ;;  %v5988_v26 = vld [vmem:[#allocation4 + $0x350] sm:$0xff] }
 0xb9d   :  { %6212 = vmatpush.msra.mxu1 %v5987_v40  ;;  %v5985_v40 = vld [vmem:[#allocation4 + $0x338] sm:$0xff] }
 0xb9e   :  { %6192 = vmatpush.msra.mxu0 %v5986_v10  ;;  %v5984_v10 = vld [vmem:[#allocation4 + $0x330] sm:$0xff] }
 0xb9f   :  { %6213 = vmatpush.msra.mxu1 %v5983_v43  ;;  %v5918_v43 = vld [vmem:[#allocation4 + $0x120] sm:$0xff] }
 0xba0   :  { %6193 = vmatpush.msra.mxu0 %v5982_v4  ;;  %v5981_v4 = vld [vmem:[#allocation4 + $0x318] sm:$0xff] }
 0xba1   :  { %6214 = vmatpush.msra.mxu1 %v5979_v39  ;;  %v5977_v39 = vld [vmem:[#allocation4 + $0x2f8] sm:$0xff] }
 0xba2   :  { %6194 = vmatpush.msra.mxu0 %v5978_v32  ;;  %v5976_v32 = vld [vmem:[#allocation4 + $0x2f0] sm:$0xff] }
 0xba3   :  { %6215 = vmatpush.msra.mxu1 %v5975_v57  ;;  %v5972_v57 = vld [vmem:[#allocation4 + $0x2d0] sm:$0xff] }
 0xba4   :  { %6195 = vmatpush.msra.mxu0 %v5974_v23  ;;  %v5915_v23 = vld [vmem:[#allocation4 + $0x108] sm:$0xff] }
 0xba5   :  { %6216 = vmatpush.msra.mxu1 %v5971_v46  ;;  %v5969_v46 = vld [vmem:[#allocation4 + $0x2b8] sm:$0xff] }
 0xba6   :  { %6196 = vmatpush.msra.mxu0 %v5970_v51  ;;  %v5968_v51 = vld [vmem:[#allocation4 + $0x2b0] sm:$0xff] }
 0xba7   :  { %6217 = vmatpush.msra.mxu1 %v5967_v27  ;;  %v5965_v27 = vld [vmem:[#allocation4 + $0x298] sm:$0xff] }
 0xba8   :  { %6197 = vmatpush.msra.mxu0 %v5966_v62  ;;  %v5964_v62 = vld [vmem:[#allocation4 + $0x290] sm:$0xff] }
 0xba9   :  { %6218 = vmatpush.msra.mxu1 %v5963_v61  ;;  %v5961_v61 = vld [vmem:[#allocation4 + $0x278] sm:$0xff] }
 0xbaa   :  { %6198 = vmatpush.msra.mxu0 %v5962_v60  ;;  %v5960_v60 = vld [vmem:[#allocation4 + $0x270] sm:$0xff] }
 0xbab   :  { %6219 = vmatpush.msra.mxu1 %v5959_v1  ;;  %v5956_v1 = vld [vmem:[#allocation4 + $0x250] sm:$0xff] }
 0xbac   :  { %6199 = vmatpush.msra.mxu0 %v5958_v35  ;;  %v5899_v35 = vld [vmem:[#allocation4 + $0x88] sm:$0xff] }
 0xbad   :  { %6220 = vmatpush.msra.mxu1 %v5955_v37  ;;  %v5952_v37 = vld [vmem:[#allocation4 + $0x230] sm:$0xff] }
 0xbae   :  { %6200 = vmatpush.msra.mxu0 %v5954_v38  ;;  %v5895_v38 = vld [vmem:[#allocation4 + $0x68] sm:$0xff] }
 0xbaf   :  { %6221 = vmatpush.msra.mxu1 %v5951_v31  ;;  %v5891_v31 = vld [vmem:[#allocation4 + $0x48] sm:$0xff] }
 0xbb0   :  { %6201 = vmatpush.msra.mxu0 %v5950_v34  ;;  %v5890_v34 = vld [vmem:[#allocation4 + $0x40] sm:$0xff] }
 0xbb1   :  { %6222 = vmatpush.msra.mxu1 %v5947_v53  ;;  %v5887_v53 = vld [vmem:[#allocation4 + $0x28] sm:$0xff] }
 0xbb2   :  { %6202 = vmatpush.msra.mxu0 %v5946_v48  ;;  %v5886_v48 = vld [vmem:[#allocation4 + $0x20] sm:$0xff] }
 0xbb3   :  { %6287 = vmatpush.msrb.mxu1 %v5943_v5  ;;  %v5937_v5 = vld [vmem:[#allocation4 + $0x1b8] sm:$0xff] }
 0xbb4   :  { %6267 = vmatpush.msrb.mxu0 %v5942_v28  ;;  %v5936_v28 = vld [vmem:[#allocation4 + $0x1b0] sm:$0xff] }
 0xbb6   :  { %6268 = vmatpush.msrb.mxu0 %v5938_v24  ;;  %v5928_v24 = vld [vmem:[#allocation4 + $0x170] sm:$0xff] }
 0xbb8   :  { %6269 = vmatpush.msrb.mxu0 %v5934_v19  ;;  %v5920_v19 = vld [vmem:[#allocation4 + $0x130] sm:$0xff] }
 0xbba   :  { %6270 = vmatpush.msrb.mxu0 %v5930_v7  ;;  %v5912_v7 = vld [vmem:[#allocation4 + $0xf0] sm:$0xff] }
 0xbe7   :  { %v5636_v41 = vpop.f32.mrf.mxu1 }
 0xbef   :  { %v5747_v18 = vpop.f32.mrf.mxu1 }
 0xc05   :  { %v5690_v50 = vpop.f32.mrf.mxu3 }
 0xc06   :  { %v5661_v22 = vpop.f32.mrf.mxu2 }
 0xc07   :  { %v5662_v14 = vadd.f32 %v5661_v22, %v5636_v41  ;;  %v5720_v15 = vpop.f32.mrf.mxu0  ;;  %v5939_v41 = vld [vmem:[#allocation4 + $0x1c8] sm:$0xff]  ;;  %v5926_v22 = vld [vmem:[#allocation4 + $0x160] sm:$0xff] }
 0xc08   :  { %6288 = vmatpush.msrb.mxu1 %v5939_v41  ;;  %6271 = vmatpush.msrb.mxu0 %v5926_v22  ;;  %v5929_v41 = vld [vmem:[#allocation4 + $0x178] sm:$0xff]  ;;  %v5904_v22 = vld [vmem:[#allocation4 + $0xb0] sm:$0xff] }
 0xc09   :  { %v5693_v54 = vadd.f32 %v5690_v50, %v5662_v14  ;;  %v5927_v50 = vld [vmem:[#allocation4 + $0x168] sm:$0xff]  ;;  %v5922_v14 = vld [vmem:[#allocation4 + $0x140] sm:$0xff] }
 0xc0a   :  { %6289 = vmatpush.msrb.mxu1 %v5935_v52  ;;  %6272 = vmatpush.msrb.mxu0 %v5922_v14  ;;  %v5921_v52 = vld [vmem:[#allocation4 + $0x138] sm:$0xff]  ;;  %v5900_v14 = vld [vmem:[#allocation4 + $0x90] sm:$0xff] }
 0xc0b   :  { %v5723_v33 = vadd.f32 %v5720_v15, %v5693_v54  ;;  %v5923_v15 = vld [vmem:[#allocation4 + $0x148] sm:$0xff] }
 0xc0c   :  { %6290 = vmatpush.msrb.mxu1 %v5931_v42  ;;  %v5919_v54 = vld [vmem:[#allocation4 + $0x128] sm:$0xff]  ;;  %6273 = vmatpush.msrb.mxu0 %v5918_v43  ;;  %v5913_v42 = vld [vmem:[#allocation4 + $0xf8] sm:$0xff]  ;;  %v5892_v43 = vld [vmem:[#allocation4 + $0x50] sm:$0xff] }
 0xc0d   :  { %v5750_v36 = vadd.f32 %v5747_v18, %v5723_v33  ;;  %v5980_v18 = vld [vmem:[#allocation4 + $0x310] sm:$0xff]  ;;  %v5914_v33 = vld [vmem:[#allocation4 + $0x100] sm:$0xff] }
 0xc0e   :  { %v5777_v56 = vpop.f32.mrf.mxu2  ;;  %v5807_v0 = vpop.f32.mrf.mxu3  ;;  %6291 = vmatpush.msrb.mxu1 %v5927_v50  ;;  %6274 = vmatpush.msrb.mxu0 %v5914_v33  ;;  %v5905_v50 = vld [vmem:[#allocation4 + $0xb8] sm:$0xff]  ;;  %v5884_v33 = vld [vmem:[#allocation4 + $0x10] sm:$0xff] }
 0xc0f   :  { %v5780_v3 = vadd.f32 %v5777_v56, %v5750_v36  ;;  %v5867_v13 = vpop.f32.mrf.mxu1  ;;  %v5973_v36 = vld [vmem:[#allocation4 + $0x2d8] sm:$0xff]  ;;  %v5910_v56 = vld [vmem:[#allocation4 + $0xe0] sm:$0xff] }
 0xc10   :  { %v5837_v9 = vpop.f32.mrf.mxu0  ;;  %6292 = vmatpush.msrb.mxu1 %v5923_v15  ;;  %6275 = vmatpush.msrb.mxu0 %v5910_v56  ;;  %v5901_v15 = vld [vmem:[#allocation4 + $0x98] sm:$0xff]  ;;  %v6066_v56 = vld [vmem:[#allocation4 + $0x5c0] sm:$0xff] }
 0xc11   :  { %v5810_v59 = vadd.f32 %v5807_v0, %v5780_v3  ;;  %v5911_v0 = vld [vmem:[#allocation4 + $0xe8] sm:$0xff]  ;;  %v5906_v3 = vld [vmem:[#allocation4 + $0xc0] sm:$0xff] }
 0xc12   :  { %6293 = vmatpush.msrb.mxu1 %v5919_v54  ;;  %6276 = vmatpush.msrb.mxu0 %v5906_v3  ;;  %v5893_v54 = vld [vmem:[#allocation4 + $0x58] sm:$0xff]  ;;  %v6068_v3 = vld [vmem:[#allocation4 + $0x5d0] sm:$0xff] }
 0xc13   :  { %v5840_v44 = vadd.f32 %v5837_v9, %v5810_v59  ;;  %v5907_v9 = vld [vmem:[#allocation4 + $0xc8] sm:$0xff]  ;;  %v5902_v59 = vld [vmem:[#allocation4 + $0xa0] sm:$0xff] }
 0xc14   :  { %6294 = vmatpush.msrb.mxu1 %v5915_v23  ;;  %6277 = vmatpush.msrb.mxu0 %v5902_v59  ;;  %v5885_v23 = vld [vmem:[#allocation4 + $0x18] sm:$0xff]  ;;  %v6058_v59 = vld [vmem:[#allocation4 + $0x580] sm:$0xff] }
 0xc15   :  { %v5870_v30 = vadd.f32 %v5867_v13, %v5840_v44  ;;  %v5903_v13 = vld [vmem:[#allocation4 + $0xa8] sm:$0xff]  ;;  %v5898_v44 = vld [vmem:[#allocation4 + $0x80] sm:$0xff] }
 0xc16   :  { %6295 = vmatpush.msrb.mxu1 %v5911_v0  ;;  %6278 = vmatpush.msrb.mxu0 %v5898_v44  ;;  %v6071_v0 = vld [vmem:[#allocation4 + $0x5e8] sm:$0xff]  ;;  %v6073_v44 = vld [vmem:[#allocation4 + $0x5f8] sm:$0xff] }
 0xc17   :  { %v5876_v49 = vadd.f32 %v5874_v47, %v5870_v30  ;;  %v5957_v30 = vld [vmem:[#allocation4 + $0x258] sm:$0xff]  ;;  %v5894_v47 = vld [vmem:[#allocation4 + $0x60] sm:$0xff] }
 0xc18   :  { %6296 = vmatpush.msrb.mxu1 %v5907_v9  ;;  %6279 = vmatpush.msrb.mxu0 %v5894_v47  ;;  %v6062_v9 = vld [vmem:[#allocation4 + $0x5a0] sm:$0xff] }
 0xc19   :  { %v5877_v2 = vmax.f32 %v5876_v49, 0.0  ;;  %v5953_v49 = vld [vmem:[#allocation4 + $0x238] sm:$0xff] }
 0xc1a   :  { %6297 = vmatpush.msrb.mxu1 %v5903_v13  ;;  %6280 = vmatpush.msrb.mxu0 %v5890_v34  ;;  %v6046_v34 = vld [vmem:[#allocation4 + $0x520] sm:$0xff] }
 0xc1b   :  { %v8878_v58 = vadd.f32 %v5877_v2, %v8815_v29  ;;  %v6005_v29 = vld [vmem:[#allocation4 + $0x3d8] sm:$0xff]  ;;  %v5948_v2 = vld [vmem:[#allocation4 + $0x210] sm:$0xff] }
 0xc1c   :  { %6298 = vmatpush.msrb.mxu1 %v5899_v35  ;;  %6281 = vmatpush.msrb.mxu0 %v5886_v48  ;;  %v6059_v35 = vld [vmem:[#allocation4 + $0x588] sm:$0xff]  ;;  %v6052_v48 = vld [vmem:[#allocation4 + $0x550] sm:$0xff] }
 0xc1d   :  { %7052 = vmatpush.msk.msrb.mxu2 %vm3598_vm12, %v8878_v58  ;;  %7054 = vmatpush.msk.msrb.mxu3 %vm3598_vm12, %v8878_v58 }
 0xc1e   :  { %7055 = vmatmul.msk.f32.vlgmr.msrb.gmra.mxu3 %vm3595_vm13, %v6164_v45  ;;  %7053 = vmatmul.msk.f32.vlgmr.msrb.gmra.mxu2 %vm3595_vm13, %v8874_v25  ;;  %v5949_v45 = vld [vmem:[#allocation4 + $0x218] sm:$0xff] }
 0xc1f   :  { %6227 = vmatpush.msra.mxu2 %v6008_v6  ;;  %6247 = vmatpush.msra.mxu3 %v6009_v63  ;;  %v5944_v6 = vld [vmem:[#allocation4 + $0x1f0] sm:$0xff]  ;;  %v5945_v63 = vld [vmem:[#allocation4 + $0x1f8] sm:$0xff] }
 0xc20   :  { %6299 = vmatpush.msrb.mxu1 %v5895_v38  ;;  %v6060_v38 = vld [vmem:[#allocation4 + $0x590] sm:$0xff] }
 0xc21   :  { %6228 = vmatpush.msra.mxu2 %v6004_v11  ;;  %6248 = vmatpush.msra.mxu3 %v6005_v29  ;;  %v5940_v11 = vld [vmem:[#allocation4 + $0x1d0] sm:$0xff]  ;;  %v5941_v29 = vld [vmem:[#allocation4 + $0x1d8] sm:$0xff] }
 0xc22   :  { %6300 = vmatpush.msrb.mxu1 %v5891_v31  ;;  %v6056_v31 = vld [vmem:[#allocation4 + $0x570] sm:$0xff] }
 0xc23   :  { %6229 = vmatpush.msra.mxu2 %v6000_v17  ;;  %6249 = vmatpush.msra.mxu3 %v6001_v16  ;;  %v5932_v17 = vld [vmem:[#allocation4 + $0x190] sm:$0xff]  ;;  %v5933_v16 = vld [vmem:[#allocation4 + $0x198] sm:$0xff] }
 0xc24   :  { %6301 = vmatpush.msrb.mxu1 %v5887_v53  ;;  %v6038_v53 = vld [vmem:[#allocation4 + $0x4e0] sm:$0xff] }
 0xc25   :  { %6230 = vmatpush.msra.mxu2 %v5996_v12  ;;  %6250 = vmatpush.msra.mxu3 %v5997_v21  ;;  %v5924_v12 = vld [vmem:[#allocation4 + $0x150] sm:$0xff]  ;;  %v5925_v21 = vld [vmem:[#allocation4 + $0x158] sm:$0xff] }
 0xc27   :  { %6231 = vmatpush.msra.mxu2 %v5992_v8  ;;  %6251 = vmatpush.msra.mxu3 %v5993_v55  ;;  %v5916_v8 = vld [vmem:[#allocation4 + $0x110] sm:$0xff]  ;;  %v5917_v55 = vld [vmem:[#allocation4 + $0x118] sm:$0xff] }
 0xc29   :  { %6232 = vmatpush.msra.mxu2 %v5988_v26  ;;  %6252 = vmatpush.msra.mxu3 %v5989_v20  ;;  %v5908_v26 = vld [vmem:[#allocation4 + $0xd0] sm:$0xff]  ;;  %v5909_v20 = vld [vmem:[#allocation4 + $0xd8] sm:$0xff] }
 0xc2b   :  { %6233 = vmatpush.msra.mxu2 %v5984_v10  ;;  %6253 = vmatpush.msra.mxu3 %v5985_v40  ;;  %v5882_v10 = vld [vmem:[#allocation4] sm:$0xff]  ;;  %v5883_v40 = vld [vmem:[#allocation4 + $0x8] sm:$0xff] }
 0xc2c   :  { %6282 = vmatpush.msrb.mxu0 %v5882_v10  ;;  %6302 = vmatpush.msrb.mxu1 %v5883_v40  ;;  %v6037_v10 = vld [vmem:[#allocation4 + $0x4d8] sm:$0xff]  ;;  %v6031_v40 = vld [vmem:[#allocation4 + $0x4a8] sm:$0xff] }
 0xc2d   :  { %6234 = vmatpush.msra.mxu2 %v5980_v18  ;;  %6254 = vmatpush.msra.mxu3 %v5981_v4  ;;  %v5896_v18 = vld [vmem:[#allocation4 + $0x70] sm:$0xff]  ;;  %v5897_v4 = vld [vmem:[#allocation4 + $0x78] sm:$0xff] }
 0xc2f   :  { %6235 = vmatpush.msra.mxu2 %v5976_v32  ;;  %6255 = vmatpush.msra.mxu3 %v5977_v39  ;;  %v5888_v32 = vld [vmem:[#allocation4 + $0x30] sm:$0xff]  ;;  %v5889_v39 = vld [vmem:[#allocation4 + $0x38] sm:$0xff] }
 0xc31   :  { %6236 = vmatpush.msra.mxu2 %v5972_v57  ;;  %6256 = vmatpush.msra.mxu3 %v5973_v36  ;;  %v6070_v36 = vld [vmem:[#allocation4 + $0x5e0] sm:$0xff] }
 0xc33   :  { %6237 = vmatpush.msra.mxu2 %v5968_v51  ;;  %6257 = vmatpush.msra.mxu3 %v5969_v46  ;;  %v6072_v51 = vld [vmem:[#allocation4 + $0x5f0] sm:$0xff]  ;;  %v6067_v46 = vld [vmem:[#allocation4 + $0x5c8] sm:$0xff] }
 0xc35   :  { %6238 = vmatpush.msra.mxu2 %v5964_v62  ;;  %6258 = vmatpush.msra.mxu3 %v5965_v27  ;;  %v6063_v62 = vld [vmem:[#allocation4 + $0x5a8] sm:$0xff]  ;;  %v6064_v27 = vld [vmem:[#allocation4 + $0x5b0] sm:$0xff] }
 0xc37   :  { %6239 = vmatpush.msra.mxu2 %v5960_v60  ;;  %6259 = vmatpush.msra.mxu3 %v5961_v61  ;;  %v8890_v60 = vld [vmem:[%s9034_s10 + $0x8] sm:$0xf] }
 0xc38   :  { %v6054_v61 = vld [vmem:[#allocation4 + $0x560] sm:$0xff]  ;;  %v6349_v47 = vrot.slane %v8890_v60, 6 }
 0xc39   :  { %6240 = vmatpush.msra.mxu2 %v5956_v1  ;;  %6260 = vmatpush.msra.mxu3 %v5957_v30  ;;  %v6050_v1 = vld [vmem:[#allocation4 + $0x540] sm:$0xff]  ;;  %v6348_v30 = vrot.slane %v8874_v25, 6  ;;  %v6061_v25 = vld [vmem:[#allocation4 + $0x598] sm:$0xff] }
 0xc3b   :  { %6241 = vmatpush.msra.mxu2 %v5952_v37  ;;  %6261 = vmatpush.msra.mxu3 %v5953_v49  ;;  %v6069_v37 = vld [vmem:[#allocation4 + $0x5d8] sm:$0xff]  ;;  %v6055_v49 = vld [vmem:[#allocation4 + $0x568] sm:$0xff] }
 0xc3d   :  { %6242 = vmatpush.msra.mxu2 %v5948_v2  ;;  %6262 = vmatpush.msra.mxu3 %v5949_v45  ;;  %v6065_v2 = vld [vmem:[#allocation4 + $0x5b8] sm:$0xff]  ;;  %v6051_v45 = vld [vmem:[#allocation4 + $0x548] sm:$0xff] }
 0xc3f   :  { %6307 = vmatpush.msrb.mxu2 %v5944_v6  ;;  %6327 = vmatpush.msrb.mxu3 %v5945_v63  ;;  %v6042_v6 = vld [vmem:[#allocation4 + $0x500] sm:$0xff]  ;;  %v6350_v63 = vsel %vm475_vm5, %v6348_v30, %v6349_v47  ;;  %v6123_v30 = vld [vmem:[#allocation4 + $0x788] sm:$0xff]  ;;  %v6124_v47 = vld [vmem:[#allocation4 + $0x790] sm:$0xff] }
 0xc41   :  { %6308 = vmatpush.msrb.mxu2 %v5940_v11  ;;  %6328 = vmatpush.msrb.mxu3 %v5941_v29  ;;  %v6047_v11 = vld [vmem:[#allocation4 + $0x528] sm:$0xff]  ;;  %v6057_v29 = vld [vmem:[#allocation4 + $0x578] sm:$0xff] }
 0xc43   :  { %6309 = vmatpush.msrb.mxu2 %v5936_v28  ;;  %6329 = vmatpush.msrb.mxu3 %v5937_v5  ;;  %v6048_v28 = vld [vmem:[#allocation4 + $0x530] sm:$0xff]  ;;  %v6034_v5 = vld [vmem:[#allocation4 + $0x4c0] sm:$0xff] }
 0xc45   :  { %6310 = vmatpush.msrb.mxu2 %v5932_v17  ;;  %6330 = vmatpush.msrb.mxu3 %v5933_v16  ;;  %v6053_v17 = vld [vmem:[#allocation4 + $0x558] sm:$0xff]  ;;  %v6030_v16 = vld [vmem:[#allocation4 + $0x4a0] sm:$0xff] }
 0xc47   :  { %6311 = vmatpush.msrb.mxu2 %v5928_v24  ;;  %6331 = vmatpush.msrb.mxu3 %v5929_v41  ;;  %v6049_v24 = vld [vmem:[#allocation4 + $0x538] sm:$0xff]  ;;  %v6026_v41 = vld [vmem:[#allocation4 + $0x480] sm:$0xff] }
 0xc49   :  { %6312 = vmatpush.msrb.mxu2 %v5924_v12  ;;  %6332 = vmatpush.msrb.mxu3 %v5925_v21  ;;  %v6022_v12 = vld [vmem:[#allocation4 + $0x460] sm:$0xff] }
 0xc4a   :  { %v6018_v21 = vld [vmem:[#allocation4 + $0x440] sm:$0xff] }
 0xc4b   :  { %6313 = vmatpush.msrb.mxu2 %v5920_v19  ;;  %6333 = vmatpush.msrb.mxu3 %v5921_v52  ;;  %v6014_v19 = vld [vmem:[#allocation4 + $0x420] sm:$0xff] }
 0xc4c   :  { %v6010_v52 = vld [vmem:[#allocation4 + $0x400] sm:$0xff] }
 0xc4d   :  { %6314 = vmatpush.msrb.mxu2 %v5916_v8  ;;  %6334 = vmatpush.msrb.mxu3 %v5917_v55  ;;  %v6043_v8 = vld [vmem:[#allocation4 + $0x508] sm:$0xff]  ;;  %v6044_v55 = vld [vmem:[#allocation4 + $0x510] sm:$0xff] }
 0xc4f   :  { %6315 = vmatpush.msrb.mxu2 %v5912_v7  ;;  %6335 = vmatpush.msrb.mxu3 %v5913_v42  ;;  %v6045_v7 = vld [vmem:[#allocation4 + $0x518] sm:$0xff]  ;;  %v6039_v42 = vld [vmem:[#allocation4 + $0x4e8] sm:$0xff] }
 0xc51   :  { %6316 = vmatpush.msrb.mxu2 %v5908_v26  ;;  %6336 = vmatpush.msrb.mxu3 %v5909_v20  ;;  %v6040_v26 = vld [vmem:[#allocation4 + $0x4f0] sm:$0xff]  ;;  %v6041_v20 = vld [vmem:[#allocation4 + $0x4f8] sm:$0xff] }
 0xc53   :  { %6317 = vmatpush.msrb.mxu2 %v5904_v22  ;;  %6337 = vmatpush.msrb.mxu3 %v5905_v50  ;;  %v6035_v22 = vld [vmem:[#allocation4 + $0x4c8] sm:$0xff]  ;;  %v6036_v50 = vld [vmem:[#allocation4 + $0x4d0] sm:$0xff] }
 0xc55   :  { %6318 = vmatpush.msrb.mxu2 %v5900_v14  ;;  %6338 = vmatpush.msrb.mxu3 %v5901_v15  ;;  %v6033_v14 = vld [vmem:[#allocation4 + $0x4b8] sm:$0xff]  ;;  %v6027_v15 = vld [vmem:[#allocation4 + $0x488] sm:$0xff] }
 0xc57   :  { %6319 = vmatpush.msrb.mxu2 %v5896_v18  ;;  %6339 = vmatpush.msrb.mxu3 %v5897_v4  ;;  %v6028_v18 = vld [vmem:[#allocation4 + $0x490] sm:$0xff]  ;;  %v6029_v4 = vld [vmem:[#allocation4 + $0x498] sm:$0xff] }
 0xc59   :  { %6320 = vmatpush.msrb.mxu2 %v5892_v43  ;;  %6340 = vmatpush.msrb.mxu3 %v5893_v54  ;;  %v6023_v43 = vld [vmem:[#allocation4 + $0x468] sm:$0xff]  ;;  %v6024_v54 = vld [vmem:[#allocation4 + $0x470] sm:$0xff] }
 0xc5b   :  { %6321 = vmatpush.msrb.mxu2 %v5888_v32  ;;  %6341 = vmatpush.msrb.mxu3 %v5889_v39  ;;  %v6025_v32 = vld [vmem:[#allocation4 + $0x478] sm:$0xff]  ;;  %v6019_v39 = vld [vmem:[#allocation4 + $0x448] sm:$0xff] }
 0xc5d   :  { %6322 = vmatpush.msrb.mxu2 %v5884_v33  ;;  %6342 = vmatpush.msrb.mxu3 %v5885_v23  ;;  %v6020_v33 = vld [vmem:[#allocation4 + $0x450] sm:$0xff]  ;;  %v6021_v23 = vld [vmem:[#allocation4 + $0x458] sm:$0xff] }
 0xca1   :  { %v6184_v57 = vpop.f32.mrf.mxu3  ;;  %v6161_v13 = vpop.f32.mrf.mxu2 }
 0xca2   :  { %6203 = vmatmul.f32.vlgmr.msra.gmra.mxu0 %v6184_v57  ;;  %6223 = vmatmul.f32.vlgmr.msra.gmra.mxu1 %v6184_v57 }
 0xca3   :  { %6243 = vmatmul.f32.vlgmr.msra.gmra.mxu2 %v6184_v57  ;;  %6263 = vmatmul.f32.vlgmr.msra.gmra.mxu3 %v6184_v57  ;;  %v6015_v57 = vld [vmem:[#allocation4 + $0x428] sm:$0xff] }
 0xca4   :  { %7056 = vmatpush.msk.msra.mxu0 %vm3598_vm12, %v8878_v58  ;;  %6373 = vmatpush.msra.mxu1 %v6070_v36  ;;  %v6016_v36 = vld [vmem:[#allocation4 + $0x430] sm:$0xff] }
 0xca5   :  { %6393 = vmatpush.msra.mxu2 %v6071_v0  ;;  %6413 = vmatpush.msra.mxu3 %v6072_v51  ;;  %v6011_v0 = vld [vmem:[#allocation4 + $0x408] sm:$0xff]  ;;  %v6012_v51 = vld [vmem:[#allocation4 + $0x410] sm:$0xff] }
 0xca6   :  { %6374 = vmatpush.msra.mxu1 %v6066_v56  ;;  %v6017_v56 = vld [vmem:[#allocation4 + $0x438] sm:$0xff] }
 0xca7   :  { %6394 = vmatpush.msra.mxu2 %v6067_v46  ;;  %6414 = vmatpush.msra.mxu3 %v6068_v3  ;;  %v6013_v46 = vld [vmem:[#allocation4 + $0x418] sm:$0xff]  ;;  %v6134_v3 = vld [vmem:[#allocation4 + $0x7e0] sm:$0xff] }
 0xca8   :  { %6375 = vmatpush.msra.mxu1 %v6062_v9  ;;  %v6135_v9 = vld [vmem:[#allocation4 + $0x7e8] sm:$0xff] }
 0xca9   :  { %6395 = vmatpush.msra.mxu2 %v6063_v62  ;;  %6415 = vmatpush.msra.mxu3 %v6064_v27  ;;  %v6136_v62 = vld [vmem:[#allocation4 + $0x7f0] sm:$0xff]  ;;  %v6130_v27 = vld [vmem:[#allocation4 + $0x7c0] sm:$0xff] }
 0xcaa   :  { %6376 = vmatpush.msra.mxu1 %v6058_v59  ;;  %6283 = vmatmul.f32.vlgmr.msrb.gmra.mxu0 %v6161_v13  ;;  %v6131_v59 = vld [vmem:[#allocation4 + $0x7c8] sm:$0xff] }
 0xcab   :  { %6303 = vmatmul.f32.vlgmr.msrb.gmra.mxu1 %v6161_v13  ;;  %6323 = vmatmul.f32.vlgmr.msrb.gmra.mxu2 %v6161_v13 }
 0xcac   :  { %6343 = vmatmul.f32.vlgmr.msrb.gmra.mxu3 %v6161_v13  ;;  %6377 = vmatpush.msra.mxu1 %v6054_v61  ;;  %v6132_v13 = vld [vmem:[#allocation4 + $0x7d0] sm:$0xff]  ;;  %v6126_v61 = vld [vmem:[#allocation4 + $0x7a0] sm:$0xff] }
 0xcad   :  { %6433 = vmatpush.msrb.mxu0 %v6073_v44  ;;  %6396 = vmatpush.msra.mxu2 %v6059_v35  ;;  %v6127_v44 = vld [vmem:[#allocation4 + $0x7a8] sm:$0xff]  ;;  %v6128_v35 = vld [vmem:[#allocation4 + $0x7b0] sm:$0xff] }
 0xcae   :  { %6378 = vmatpush.msra.mxu1 %v6050_v1  ;;  %6416 = vmatpush.msra.mxu3 %v6060_v38  ;;  %v6122_v1 = vld [vmem:[#allocation4 + $0x780] sm:$0xff] }
 0xcaf   :  { %6434 = vmatpush.msrb.mxu0 %v6069_v37  ;;  %6397 = vmatpush.msra.mxu2 %v6055_v49  ;;  %v6118_v38 = vld [vmem:[#allocation4 + $0x760] sm:$0xff]  ;;  %v6119_v37 = vld [vmem:[#allocation4 + $0x768] sm:$0xff] }
 0xcb0   :  { %6379 = vmatpush.msra.mxu1 %v6046_v34  ;;  %6417 = vmatpush.msra.mxu3 %v6056_v31  ;;  %v6120_v34 = vld [vmem:[#allocation4 + $0x770] sm:$0xff]  ;;  %v6114_v31 = vld [vmem:[#allocation4 + $0x740] sm:$0xff] }
 0xcb1   :  { %6435 = vmatpush.msrb.mxu0 %v6065_v2  ;;  %6398 = vmatpush.msra.mxu2 %v6051_v45  ;;  %v6115_v2 = vld [vmem:[#allocation4 + $0x748] sm:$0xff]  ;;  %v6116_v45 = vld [vmem:[#allocation4 + $0x750] sm:$0xff] }
 0xcb2   :  { %6380 = vmatpush.msra.mxu1 %v6042_v6  ;;  %7057 = vmatmul.msk.f32.vlgmr.msra.gmra.mxu0 %vm3595_vm13, %v6350_v63  ;;  %v6110_v6 = vld [vmem:[#allocation4 + $0x720] sm:$0xff]  ;;  %v6111_v63 = vld [vmem:[#allocation4 + $0x728] sm:$0xff] }
 0xcb3   :  { %6436 = vmatpush.msrb.mxu0 %v6061_v25  ;;  %6418 = vmatpush.msra.mxu3 %v6052_v48  ;;  %v6112_v25 = vld [vmem:[#allocation4 + $0x730] sm:$0xff]  ;;  %v6106_v48 = vld [vmem:[#allocation4 + $0x700] sm:$0xff] }
 0xcb4   :  { %6381 = vmatpush.msra.mxu1 %v6038_v53  ;;  %6399 = vmatpush.msra.mxu2 %v6047_v11  ;;  %v6107_v53 = vld [vmem:[#allocation4 + $0x708] sm:$0xff]  ;;  %v6108_v11 = vld [vmem:[#allocation4 + $0x710] sm:$0xff] }
 0xcb5   :  { %6437 = vmatpush.msrb.mxu0 %v6057_v29  ;;  %6419 = vmatpush.msra.mxu3 %v6048_v28  ;;  %v6102_v29 = vld [vmem:[#allocation4 + $0x6e0] sm:$0xff]  ;;  %v6103_v28 = vld [vmem:[#allocation4 + $0x6e8] sm:$0xff] }
 0xcb6   :  { %6382 = vmatpush.msra.mxu1 %v6034_v5  ;;  %6400 = vmatpush.msra.mxu2 %v6043_v8 }
 0xcb7   :  { %6438 = vmatpush.msrb.mxu0 %v6053_v17  ;;  %6420 = vmatpush.msra.mxu3 %v6044_v55  ;;  %v6104_v17 = vld [vmem:[#allocation4 + $0x6f0] sm:$0xff]  ;;  %v6137_v55 = vld [vmem:[#allocation4 + $0x7f8] sm:$0xff] }
 0xcb8   :  { %6383 = vmatpush.msra.mxu1 %v6030_v16  ;;  %6401 = vmatpush.msra.mxu2 %v6039_v42  ;;  %v6129_v42 = vld [vmem:[#allocation4 + $0x7b8] sm:$0xff] }
 0xcb9   :  { %6439 = vmatpush.msrb.mxu0 %v6049_v24  ;;  %6421 = vmatpush.msra.mxu3 %v6040_v26  ;;  %v6098_v24 = vld [vmem:[#allocation4 + $0x6c0] sm:$0xff]  ;;  %v6457_v26 = vrot.slane %v8890_v60, 1 }
 0xcba   :  { %6384 = vmatpush.msra.mxu1 %v6026_v41  ;;  %6402 = vmatpush.msra.mxu2 %v6035_v22  ;;  %v6099_v41 = vld [vmem:[#allocation4 + $0x6c8] sm:$0xff]  ;;  %v6121_v22 = vld [vmem:[#allocation4 + $0x778] sm:$0xff]  ;;  %v6090_v60 = vld [vmem:[#allocation4 + $0x680] sm:$0xff] }
 0xcbb   :  { %6440 = vmatpush.msrb.mxu0 %v6045_v7  ;;  %6422 = vmatpush.msra.mxu3 %v6036_v50  ;;  %v6133_v7 = vld [vmem:[#allocation4 + $0x7d8] sm:$0xff] }
 0xcbc   :  { %6385 = vmatpush.msra.mxu1 %v6022_v12  ;;  %6403 = vmatpush.msra.mxu2 %v6031_v40  ;;  %v6100_v12 = vld [vmem:[#allocation4 + $0x6d0] sm:$0xff]  ;;  %v6117_v50 = vld [vmem:[#allocation4 + $0x758] sm:$0xff] }
 0xcbd   :  { %6441 = vmatpush.msrb.mxu0 %v6041_v20  ;;  %v6125_v20 = vld [vmem:[#allocation4 + $0x798] sm:$0xff] }
 0xcbe   :  { %6386 = vmatpush.msra.mxu1 %v6018_v21  ;;  %6404 = vmatpush.msra.mxu2 %v6027_v15  ;;  %v6094_v21 = vld [vmem:[#allocation4 + $0x6a0] sm:$0xff]  ;;  %v6109_v40 = vld [vmem:[#allocation4 + $0x718] sm:$0xff] }
 0xcbf   :  { %6442 = vmatpush.msrb.mxu0 %v6037_v10  ;;  %v6113_v10 = vld [vmem:[#allocation4 + $0x738] sm:$0xff] }
 0xcc0   :  { %6387 = vmatpush.msra.mxu1 %v6014_v19  ;;  %6405 = vmatpush.msra.mxu2 %v6023_v43  ;;  %v6095_v19 = vld [vmem:[#allocation4 + $0x6a8] sm:$0xff]  ;;  %v6097_v15 = vld [vmem:[#allocation4 + $0x6b8] sm:$0xff] }
 0xcc1   :  { %6443 = vmatpush.msrb.mxu0 %v6033_v14  ;;  %v6101_v14 = vld [vmem:[#allocation4 + $0x6d8] sm:$0xff] }
 0xcc2   :  { %6388 = vmatpush.msra.mxu1 %v6010_v52  ;;  %6406 = vmatpush.msra.mxu2 %v6019_v39  ;;  %v6096_v52 = vld [vmem:[#allocation4 + $0x6b0] sm:$0xff]  ;;  %v6093_v43 = vld [vmem:[#allocation4 + $0x698] sm:$0xff] }
 0xcc3   :  { %6444 = vmatpush.msrb.mxu0 %v6029_v4  ;;  %v6092_v4 = vld [vmem:[#allocation4 + $0x690] sm:$0xff] }
 0xcc4   :  { %7058 = vmatpush.msk.msrb.mxu1 %vm3598_vm12, %v8878_v58  ;;  %v6032_v58 = vld [vmem:[#allocation4 + $0x4b0] sm:$0xff]  ;;  %6407 = vmatpush.msra.mxu2 %v6015_v57  ;;  %v6083_v57 = vld [vmem:[#allocation4 + $0x648] sm:$0xff] }
 0xcc5   :  { %6423 = vmatpush.msra.mxu3 %v6032_v58  ;;  %6445 = vmatpush.msrb.mxu0 %v6025_v32  ;;  %v6105_v58 = vld [vmem:[#allocation4 + $0x6f8] sm:$0xff]  ;;  %v6087_v32 = vld [vmem:[#allocation4 + $0x668] sm:$0xff]  ;;  %v6088_v39 = vld [vmem:[#allocation4 + $0x670] sm:$0xff] }
 0xcc6   :  { %6408 = vmatpush.msra.mxu2 %v6011_v0  ;;  %v6078_v0 = vld [vmem:[#allocation4 + $0x620] sm:$0xff] }
 0xcc7   :  { %6424 = vmatpush.msra.mxu3 %v6028_v18  ;;  %6446 = vmatpush.msrb.mxu0 %v6021_v23  ;;  %v6091_v18 = vld [vmem:[#allocation4 + $0x688] sm:$0xff]  ;;  %v6082_v23 = vld [vmem:[#allocation4 + $0x640] sm:$0xff] }
 0xcc8   :  { %6480 = vmatpush.msrb.mxu2 %v6134_v3  ;;  %v6081_v3 = vld [vmem:[#allocation4 + $0x638] sm:$0xff] }
 0xcc9   :  { %6425 = vmatpush.msra.mxu3 %v6024_v54  ;;  %6447 = vmatpush.msrb.mxu0 %v6017_v56  ;;  %v6086_v54 = vld [vmem:[#allocation4 + $0x660] sm:$0xff]  ;;  %v6085_v56 = vld [vmem:[#allocation4 + $0x658] sm:$0xff] }
 0xcca   :  { %6481 = vmatpush.msrb.mxu2 %v6130_v27  ;;  %v6076_v27 = vld [vmem:[#allocation4 + $0x610] sm:$0xff] }
 0xccb   :  { %6426 = vmatpush.msra.mxu3 %v6020_v33  ;;  %6448 = vmatpush.msrb.mxu0 %v6013_v46  ;;  %v6089_v33 = vld [vmem:[#allocation4 + $0x678] sm:$0xff]  ;;  %v6080_v46 = vld [vmem:[#allocation4 + $0x630] sm:$0xff] }
 0xccc   :  { %6482 = vmatpush.msrb.mxu2 %v6126_v61 }
 0xccd   :  { %6427 = vmatpush.msra.mxu3 %v6016_v36  ;;  %6520 = vmatpush.msra.mxu0 %v6136_v62  ;;  %v6084_v36 = vld [vmem:[#allocation4 + $0x650] sm:$0xff]  ;;  %v6075_v62 = vld [vmem:[#allocation4 + $0x608] sm:$0xff] }
 0xcce   :  { %6483 = vmatpush.msrb.mxu2 %v6122_v1 }
 0xccf   :  { %6428 = vmatpush.msra.mxu3 %v6012_v51  ;;  %6521 = vmatpush.msra.mxu0 %v6132_v13  ;;  %v6079_v51 = vld [vmem:[#allocation4 + $0x628] sm:$0xff]  ;;  %v5881_v13 = vld [vmem:[%s9035_s12] sm:$0x7] }
 0xcd0   :  { %6484 = vmatpush.msrb.mxu2 %v6118_v38  ;;  %6566 = vperm.xlu0 %7120, %v5881_v13  }
 0xcd1   :  { %6500 = vmatpush.msrb.mxu3 %v6135_v9  ;;  %6522 = vmatpush.msra.mxu0 %v6128_v35  ;;  %v6074_v9 = vld [vmem:[#allocation4 + $0x600] sm:$0xff] }
 0xcd2   :  { %6485 = vmatpush.msrb.mxu2 %v6114_v31 }
 0xcd3   :  { %6501 = vmatpush.msrb.mxu3 %v6131_v59  ;;  %6523 = vmatpush.msra.mxu0 %v6124_v47  ;;  %v6077_v59 = vld [vmem:[#allocation4 + $0x618] sm:$0xff] }
 0xcd4   :  { %6486 = vmatpush.msrb.mxu2 %v6110_v6 }
 0xcd5   :  { %6502 = vmatpush.msrb.mxu3 %v6127_v44  ;;  %6524 = vmatpush.msra.mxu0 %v6120_v34 }
 0xcd6   :  { %6487 = vmatpush.msrb.mxu2 %v6106_v48 }
 0xcd7   :  { %6503 = vmatpush.msrb.mxu3 %v6123_v30  ;;  %6525 = vmatpush.msra.mxu0 %v6116_v45 }
 0xcd8   :  { %6488 = vmatpush.msrb.mxu2 %v6102_v29 }
 0xcd9   :  { %6504 = vmatpush.msrb.mxu3 %v6119_v37  ;;  %6526 = vmatpush.msra.mxu0 %v6112_v25  ;;  %v6578_v37 = vld [vmem:[%s7394_s30] sm:$0x7] }
 0xcda   :  { %6489 = vmatpush.msrb.mxu2 %v6098_v24  ;;  %6581 = vperm.xlu1 %7121, %v6578_v37  }
 0xcdb   :  { %6505 = vmatpush.msrb.mxu3 %v6115_v2  ;;  %6527 = vmatpush.msra.mxu0 %v6108_v11 }
 0xcdc   :  { %6490 = vmatpush.msrb.mxu2 %v6094_v21 }
 0xcdd   :  { %6506 = vmatpush.msrb.mxu3 %v6111_v63  ;;  %6528 = vmatpush.msra.mxu0 %v6104_v17 }
 0xcde   :  { %6491 = vmatpush.msrb.mxu2 %v6090_v60 }
 0xcdf   :  { %6507 = vmatpush.msrb.mxu3 %v6107_v53  ;;  %6529 = vmatpush.msra.mxu0 %v6100_v12 }
 0xce0   :  { %6492 = vmatpush.msrb.mxu2 %v6086_v54 }
 0xce1   :  { %6508 = vmatpush.msrb.mxu3 %v6103_v28  ;;  %6530 = vmatpush.msra.mxu0 %v6096_v52 }
 0xce2   :  { %6493 = vmatpush.msrb.mxu2 %v6082_v23 }
 0xce3   :  { %6509 = vmatpush.msrb.mxu3 %v6099_v41  ;;  %6531 = vmatpush.msra.mxu0 %v6092_v4 }
 0xce4   :  { %6494 = vmatpush.msrb.mxu2 %v6078_v0 }
 0xce5   :  { %6510 = vmatpush.msrb.mxu3 %v6095_v19  ;;  %6532 = vmatpush.msra.mxu0 %v6088_v39 }
 0xce6   :  { %6495 = vmatpush.msrb.mxu2 %v6074_v9 }
 0xce7   :  { %6511 = vmatpush.msrb.mxu3 %v6091_v18  ;;  %6533 = vmatpush.msra.mxu0 %v6084_v36 }
 0xce9   :  { %6512 = vmatpush.msrb.mxu3 %v6087_v32  ;;  %6534 = vmatpush.msra.mxu0 %v6080_v46 }
 0xceb   :  { %6513 = vmatpush.msrb.mxu3 %v6083_v57  ;;  %6535 = vmatpush.msra.mxu0 %v6076_v27 }
 0xced   :  { %6514 = vmatpush.msrb.mxu3 %v6079_v51 }
 0xcef   :  { %6515 = vmatpush.msrb.mxu3 %v6075_v62 }
 0xd1f   :  { %v6204_v49 = vpop.f32.mrf.mxu0  ;;  %v6224_v61 = vpop.f32.mrf.mxu1 }
 0xd26   :  { %v6264_v47 = vpop.f32.mrf.mxu3  ;;  %v6244_v38 = vpop.f32.mrf.mxu2 }
 0xd27   :  { %v6284_v5 = vpop.f32.mrf.mxu0 }
 0xd28   :  { %v8898_v16 = vadd.f32 %v6284_v5, %v6204_v49  ;;  %v6304_v44 = vpop.f32.mrf.mxu1 }
 0xd29   :  { %v6305_v17 = vadd.f32 %v6304_v44, %v6224_v61 }
 0xd2e   :  { %v6324_v34 = vpop.f32.mrf.mxu2 }
 0xd2f   :  { %v6370_v8 = vpop.f32.mrf.mxu0  ;;  %v6344_v49 = vpop.f32.mrf.mxu3  ;;  %v6325_v45 = vadd.f32 %v6324_v34, %v6244_v38 }
 0xd30   :  { %6389 = vmatmul.f32.vlgmr.msra.gmra.mxu1 %v6370_v8  ;;  %6409 = vmatmul.f32.vlgmr.msra.gmra.mxu2 %v6370_v8  ;;  %v6345_v6 = vadd.f32 %v6344_v49, %v6264_v47 }
 0xd31   :  { %6429 = vmatmul.f32.vlgmr.msra.gmra.mxu3 %v6370_v8  ;;  %6449 = vmatmul.f32.vlgmr.msrb.gmra.mxu0 %v6370_v8 }
 0xd32   :  { %6540 = vmatpush.msra.mxu1 %v6137_v55 }
 0xd34   :  { %6541 = vmatpush.msra.mxu1 %v6133_v7  ;;  %v6577_v7 = vld [vmem:[%s7389_s4] sm:$0x7] }
 0xd36   :  { %6542 = vmatpush.msra.mxu1 %v6129_v42 }
 0xd38   :  { %7059 = vmatmul.msk.f32.vlgmr.msrb.gmra.mxu1 %vm3595_vm13, %v6457_v26 }
 0xd39   :  { %6543 = vmatpush.msra.mxu1 %v6125_v20 }
 0xd3b   :  { %6544 = vmatpush.msra.mxu1 %v6121_v22 }
 0xd3d   :  { %6545 = vmatpush.msra.mxu1 %v6117_v50 }
 0xd3f   :  { %6546 = vmatpush.msra.mxu1 %v6113_v10 }
 0xd41   :  { %6547 = vmatpush.msra.mxu1 %v6109_v40 }
 0xd42   :  { %v6567_v53 = vpop.permute.xlu0 %6566 }
 0xd43   :  { %6548 = vmatpush.msra.mxu1 %v6105_v58 }
 0xd45   :  { %6549 = vmatpush.msra.mxu1 %v6101_v14 }
 0xd47   :  { %6550 = vmatpush.msra.mxu1 %v6097_v15 }
 0xd49   :  { %6551 = vmatpush.msra.mxu1 %v6093_v43 }
 0xd4b   :  { %6552 = vmatpush.msra.mxu1 %v6089_v33 }
 0xd4c   :  { %v6582_v50 = vpop.permute.xlu1 %6581 }
 0xd4d   :  { %6553 = vmatpush.msra.mxu1 %v6085_v56 }
 0xd4f   :  { %6554 = vmatpush.msra.mxu1 %v6081_v3 }
 0xd51   :  { %6555 = vmatpush.msra.mxu1 %v6077_v59 }
 0xdad   :  { %v6390_v35 = vpop.f32.mrf.mxu1 }
 0xdae   :  { %v6453_v1 = vadd.f32 %v6390_v35, %v8898_v16  ;;  %v6450_v31 = vpop.f32.mrf.mxu0 }
 0xdaf   :  { %v6456_v25 = vadd.f32 %v6450_v31, %v6345_v6 }
 0xdb3   :  { %v6410_v63 = vpop.f32.mrf.mxu2 }
 0xdb4   :  { %v6430_v2 = vpop.f32.mrf.mxu3  ;;  %v6454_v41 = vadd.f32 %v6410_v63, %v6305_v17 }
 0xdb5   :  { %v6477_v30 = vpop.f32.mrf.mxu1  ;;  %v6455_v48 = vadd.f32 %v6430_v2, %v6325_v45 }
 0xdb6   :  { %6496 = vmatmul.f32.vlgmr.msrb.gmra.mxu2 %v6477_v30  ;;  %6516 = vmatmul.f32.vlgmr.msrb.gmra.mxu3 %v6477_v30 }
 0xdb7   :  { %6536 = vmatmul.f32.vlgmr.msra.gmra.mxu0 %v6477_v30  ;;  %6556 = vmatmul.f32.vlgmr.msra.gmra.mxu1 %v6477_v30 }
 0xe34   :  { %v6537_v11 = vpop.f32.mrf.mxu0  ;;  %v6557_v29 = vpop.f32.mrf.mxu1 }
 0xe35   :  { %v6562_v28 = vadd.f32 %v6537_v11, %v6455_v48  ;;  %v6563_v5 = vadd.f32 %v6557_v29, %v6456_v25 }
 0xe37   :  { %v6571_v16 = vadd.f32 %v6567_v53, %v6562_v28  ;;  %v6572_v24 = vadd.f32 %v6567_v53, %v6563_v5 }
 0xe39   :  { %v6575_v12 = vmax.f32 %v6571_v16, 0.0  ;;  %v6576_v21 = vmax.f32 %v6572_v24, 0.0  ;;  %v6497_v19 = vpop.f32.mrf.mxu2  ;;  %v6517_v52 = vpop.f32.mrf.mxu3 }
 0xe3a   :  { %v6560_v8 = vadd.f32 %v6497_v19, %v6453_v1  ;;  %v6561_v55 = vadd.f32 %v6517_v52, %v6454_v41 }
 0xe3b   :  { %7064 = vmatpush.msk.msrb.mxu0 %vm255_vm3, %v6575_v12  ;;  %7066 = vmatpush.msk.msrb.mxu1 %vm255_vm3, %v6576_v21 }
 0xe3c   :  { %v6569_v42 = vadd.f32 %v6567_v53, %v6560_v8  ;;  %v6570_v26 = vadd.f32 %v6567_v53, %v6561_v55  ;;  %7067 = vmatmul.msk.f32.vlgmr.msrb.gmra.mxu1 %vm252_vm4, %v6577_v7  ;;  %7065 = vmatmul.msk.f32.vlgmr.msrb.gmra.mxu0 %vm252_vm4, %v6577_v7 }
 0xe3e   :  { %v6573_v20 = vmax.f32 %v6569_v42, 0.0  ;;  %v6574_v22 = vmax.f32 %v6570_v26, 0.0 }
 0xe40   :  { %7060 = vmatpush.msk.msra.mxu2 %vm255_vm3, %v6573_v20  ;;  %7062 = vmatpush.msk.msra.mxu3 %vm255_vm3, %v6574_v22 }
 0xe41   :  { %7063 = vmatmul.msk.f32.vlgmr.msra.gmra.mxu3 %vm252_vm4, %v6577_v7  ;;  %7061 = vmatmul.msk.f32.vlgmr.msra.gmra.mxu2 %vm252_vm4, %v6577_v7 }
 0xeb9   :  { %v6676_v10 = vpop.f32.mrf.mxu1  ;;  %v6656_v40 = vpop.f32.mrf.mxu0 }
 0xeba   :  { %v6677_v58 = vadd.f32 %v6676_v10, %v6582_v50  ;;  %v6657_v14 = vadd.f32 %v6656_v40, %v6582_v50 }
 0xebc   :  { %v6684_v15 = vrot.slane %v6677_v58, 4 }
 0xebe   :  { %v6686_v60 = vsel %vm3598_vm12, %v6657_v14, %v6684_v15 }
 0xebf   :  { %6690 = vst [vmem:[%s7399_s20 + $0x8] sm:$0x77] %v6686_v60 }
 0xec4   :  { %v6636_v18 = vpop.f32.mrf.mxu3  ;;  %v6616_v4 = vpop.f32.mrf.mxu2 }
 0xec5   :  { %v6637_v43 = vadd.f32 %v6636_v18, %v6582_v50  ;;  %v6617_v32 = vadd.f32 %v6616_v4, %v6582_v50 }
 0xec7   :  { %v6683_v54 = vrot.slane %v6637_v43, 4 }
 0xec9   :  { %v6685_v39 = vsel %vm3598_vm12, %v6617_v32, %v6683_v54 }
 0xeca   :  { %6689 = vst [vmem:[%s7399_s20] sm:$0x77] %v6685_v39 }
 0xecb   :  { %6695 = vsyncpa [#allocation3], 1 }
 0xecc   :  { %6696 = vsyncpa [#allocation5], 1 }

</bundles_post_ra>
